<compile_context>
chip_gen: v7x
topology: tpu7x:2x2x1
jax: 0.10.0
libtpu: 0.0.40
codegen_flags: <defaults>
</compile_context>

<pallas_src>
import jax
import jax.numpy as jnp
from jax.experimental import pallas as pl
from jax.experimental.pallas import tpu as pltpu

# ---------- model hyper-parameters (small, consistent with EEGNet_Original.__init__) ----
N_CHANS = 4        # n_chans
N_TIME = 64        # n_time_samples
SRATE = 32         # sampling_rate
F1 = 8
D = 2
F2 = F1 * D

K1 = round(SRATE / 2)                 # temporal conv kernel width  (1, K1)
K3 = round(SRATE / 8)                 # separable depthwise width   (1, K3)
PAD1 = int(round((K1 - 1) / 2)) - 1   # kernel_padding_1[1]
PAD3 = int(round((K3 - 1) / 2))       # kernel_padding_3[1]
POOL1, POOL2 = 4, 8
EPS = 1e-5

TP = N_TIME + 2 * PAD1                # padded width into conv2d
W1 = TP - K1 + 1                      # width after conv2d
P1 = W1 // POOL1                      # width after AvgPool2d (1,4)
WP3 = P1 + 2 * PAD3                   # padded width into separable depthwise conv
W3 = WP3 - K3 + 1                     # width after separable conv
P2 = W3 // POOL2                      # width after AvgPool2d (1,8)
FLAT = F2 * P2
assert FLAT == F2 * round(N_TIME / 32), "dense layer input size mismatch"


def _elu(v):
    return jnp.where(v > 0, v, jnp.exp(jnp.minimum(v, 0.0)) - 1.0)


def _bn_affine(g, be, mu, var):
    s = g / jnp.sqrt(var + EPS)
    return s, be - mu * s


# ------------------------------- fused Pallas kernel ------------------------------------
def eegnet_fused_kernel(x_ref, w1t_ref, bias_ref, m1t_ref, b2t_ref, m2t_ref,
                        wd8_ref, bd8_ref, flat_ref, dense_ref):
    # x_ref: (C*TP, B) — one batch block, batch on lanes.
    bias = bias_ref[...]
    beta = bias[:F2 * W1, :]                 # composed stage-1 bias (per output row)
    gamma = bias[F2 * W1:, :]                # composed stage-2 bias

    x = x_ref[...]

    # conv2d(1,K1) . BN1 . depthwise(C,1) . BN2   — one composed MXU matmul
    y = jnp.dot(w1t_ref[...], x, preferred_element_type=jnp.float32) + beta   # (F2*W1, B)
    y = _elu(y)

    # AvgPool2d(1,4) as matmul
    p1 = jnp.dot(m1t_ref[...], y, preferred_element_type=jnp.float32)         # (F2*P1, B)

    # zero-pad(PAD3) . separable depthwise(1,K3) . pointwise(1,1) . BN3 — composed matmul
    z = jnp.dot(b2t_ref[...], p1, preferred_element_type=jnp.float32) + gamma  # (F2*W3, B)
    z = _elu(z)

    # AvgPool2d(1,8) + flatten ordering as matmul  -> lane-dense (FLAT, B) output
    flat = jnp.dot(m2t_ref[...], z, preferred_element_type=jnp.float32)        # (FLAT, B)
    flat_ref[...] = flat

    # Dense Linear(FLAT, 1): batched MXU matmul, weight padded to 8 rows (row 0 is real).
    dense_ref[...] = (jnp.dot(wd8_ref[...], flat, preferred_element_type=jnp.float32)
                      + bd8_ref[...])                                          # (8, B)


# ------------------------------- glue: compose weights ----------------------------------
def _build_composed(p):
    """Fold conv / BN / pool chains into dense matrices (weight reshuffling only)."""
    s1, h1 = _bn_affine(p['g1'], p['be1'], p['mu1'], p['var1'])
    s2, h2 = _bn_affine(p['g2'], p['be2'], p['mu2'], p['var2'])
    s3, h3 = _bn_affine(p['g3'], p['be3'], p['mu3'], p['var3'])

    f_of_o = jnp.arange(F2) // D                    # depthwise group of output channel o
    w1g, s1g = p['w1'][f_of_o], s1[f_of_o]          # (F2, K1), (F2,)
    b1g, h1g = p['b1'][f_of_o], h1[f_of_o]

    # --- stage 1 composed: A[o,c,k] = s2[o]*w2[o,c]*s1[f]*w1[f,k] , f = o//D ------------
    A = s2[:, None, None] * p['w2'][:, :, None] * (s1g[:, None] * w1g)[:, None, :]
    beta = s2 * (p['w2'].sum(1) * (s1g * b1g + h1g) + p['b2']) + h2             # (F2,)

    tw = jnp.arange(W1)
    tpd = jnp.arange(TP)
    kk = tpd[None, :] - tw[:, None]                                             # (W1, TP)
    band = ((kk >= 0) & (kk < K1)).astype(jnp.float32)
    Akk = A[:, :, jnp.clip(kk, 0, K1 - 1)] * band[None, None]                   # (F2,C,W1,TP)
    w1t = jnp.transpose(Akk, (0, 2, 1, 3)).reshape(F2 * W1, N_CHANS * TP)

    # --- AvgPool2d(1,4), floor mode -----------------------------------------------------
    eye = jnp.eye(F2, dtype=jnp.float32)
    pool1 = (((tw[None, :] // POOL1) == jnp.arange(P1)[:, None])
             & (tw[None, :] < P1 * POOL1)).astype(jnp.float32) / POOL1          # (P1, W1)
    m1t = jnp.einsum('ab,pq->apbq', eye, pool1).reshape(F2 * P1, F2 * W1)

    # --- stage 2 composed: zero-pad . depthwise(1,K3) . pointwise . BN3 ------------------
    t3 = jnp.arange(W3)
    pp = jnp.arange(P1)
    k3 = pp[None, :] - t3[:, None] + PAD3                                       # (W3, P1)
    band3 = ((k3 >= 0) & (k3 < K3)).astype(jnp.float32)
    w3kk = p['w3'][:, jnp.clip(k3, 0, K3 - 1)] * band3[None]                    # (F2,W3,P1)
    b2t = jnp.einsum('oc,ctp->otcp', s3[:, None] * p['w4'], w3kk
                     ).reshape(F2 * W3, F2 * P1)
    gamma = s3 * (p['w4'] @ p['b3'] + p['b4']) + h3                             # (F2,)

    # --- AvgPool2d(1,8) + flatten ordering ----------------------------------------------
    pool2 = (((t3[None, :] // POOL2) == jnp.arange(P2)[:, None])
             & (t3[None, :] < P2 * POOL2)).astype(jnp.float32) / POOL2          # (P2, W3)
    m2t = jnp.einsum('ab,pq->apbq', eye, pool2).reshape(F2 * P2, F2 * W3)

    bias_col = jnp.concatenate([jnp.repeat(beta, W1),
                                jnp.repeat(gamma, W3)]).reshape(-1, 1)          # (1264, 1)
    return w1t, bias_col, m1t, b2t, m2t


# ------------------------------- wrapper -------------------------------------------------
def eegnet_pallas_forward(x, p, block_b=None):
    n = x.shape[0]
    w1t, bias_col, m1t, b2t, m2t = _build_composed(p)

    wd8 = jnp.zeros((8, FLAT), jnp.float32).at[0].set(
        p['wd'].reshape(FLAT).astype(jnp.float32))
    bd8 = jnp.broadcast_to(p['bd'].astype(jnp.float32).reshape(1, 1), (8, 1))

    # Batch block on the lane axis.  128 keeps VMEM modest everywhere; 256/512 is a good
    # choice on v6e/v7x for large batches (MXU 256-alignment), still well under 32 MiB.
    if block_b is None:
        block_b = 256 if n >= 256 else 128
    n_blocks = pl.cdiv(n, block_b)
    n_pad = n_blocks * block_b

    # (n, 1, C, T) -> zero-pad batch & time -> (C*TP, n_pad) with batch on lanes.
    xp = jnp.pad(x[:, 0].astype(jnp.float32),
                 ((0, n_pad - n), (0, 0), (PAD1, PAD1)))             # (n_pad, C, TP)
    x_t = jnp.transpose(xp, (1, 2, 0)).reshape(N_CHANS * TP, n_pad)  # (C*TP, n_pad)

    const2 = lambda shape: pl.BlockSpec(shape, lambda i: (0, 0))

    flat_t, dense8_t = pl.pallas_call(
        eegnet_fused_kernel,
        out_shape=(jax.ShapeDtypeStruct((FLAT, n_pad), jnp.float32),
                   jax.ShapeDtypeStruct((8, n_pad), jnp.float32)),
        grid=(n_blocks,),
        in_specs=[
            pl.BlockSpec((N_CHANS * TP, block_b), lambda i: (0, i)),   # batch block
            const2((F2 * W1, N_CHANS * TP)),                           # W1T
            const2((F2 * W1 + F2 * W3, 1)),                            # packed biases
            const2((F2 * P1, F2 * W1)),                                # M1T
            const2((F2 * W3, F2 * P1)),                                # B2T
            const2((FLAT, F2 * W3)),                                   # M2T
            const2((8, FLAT)),                                         # dense W (padded)
            const2((8, 1)),                                            # dense bias
        ],
        out_specs=(pl.BlockSpec((FLAT, block_b), lambda i: (0, i)),
                   pl.BlockSpec((8, block_b), lambda i: (0, i))),
        compiler_params=pltpu.CompilerParams(
            dimension_semantics=("parallel",),          # shard batch blocks across TCs
            vmem_limit_bytes=32 * 1024 * 1024),         # explicit, safe on v5e/v6e/v7x
    )(x_t, w1t, bias_col, m1t, b2t, m2t, wd8, bd8)

    flat = flat_t[:, :n].T                 # (n, FLAT)   — nn.Flatten output
    dense = dense8_t[0:1, :n].T            # (n, 1)      — nn.Linear output
    return flat, dense


# ------------------------------- pure-JAX reference --------------------------------------
def reference_forward(x, p):
    n = x.shape[0]
    s1, h1 = _bn_affine(p['g1'], p['be1'], p['mu1'], p['var1'])
    s2, h2 = _bn_affine(p['g2'], p['be2'], p['mu2'], p['var2'])
    s3, h3 = _bn_affine(p['g3'], p['be3'], p['mu3'], p['var3'])

    xp = jnp.pad(x[:, 0], ((0, 0), (0, 0), (PAD1, PAD1)))
    win1 = jnp.stack([xp[:, :, k:k + W1] for k in range(K1)], axis=-1)     # (n,C,W1,K1)
    y1 = jnp.einsum('ncwk,fk->nfcw', win1, p['w1']) + p['b1'][None, :, None, None]
    y1 = y1 * s1[None, :, None, None] + h1[None, :, None, None]
    y1g = y1[:, jnp.arange(F2) // D]                                       # (n,F2,C,W1)
    y2 = jnp.einsum('nocw,oc->now', y1g, p['w2']) + p['b2'][None, :, None]
    y2 = _elu(y2 * s2[None, :, None] + h2[None, :, None])
    pool1 = y2[:, :, :P1 * POOL1].reshape(n, F2, P1, POOL1).mean(-1)
    ap = jnp.pad(pool1, ((0, 0), (0, 0), (PAD3, PAD3)))
    win3 = jnp.stack([ap[:, :, k:k + W3] for k in range(K3)], axis=-1)     # (n,F2,W3,K3)
    z1 = jnp.einsum('ncwk,ck->ncw', win3, p['w3']) + p['b3'][None, :, None]
    z2 = jnp.einsum('oc,ncw->now', p['w4'], z1) + p['b4'][None, :, None]
    z2 = _elu(z2 * s3[None, :, None] + h3[None, :, None])
    pool2 = z2[:, :, :P2 * POOL2].reshape(n, F2, P2, POOL2).mean(-1)
    flat = pool2.reshape(n, FLAT)
    dense = flat @ p['wd'].T + p['bd'][None, :]
    return flat, dense


# ------------------------------- deterministic params ------------------------------------
def init_params(key):
    ks = jax.random.split(key, 22)
    nrm = lambda k, shp, s=0.1: jax.random.normal(k, shp, jnp.float32) * s
    uni = lambda k, shp: jax.random.uniform(k, shp, jnp.float32, 0.5, 1.5)
    return dict(
        w1=nrm(ks[0], (F1, K1)), b1=nrm(ks[1], (F1,)),
        g1=uni(ks[2], (F1,)), be1=nrm(ks[3], (F1,), 0.05),
        mu1=nrm(ks[4], (F1,), 0.05), var1=uni(ks[5], (F1,)),
        w2=nrm(ks[6], (F2, N_CHANS)), b2=nrm(ks[7], (F2,)),
        g2=uni(ks[8], (F2,)), be2=nrm(ks[9], (F2,), 0.05),
        mu2=nrm(ks[10], (F2,), 0.05), var2=uni(ks[11], (F2,)),
        w3=nrm(ks[12], (F2, K3)), b3=nrm(ks[13], (F2,)),
        w4=nrm(ks[14], (F2, F2)), b4=nrm(ks[15], (F2,)),
        g3=uni(ks[16], (F2,)), be3=nrm(ks[17], (F2,), 0.05),
        mu3=nrm(ks[18], (F2,), 0.05), var3=uni(ks[19], (F2,)),
        wd=nrm(ks[20], (1, FLAT)), bd=nrm(ks[21], (1,)),
    )


if __name__ == "__main__":
    key = jax.random.PRNGKey(0)
    k_x, k_p = jax.random.split(key)
    params = init_params(k_p)
    x = jax.random.normal(k_x, (2, 1, N_CHANS, N_TIME), dtype=jnp.float32)

    flat, dense = eegnet_pallas_forward(x, params)
    jax.block_until_ready((flat, dense))

    flat_r, dense_r = reference_forward(x, params)
    assert flat.shape == (2, FLAT) and dense.shape == (2, 1)
    assert bool(jnp.allclose(flat, flat_r, atol=1e-3, rtol=1e-3)), "flatten output mismatch"
    assert bool(jnp.allclose(dense, dense_r, atol=1e-3, rtol=1e-3)), "dense output mismatch"
    print("KERNEL_OK")
</pallas_src>

<mosaic_0001>
module attributes {stable_mosaic.version = 11 : i64} {
  func.func @eegnet_fused_kernel(%arg0: i32, %arg1: memref<312x128xf32, #tpu.memory_space<vmem>>, %arg2: memref<1008x312xf32, #tpu.memory_space<vmem>>, %arg3: memref<1264x1xf32, #tpu.memory_space<vmem>>, %arg4: memref<240x1008xf32, #tpu.memory_space<vmem>>, %arg5: memref<256x240xf32, #tpu.memory_space<vmem>>, %arg6: memref<32x256xf32, #tpu.memory_space<vmem>>, %arg7: memref<8x32xf32, #tpu.memory_space<vmem>>, %arg8: memref<8x1xf32, #tpu.memory_space<vmem>>, %arg9: memref<32x128xf32, #tpu.memory_space<vmem>>, %arg10: memref<8x128xf32, #tpu.memory_space<vmem>>) attributes {dimension_semantics = [#tpu.dimension_semantics<parallel>], iteration_bounds = array<i64: 1>, scalar_prefetch = 0 : i64, scratch_operands = 0 : i64, tpu.core_type = #tpu.core_type<tc>, window_params = [{transform_indices = @transform_0, window_bounds = array<i64: 312, 128>}, {pipeline_mode = #tpu.pipeline_mode<synchronous>, transform_indices = @transform_1, window_bounds = array<i64: 1008, 312>}, {pipeline_mode = #tpu.pipeline_mode<synchronous>, transform_indices = @transform_2, window_bounds = array<i64: 1264, 1>}, {pipeline_mode = #tpu.pipeline_mode<synchronous>, transform_indices = @transform_3, window_bounds = array<i64: 240, 1008>}, {pipeline_mode = #tpu.pipeline_mode<synchronous>, transform_indices = @transform_4, window_bounds = array<i64: 256, 240>}, {pipeline_mode = #tpu.pipeline_mode<synchronous>, transform_indices = @transform_5, window_bounds = array<i64: 32, 256>}, {pipeline_mode = #tpu.pipeline_mode<synchronous>, transform_indices = @transform_6, window_bounds = array<i64: 8, 32>}, {pipeline_mode = #tpu.pipeline_mode<synchronous>, transform_indices = @transform_7, window_bounds = array<i64: 8, 1>}, {transform_indices = @transform_8, window_bounds = array<i64: 32, 128>}, {transform_indices = @transform_9, window_bounds = array<i64: 8, 128>}]} {
    %c0 = arith.constant 0 : index
    %c0_0 = arith.constant 0 : index
    %0 = vector.load %arg3[%c0, %c0_0] : memref<1264x1xf32, #tpu.memory_space<vmem>>, vector<1264x1xf32>
    %1 = vector.extract_strided_slice %0 {offsets = [0, 0], sizes = [1008, 1], strides = [1, 1]} : vector<1264x1xf32> to vector<1008x1xf32>
    %2 = vector.extract_strided_slice %0 {offsets = [1008, 0], sizes = [256, 1], strides = [1, 1]} : vector<1264x1xf32> to vector<256x1xf32>
    %c0_1 = arith.constant 0 : index
    %c0_2 = arith.constant 0 : index
    %3 = vector.load %arg1[%c0_1, %c0_2] : memref<312x128xf32, #tpu.memory_space<vmem>>, vector<312x128xf32>
    %c0_3 = arith.constant 0 : index
    %c0_4 = arith.constant 0 : index
    %4 = vector.load %arg2[%c0_3, %c0_4] : memref<1008x312xf32, #tpu.memory_space<vmem>>, vector<1008x312xf32>
    %cst = arith.constant dense<0.000000e+00> : vector<1008x128xf32>
    %5 = tpu.matmul %4, %3, %cst {dimension_numbers = #tpu.dot_dimension_numbers<[1], [0], [0], [1], [0, 0, 1, 1], [], []>} : vector<1008x312xf32>, vector<312x128xf32>, vector<1008x128xf32> -> vector<1008x128xf32>
    %6 = vector.broadcast %1 : vector<1008x1xf32> to vector<1008x128xf32>
    %7 = arith.addf %5, %6 : vector<1008x128xf32>
    %cst_5 = arith.constant 0.000000e+00 : f32
    %8 = vector.broadcast %cst_5 : f32 to vector<1008x128xf32>
    %9 = arith.cmpf ogt, %7, %8 : vector<1008x128xf32>
    %cst_6 = arith.constant 0.000000e+00 : f32
    %10 = vector.broadcast %cst_6 : f32 to vector<1008x128xf32>
    %11 = arith.minimumf %7, %10 : vector<1008x128xf32>
    %12 = math.exp %11 : vector<1008x128xf32>
    %cst_7 = arith.constant 1.000000e+00 : f32
    %13 = vector.broadcast %cst_7 : f32 to vector<1008x128xf32>
    %14 = arith.subf %12, %13 : vector<1008x128xf32>
    %15 = arith.select %9, %7, %14 : vector<1008x128xi1>, vector<1008x128xf32>
    %c0_8 = arith.constant 0 : index
    %c0_9 = arith.constant 0 : index
    %16 = vector.load %arg4[%c0_8, %c0_9] : memref<240x1008xf32, #tpu.memory_space<vmem>>, vector<240x1008xf32>
    %cst_10 = arith.constant dense<0.000000e+00> : vector<240x128xf32>
    %17 = tpu.matmul %16, %15, %cst_10 {dimension_numbers = #tpu.dot_dimension_numbers<[1], [0], [0], [1], [0, 0, 1, 1], [], []>} : vector<240x1008xf32>, vector<1008x128xf32>, vector<240x128xf32> -> vector<240x128xf32>
    %c0_11 = arith.constant 0 : index
    %c0_12 = arith.constant 0 : index
    %18 = vector.load %arg5[%c0_11, %c0_12] : memref<256x240xf32, #tpu.memory_space<vmem>>, vector<256x240xf32>
    %cst_13 = arith.constant dense<0.000000e+00> : vector<256x128xf32>
    %19 = tpu.matmul %18, %17, %cst_13 {dimension_numbers = #tpu.dot_dimension_numbers<[1], [0], [0], [1], [0, 0, 1, 1], [], []>} : vector<256x240xf32>, vector<240x128xf32>, vector<256x128xf32> -> vector<256x128xf32>
    %20 = vector.broadcast %2 : vector<256x1xf32> to vector<256x128xf32>
    %21 = arith.addf %19, %20 : vector<256x128xf32>
    %cst_14 = arith.constant 0.000000e+00 : f32
    %22 = vector.broadcast %cst_14 : f32 to vector<256x128xf32>
    %23 = arith.cmpf ogt, %21, %22 : vector<256x128xf32>
    %cst_15 = arith.constant 0.000000e+00 : f32
    %24 = vector.broadcast %cst_15 : f32 to vector<256x128xf32>
    %25 = arith.minimumf %21, %24 : vector<256x128xf32>
    %26 = math.exp %25 : vector<256x128xf32>
    %cst_16 = arith.constant 1.000000e+00 : f32
    %27 = vector.broadcast %cst_16 : f32 to vector<256x128xf32>
    %28 = arith.subf %26, %27 : vector<256x128xf32>
    %29 = arith.select %23, %21, %28 : vector<256x128xi1>, vector<256x128xf32>
    %c0_17 = arith.constant 0 : index
    %c0_18 = arith.constant 0 : index
    %30 = vector.load %arg6[%c0_17, %c0_18] : memref<32x256xf32, #tpu.memory_space<vmem>>, vector<32x256xf32>
    %cst_19 = arith.constant dense<0.000000e+00> : vector<32x128xf32>
    %31 = tpu.matmul %30, %29, %cst_19 {dimension_numbers = #tpu.dot_dimension_numbers<[1], [0], [0], [1], [0, 0, 1, 1], [], []>} : vector<32x256xf32>, vector<256x128xf32>, vector<32x128xf32> -> vector<32x128xf32>
    %c0_20 = arith.constant 0 : index
    %c0_21 = arith.constant 0 : index
    %32 = vector.load %arg9[%c0_20, %c0_21] : memref<32x128xf32, #tpu.memory_space<vmem>>, vector<32x128xf32>
    tpu.vector_store %arg9[%c0_20, %c0_21], %31 {strides = array<i32>} : memref<32x128xf32, #tpu.memory_space<vmem>>, vector<32x128xf32>,
    %c0_22 = arith.constant 0 : index
    %c0_23 = arith.constant 0 : index
    %33 = vector.load %arg7[%c0_22, %c0_23] : memref<8x32xf32, #tpu.memory_space<vmem>>, vector<8x32xf32>
    %cst_24 = arith.constant dense<0.000000e+00> : vector<8x128xf32>
    %34 = tpu.matmul %33, %31, %cst_24 {dimension_numbers = #tpu.dot_dimension_numbers<[1], [0], [0], [1], [0, 0, 1, 1], [], []>} : vector<8x32xf32>, vector<32x128xf32>, vector<8x128xf32> -> vector<8x128xf32>
    %c0_25 = arith.constant 0 : index
    %c0_26 = arith.constant 0 : index
    %35 = vector.load %arg8[%c0_25, %c0_26] : memref<8x1xf32, #tpu.memory_space<vmem>>, vector<8x1xf32>
    %36 = vector.broadcast %35 : vector<8x1xf32> to vector<8x128xf32>
    %37 = arith.addf %34, %36 : vector<8x128xf32>
    %c0_27 = arith.constant 0 : index
    %c0_28 = arith.constant 0 : index
    %38 = vector.load %arg10[%c0_27, %c0_28] : memref<8x128xf32, #tpu.memory_space<vmem>>, vector<8x128xf32>
    tpu.vector_store %arg10[%c0_27, %c0_28], %37 {strides = array<i32>} : memref<8x128xf32, #tpu.memory_space<vmem>>, vector<8x128xf32>,
    return
  }
  func.func @transform_0(%arg0: i32) -> (i32, i32) {
    %c0_i32 = arith.constant 0 : i32
    %c0_i32_0 = arith.constant 0 : i32
    return %c0_i32, %arg0 : i32, i32
  }
  func.func @transform_1(%arg0: i32) -> (i32, i32) {
    %c0_i32 = arith.constant 0 : i32
    %c0_i32_0 = arith.constant 0 : i32
    %c0_i32_1 = arith.constant 0 : i32
    return %c0_i32, %c0_i32_0 : i32, i32
  }
  func.func @transform_2(%arg0: i32) -> (i32, i32) {
    %c0_i32 = arith.constant 0 : i32
    %c0_i32_0 = arith.constant 0 : i32
    %c0_i32_1 = arith.constant 0 : i32
    return %c0_i32, %c0_i32_0 : i32, i32
  }
  func.func @transform_3(%arg0: i32) -> (i32, i32) {
    %c0_i32 = arith.constant 0 : i32
    %c0_i32_0 = arith.constant 0 : i32
    %c0_i32_1 = arith.constant 0 : i32
    return %c0_i32, %c0_i32_0 : i32, i32
  }
  func.func @transform_4(%arg0: i32) -> (i32, i32) {
    %c0_i32 = arith.constant 0 : i32
    %c0_i32_0 = arith.constant 0 : i32
    %c0_i32_1 = arith.constant 0 : i32
    return %c0_i32, %c0_i32_0 : i32, i32
  }
  func.func @transform_5(%arg0: i32) -> (i32, i32) {
    %c0_i32 = arith.constant 0 : i32
    %c0_i32_0 = arith.constant 0 : i32
    %c0_i32_1 = arith.constant 0 : i32
    return %c0_i32, %c0_i32_0 : i32, i32
  }
  func.func @transform_6(%arg0: i32) -> (i32, i32) {
    %c0_i32 = arith.constant 0 : i32
    %c0_i32_0 = arith.constant 0 : i32
    %c0_i32_1 = arith.constant 0 : i32
    return %c0_i32, %c0_i32_0 : i32, i32
  }
  func.func @transform_7(%arg0: i32) -> (i32, i32) {
    %c0_i32 = arith.constant 0 : i32
    %c0_i32_0 = arith.constant 0 : i32
    %c0_i32_1 = arith.constant 0 : i32
    return %c0_i32, %c0_i32_0 : i32, i32
  }
  func.func @transform_8(%arg0: i32) -> (i32, i32) {
    %c0_i32 = arith.constant 0 : i32
    %c0_i32_0 = arith.constant 0 : i32
    return %c0_i32, %arg0 : i32, i32
  }
  func.func @transform_9(%arg0: i32) -> (i32, i32) {
    %c0_i32 = arith.constant 0 : i32
    %c0_i32_0 = arith.constant 0 : i32
    return %c0_i32, %arg0 : i32, i32
  }
}

</mosaic_0001>

<bundles_post_ra>
// kernel: tpu_custom_call.1
= control target key start
LH: loop header
LB: loop body
LE: loop exit
PB: predicated region body
PF: predicated region fallthrough
CT: control target
= control target key end

     0   :  { %15 = vsyncpa [#allocation3], 0  ;;  %v7529_v3 = vmov 0   ;;  %v11918_v5 = vmov 0.0|0.0   ;;  %vm1238_vm0 = vcmask 457728   ;;  %s11908_s0 = inlined_call_operand.vmem [shape: f32[312,128], index: 0, kind: input, shape index: {}]   ;;  %s11909_s1 = inlined_call_operand.vmem [shape: f32[1008,312], index: 1, kind: input, shape index: {}]   ;;  %s11910_s2 = inlined_call_operand.vmem [shape: f32[1264,1], index: 2, kind: input, shape index: {}]   ;;  %s11911_s3 = inlined_call_operand.vmem [shape: f32[240,1008], index: 3, kind: input, shape index: {}]   ;;  %s11912_s4 = inlined_call_operand.vmem [shape: f32[256,240], index: 4, kind: input, shape index: {}]   ;;  %s11913_s5 = inlined_call_operand.vmem [shape: f32[32,256], index: 5, kind: input, shape index: {}]   ;;  %s11914_s6 = inlined_call_operand.vmem [shape: f32[8,32], index: 6, kind: input, shape index: {}]   ;;  %s11915_s7 = inlined_call_operand.vmem [shape: f32[8,1], index: 7, kind: input, shape index: {}]   ;;  %s11916_s8 = inlined_call_operand.hbm [shape: f32[32,128], index: 8, kind: output, shape index: {0}]   ;;  %s11917_s9 = inlined_call_operand.hbm [shape: f32[8,128], index: 9, kind: output, shape index: {1}]  }
   0x1   :  { %v35_v0 = vld [vmem:[%s11910_s2 + $0x10] sm:$0xff]  ;;  %v33_v1 = vld [vmem:[%s11910_s2] sm:$0xff]  ;;  %7164 = vset.pattern.permute.xlu1 %v7529_v3  ;;  %7163 = vset.pattern.permute.xlu0 %v7529_v3  ;;  %v192_v4 = vld [vmem:[%s11908_s0 + $0x8] sm:$0xff] }
   0x2   :  { %v191_v2 = vld [vmem:[%s11908_s0] sm:$0xff]  ;;  %6643 = vmatprep.subr.bf16.mxu0 %v11918_v5  ;;  %620 = vperm.xlu1 %7164, %v35_v0   ;;  %v193_v7 = vld [vmem:[%s11908_s0 + $0x10] sm:$0xff]  ;;  %v194_v8 = vld [vmem:[%s11908_s0 + $0x18] sm:$0xff] }
   0x3   :  { %v6644_v6 = vpack.c.bf16 %v192_v4, %v191_v2  ;;  %610 = vperm.xlu0 %7163, %v33_v1   ;;  %v36_v9 = vld [vmem:[%s11910_s2 + $0x18] sm:$0xff]  ;;  %v34_v10 = vld [vmem:[%s11910_s2 + $0x8] sm:$0xff]  ;;  %v6647_v11 = vpack.c.bf16 %v194_v8, %v193_v7  ;;  %v195_v12 = vld [vmem:[%s11908_s0 + $0x20] sm:$0xff] }
   0x4   :  { %v196_v13 = vld [vmem:[%s11908_s0 + $0x28] sm:$0xff]  ;;  %v37_v15 = vld [vmem:[%s11910_s2 + $0x20] sm:$0xff]  ;;  %v197_v17 = vld [vmem:[%s11908_s0 + $0x30] sm:$0xff] }
   0x5   :  { %6645 = vmatpush1.bf16.msra.mxu0 %v6644_v6  ;;  %v38_v14 = vld [vmem:[%s11910_s2 + $0x28] sm:$0xff]  ;;  %v6650_v16 = vpack.c.bf16 %v196_v13, %v195_v12  ;;  %v198_v18 = vld [vmem:[%s11908_s0 + $0x38] sm:$0xff]  ;;  %v39_v20 = vld [vmem:[%s11910_s2 + $0x30] sm:$0xff] }
   0x6   :  { %6646 = vmatprep.subr.bf16.mxu0 %v11918_v5  ;;  %625 = vperm.xlu1 %7164, %v36_v9   ;;  %v40_v19 = vld [vmem:[%s11910_s2 + $0x38] sm:$0xff]  ;;  %v6653_v21 = vpack.c.bf16 %v198_v18, %v197_v17  ;;  %v199_v22 = vld [vmem:[%s11908_s0 + $0x40] sm:$0xff]  ;;  %v200_v23 = vld [vmem:[%s11908_s0 + $0x48] sm:$0xff] }
   0x7   :  { %615 = vperm.xlu0 %7163, %v34_v10   ;;  %v42_v24 = vld [vmem:[%s11910_s2 + $0x48] sm:$0xff]  ;;  %v41_v25 = vld [vmem:[%s11910_s2 + $0x40] sm:$0xff]  ;;  %v6656_v26 = vpack.c.bf16 %v200_v23, %v199_v22  ;;  %v201_v27 = vld [vmem:[%s11908_s0 + $0x50] sm:$0xff] }
   0x8   :  { %v202_v28 = vld [vmem:[%s11908_s0 + $0x58] sm:$0xff]  ;;  %v223_v29 = vld [vmem:[%s11908_s0 + $0x100] sm:$0xff]  ;;  %v224_v30 = vld [vmem:[%s11908_s0 + $0x108] sm:$0xff] }
   0x9   :  { %6648 = vmatpush1.bf16.msra.mxu0 %v6647_v11  ;;  %v6691_v31 = vpack.c.bf16 %v224_v30, %v223_v29  ;;  %v44_v32 = vld [vmem:[%s11910_s2 + $0x58] sm:$0xff]  ;;  %v225_v33 = vld [vmem:[%s11908_s0 + $0x110] sm:$0xff]  ;;  %v6659_v36 = vpack.c.bf16 %v202_v28, %v201_v27  ;;  %v203_v37 = vld [vmem:[%s11908_s0 + $0x60] sm:$0xff] }
   0xa   :  { %6649 = vmatprep.subr.bf16.mxu0 %v11918_v5  ;;  %635 = vperm.xlu1 %7164, %v38_v14   ;;  %v226_v34 = vld [vmem:[%s11908_s0 + $0x118] sm:$0xff]  ;;  %v43_v35 = vld [vmem:[%s11910_s2 + $0x50] sm:$0xff]  ;;  %v204_v39 = vld [vmem:[%s11908_s0 + $0x68] sm:$0xff] }
   0xb   :  { %630 = vperm.xlu0 %7163, %v37_v15   ;;  %6692 = vmatprep.subr.bf16.mxu1 %v6691_v31  ;;  %v6695_v38 = vpack.c.bf16 %v226_v34, %v225_v33  ;;  %v227_v40 = vld [vmem:[%s11908_s0 + $0x120] sm:$0xff]  ;;  %v228_v41 = vld [vmem:[%s11908_s0 + $0x128] sm:$0xff]  ;;  %v6662_v46 = vpack.c.bf16 %v204_v39, %v203_v37  ;;  %v232_v47 = vld [vmem:[%s11909_s1 + $0x10] sm:$0xff] }
   0xc   :  { %6694 = vmatpush3.bf16.msra.mxu1 %v6691_v31  ;;  %v6699_v42 = vpack.c.bf16 %v228_v41, %v227_v40  ;;  %v46_v43 = vld [vmem:[%s11910_s2 + $0x68] sm:$0xff]  ;;  %v45_v45 = vld [vmem:[%s11910_s2 + $0x60] sm:$0xff]  ;;  %v205_v48 = vld [vmem:[%s11908_s0 + $0x70] sm:$0xff]  ;;  %6443 = vmatprep.mubr.msk.f32.mxu1 %vm1238_vm0, %v232_v47 }
   0xd   :  { %6651 = vmatpush1.bf16.msra.mxu0 %v6650_v16  ;;  %6696 = vmatprep.subr.bf16.mxu1 %v6695_v38  ;;  %v231_v44 = vld [vmem:[%s11909_s1 + $0x8] sm:$0xff]  ;;  %v206_v49 = vld [vmem:[%s11908_s0 + $0x78] sm:$0xff]  ;;  %v229_v51 = vld [vmem:[%s11908_s0 + $0x130] sm:$0xff] }
   0xe   :  { %6652 = vmatprep.subr.bf16.mxu0 %v11918_v5  ;;  %645 = vperm.xlu1 %7164, %v40_v19   ;;  %v48_v50 = vld [vmem:[%s11910_s2 + $0x78] sm:$0xff]  ;;  %v47_v52 = vld [vmem:[%s11910_s2 + $0x70] sm:$0xff]  ;;  %v6665_v53 = vpack.c.bf16 %v206_v49, %v205_v48  ;;  %v207_v54 = vld [vmem:[%s11908_s0 + $0x80] sm:$0xff] }
   0xf   :  { %640 = vperm.xlu0 %7163, %v39_v20   ;;  %1681 = vmatprep.mubr.f32.mxu0 %v231_v44  ;;  %v208_v55 = vld [vmem:[%s11908_s0 + $0x88] sm:$0xff]  ;;  %v49_v58 = vld [vmem:[%s11910_s2 + $0x80] sm:$0xff]  ;;  %v209_v61 = vld [vmem:[%s11908_s0 + $0x90] sm:$0xff] }
  0x10   :  { %6698 = vmatpush3.bf16.msra.mxu1 %v6695_v38  ;;  %v50_v56 = vld [vmem:[%s11910_s2 + $0x88] sm:$0xff]  ;;  %v6668_v59 = vpack.c.bf16 %v208_v55, %v207_v54  ;;  %v238_v60 = vld [vmem:[%s11909_s1 + $0x40] sm:$0xff]  ;;  %v210_v62 = vld [vmem:[%s11908_s0 + $0x98] sm:$0xff] }
  0x11   :  { %6654 = vmatpush1.bf16.msra.mxu0 %v6653_v21  ;;  %6700 = vmatprep.subr.bf16.mxu1 %v6699_v42  ;;  %v235_v57 = vld [vmem:[%s11909_s1 + $0x28] sm:$0xff]  ;;  %v52_v63 = vld [vmem:[%s11910_s2 + $0x98] sm:$0xff]  ;;  %v51_v1 = vld [vmem:[%s11910_s2 + $0x90] sm:$0xff]  ;;  %v6671_v2 = vpack.c.bf16 %v210_v62, %v209_v61 }
  0x12   :  { %6655 = vmatprep.subr.bf16.mxu0 %v11918_v5  ;;  %655 = vperm.xlu1 %7164, %v42_v24   ;;  %v241_v0 = vld [vmem:[%s11909_s1 + $0x58] sm:$0xff]  ;;  %v244_v3 = vld [vmem:[%s11909_s1 + $0x70] sm:$0xff]  ;;  %v211_v4 = vld [vmem:[%s11908_s0 + $0xa0] sm:$0xff] }
  0x13   :  { %650 = vperm.xlu0 %7163, %v41_v25   ;;  %v212_v6 = vld [vmem:[%s11908_s0 + $0xa8] sm:$0xff]  ;;  %v53_v9 = vld [vmem:[%s11910_s2 + $0xa0] sm:$0xff]  ;;  %v213_v12 = vld [vmem:[%s11908_s0 + $0xb0] sm:$0xff] }
  0x14   :  { %6702 = vmatpush3.bf16.msra.mxu1 %v6699_v42  ;;  %v54_v7 = vld [vmem:[%s11910_s2 + $0xa8] sm:$0xff]  ;;  %v6674_v10 = vpack.c.bf16 %v212_v6, %v211_v4  ;;  %v250_v11 = vld [vmem:[%s11909_s1 + $0xa0] sm:$0xff]  ;;  %v214_v13 = vld [vmem:[%s11908_s0 + $0xb8] sm:$0xff] }
  0x15   :  { %6657 = vmatpush1.bf16.msra.mxu0 %v6656_v26  ;;  %6441 = vmatprep.subr.mxu1 %v229_v51  ;;  %v247_v8 = vld [vmem:[%s11909_s1 + $0x88] sm:$0xff]  ;;  %v56_v14 = vld [vmem:[%s11910_s2 + $0xb8] sm:$0xff]  ;;  %v55_v16 = vld [vmem:[%s11910_s2 + $0xb0] sm:$0xff]  ;;  %v6677_v17 = vpack.c.bf16 %v214_v13, %v213_v12 }
  0x16   :  { %6658 = vmatprep.subr.bf16.mxu0 %v11918_v5  ;;  %665 = vperm.xlu1 %7164, %v44_v32   ;;  %v253_v15 = vld [vmem:[%s11909_s1 + $0xb8] sm:$0xff]  ;;  %v256_v18 = vld [vmem:[%s11909_s1 + $0xd0] sm:$0xff]  ;;  %v215_v19 = vld [vmem:[%s11908_s0 + $0xc0] sm:$0xff] }
  0x17   :  { %660 = vperm.xlu0 %7163, %v43_v35   ;;  %v216_v20 = vld [vmem:[%s11908_s0 + $0xc8] sm:$0xff]  ;;  %v57_v23 = vld [vmem:[%s11910_s2 + $0xc0] sm:$0xff]  ;;  %v217_v26 = vld [vmem:[%s11908_s0 + $0xd0] sm:$0xff] }
  0x18   :  { %6442 = vmatpush3.msra.mxu1 %v229_v51  ;;  %v58_v21 = vld [vmem:[%s11910_s2 + $0xc8] sm:$0xff]  ;;  %v6680_v24 = vpack.c.bf16 %v216_v20, %v215_v19  ;;  %v262_v25 = vld [vmem:[%s11909_s1 + $0x100] sm:$0xff]  ;;  %v218_v27 = vld [vmem:[%s11908_s0 + $0xd8] sm:$0xff] }
  0x19   :  { %6660 = vmatpush1.bf16.msra.mxu0 %v6659_v36  ;;  %6444 = vmatmul.mubr.msk.f32.vlgmr.msra.gmra.mrb[0].mxu1 %vm1238_vm0, %v235_v57  ;;  %v259_v22 = vld [vmem:[%s11909_s1 + $0xe8] sm:$0xff]  ;;  %v60_v28 = vld [vmem:[%s11910_s2 + $0xd8] sm:$0xff]  ;;  %v59_v30 = vld [vmem:[%s11910_s2 + $0xd0] sm:$0xff]  ;;  %v6683_v31 = vpack.c.bf16 %v218_v27, %v217_v26 }
  0x1a   :  { %6661 = vmatprep.subr.bf16.mxu0 %v11918_v5  ;;  %675 = vperm.xlu1 %7164, %v46_v43   ;;  %v265_v29 = vld [vmem:[%s11909_s1 + $0x118] sm:$0xff]  ;;  %v268_v32 = vld [vmem:[%s11909_s1 + $0x130] sm:$0xff]  ;;  %v219_v33 = vld [vmem:[%s11908_s0 + $0xe0] sm:$0xff] }
  0x1b   :  { %670 = vperm.xlu0 %7163, %v45_v45   ;;  %6446 = vmatprep.mubr.msk.f32.mxu1 %vm1238_vm0, %v238_v60  ;;  %v220_v34 = vld [vmem:[%s11908_s0 + $0xe8] sm:$0xff]  ;;  %v61_v37 = vld [vmem:[%s11910_s2 + $0xe0] sm:$0xff]  ;;  %v221_v40 = vld [vmem:[%s11908_s0 + $0xf0] sm:$0xff] }
  0x1c   :  { %6703 = vmatprep.subr.bf16.mxu1 %v11918_v5  ;;  %v62_v35 = vld [vmem:[%s11910_s2 + $0xe8] sm:$0xff]  ;;  %v6686_v38 = vpack.c.bf16 %v220_v34, %v219_v33  ;;  %v274_v39 = vld [vmem:[%s11909_s1 + $0x160] sm:$0xff]  ;;  %v222_v41 = vld [vmem:[%s11908_s0 + $0xf8] sm:$0xff] }
  0x1d   :  { %6663 = vmatpush1.bf16.msra.mxu0 %v6662_v46  ;;  %6447 = vmatmul.mubr.msk.f32.gmra.mrb[2].mxu1 %vm1238_vm0, %v241_v0  ;;  %v271_v36 = vld [vmem:[%s11909_s1 + $0x148] sm:$0xff]  ;;  %v64_v42 = vld [vmem:[%s11910_s2 + $0xf8] sm:$0xff]  ;;  %v63_v44 = vld [vmem:[%s11910_s2 + $0xf0] sm:$0xff]  ;;  %v6689_v45 = vpack.c.bf16 %v222_v41, %v221_v40 }
  0x1e   :  { %6664 = vmatprep.subr.bf16.mxu0 %v11918_v5  ;;  %685 = vperm.xlu1 %7164, %v48_v50   ;;  %v277_v43 = vld [vmem:[%s11909_s1 + $0x178] sm:$0xff]  ;;  %v280_v46 = vld [vmem:[%s11909_s1 + $0x190] sm:$0xff]  ;;  %v66_v47 = vld [vmem:[%s11910_s2 + $0x108] sm:$0xff] }
  0x1f   :  { %680 = vperm.xlu0 %7163, %v47_v52   ;;  %6449 = vmatprep.mubr.msk.f32.mxu1 %vm1238_vm0, %v244_v3  ;;  %v283_v48 = vld [vmem:[%s11909_s1 + $0x1a8] sm:$0xff]  ;;  %v230_v49 = vld [vmem:[%s11909_s1] sm:$0xff]  ;;  %v289_v54 = vld [vmem:[%s11909_s1 + $0x1d8] sm:$0xff] }
  0x20   :  { %v65_v50 = vld [vmem:[%s11910_s2 + $0x100] sm:$0xff]  ;;  %v233_v55 = vld [vmem:[%s11909_s1 + $0x18] sm:$0xff]  ;;  %v295_v60 = vld [vmem:[%s11909_s1 + $0x208] sm:$0xff] }
  0x21   :  { %6666 = vmatpush1.bf16.msra.mxu0 %v6665_v53  ;;  %6450 = vmatmul.mubr.msk.f32.gmra.mrb[4].mxu1 %vm1238_vm0, %v247_v8  ;;  %v234_v51 = vld [vmem:[%s11909_s1 + $0x20] sm:$0xff]  ;;  %v68_v53 = vld [vmem:[%s11910_s2 + $0x118] sm:$0xff]  ;;  %v236_v61 = vld [vmem:[%s11909_s1 + $0x30] sm:$0xff] }
  0x22   :  { %6667 = vmatprep.subr.bf16.mxu0 %v11918_v5  ;;  %695 = vperm.xlu1 %7164, %v50_v56   ;;  %v286_v52 = vld [vmem:[%s11909_s1 + $0x1c0] sm:$0xff]  ;;  %v67_v56 = vld [vmem:[%s11910_s2 + $0x110] sm:$0xff]  ;;  %v237_v57 = vld [vmem:[%s11909_s1 + $0x38] sm:$0xff] }
  0x23   :  { %690 = vperm.xlu0 %7163, %v49_v58   ;;  %6452 = vmatprep.mubr.msk.f32.mxu1 %vm1238_vm0, %v250_v11  ;;  %v292_v58 = vld [vmem:[%s11909_s1 + $0x1f0] sm:$0xff]  ;;  %v69_v62 = vld [vmem:[%s11910_s2 + $0x120] sm:$0xff]  ;;  %v239_v3 = vld [vmem:[%s11909_s1 + $0x48] sm:$0xff] }
  0x24   :  { %v298_v0 = vld [vmem:[%s11909_s1 + $0x220] sm:$0xff]  ;;  %v71_v4 = vld [vmem:[%s11910_s2 + $0x130] sm:$0xff]  ;;  %v243_v6 = vld [vmem:[%s11909_s1 + $0x68] sm:$0xff] }
  0x25   :  { %6669 = vmatpush1.bf16.msra.mxu0 %v6668_v59  ;;  %6453 = vmatmul.mubr.msk.f32.gmra.mrb[6].mxu1 %vm1238_vm0, %v253_v15  ;;  %v70_v59 = vld [vmem:[%s11910_s2 + $0x128] sm:$0xff]  ;;  %v73_v11 = vld [vmem:[%s11910_s2 + $0x140] sm:$0xff]  ;;  %v313_v15 = vld [vmem:[%s11909_s1 + $0x298] sm:$0xff] }
  0x26   :  { %6670 = vmatprep.subr.bf16.mxu0 %v11918_v5  ;;  %705 = vperm.xlu1 %7164, %v52_v63   ;;  %v240_v63 = vld [vmem:[%s11909_s1 + $0x50] sm:$0xff]  ;;  %v74_v8 = vld [vmem:[%s11910_s2 + $0x148] sm:$0xff]  ;;  %v246_v12 = vld [vmem:[%s11909_s1 + $0x80] sm:$0xff] }
  0x27   :  { %700 = vperm.xlu0 %7163, %v51_v1   ;;  %6455 = vmatprep.mubr.msk.f32.mxu1 %vm1238_vm0, %v256_v18  ;;  %v72_v1 = vld [vmem:[%s11910_s2 + $0x138] sm:$0xff]  ;;  %v310_v13 = vld [vmem:[%s11909_s1 + $0x280] sm:$0xff]  ;;  %v316_v19 = vld [vmem:[%s11909_s1 + $0x2b0] sm:$0xff] }
  0x28   :  { %v249_v18 = vld [vmem:[%s11909_s1 + $0x98] sm:$0xff]  ;;  %v78_v20 = vld [vmem:[%s11910_s2 + $0x168] sm:$0xff] }
  0x29   :  { %6672 = vmatpush1.bf16.msra.mxu0 %v6671_v2  ;;  %6456 = vmatmul.mubr.msk.f32.gmra.mrb[8].mxu1 %vm1238_vm0, %v259_v22  ;;  %v301_v2 = vld [vmem:[%s11909_s1 + $0x238] sm:$0xff] }
  0x2a   :  { %6673 = vmatprep.subr.bf16.mxu0 %v11918_v5  ;;  %715 = vperm.xlu1 %7164, %v54_v7   ;;  %v304_v7 = vld [vmem:[%s11909_s1 + $0x250] sm:$0xff] }
  0x2b   :  { %710 = vperm.xlu0 %7163, %v53_v9   ;;  %6458 = vmatprep.mubr.msk.f32.mxu1 %vm1238_vm0, %v262_v25  ;;  %v307_v9 = vld [vmem:[%s11909_s1 + $0x268] sm:$0xff] }
  0x2d   :  { %6675 = vmatpush1.bf16.msra.mxu0 %v6674_v10  ;;  %6459 = vmatmul.mubr.msk.f32.gmra.mrb[10].mxu1 %vm1238_vm0, %v265_v29  ;;  %v242_v10 = vld [vmem:[%s11909_s1 + $0x60] sm:$0xff] }
  0x2e   :  { %6676 = vmatprep.subr.bf16.mxu0 %v11918_v5  ;;  %725 = vperm.xlu1 %7164, %v56_v14   ;;  %v76_v14 = vld [vmem:[%s11910_s2 + $0x158] sm:$0xff] }
  0x2f   :  { %720 = vperm.xlu0 %7163, %v55_v16   ;;  %6461 = vmatprep.mubr.msk.f32.mxu1 %vm1238_vm0, %v268_v32  ;;  %v245_v16 = vld [vmem:[%s11909_s1 + $0x78] sm:$0xff] }
  0x31   :  { %6678 = vmatpush1.bf16.msra.mxu0 %v6677_v17  ;;  %6462 = vmatmul.mubr.msk.f32.gmra.mrb[12].mxu1 %vm1238_vm0, %v271_v36  ;;  %v75_v17 = vld [vmem:[%s11910_s2 + $0x150] sm:$0xff] }
  0x32   :  { %6679 = vmatprep.subr.bf16.mxu0 %v11918_v5  ;;  %735 = vperm.xlu1 %7164, %v58_v21   ;;  %v319_v21 = vld [vmem:[%s11909_s1 + $0x2c8] sm:$0xff] }
  0x33   :  { %730 = vperm.xlu0 %7163, %v57_v23   ;;  %6464 = vmatprep.mubr.msk.f32.mxu1 %vm1238_vm0, %v274_v39 }
  0x35   :  { %6681 = vmatpush1.bf16.msra.mxu0 %v6680_v24  ;;  %6465 = vmatmul.mubr.msk.f32.gmra.mrb[14].mxu1 %vm1238_vm0, %v277_v43 }
  0x36   :  { %6682 = vmatprep.subr.bf16.mxu0 %v11918_v5  ;;  %745 = vperm.xlu1 %7164, %v60_v28  }
  0x37   :  { %740 = vperm.xlu0 %7163, %v59_v30   ;;  %6467 = vmatprep.mubr.msk.f32.mxu1 %vm1238_vm0, %v280_v46 }
  0x39   :  { %6684 = vmatpush1.bf16.msra.mxu0 %v6683_v31  ;;  %6468 = vmatmul.mubr.msk.f32.gmra.mrb[16].mxu1 %vm1238_vm0, %v283_v48 }
  0x3a   :  { %6685 = vmatprep.subr.bf16.mxu0 %v11918_v5  ;;  %755 = vperm.xlu1 %7164, %v62_v35  }
  0x3b   :  { %750 = vperm.xlu0 %7163, %v61_v37   ;;  %6470 = vmatprep.mubr.msk.f32.mxu1 %vm1238_vm0, %v286_v52 }
  0x3d   :  { %6687 = vmatpush1.bf16.msra.mxu0 %v6686_v38  ;;  %6471 = vmatmul.mubr.msk.f32.gmra.mrb[18].mxu1 %vm1238_vm0, %v289_v54 }
  0x3e   :  { %6688 = vmatprep.subr.bf16.mxu0 %v11918_v5  ;;  %765 = vperm.xlu1 %7164, %v64_v42  }
  0x3f   :  { %760 = vperm.xlu0 %7163, %v63_v44   ;;  %6473 = vmatprep.mubr.msk.f32.mxu1 %vm1238_vm0, %v292_v58 }
  0x41   :  { %6690 = vmatpush1.bf16.msra.mxu0 %v6689_v45  ;;  %6474 = vmatmul.mubr.msk.f32.gmra.mrb[20].mxu1 %vm1238_vm0, %v295_v60 }
  0x42   :  { %6892 = vmatprep.subr.bf16.mxu0 %v11918_v5  ;;  %775 = vperm.xlu1 %7164, %v66_v47  }
  0x43   :  { %770 = vperm.xlu0 %7163, %v65_v50   ;;  %6476 = vmatprep.mubr.msk.f32.mxu1 %vm1238_vm0, %v298_v0 }
  0x44   :  { %1682 = vmatmul.mubr.f32.vlgmr.msra.gmra.mrb[0].mxu0 %v230_v49 }
  0x45   :  { %1686 = vmatprep.mubr.f32.mxu0 %v234_v51  ;;  %6477 = vmatmul.mubr.msk.f32.gmra.mrb[22].mxu1 %vm1238_vm0, %v301_v2 }
  0x46   :  { %785 = vperm.xlu1 %7164, %v68_v53   ;;  %6479 = vmatprep.mubr.msk.f32.mxu1 %vm1238_vm0, %v304_v7 }
  0x47   :  { %780 = vperm.xlu0 %7163, %v67_v56  }
  0x48   :  { %1687 = vmatmul.mubr.f32.gmra.mrb[2].mxu0 %v233_v55 }
  0x49   :  { %1691 = vmatprep.mubr.f32.mxu0 %v237_v57  ;;  %6480 = vmatmul.mubr.msk.f32.gmra.mrb[24].mxu1 %vm1238_vm0, %v307_v9 }
  0x4a   :  { %795 = vperm.xlu1 %7164, %v70_v59   ;;  %6482 = vmatprep.mubr.msk.f32.mxu1 %vm1238_vm0, %v310_v13 }
  0x4b   :  { %790 = vperm.xlu0 %7163, %v69_v62  }
  0x4c   :  { %1692 = vmatmul.mubr.f32.gmra.mrb[4].mxu0 %v236_v61 }
  0x4d   :  { %1696 = vmatprep.mubr.f32.mxu0 %v240_v63  ;;  %6483 = vmatmul.mubr.msk.f32.gmra.mrb[26].mxu1 %vm1238_vm0, %v313_v15 }
  0x4e   :  { %805 = vperm.xlu1 %7164, %v72_v1  }
  0x4f   :  { %800 = vperm.xlu0 %7163, %v71_v4  }
  0x50   :  { %1697 = vmatmul.mubr.f32.gmra.mrb[6].mxu0 %v239_v3 }
  0x51   :  { %1701 = vmatprep.mubr.f32.mxu0 %v243_v6 }
  0x52   :  { %815 = vperm.xlu1 %7164, %v74_v8  }
  0x53   :  { %810 = vperm.xlu0 %7163, %v73_v11  }
  0x54   :  { %1702 = vmatmul.mubr.f32.gmra.mrb[8].mxu0 %v242_v10 }
  0x55   :  { %1706 = vmatprep.mubr.f32.mxu0 %v246_v12 }
  0x56   :  { %825 = vperm.xlu1 %7164, %v76_v14  }
  0x57   :  { %820 = vperm.xlu0 %7163, %v75_v17  }
  0x58   :  { %1707 = vmatmul.mubr.f32.gmra.mrb[10].mxu0 %v245_v16 }
  0x59   :  { %16 = vsyncpa [#allocation5], 0  ;;  %1711 = vmatprep.mubr.f32.mxu0 %v249_v18  ;;  %v248_v22 = vld [vmem:[%s11909_s1 + $0x90] sm:$0xff]  ;;  %v77_v23 = vld [vmem:[%s11910_s2 + $0x160] sm:$0xff]  ;;  %6485 = vmatprep.mubr.msk.f32.mxu1 %vm1238_vm0, %v316_v19  ;;  %s7533_s22 = smov [#allocation2]  }
  0x5a   :  { %v252_v24 = vld [vmem:[%s11909_s1 + $0xb0] sm:$0xff]  ;;  %v322_v25 = vld [vmem:[%s11909_s1 + $0x2e0] sm:$0xff]  ;;  %835 = vperm.xlu1 %7164, %v78_v20   ;;  %6486 = vmatmul.mubr.msk.f32.gmra.mrb[28].mxu1 %vm1238_vm0, %v319_v21  ;;  %v80_v26 = vld [vmem:[%s11910_s2 + $0x178] sm:$0xff]  ;;  %s5875_s23 = sshll.u32 %s7533_s22, 4  ;;  %s5876_s23 = int_to_ptr.vmem [resolvable:$true] %s5875_s23 }
  0x5b   :  { %830 = vperm.xlu0 %7163, %v77_v23   ;;  %v325_v27 = vld [vmem:[%s11909_s1 + $0x2f8] sm:$0xff]  ;;  %v251_v28 = vld [vmem:[%s11909_s1 + $0xa8] sm:$0xff]  ;;  %v79_v29 = vld [vmem:[%s11910_s2 + $0x170] sm:$0xff]  ;;  %6488 = vmatprep.mubr.msk.f32.mxu1 %vm1238_vm0, %v322_v25  ;;  %s7481_s24 = scalar_lea.vmem %s5876_s23, 512  ;;  %p7486_p1 = scmp.lt.s32.totalorder %s5876_s23, %s5876_s23 }
  0x5c   :  { %1712 = vmatmul.mubr.f32.gmra.mrb[12].mxu0 %v248_v22  ;;  %v255_v30 = vld [vmem:[%s11909_s1 + $0xc8] sm:$0xff]  ;;  %v328_v31 = vld [vmem:[%s11909_s1 + $0x310] sm:$0xff]  ;;  %v254_v34 = vld [vmem:[%s11909_s1 + $0xc0] sm:$0xff]  ;;  %p7482_p0 = scmp.ne.s32.totalorder %s5876_s23, %s7481_s24  ;;  %p7487_p2 = scmp.lt.s32.totalorder %s7481_s24, %s7481_s24 }
  0x5d   :  { %1716 = vmatprep.mubr.f32.mxu0 %v252_v24  ;;  %v82_v32 = vld [vmem:[%s11910_s2 + $0x188] sm:$0xff]  ;;  %v81_v35 = vld [vmem:[%s11910_s2 + $0x180] sm:$0xff]  ;;  %v84_v38 = vld [vmem:[%s11910_s2 + $0x198] sm:$0xff] }
  0x5e   :  { %845 = vperm.xlu1 %7164, %v80_v26   ;;  %6489 = vmatmul.mubr.msk.f32.gmra.mrb[30].mxu1 %vm1238_vm0, %v325_v27  ;;  %v331_v33 = vld [vmem:[%s11909_s1 + $0x328] sm:$0xff]  ;;  %v258_v36 = vld [vmem:[%s11909_s1 + $0xe0] sm:$0xff]  ;;  %v337_v39 = vld [vmem:[%s11909_s1 + $0x358] sm:$0xff]  ;;  %p7488_p3 = por %p7487_p2, %p7486_p1 }
  0x5f   :  { %840 = vperm.xlu0 %7163, %v79_v29   ;;  %6491 = vmatprep.mubr.msk.f32.mxu1 %vm1238_vm0, %v328_v31  ;;  %v334_v37 = vld [vmem:[%s11909_s1 + $0x340] sm:$0xff]  ;;  %v257_v40 = vld [vmem:[%s11909_s1 + $0xd8] sm:$0xff]  ;;  %v83_v41 = vld [vmem:[%s11910_s2 + $0x190] sm:$0xff] }
  0x60   :  { %1717 = vmatmul.mubr.f32.gmra.mrb[14].mxu0 %v251_v28  ;;  %v261_v42 = vld [vmem:[%s11909_s1 + $0xf8] sm:$0xff]  ;;  %v340_v43 = vld [vmem:[%s11909_s1 + $0x370] sm:$0xff]  ;;  %v86_v44 = vld [vmem:[%s11910_s2 + $0x1a8] sm:$0xff]  ;;  %p7489_p4 = pnand %p7488_p3, %p7482_p0 }
  0x61   :  { %1721 = vmatprep.mubr.f32.mxu0 %v255_v30  ;;  %v343_v45 = vld [vmem:[%s11909_s1 + $0x388] sm:$0xff]  ;;  %v260_v46 = vld [vmem:[%s11909_s1 + $0xf0] sm:$0xff]  ;;  %v85_v47 = vld [vmem:[%s11910_s2 + $0x1a0] sm:$0xff] }
  0x62   :  { %855 = vperm.xlu1 %7164, %v82_v32   ;;  %6492 = vmatmul.mubr.msk.f32.gmra.mrb[32].mxu1 %vm1238_vm0, %v331_v33  ;;  %v264_v48 = vld [vmem:[%s11909_s1 + $0x110] sm:$0xff]  ;;  %v346_v49 = vld [vmem:[%s11909_s1 + $0x3a0] sm:$0xff]  ;;  %v88_v50 = vld [vmem:[%s11910_s2 + $0x1b8] sm:$0xff] }
  0x63   :  { %850 = vperm.xlu0 %7163, %v81_v35   ;;  %6494 = vmatprep.mubr.msk.f32.mxu1 %vm1238_vm0, %v334_v37  ;;  %v349_v51 = vld [vmem:[%s11909_s1 + $0x3b8] sm:$0xff]  ;;  %v263_v52 = vld [vmem:[%s11909_s1 + $0x108] sm:$0xff]  ;;  %v87_v53 = vld [vmem:[%s11910_s2 + $0x1b0] sm:$0xff] }
  0x64   :  { %1722 = vmatmul.mubr.f32.gmra.mrb[16].mxu0 %v254_v34  ;;  %v267_v54 = vld [vmem:[%s11909_s1 + $0x128] sm:$0xff]  ;;  %v352_v55 = vld [vmem:[%s11909_s1 + $0x3d0] sm:$0xff]  ;;  %v266_v58 = vld [vmem:[%s11909_s1 + $0x120] sm:$0xff] }
  0x65   :  { %1726 = vmatprep.mubr.f32.mxu0 %v258_v36  ;;  %v90_v56 = vld [vmem:[%s11910_s2 + $0x1c8] sm:$0xff]  ;;  %v89_v59 = vld [vmem:[%s11910_s2 + $0x1c0] sm:$0xff]  ;;  %v92_v62 = vld [vmem:[%s11910_s2 + $0x1d8] sm:$0xff] }
  0x66   :  { %865 = vperm.xlu1 %7164, %v84_v38   ;;  %6495 = vmatmul.mubr.msk.f32.gmra.mrb[34].mxu1 %vm1238_vm0, %v337_v39  ;;  %v355_v57 = vld [vmem:[%s11909_s1 + $0x3e8] sm:$0xff]  ;;  %v270_v60 = vld [vmem:[%s11909_s1 + $0x140] sm:$0xff]  ;;  %v361_v63 = vld [vmem:[%s11909_s1 + $0x418] sm:$0xff] }
  0x67   :  { %860 = vperm.xlu0 %7163, %v83_v41   ;;  %6497 = vmatprep.mubr.msk.f32.mxu1 %vm1238_vm0, %v340_v43  ;;  %v358_v61 = vld [vmem:[%s11909_s1 + $0x400] sm:$0xff]  ;;  %v269_v0 = vld [vmem:[%s11909_s1 + $0x138] sm:$0xff]  ;;  %v91_v1 = vld [vmem:[%s11910_s2 + $0x1d0] sm:$0xff] }
  0x68   :  { %1727 = vmatmul.mubr.f32.gmra.mrb[18].mxu0 %v257_v40  ;;  %v273_v2 = vld [vmem:[%s11909_s1 + $0x158] sm:$0xff]  ;;  %v364_v3 = vld [vmem:[%s11909_s1 + $0x430] sm:$0xff]  ;;  %v94_v4 = vld [vmem:[%s11910_s2 + $0x1e8] sm:$0xff] }
  0x69   :  { %1731 = vmatprep.mubr.f32.mxu0 %v261_v42  ;;  %v367_v6 = vld [vmem:[%s11909_s1 + $0x448] sm:$0xff]  ;;  %v272_v7 = vld [vmem:[%s11909_s1 + $0x150] sm:$0xff]  ;;  %v93_v8 = vld [vmem:[%s11910_s2 + $0x1e0] sm:$0xff] }
  0x6a   :  { %875 = vperm.xlu1 %7164, %v86_v44   ;;  %6498 = vmatmul.mubr.msk.f32.gmra.mrb[36].mxu1 %vm1238_vm0, %v343_v45  ;;  %v276_v9 = vld [vmem:[%s11909_s1 + $0x170] sm:$0xff]  ;;  %v370_v10 = vld [vmem:[%s11909_s1 + $0x460] sm:$0xff]  ;;  %v96_v11 = vld [vmem:[%s11910_s2 + $0x1f8] sm:$0xff] }
  0x6b   :  { %870 = vperm.xlu0 %7163, %v85_v47   ;;  %6500 = vmatprep.mubr.msk.f32.mxu1 %vm1238_vm0, %v346_v49  ;;  %v373_v12 = vld [vmem:[%s11909_s1 + $0x478] sm:$0xff]  ;;  %v275_v13 = vld [vmem:[%s11909_s1 + $0x168] sm:$0xff]  ;;  %v95_v14 = vld [vmem:[%s11910_s2 + $0x1f0] sm:$0xff] }
  0x6c   :  { %1732 = vmatmul.mubr.f32.gmra.mrb[20].mxu0 %v260_v46  ;;  %v279_v15 = vld [vmem:[%s11909_s1 + $0x188] sm:$0xff]  ;;  %v278_v17 = vld [vmem:[%s11909_s1 + $0x180] sm:$0xff]  ;;  %v376_v20 = vld [vmem:[%s11909_s1 + $0x490] sm:$0xff] }
  0x6d   :  { %1736 = vmatprep.mubr.f32.mxu0 %v264_v48  ;;  %v98_v16 = vld [vmem:[%s11910_s2 + $0x208] sm:$0xff]  ;;  %v97_v18 = vld [vmem:[%s11910_s2 + $0x200] sm:$0xff]  ;;  %v100_v21 = vld [vmem:[%s11910_s2 + $0x218] sm:$0xff] }
  0x6e   :  { %885 = vperm.xlu1 %7164, %v88_v50   ;;  %6501 = vmatmul.mubr.msk.f32.gmra.mrb[38].mxu1 %vm1238_vm0, %v349_v51  ;;  %v282_v19 = vld [vmem:[%s11909_s1 + $0x1a0] sm:$0xff]  ;;  %v379_v22 = vld [vmem:[%s11909_s1 + $0x4a8] sm:$0xff]  ;;  %v281_v23 = vld [vmem:[%s11909_s1 + $0x198] sm:$0xff] }
  0x6f   :  { %880 = vperm.xlu0 %7163, %v87_v53   ;;  %6503 = vmatprep.mubr.msk.f32.mxu1 %vm1238_vm0, %v352_v55  ;;  %v99_v24 = vld [vmem:[%s11910_s2 + $0x210] sm:$0xff]  ;;  %v285_v25 = vld [vmem:[%s11909_s1 + $0x1b8] sm:$0xff]  ;;  %v102_v26 = vld [vmem:[%s11910_s2 + $0x228] sm:$0xff] }
  0x70   :  { %1737 = vmatmul.mubr.f32.gmra.mrb[22].mxu0 %v263_v52  ;;  %v284_v27 = vld [vmem:[%s11909_s1 + $0x1b0] sm:$0xff]  ;;  %v101_v28 = vld [vmem:[%s11910_s2 + $0x220] sm:$0xff]  ;;  %v104_v32 = vld [vmem:[%s11910_s2 + $0x238] sm:$0xff] }
  0x71   :  { %1741 = vmatprep.mubr.f32.mxu0 %v267_v54  ;;  %v288_v29 = vld [vmem:[%s11909_s1 + $0x1d0] sm:$0xff]  ;;  %v382_v31 = vld [vmem:[%s11909_s1 + $0x4c0] sm:$0xff]  ;;  %v385_v33 = vld [vmem:[%s11909_s1 + $0x4d8] sm:$0xff] }
  0x72   :  { %895 = vperm.xlu1 %7164, %v90_v56   ;;  %6504 = vmatmul.mubr.msk.f32.gmra.mrb[40].mxu1 %vm1238_vm0, %v355_v57  ;;  %v287_v35 = vld [vmem:[%s11909_s1 + $0x1c8] sm:$0xff]  ;;  %v103_v36 = vld [vmem:[%s11910_s2 + $0x230] sm:$0xff]  ;;  %v290_v40 = vld [vmem:[%s11909_s1 + $0x1e0] sm:$0xff] }
  0x73   :  { %890 = vperm.xlu0 %7163, %v89_v59   ;;  %6506 = vmatprep.mubr.msk.f32.mxu1 %vm1238_vm0, %v358_v61  ;;  %v291_v37 = vld [vmem:[%s11909_s1 + $0x1e8] sm:$0xff]  ;;  %v105_v41 = vld [vmem:[%s11910_s2 + $0x240] sm:$0xff]  ;;  %v388_v44 = vld [vmem:[%s11909_s1 + $0x4f0] sm:$0xff] }
  0x74   :  { %1742 = vmatmul.mubr.f32.gmra.mrb[24].mxu0 %v266_v58  ;;  %v106_v38 = vld [vmem:[%s11910_s2 + $0x248] sm:$0xff]  ;;  %v294_v42 = vld [vmem:[%s11909_s1 + $0x200] sm:$0xff]  ;;  %v108_v45 = vld [vmem:[%s11910_s2 + $0x258] sm:$0xff] }
  0x75   :  { %1746 = vmatprep.mubr.f32.mxu0 %v270_v60  ;;  %v391_v46 = vld [vmem:[%s11909_s1 + $0x508] sm:$0xff]  ;;  %v293_v47 = vld [vmem:[%s11909_s1 + $0x1f8] sm:$0xff]  ;;  %v107_v48 = vld [vmem:[%s11910_s2 + $0x250] sm:$0xff] }
  0x76   :  { %905 = vperm.xlu1 %7164, %v92_v62   ;;  %6507 = vmatmul.mubr.msk.f32.gmra.mrb[42].mxu1 %vm1238_vm0, %v361_v63  ;;  %v297_v49 = vld [vmem:[%s11909_s1 + $0x218] sm:$0xff]  ;;  %v110_v51 = vld [vmem:[%s11910_s2 + $0x268] sm:$0xff]  ;;  %v296_v53 = vld [vmem:[%s11909_s1 + $0x210] sm:$0xff] }
  0x77   :  { %900 = vperm.xlu0 %7163, %v91_v1   ;;  %6509 = vmatprep.mubr.msk.f32.mxu1 %vm1238_vm0, %v364_v3  ;;  %v109_v54 = vld [vmem:[%s11910_s2 + $0x260] sm:$0xff]  ;;  %v300_v55 = vld [vmem:[%s11909_s1 + $0x230] sm:$0xff]  ;;  %v112_v57 = vld [vmem:[%s11910_s2 + $0x278] sm:$0xff] }
  0x78   :  { %1747 = vmatmul.mubr.f32.gmra.mrb[26].mxu0 %v269_v0  ;;  %v394_v56 = vld [vmem:[%s11909_s1 + $0x520] sm:$0xff]  ;;  %v397_v58 = vld [vmem:[%s11909_s1 + $0x538] sm:$0xff]  ;;  %v299_v60 = vld [vmem:[%s11909_s1 + $0x228] sm:$0xff] }
  0x79   :  { %1751 = vmatprep.mubr.f32.mxu0 %v273_v2  ;;  %v111_v61 = vld [vmem:[%s11910_s2 + $0x270] sm:$0xff]  ;;  %v303_v62 = vld [vmem:[%s11909_s1 + $0x248] sm:$0xff]  ;;  %v302_v1 = vld [vmem:[%s11909_s1 + $0x240] sm:$0xff] }
  0x7a   :  { %915 = vperm.xlu1 %7164, %v94_v4   ;;  %6510 = vmatmul.mubr.msk.f32.gmra.mrb[44].mxu1 %vm1238_vm0, %v367_v6  ;;  %v114_v0 = vld [vmem:[%s11910_s2 + $0x288] sm:$0xff]  ;;  %v113_v2 = vld [vmem:[%s11910_s2 + $0x280] sm:$0xff]  ;;  %v400_v6 = vld [vmem:[%s11909_s1 + $0x550] sm:$0xff] }
  0x7b   :  { %910 = vperm.xlu0 %7163, %v93_v8   ;;  %6512 = vmatprep.mubr.msk.f32.mxu1 %vm1238_vm0, %v370_v10  ;;  %v306_v3 = vld [vmem:[%s11909_s1 + $0x260] sm:$0xff]  ;;  %v403_v8 = vld [vmem:[%s11909_s1 + $0x568] sm:$0xff]  ;;  %v305_v10 = vld [vmem:[%s11909_s1 + $0x258] sm:$0xff] }
  0x7c   :  { %1752 = vmatmul.mubr.f32.gmra.mrb[28].mxu0 %v272_v7  ;;  %v116_v7 = vld [vmem:[%s11910_s2 + $0x298] sm:$0xff] }
  0x7d   :  { %1756 = vmatprep.mubr.f32.mxu0 %v276_v9  ;;  %v553_v5 = vld [vmem:[%s11909_s1 + $0xa18] sm:$0xff] }
  0x7e   :  { %925 = vperm.xlu1 %7164, %v96_v11   ;;  %6513 = vmatmul.mubr.msk.f32.gmra.mrb[46].mxu1 %vm1238_vm0, %v373_v12  ;;  %v115_v11 = vld [vmem:[%s11910_s2 + $0x290] sm:$0xff]  ;;  %v309_v12 = vld [vmem:[%s11909_s1 + $0x278] sm:$0xff] }
  0x7f   :  { %920 = vperm.xlu0 %7163, %v95_v14   ;;  %6515 = vmatprep.mubr.msk.f32.mxu1 %vm1238_vm0, %v376_v20  ;;  %v409_v20 = vld [vmem:[%s11909_s1 + $0x598] sm:$0xff] }
  0x80   :  { %1757 = vmatmul.mubr.f32.gmra.mrb[30].mxu0 %v275_v13  ;;  %v118_v13 = vld [vmem:[%s11910_s2 + $0x2a8] sm:$0xff] }
  0x81   :  { %1761 = vmatprep.mubr.f32.mxu0 %v279_v15  ;;  %v8249_v30 = vpop.permute.xlu1 %620  ;;  %v308_v15 = vld [vmem:[%s11909_s1 + $0x270] sm:$0xff] }
  0x82   :  { %935 = vperm.xlu1 %7164, %v98_v16   ;;  %6516 = vmatmul.mubr.msk.f32.gmra.mrb[48].mxu1 %vm1238_vm0, %v379_v22  ;;  %v8260_v34 = vpop.permute.xlu0 %610  ;;  %v117_v16 = vld [vmem:[%s11910_s2 + $0x2a0] sm:$0xff]  ;;  %v311_v22 = vld [vmem:[%s11909_s1 + $0x288] sm:$0xff] }
  0x83   :  { %930 = vperm.xlu0 %7163, %v97_v18   ;;  %6518 = vmatprep.mubr.msk.f32.mxu1 %vm1238_vm0, %v382_v31  ;;  %v406_v18 = vld [vmem:[%s11909_s1 + $0x580] sm:$0xff] }
  0x84   :  { %1762 = vmatmul.mubr.f32.gmra.mrb[32].mxu0 %v278_v17  ;;  %v312_v17 = vld [vmem:[%s11909_s1 + $0x290] sm:$0xff]  ;;  %v314_v31 = vld [vmem:[%s11909_s1 + $0x2a0] sm:$0xff] }
  0x85   :  { %1766 = vmatprep.mubr.f32.mxu0 %v282_v19  ;;  %v8276_v39 = vpop.permute.xlu1 %625 }
  0x86   :  { %945 = vperm.xlu1 %7164, %v100_v21   ;;  %6519 = vmatmul.mubr.msk.f32.gmra.mrb[50].mxu1 %vm1238_vm0, %v385_v33  ;;  %v8287_v43 = vpop.permute.xlu0 %615  ;;  %v120_v21 = vld [vmem:[%s11910_s2 + $0x2b8] sm:$0xff]  ;;  %v318_v33 = vld [vmem:[%s11909_s1 + $0x2c0] sm:$0xff] }
  0x87   :  { %940 = vperm.xlu0 %7163, %v99_v24   ;;  %6521 = vmatprep.mubr.msk.f32.mxu1 %vm1238_vm0, %v388_v44  ;;  %v315_v24 = vld [vmem:[%s11909_s1 + $0x2a8] sm:$0xff] }
  0x88   :  { %1767 = vmatmul.mubr.f32.gmra.mrb[34].mxu0 %v281_v23  ;;  %v119_v23 = vld [vmem:[%s11910_s2 + $0x2b0] sm:$0xff] }
  0x89   :  { %1771 = vmatprep.mubr.f32.mxu0 %v285_v25  ;;  %v8309_v50 = vpop.permute.xlu1 %635  ;;  %v412_v25 = vld [vmem:[%s11909_s1 + $0x5b0] sm:$0xff] }
  0x8a   :  { %955 = vperm.xlu1 %7164, %v102_v26   ;;  %6522 = vmatmul.mubr.msk.f32.gmra.mrb[52].mxu1 %vm1238_vm0, %v391_v46  ;;  %v8314_v52 = vpop.permute.xlu0 %630  ;;  %v126_v46 = vld [vmem:[%s11910_s2 + $0x2e8] sm:$0xff] }
  0x8b   :  { %950 = vperm.xlu0 %7163, %v101_v28   ;;  %6524 = vmatprep.mubr.msk.f32.mxu1 %vm1238_vm0, %v394_v56  ;;  %v122_v28 = vld [vmem:[%s11910_s2 + $0x2c8] sm:$0xff]  ;;  %v433_v56 = vld [vmem:[%s11909_s1 + $0x658] sm:$0xff] }
  0x8c   :  { %1772 = vmatmul.mubr.f32.gmra.mrb[36].mxu0 %v284_v27  ;;  %v415_v27 = vld [vmem:[%s11909_s1 + $0x5c8] sm:$0xff] }
  0x8d   :  { %1776 = vmatprep.mubr.f32.mxu0 %v288_v29  ;;  %v8334_v59 = vpop.permute.xlu1 %645 }
  0x8e   :  { %965 = vperm.xlu1 %7164, %v104_v32   ;;  %6525 = vmatmul.mubr.msk.f32.gmra.mrb[54].mxu1 %vm1238_vm0, %v397_v58  ;;  %v8347_v63 = vpop.permute.xlu0 %640  ;;  %v121_v32 = vld [vmem:[%s11910_s2 + $0x2c0] sm:$0xff]  ;;  %v323_v58 = vld [vmem:[%s11909_s1 + $0x2e8] sm:$0xff] }
  0x8f   :  { %960 = vperm.xlu0 %7163, %v103_v36   ;;  %6527 = vmatprep.mubr.msk.f32.mxu1 %vm1238_vm0, %v400_v6  ;;  %v421_v36 = vld [vmem:[%s11909_s1 + $0x5f8] sm:$0xff]  ;;  %v129_v6 = vld [vmem:[%s11910_s2 + $0x300] sm:$0xff] }
  0x90   :  { %1777 = vmatmul.mubr.f32.gmra.mrb[38].mxu0 %v287_v35  ;;  %v418_v35 = vld [vmem:[%s11909_s1 + $0x5e0] sm:$0xff] }
  0x91   :  { %1781 = vmatprep.mubr.f32.mxu0 %v291_v37  ;;  %v8361_v4 = vpop.permute.xlu1 %655  ;;  %v124_v37 = vld [vmem:[%s11910_s2 + $0x2d8] sm:$0xff] }
  0x92   :  { %975 = vperm.xlu1 %7164, %v106_v38   ;;  %v8372_v9 = vpop.permute.xlu0 %650  ;;  %6528 = vmatmul.mubr.msk.f32.gmra.mrb[56].mxu1 %vm1238_vm0, %v403_v8 }
  0x93   :  { %970 = vperm.xlu0 %7163, %v105_v41   ;;  %6530 = vmatprep.mubr.msk.f32.mxu1 %vm1238_vm0, %v406_v18  ;;  %v123_v41 = vld [vmem:[%s11910_s2 + $0x2d0] sm:$0xff] }
  0x94   :  { %1782 = vmatmul.mubr.f32.gmra.mrb[40].mxu0 %v290_v40  ;;  %v317_v40 = vld [vmem:[%s11909_s1 + $0x2b8] sm:$0xff]  ;;  %v448_v18 = vld [vmem:[%s11909_s1 + $0x6d0] sm:$0xff] }
  0x95   :  { %1786 = vmatprep.mubr.f32.mxu0 %v294_v42  ;;  %v8388_v14 = vpop.permute.xlu1 %665  ;;  %v321_v42 = vld [vmem:[%s11909_s1 + $0x2d8] sm:$0xff] }
  0x96   :  { %985 = vperm.xlu1 %7164, %v108_v45   ;;  %v8402_v19 = vpop.permute.xlu0 %660  ;;  %6531 = vmatmul.mubr.msk.f32.gmra.mrb[58].mxu1 %vm1238_vm0, %v409_v20  ;;  %v424_v45 = vld [vmem:[%s11909_s1 + $0x610] sm:$0xff]  ;;  %v134_v20 = vld [vmem:[%s11910_s2 + $0x328] sm:$0xff] }
  0x97   :  { %980 = vperm.xlu0 %7163, %v107_v48   ;;  %6533 = vmatprep.mubr.msk.f32.mxu1 %vm1238_vm0, %v412_v25  ;;  %v320_v48 = vld [vmem:[%s11909_s1 + $0x2d0] sm:$0xff] }
  0x98   :  { %1787 = vmatmul.mubr.f32.gmra.mrb[42].mxu0 %v293_v47  ;;  %v427_v47 = vld [vmem:[%s11909_s1 + $0x628] sm:$0xff]  ;;  %v336_v25 = vld [vmem:[%s11909_s1 + $0x350] sm:$0xff] }
  0x99   :  { %1791 = vmatprep.mubr.f32.mxu0 %v297_v49  ;;  %v8424_v26 = vpop.permute.xlu1 %675  ;;  %v125_v49 = vld [vmem:[%s11910_s2 + $0x2e0] sm:$0xff] }
  0x9a   :  { %995 = vperm.xlu1 %7164, %v110_v51   ;;  %v8433_v29 = vpop.permute.xlu0 %670  ;;  %6534 = vmatmul.mubr.msk.f32.gmra.mrb[60].mxu1 %vm1238_vm0, %v415_v27  ;;  %v324_v51 = vld [vmem:[%s11909_s1 + $0x2f0] sm:$0xff]  ;;  %v454_v27 = vld [vmem:[%s11909_s1 + $0x700] sm:$0xff] }
  0x9b   :  { %990 = vperm.xlu0 %7163, %v109_v54   ;;  %6536 = vmatprep.mubr.msk.f32.mxu1 %vm1238_vm0, %v418_v35  ;;  %v430_v54 = vld [vmem:[%s11909_s1 + $0x640] sm:$0xff]  ;;  %v135_v35 = vld [vmem:[%s11910_s2 + $0x330] sm:$0xff] }
  0x9c   :  { %1792 = vmatmul.mubr.f32.gmra.mrb[44].mxu0 %v296_v53 }
  0x9d   :  { %1796 = vmatprep.mubr.f32.mxu0 %v300_v55  ;;  %v8455_v38 = vpop.permute.xlu1 %685  ;;  %v128_v55 = vld [vmem:[%s11910_s2 + $0x2f8] sm:$0xff] }
  0x9e   :  { %1005 = vperm.xlu1 %7164, %v112_v57   ;;  %6537 = vmatmul.mubr.msk.f32.gmra.mrb[62].mxu1 %vm1238_vm0, %v421_v36  ;;  %v8467_v44 = vpop.permute.xlu0 %680  ;;  %v339_v36 = vld [vmem:[%s11909_s1 + $0x368] sm:$0xff] }
  0x9f   :  { %1000 = vperm.xlu0 %7163, %v111_v61   ;;  %6539 = vmatprep.mubr.msk.f32.mxu1 %vm1238_vm0, %v424_v45  ;;  %v327_v61 = vld [vmem:[%s11909_s1 + $0x308] sm:$0xff]  ;;  %v338_v45 = vld [vmem:[%s11909_s1 + $0x360] sm:$0xff] }
  0xa0   :  { %1797 = vmatmul.mubr.f32.gmra.mrb[46].mxu0 %v299_v60  ;;  %v127_v60 = vld [vmem:[%s11910_s2 + $0x2f0] sm:$0xff] }
  0xa1   :  { %1801 = vmatprep.mubr.f32.mxu0 %v303_v62  ;;  %v8489_v53 = vpop.permute.xlu1 %695  ;;  %v436_v62 = vld [vmem:[%s11909_s1 + $0x670] sm:$0xff] }
  0xa2   :  { %1015 = vperm.xlu1 %7164, %v114_v0   ;;  %6540 = vmatmul.mubr.msk.f32.gmra.mrb[64].mxu1 %vm1238_vm0, %v427_v47  ;;  %v8500_v57 = vpop.permute.xlu0 %690  ;;  %v130_v0 = vld [vmem:[%s11910_s2 + $0x308] sm:$0xff]  ;;  %v342_v47 = vld [vmem:[%s11909_s1 + $0x380] sm:$0xff] }
  0xa3   :  { %1010 = vperm.xlu0 %7163, %v113_v2   ;;  %6542 = vmatprep.mubr.msk.f32.mxu1 %vm1238_vm0, %v430_v54  ;;  %v469_v54 = vld [vmem:[%s11909_s1 + $0x778] sm:$0xff] }
  0xa4   :  { %1802 = vmatmul.mubr.f32.gmra.mrb[48].mxu0 %v302_v1  ;;  %v439_v1 = vld [vmem:[%s11909_s1 + $0x688] sm:$0xff] }
  0xa5   :  { %1806 = vmatprep.mubr.f32.mxu0 %v306_v3  ;;  %v8522_v2 = vpop.permute.xlu1 %705  ;;  %v326_v3 = vld [vmem:[%s11909_s1 + $0x300] sm:$0xff] }
  0xa6   :  { %1025 = vperm.xlu1 %7164, %v116_v7   ;;  %6543 = vmatmul.mubr.msk.f32.gmra.mrb[66].mxu1 %vm1238_vm0, %v433_v56  ;;  %v330_v7 = vld [vmem:[%s11909_s1 + $0x320] sm:$0xff]  ;;  %v8535_v8 = vpop.permute.xlu0 %700  ;;  %v341_v56 = vld [vmem:[%s11909_s1 + $0x378] sm:$0xff] }
  0xa7   :  { %1020 = vperm.xlu0 %7163, %v115_v11   ;;  %6545 = vmatprep.mubr.msk.f32.mxu1 %vm1238_vm0, %v436_v62  ;;  %v132_v11 = vld [vmem:[%s11910_s2 + $0x318] sm:$0xff]  ;;  %v142_v62 = vld [vmem:[%s11910_s2 + $0x368] sm:$0xff] }
  0xa8   :  { %1807 = vmatmul.mubr.f32.gmra.mrb[50].mxu0 %v305_v10  ;;  %v442_v10 = vld [vmem:[%s11909_s1 + $0x6a0] sm:$0xff] }
  0xa9   :  { %1811 = vmatprep.mubr.f32.mxu0 %v309_v12  ;;  %v445_v12 = vld [vmem:[%s11909_s1 + $0x6b8] sm:$0xff] }
  0xaa   :  { %1035 = vperm.xlu1 %7164, %v118_v13   ;;  %6546 = vmatmul.mubr.msk.f32.gmra.mrb[68].mxu1 %vm1238_vm0, %v439_v1  ;;  %v329_v13 = vld [vmem:[%s11909_s1 + $0x318] sm:$0xff] }
  0xab   :  { %1030 = vperm.xlu0 %7163, %v117_v16   ;;  %6548 = vmatprep.mubr.msk.f32.mxu1 %vm1238_vm0, %v442_v10  ;;  %v333_v16 = vld [vmem:[%s11909_s1 + $0x338] sm:$0xff] }
  0xac   :  { %1812 = vmatmul.mubr.f32.gmra.mrb[52].mxu0 %v308_v15  ;;  %v131_v15 = vld [vmem:[%s11910_s2 + $0x310] sm:$0xff] }
  0xad   :  { %1816 = vmatprep.mubr.f32.mxu0 %v312_v17  ;;  %v8557_v17 = vpop.permute.xlu1 %715 }
  0xae   :  { %1045 = vperm.xlu1 %7164, %v120_v21   ;;  %6549 = vmatmul.mubr.msk.f32.gmra.mrb[70].mxu1 %vm1238_vm0, %v445_v12  ;;  %v451_v21 = vld [vmem:[%s11909_s1 + $0x6e8] sm:$0xff]  ;;  %v144_v12 = vld [vmem:[%s11910_s2 + $0x378] sm:$0xff] }
  0xaf   :  { %1040 = vperm.xlu0 %7163, %v119_v23   ;;  %v332_v23 = vld [vmem:[%s11909_s1 + $0x330] sm:$0xff]  ;;  %6551 = vmatprep.mubr.msk.f32.mxu1 %vm1238_vm0, %v448_v18  ;;  %v351_v18 = vld [vmem:[%s11909_s1 + $0x3c8] sm:$0xff] }
  0xb0   :  { %1817 = vmatmul.mubr.f32.gmra.mrb[54].mxu0 %v311_v22  ;;  %v8568_v22 = vpop.permute.xlu0 %710 }
  0xb1   :  { %1821 = vmatprep.mubr.f32.mxu0 %v315_v24  ;;  %v133_v24 = vld [vmem:[%s11910_s2 + $0x320] sm:$0xff] }
  0xb2   :  { %1055 = vperm.xlu1 %7164, %v122_v28   ;;  %6552 = vmatmul.mubr.msk.f32.gmra.mrb[72].mxu1 %vm1238_vm0, %v451_v21  ;;  %v136_v28 = vld [vmem:[%s11910_s2 + $0x338] sm:$0xff]  ;;  %v484_v21 = vld [vmem:[%s11909_s1 + $0x7f0] sm:$0xff] }
  0xb3   :  { %1050 = vperm.xlu0 %7163, %v121_v32   ;;  %v8590_v32 = vpop.permute.xlu1 %725  ;;  %6554 = vmatprep.mubr.msk.f32.mxu1 %vm1238_vm0, %v454_v27  ;;  %v350_v27 = vld [vmem:[%s11909_s1 + $0x3c0] sm:$0xff] }
  0xb4   :  { %1822 = vmatmul.mubr.f32.gmra.mrb[56].mxu0 %v314_v31  ;;  %v457_v31 = vld [vmem:[%s11909_s1 + $0x718] sm:$0xff] }
  0xb5   :  { %1826 = vmatprep.mubr.f32.mxu0 %v318_v33  ;;  %v335_v33 = vld [vmem:[%s11909_s1 + $0x348] sm:$0xff] }
  0xb6   :  { %1065 = vperm.xlu1 %7164, %v124_v37   ;;  %6555 = vmatmul.mubr.msk.f32.gmra.mrb[74].mxu1 %vm1238_vm0, %v457_v31  ;;  %v8603_v37 = vpop.permute.xlu0 %720  ;;  %v354_v31 = vld [vmem:[%s11909_s1 + $0x3e0] sm:$0xff] }
  0xb7   :  { %1060 = vperm.xlu0 %7163, %v123_v41   ;;  %v138_v41 = vld [vmem:[%s11910_s2 + $0x348] sm:$0xff] }
  0xb8   :  { %1827 = vmatmul.mubr.f32.gmra.mrb[58].mxu0 %v317_v40  ;;  %v460_v40 = vld [vmem:[%s11909_s1 + $0x730] sm:$0xff] }
  0xb9   :  { %1831 = vmatprep.mubr.f32.mxu0 %v321_v42  ;;  %v463_v42 = vld [vmem:[%s11909_s1 + $0x748] sm:$0xff]  ;;  %6557 = vmatprep.mubr.msk.f32.mxu1 %vm1238_vm0, %v460_v40 }
  0xba   :  { %1075 = vperm.xlu1 %7164, %v126_v46   ;;  %v137_v46 = vld [vmem:[%s11910_s2 + $0x340] sm:$0xff]  ;;  %6558 = vmatmul.mubr.msk.f32.gmra.mrb[76].mxu1 %vm1238_vm0, %v463_v42  ;;  %v147_v42 = vld [vmem:[%s11910_s2 + $0x390] sm:$0xff] }
  0xbb   :  { %1070 = vperm.xlu0 %7163, %v125_v49   ;;  %v466_v49 = vld [vmem:[%s11909_s1 + $0x760] sm:$0xff] }
  0xbc   :  { %1832 = vmatmul.mubr.f32.gmra.mrb[60].mxu0 %v320_v48  ;;  %v8625_v48 = vpop.permute.xlu1 %735  ;;  %6560 = vmatprep.mubr.msk.f32.mxu1 %vm1238_vm0, %v466_v49  ;;  %v150_v49 = vld [vmem:[%s11910_s2 + $0x3a8] sm:$0xff] }
  0xbd   :  { %1836 = vmatprep.mubr.f32.mxu0 %v324_v51  ;;  %v140_v51 = vld [vmem:[%s11910_s2 + $0x358] sm:$0xff] }
  0xbe   :  { %1085 = vperm.xlu1 %7164, %v128_v55   ;;  %v8636_v55 = vpop.permute.xlu0 %730  ;;  %6561 = vmatmul.mubr.msk.f32.gmra.mrb[78].mxu1 %vm1238_vm0, %v469_v54  ;;  %v356_v54 = vld [vmem:[%s11909_s1 + $0x3f0] sm:$0xff] }
  0xbf   :  { %1080 = vperm.xlu0 %7163, %v127_v60   ;;  %v345_v60 = vld [vmem:[%s11909_s1 + $0x398] sm:$0xff] }
  0xc0   :  { %1837 = vmatmul.mubr.f32.gmra.mrb[62].mxu0 %v323_v58  ;;  %v139_v58 = vld [vmem:[%s11910_s2 + $0x350] sm:$0xff]  ;;  %v8658_v1 = vpop.permute.xlu1 %745 }
  0xc1   :  { %1841 = vmatprep.mubr.f32.mxu0 %v327_v61  ;;  %v472_v61 = vld [vmem:[%s11909_s1 + $0x790] sm:$0xff] }
  0xc2   :  { %1095 = vperm.xlu1 %7164, %v130_v0   ;;  %v475_v0 = vld [vmem:[%s11909_s1 + $0x7a8] sm:$0xff]  ;;  %6563 = vmatprep.mubr.msk.f32.mxu1 %vm1238_vm0, %v472_v61  ;;  %v8671_v10 = vpop.permute.xlu0 %740  ;;  %v502_v61 = vld [vmem:[%s11909_s1 + $0x880] sm:$0xff] }
  0xc3   :  { %1090 = vperm.xlu0 %7163, %v129_v6   ;;  %v141_v6 = vld [vmem:[%s11910_s2 + $0x360] sm:$0xff]  ;;  %6564 = vmatmul.mubr.msk.f32.gmra.mrb[80].mxu1 %vm1238_vm0, %v475_v0  ;;  %v505_v0 = vld [vmem:[%s11909_s1 + $0x898] sm:$0xff] }
  0xc4   :  { %1842 = vmatmul.mubr.f32.gmra.mrb[64].mxu0 %v326_v3  ;;  %v344_v3 = vld [vmem:[%s11909_s1 + $0x390] sm:$0xff] }
  0xc5   :  { %1846 = vmatprep.mubr.f32.mxu0 %v330_v7  ;;  %v348_v7 = vld [vmem:[%s11909_s1 + $0x3b0] sm:$0xff] }
  0xc6   :  { %1105 = vperm.xlu1 %7164, %v132_v11   ;;  %v478_v11 = vld [vmem:[%s11909_s1 + $0x7c0] sm:$0xff] }
  0xc7   :  { %1100 = vperm.xlu0 %7163, %v131_v15   ;;  %v347_v15 = vld [vmem:[%s11909_s1 + $0x3a8] sm:$0xff]  ;;  %6566 = vmatprep.mubr.msk.f32.mxu1 %vm1238_vm0, %v478_v11 }
  0xc8   :  { %1847 = vmatmul.mubr.f32.gmra.mrb[66].mxu0 %v329_v13  ;;  %v481_v13 = vld [vmem:[%s11909_s1 + $0x7d8] sm:$0xff]  ;;  %v363_v11 = vld [vmem:[%s11909_s1 + $0x428] sm:$0xff] }
  0xc9   :  { %1851 = vmatprep.mubr.f32.mxu0 %v333_v16  ;;  %v143_v16 = vld [vmem:[%s11910_s2 + $0x370] sm:$0xff]  ;;  %6567 = vmatmul.mubr.msk.f32.gmra.mrb[82].mxu1 %vm1238_vm0, %v481_v13  ;;  %v154_v13 = vld [vmem:[%s11910_s2 + $0x3c8] sm:$0xff] }
  0xca   :  { %1115 = vperm.xlu1 %7164, %v134_v20   ;;  %v8693_v20 = vpop.permute.xlu1 %755  ;;  %6569 = vmatprep.mubr.msk.f32.mxu1 %vm1238_vm0, %v484_v21  ;;  %v153_v21 = vld [vmem:[%s11910_s2 + $0x3c0] sm:$0xff] }
  0xcb   :  { %1110 = vperm.xlu0 %7163, %v133_v24   ;;  %11920 = vst [vmem:[#allocation8_spill] sm:$0xff] %v8693_v20  ;;  %v487_v24 = vld [vmem:[%s11909_s1 + $0x808] sm:$0xff]  ;;  %v598_v20 = vld [vmem:[%s11909_s1 + $0xb80] sm:$0xff] }
  0xcc   :  { %1852 = vmatmul.mubr.f32.gmra.mrb[68].mxu0 %v332_v23  ;;  %v146_v23 = vld [vmem:[%s11910_s2 + $0x388] sm:$0xff] }
  0xcd   :  { %1856 = vmatprep.mubr.f32.mxu0 %v336_v25  ;;  %v8704_v25 = vpop.permute.xlu0 %750  ;;  %6570 = vmatmul.mubr.msk.f32.gmra.mrb[84].mxu1 %vm1238_vm0, %v487_v24 }
  0xce   :  { %1125 = vperm.xlu1 %7164, %v136_v28   ;;  %11921 = vst [vmem:[#allocation9_spill] sm:$0xff] %v8704_v25  ;;  %v145_v28 = vld [vmem:[%s11910_s2 + $0x380] sm:$0xff]  ;;  %v8726_v40 = vpop.permute.xlu1 %765 }
  0xcf   :  { %1120 = vperm.xlu0 %7163, %v135_v35   ;;  %v148_v35 = vld [vmem:[%s11910_s2 + $0x398] sm:$0xff]  ;;  %11922 = vst [vmem:[#allocation10_spill] sm:$0xff] %v8726_v40 }
  0xd0   :  { %1857 = vmatmul.mubr.f32.gmra.mrb[70].mxu0 %v335_v33  ;;  %v490_v33 = vld [vmem:[%s11909_s1 + $0x820] sm:$0xff] }
  0xd1   :  { %1861 = vmatprep.mubr.f32.mxu0 %v339_v36  ;;  %v493_v36 = vld [vmem:[%s11909_s1 + $0x838] sm:$0xff]  ;;  %6572 = vmatprep.mubr.msk.f32.mxu1 %vm1238_vm0, %v490_v33 }
  0xd2   :  { %1135 = vperm.xlu1 %7164, %v138_v41   ;;  %v353_v41 = vld [vmem:[%s11909_s1 + $0x3d8] sm:$0xff]  ;;  %6573 = vmatmul.mubr.msk.f32.gmra.mrb[86].mxu1 %vm1238_vm0, %v493_v36 }
  0xd3   :  { %1130 = vperm.xlu0 %7163, %v137_v46   ;;  %v8739_v46 = vpop.permute.xlu0 %760  ;;  %v365_v33 = vld [vmem:[%s11909_s1 + $0x438] sm:$0xff] }
  0xd4   :  { %1862 = vmatmul.mubr.f32.gmra.mrb[72].mxu0 %v338_v45  ;;  %v357_v45 = vld [vmem:[%s11909_s1 + $0x3f8] sm:$0xff]  ;;  %11923 = vst [vmem:[#allocation11_spill] sm:$0xff] %v8739_v46 }
  0xd5   :  { %1866 = vmatprep.mubr.f32.mxu0 %v342_v47  ;;  %v496_v47 = vld [vmem:[%s11909_s1 + $0x850] sm:$0xff]  ;;  %v369_v36 = vld [vmem:[%s11909_s1 + $0x458] sm:$0xff] }
  0xd6   :  { %1145 = vperm.xlu1 %7164, %v140_v51   ;;  %v499_v51 = vld [vmem:[%s11909_s1 + $0x868] sm:$0xff]  ;;  %6575 = vmatprep.mubr.msk.f32.mxu1 %vm1238_vm0, %v496_v47  ;;  %v520_v47 = vld [vmem:[%s11909_s1 + $0x910] sm:$0xff] }
  0xd7   :  { %1140 = vperm.xlu0 %7163, %v139_v58   ;;  %v360_v58 = vld [vmem:[%s11909_s1 + $0x410] sm:$0xff]  ;;  %6576 = vmatmul.mubr.msk.f32.gmra.mrb[88].mxu1 %vm1238_vm0, %v499_v51  ;;  %v523_v51 = vld [vmem:[%s11909_s1 + $0x928] sm:$0xff] }
  0xd8   :  { %1867 = vmatmul.mubr.f32.gmra.mrb[74].mxu0 %v341_v56  ;;  %v149_v56 = vld [vmem:[%s11910_s2 + $0x3a0] sm:$0xff]  ;;  %6578 = vmatprep.mubr.msk.f32.mxu1 %vm1238_vm0, %v502_v61  ;;  %v372_v61 = vld [vmem:[%s11909_s1 + $0x470] sm:$0xff] }
  0xd9   :  { %1871 = vmatprep.mubr.f32.mxu0 %v345_v60  ;;  %v8761_v60 = vpop.permute.xlu1 %775 }
  0xda   :  { %1155 = vperm.xlu1 %7164, %v142_v62   ;;  %11924 = vst [vmem:[#allocation12_spill] sm:$0xff] %v8761_v60  ;;  %v152_v62 = vld [vmem:[%s11910_s2 + $0x3b8] sm:$0xff]  ;;  %v580_v60 = vld [vmem:[%s11909_s1 + $0xaf0] sm:$0xff] }
  0xdb   :  { %1150 = vperm.xlu0 %7163, %v141_v6   ;;  %v359_v6 = vld [vmem:[%s11909_s1 + $0x408] sm:$0xff]  ;;  %6579 = vmatmul.mubr.msk.f32.gmra.mrb[90].mxu1 %vm1238_vm0, %v505_v0 }
  0xdc   :  { %1872 = vmatmul.mubr.f32.gmra.mrb[76].mxu0 %v344_v3  ;;  %v8772_v3 = vpop.permute.xlu0 %770 }
  0xdd   :  { %1876 = vmatprep.mubr.f32.mxu0 %v348_v7  ;;  %11925 = vst [vmem:[#allocation13_spill] sm:$0xff] %v8772_v3  ;;  %v151_v7 = vld [vmem:[%s11910_s2 + $0x3b0] sm:$0xff] }
  0xde   :  { %1165 = vperm.xlu1 %7164, %v144_v12   ;;  %v508_v12 = vld [vmem:[%s11909_s1 + $0x8b0] sm:$0xff] }
  0xdf   :  { %1160 = vperm.xlu0 %7163, %v143_v16   ;;  %v8794_v16 = vpop.permute.xlu1 %785  ;;  %6581 = vmatprep.mubr.msk.f32.mxu1 %vm1238_vm0, %v508_v12 }
  0xe0   :  { %1877 = vmatmul.mubr.f32.gmra.mrb[78].mxu0 %v347_v15  ;;  %v511_v15 = vld [vmem:[%s11909_s1 + $0x8c8] sm:$0xff]  ;;  %11926 = vst [vmem:[#allocation14_spill] sm:$0xff] %v8794_v16  ;;  %v8807_v24 = vpop.permute.xlu0 %780 }
  0xe1   :  { %1881 = vmatprep.mubr.f32.mxu0 %v351_v18  ;;  %v362_v18 = vld [vmem:[%s11909_s1 + $0x420] sm:$0xff]  ;;  %6582 = vmatmul.mubr.msk.f32.gmra.mrb[92].mxu1 %vm1238_vm0, %v511_v15  ;;  %11927 = vst [vmem:[#allocation15_spill] sm:$0xff] %v8807_v24  ;;  %v175_v15 = vld [vmem:[%s11910_s2 + $0x470] sm:$0xff]  ;;  %v184_v24 = vld [vmem:[%s11910_s2 + $0x4b8] sm:$0xff] }
  0xe2   :  { %1175 = vperm.xlu1 %7164, %v146_v23   ;;  %v366_v23 = vld [vmem:[%s11909_s1 + $0x440] sm:$0xff] }
  0xe3   :  { %1170 = vperm.xlu0 %7163, %v145_v28   ;;  %v156_v28 = vld [vmem:[%s11910_s2 + $0x3d8] sm:$0xff] }
  0xe4   :  { %1882 = vmatmul.mubr.f32.gmra.mrb[80].mxu0 %v350_v27  ;;  %v514_v27 = vld [vmem:[%s11909_s1 + $0x8e0] sm:$0xff] }
  0xe5   :  { %1886 = vmatprep.mubr.f32.mxu0 %v354_v31  ;;  %v517_v31 = vld [vmem:[%s11909_s1 + $0x8f8] sm:$0xff]  ;;  %6584 = vmatprep.mubr.msk.f32.mxu1 %vm1238_vm0, %v514_v27 }
  0xe6   :  { %1185 = vperm.xlu1 %7164, %v148_v35   ;;  %v155_v35 = vld [vmem:[%s11910_s2 + $0x3d0] sm:$0xff]  ;;  %6585 = vmatmul.mubr.msk.f32.gmra.mrb[94].mxu1 %vm1238_vm0, %v517_v31  ;;  %v160_v31 = vld [vmem:[%s11910_s2 + $0x3f8] sm:$0xff] }
  0xe7   :  { %1180 = vperm.xlu0 %7163, %v147_v42   ;;  %v8831_v42 = vpop.permute.xlu1 %795  ;;  %6587 = vmatprep.mubr.msk.f32.mxu1 %vm1238_vm0, %v520_v47  ;;  %v378_v47 = vld [vmem:[%s11909_s1 + $0x4a0] sm:$0xff] }
  0xe8   :  { %1887 = vmatmul.mubr.f32.gmra.mrb[82].mxu0 %v353_v41  ;;  %11928 = vst [vmem:[#allocation16_spill] sm:$0xff] %v8831_v42 }
  0xe9   :  { %1891 = vmatprep.mubr.f32.mxu0 %v357_v45 }
  0xea   :  { %1195 = vperm.xlu1 %7164, %v150_v49   ;;  %v158_v49 = vld [vmem:[%s11910_s2 + $0x3e8] sm:$0xff]  ;;  %6588 = vmatmul.mubr.msk.f32.gmra.mrb[96].mxu1 %vm1238_vm0, %v523_v51 }
  0xeb   :  { %1190 = vperm.xlu0 %7163, %v149_v56   ;;  %v368_v56 = vld [vmem:[%s11909_s1 + $0x450] sm:$0xff]  ;;  %v8870_v12 = vpop.permute.xlu1 %805 }
  0xec   :  { %1892 = vmatmul.mubr.f32.gmra.mrb[84].mxu0 %v356_v54  ;;  %v8828_v41 = vpop.f32.mrb[0].mxu1  ;;  %v8844_v54 = vpop.permute.xlu0 %790  ;;  %11930 = vst [vmem:[#allocation18_spill] sm:$0xff] %v8870_v12 }
  0xed   :  { %1896 = vmatprep.mubr.f32.mxu0 %v360_v58  ;;  %v8833_v45 = vpop.f32.mrb[1].mxu1  ;;  %11929 = vst [vmem:[#allocation17_spill] sm:$0xff] %v8844_v54  ;;  %v157_v58 = vld [vmem:[%s11910_s2 + $0x3e0] sm:$0xff]  ;;  %v166_v54 = vld [vmem:[%s11910_s2 + $0x428] sm:$0xff] }
  0xee   :  { %1205 = vperm.xlu1 %7164, %v152_v62  }
  0xef   :  { %1200 = vperm.xlu0 %7163, %v151_v7   ;;  %v176_v7 = vld [vmem:[%s11910_s2 + $0x478] sm:$0xff]  ;;  %v8911_v51 = vpop.permute.xlu1 %815 }
  0xf0   :  { %1897 = vmatmul.mubr.f32.gmra.mrb[86].mxu0 %v359_v6  ;;  %v8856_v62 = vpop.f32.mrb[2].mxu1  ;;  %v526_v6 = vld [vmem:[%s11909_s1 + $0x940] sm:$0xff]  ;;  %11932 = vst [vmem:[#allocation20_spill] sm:$0xff] %v8911_v51  ;;  %v559_v51 = vld [vmem:[%s11909_s1 + $0xa48] sm:$0xff] }
  0xf1   :  { %1901 = vmatprep.mubr.f32.mxu0 %v363_v11  ;;  %v8859_v0 = vpop.f32.mrb[3].mxu1  ;;  %v529_v11 = vld [vmem:[%s11909_s1 + $0x958] sm:$0xff]  ;;  %6590 = vmatprep.mubr.msk.f32.mxu1 %vm1238_vm0, %v526_v6 }
  0xf2   :  { %1215 = vperm.xlu1 %7164, %v154_v13   ;;  %v371_v13 = vld [vmem:[%s11909_s1 + $0x468] sm:$0xff]  ;;  %6591 = vmatmul.mubr.msk.f32.gmra.mrb[98].mxu1 %vm1238_vm0, %v529_v11  ;;  %v541_v6 = vld [vmem:[%s11909_s1 + $0x9b8] sm:$0xff] }
  0xf3   :  { %1210 = vperm.xlu0 %7163, %v153_v21   ;;  %v377_v11 = vld [vmem:[%s11909_s1 + $0x498] sm:$0xff] }
  0xf4   :  { %1902 = vmatmul.mubr.f32.gmra.mrb[88].mxu0 %v362_v18  ;;  %v375_v18 = vld [vmem:[%s11909_s1 + $0x488] sm:$0xff]  ;;  %v8882_v21 = vpop.f32.mrb[4].mxu1 }
  0xf5   :  { %1906 = vmatprep.mubr.f32.mxu0 %v366_v23  ;;  %v8885_v23 = vpop.permute.xlu0 %800  ;;  %v8887_v27 = vpop.f32.mrb[5].mxu1 }
  0xf6   :  { %1225 = vperm.xlu1 %7164, %v156_v28   ;;  %11931 = vst [vmem:[#allocation19_spill] sm:$0xff] %v8885_v23  ;;  %v532_v28 = vld [vmem:[%s11909_s1 + $0x970] sm:$0xff] }
  0xf7   :  { %1220 = vperm.xlu0 %7163, %v155_v35   ;;  %v374_v35 = vld [vmem:[%s11909_s1 + $0x480] sm:$0xff]  ;;  %6593 = vmatprep.mubr.msk.f32.mxu1 %vm1238_vm0, %v532_v28  ;;  %v568_v23 = vld [vmem:[%s11909_s1 + $0xa90] sm:$0xff] }
  0xf8   :  { %1907 = vmatmul.mubr.f32.gmra.mrb[90].mxu0 %v365_v33  ;;  %v535_v33 = vld [vmem:[%s11909_s1 + $0x988] sm:$0xff] }
  0xf9   :  { %1911 = vmatprep.mubr.f32.mxu0 %v369_v36  ;;  %v159_v36 = vld [vmem:[%s11910_s2 + $0x3f0] sm:$0xff]  ;;  %6594 = vmatmul.mubr.msk.f32.gmra.mrb[100].mxu1 %vm1238_vm0, %v535_v33  ;;  %v162_v33 = vld [vmem:[%s11910_s2 + $0x408] sm:$0xff] }
  0xfa   :  { %1235 = vperm.xlu1 %7164, %v158_v49   ;;  %v8908_v49 = vpop.f32.mrb[6].mxu1 }
  0xfb   :  { %1230 = vperm.xlu0 %7163, %v157_v58   ;;  %v538_v58 = vld [vmem:[%s11909_s1 + $0x9a0] sm:$0xff] }
  0xfc   :  { %1912 = vmatmul.mubr.f32.gmra.mrb[92].mxu0 %v368_v56  ;;  %v8913_v56 = vpop.f32.mrb[7].mxu1  ;;  %6596 = vmatprep.mubr.msk.f32.mxu1 %vm1238_vm0, %v538_v58  ;;  %v161_v58 = vld [vmem:[%s11910_s2 + $0x400] sm:$0xff] }
  0xfd   :  { %1916 = vmatprep.mubr.f32.mxu0 %v372_v61  ;;  %v178_v61 = vld [vmem:[%s11910_s2 + $0x488] sm:$0xff]  ;;  %6597 = vmatmul.mubr.msk.f32.gmra.mrb[102].mxu1 %vm1238_vm0, %v541_v6 }
  0xfe   :  { %5105 = vperm.xlu1 %7164, %v176_v7   ;;  %v8924_v7 = vpop.permute.xlu0 %810 }
  0xff   :  { %5100 = vperm.xlu0 %7163, %v175_v15   ;;  %11933 = vst [vmem:[#allocation21_spill] sm:$0xff] %v8924_v7  ;;  %v381_v15 = vld [vmem:[%s11909_s1 + $0x4b8] sm:$0xff] }
 0x100   :  { %1917 = vmatmul.mubr.f32.gmra.mrb[94].mxu0 %v371_v13  ;;  %v177_v13 = vld [vmem:[%s11910_s2 + $0x480] sm:$0xff]  ;;  %v565_v7 = vld [vmem:[%s11909_s1 + $0xa78] sm:$0xff] }
 0x101   :  { %1921 = vmatprep.mubr.f32.mxu0 %v375_v18  ;;  %v8936_v18 = vpop.f32.mrb[8].mxu1 }
 0x102   :  { %5025 = vperm.xlu1 %7164, %v160_v31   ;;  %v8939_v28 = vpop.f32.mrb[9].mxu1  ;;  %v544_v31 = vld [vmem:[%s11909_s1 + $0x9d0] sm:$0xff] }
 0x103   :  { %5020 = vperm.xlu0 %7163, %v159_v36   ;;  %v8950_v36 = vpop.permute.xlu1 %825  ;;  %6599 = vmatprep.mubr.msk.f32.mxu1 %vm1238_vm0, %v544_v31  ;;  %v8962_v6 = vpop.f32.mrb[10].mxu1  ;;  %v180_v31 = vld [vmem:[%s11910_s2 + $0x498] sm:$0xff] }
 0x104   :  { %1922 = vmatmul.mubr.f32.gmra.mrb[96].mxu0 %v374_v35  ;;  %v547_v35 = vld [vmem:[%s11909_s1 + $0x9e8] sm:$0xff]  ;;  %11934 = vst [vmem:[#allocation22_spill] sm:$0xff] %v8950_v36 }
 0x105   :  { %1926 = vmatprep.mubr.f32.mxu0 %v378_v47  ;;  %v380_v47 = vld [vmem:[%s11909_s1 + $0x4b0] sm:$0xff]  ;;  %6600 = vmatmul.mubr.msk.f32.gmra.mrb[104].mxu1 %vm1238_vm0, %v547_v35 }
 0x106   :  { %5115 = vperm.xlu1 %7164, %v178_v61   ;;  %v384_v61 = vld [vmem:[%s11909_s1 + $0x4d0] sm:$0xff] }
 0x107   :  { %5110 = vperm.xlu0 %7163, %v177_v13   ;;  %v8967_v13 = vpop.f32.mrb[11].mxu1  ;;  %v179_v35 = vld [vmem:[%s11910_s2 + $0x490] sm:$0xff]  ;;  %v8991_v36 = vpop.permute.xlu1 %835 }
 0x108   :  { %1927 = vmatmul.mubr.f32.gmra.mrb[98].mxu0 %v377_v11  ;;  %v8965_v11 = vpop.permute.xlu0 %820  ;;  %11936 = vst [vmem:[#allocation24_spill] sm:$0xff] %v8991_v36 }
 0x109   :  { %1931 = vmatprep.mubr.f32.mxu0 %v381_v15  ;;  %11935 = vst [vmem:[#allocation23_spill] sm:$0xff] %v8965_v11  ;;  %v550_v15 = vld [vmem:[%s11909_s1 + $0xa00] sm:$0xff]  ;;  %v556_v11 = vld [vmem:[%s11909_s1 + $0xa30] sm:$0xff] }
 0x10a   :  { %5035 = vperm.xlu1 %7164, %v162_v33   ;;  %v383_v33 = vld [vmem:[%s11909_s1 + $0x4c8] sm:$0xff]  ;;  %6602 = vmatprep.mubr.msk.f32.mxu1 %vm1238_vm0, %v550_v15  ;;  %v164_v15 = vld [vmem:[%s11910_s2 + $0x418] sm:$0xff] }
 0x10b   :  { %5030 = vperm.xlu0 %7163, %v161_v58   ;;  %v8988_v58 = vpop.f32.mrb[12].mxu1  ;;  %6603 = vmatmul.mubr.msk.f32.gmra.mrb[106].mxu1 %vm1238_vm0, %v553_v5  ;;  %v9030_v12 = vpop.permute.xlu1 %845 }
 0x10c   :  { %1932 = vmatmul.mubr.f32.gmra.mrb[100].mxu0 %v380_v47  ;;  %v387_v47 = vld [vmem:[%s11909_s1 + $0x4e8] sm:$0xff]  ;;  %v9004_v5 = vpop.permute.xlu0 %830  ;;  %6605 = vmatprep.mubr.msk.f32.mxu1 %vm1238_vm0, %v556_v11  ;;  %11938 = vst [vmem:[#allocation26_spill] sm:$0xff] %v9030_v12 }
 0x10d   :  { %1936 = vmatprep.mubr.f32.mxu0 %v384_v61  ;;  %v8993_v61 = vpop.f32.mrb[13].mxu1  ;;  %11937 = vst [vmem:[#allocation25_spill] sm:$0xff] %v9004_v5  ;;  %v562_v5 = vld [vmem:[%s11909_s1 + $0xa60] sm:$0xff]  ;;  %v182_v11 = vld [vmem:[%s11910_s2 + $0x4a8] sm:$0xff] }
 0x10e   :  { %5125 = vperm.xlu1 %7164, %v180_v31   ;;  %v386_v31 = vld [vmem:[%s11909_s1 + $0x4e0] sm:$0xff]  ;;  %v9016_v36 = vpop.f32.mrb[14].mxu1 }
 0x10f   :  { %5120 = vperm.xlu0 %7163, %v179_v35   ;;  %v390_v35 = vld [vmem:[%s11909_s1 + $0x500] sm:$0xff]  ;;  %6606 = vmatmul.mubr.msk.f32.gmra.mrb[108].mxu1 %vm1238_vm0, %v559_v51  ;;  %v389_v51 = vld [vmem:[%s11909_s1 + $0x4f8] sm:$0xff] }
 0x110   :  { %1937 = vmatmul.mubr.f32.gmra.mrb[102].mxu0 %v383_v33  ;;  %v163_v33 = vld [vmem:[%s11910_s2 + $0x410] sm:$0xff]  ;;  %6608 = vmatprep.mubr.msk.f32.mxu1 %vm1238_vm0, %v562_v5  ;;  %v9045_v12 = vpop.permute.xlu0 %840 }
 0x111   :  { %1941 = vmatprep.mubr.f32.mxu0 %v387_v47  ;;  %v9019_v47 = vpop.f32.mrb[15].mxu1  ;;  %11939 = vst [vmem:[#allocation27_spill] sm:$0xff] %v9045_v12  ;;  %v574_v12 = vld [vmem:[%s11909_s1 + $0xac0] sm:$0xff] }
 0x112   :  { %5045 = vperm.xlu1 %7164, %v164_v15   ;;  %v181_v15 = vld [vmem:[%s11910_s2 + $0x4a0] sm:$0xff] }
 0x113   :  { %5040 = vperm.xlu0 %7163, %v163_v33   ;;  %v9042_v33 = vpop.f32.mrb[16].mxu1  ;;  %6609 = vmatmul.mubr.msk.f32.gmra.mrb[110].mxu1 %vm1238_vm0, %v565_v7  ;;  %v571_v7 = vld [vmem:[%s11909_s1 + $0xaa8] sm:$0xff] }
 0x114   :  { %1942 = vmatmul.mubr.f32.gmra.mrb[104].mxu0 %v386_v31  ;;  %v393_v31 = vld [vmem:[%s11909_s1 + $0x518] sm:$0xff]  ;;  %v9054_v16 = vpop.f32.mrb[17].mxu1  ;;  %6611 = vmatprep.mubr.msk.f32.mxu1 %vm1238_vm0, %v568_v23 }
 0x115   :  { %1946 = vmatprep.mubr.f32.mxu0 %v390_v35 }
 0x116   :  { %5135 = vperm.xlu1 %7164, %v182_v11   ;;  %v392_v11 = vld [vmem:[%s11909_s1 + $0x510] sm:$0xff] }
 0x117   :  { %v1683_v35 = vpop.f32.mrb[0].mxu0  ;;  %5130 = vperm.xlu0 %7163, %v181_v15   ;;  %v9072_v15 = vpop.f32.mrb[18].mxu1  ;;  %6612 = vmatmul.mubr.msk.f32.gmra.mrb[112].mxu1 %vm1238_vm0, %v571_v7 }
 0x118   :  { %v1685_v42 = vpop.f32.mrb[1].mxu0  ;;  %1947 = vmatmul.mubr.f32.gmra.mrb[106].mxu0 %v389_v51  ;;  %v1684_v5 = vadd.f32 %v1683_v35, %v8260_v34  ;;  %v396_v51 = vld [vmem:[%s11909_s1 + $0x530] sm:$0xff]  ;;  %v9085_v7 = vpop.f32.mrb[19].mxu1  ;;  %6614 = vmatprep.mubr.msk.f32.mxu1 %vm1238_vm0, %v574_v12 }
 0x119   :  { %1951 = vmatprep.mubr.f32.mxu0 %v393_v31  ;;  %v165_v42 = vld [vmem:[%s11910_s2 + $0x420] sm:$0xff]  ;;  %v9075_v31 = vpop.permute.xlu1 %855 }
 0x11a   :  { %v9067_v34 = vadd.f32 %v8833_v45, %v1684_v5  ;;  %11940 = vst [vmem:[#allocation28_spill] sm:$0xff] %v9075_v31  ;;  %5055 = vperm.xlu1 %7164, %v166_v54   ;;  %v577_v54 = vld [vmem:[%s11909_s1 + $0xad8] sm:$0xff]  ;;  %v9090_v31 = vpop.permute.xlu0 %850 }
 0x11b   :  { %v1688_v35 = vpop.f32.mrb[2].mxu0  ;;  %5050 = vperm.xlu0 %7163, %v165_v42   ;;  %11941 = vst [vmem:[#allocation29_spill] sm:$0xff] %v9090_v31  ;;  %v9105_v31 = vpop.f32.mrb[20].mxu1  ;;  %6615 = vmatmul.mubr.msk.f32.gmra.mrb[114].mxu1 %vm1238_vm0, %v577_v54 }
 0x11c   :  { %v3133_v23 = vmin.f32 %v9067_v34, 0.0  ;;  %v1689_v45 = vadd.f32 %v1688_v35, %v8287_v43  ;;  %v1690_v5 = vpop.f32.mrb[3].mxu0  ;;  %1952 = vmatmul.mubr.f32.gmra.mrb[108].mxu0 %v392_v11  ;;  %v395_v43 = vld [vmem:[%s11909_s1 + $0x528] sm:$0xff]  ;;  %v183_v11 = vld [vmem:[%s11910_s2 + $0x4b0] sm:$0xff]  ;;  %v9116_v3 = vpop.f32.mrb[21].mxu1  ;;  %6617 = vmatprep.mubr.msk.f32.mxu1 %vm1238_vm0, %v580_v60  ;;  %v586_v60 = vld [vmem:[%s11909_s1 + $0xb20] sm:$0xff] }
 0x11d   :  { %1956 = vmatprep.mubr.f32.mxu0 %v396_v51  ;;  %v399_v5 = vld [vmem:[%s11909_s1 + $0x548] sm:$0xff]  ;;  %v9121_v54 = vpop.permute.xlu1 %865  ;;  %vm3007_vm1 = vcmp.gt.f32.partialorder %v9067_v34, 0.0 }
 0x11e   :  { %v3259_v42 = vmul.f32 1.442695, %v3133_v23  ;;  %v9100_v35 = vadd.f32 %v8828_v41, %v1689_v45  ;;  %5145 = vperm.xlu1 %7164, %v184_v24   ;;  %v168_v45 = vld [vmem:[%s11910_s2 + $0x438] sm:$0xff]  ;;  %v583_v24 = vld [vmem:[%s11909_s1 + $0xb08] sm:$0xff]  ;;  %11942 = vst [vmem:[#allocation30_spill] sm:$0xff] %v9121_v54 }
 0x11f   :  { %v1693_v51 = vpop.f32.mrb[4].mxu0  ;;  %5140 = vperm.xlu0 %7163, %v183_v11   ;;  %6618 = vmatmul.mubr.msk.f32.gmra.mrb[116].mxu1 %vm1238_vm0, %v583_v24  ;;  %v186_v24 = vld [vmem:[%s11910_s2 + $0x4c8] sm:$0xff] }
 0x120   :  { %7165 = vpow2.f32 %v3259_v42  ;;  %v3134_v12 = vmin.f32 %v9100_v35, 0.0  ;;  %v1695_v23 = vpop.f32.mrb[5].mxu0  ;;  %1957 = vmatmul.mubr.f32.gmra.mrb[110].mxu0 %v395_v43  ;;  %v1694_v41 = vadd.f32 %v1693_v51, %v8249_v30  ;;  %v398_v43 = vld [vmem:[%s11909_s1 + $0x540] sm:$0xff]  ;;  %v167_v30 = vld [vmem:[%s11910_s2 + $0x430] sm:$0xff]  ;;  %6620 = vmatprep.mubr.msk.f32.mxu1 %vm1238_vm0, %v586_v60  ;;  %vm3008_vm2 = vcmp.gt.f32.partialorder %v9100_v35, 0.0 }
 0x121   :  { %1961 = vmatprep.mubr.f32.mxu0 %v399_v5  ;;  %v402_v51 = vld [vmem:[%s11909_s1 + $0x560] sm:$0xff]  ;;  %v9136_v23 = vpop.f32.mrb[22].mxu1  ;;  %v9139_v5 = vpop.permute.xlu0 %860  ;;  %v592_v60 = vld [vmem:[%s11909_s1 + $0xb50] sm:$0xff] }
 0x122   :  { %v3261_v11 = vmul.f32 1.442695, %v3134_v12  ;;  %v9131_v42 = vadd.f32 %v8859_v0, %v1694_v41  ;;  %11943 = vst [vmem:[#allocation31_spill] sm:$0xff] %v9139_v5  ;;  %5065 = vperm.xlu1 %7164, %v168_v45   ;;  %v9149_v40 = vpop.f32.mrb[23].mxu1  ;;  %v589_v45 = vld [vmem:[%s11909_s1 + $0xb38] sm:$0xff] }
 0x123   :  { %v1698_v54 = vpop.f32.mrb[6].mxu0  ;;  %5060 = vperm.xlu0 %7163, %v167_v30   ;;  %v405_v30 = vld [vmem:[%s11909_s1 + $0x578] sm:$0xff]  ;;  %6621 = vmatmul.mubr.msk.f32.gmra.mrb[118].mxu1 %vm1238_vm0, %v589_v45  ;;  %v170_v45 = vld [vmem:[%s11910_s2 + $0x448] sm:$0xff] }
 0x124   :  { %7167 = vpow2.f32 %v3261_v11  ;;  %v3135_v0 = vmin.f32 %v9131_v42, 0.0  ;;  %v1699_v12 = vadd.f32 %v1698_v54, %v8276_v39  ;;  %v1700_v41 = vpop.f32.mrb[7].mxu0  ;;  %1962 = vmatmul.mubr.f32.gmra.mrb[112].mxu0 %v398_v43  ;;  %v401_v11 = vld [vmem:[%s11909_s1 + $0x558] sm:$0xff]  ;;  %v185_v39 = vld [vmem:[%s11910_s2 + $0x4c0] sm:$0xff]  ;;  %6623 = vmatprep.mubr.msk.f32.mxu1 %vm1238_vm0, %v592_v60  ;;  %vm3009_vm3 = vcmp.gt.f32.partialorder %v9131_v42, 0.0 }
 0x125   :  { %1966 = vmatprep.mubr.f32.mxu0 %v402_v51  ;;  %v9167_v41 = vpop.f32.mrb[24].mxu1  ;;  %v9170_v51 = vpop.permute.xlu1 %875 }
 0x126   :  { %v3263_v54 = vmul.f32 1.442695, %v3135_v0  ;;  %v9162_v43 = vadd.f32 %v8856_v62, %v1699_v12  ;;  %11944 = vst [vmem:[#allocation32_spill] sm:$0xff] %v9170_v51  ;;  %5155 = vperm.xlu1 %7164, %v186_v24   ;;  %v9180_v46 = vpop.f32.mrb[25].mxu1  ;;  %v595_v24 = vld [vmem:[%s11909_s1 + $0xb68] sm:$0xff]  ;;  %v9185_v51 = vpop.permute.xlu0 %870 }
 0x127   :  { %v1703_v5 = vpop.f32.mrb[8].mxu0  ;;  %5150 = vperm.xlu0 %7163, %v185_v39   ;;  %11945 = vst [vmem:[#allocation33_spill] sm:$0xff] %v9185_v51  ;;  %6624 = vmatmul.mubr.msk.f32.gmra.mrb[120].mxu1 %vm1238_vm0, %v595_v24 }
 0x128   :  { %7169 = vpow2.f32 %v3263_v54  ;;  %v3136_v62 = vmin.f32 %v9162_v43, 0.0  ;;  %v1705_v0 = vpop.f32.mrb[9].mxu0  ;;  %1967 = vmatmul.mubr.f32.gmra.mrb[114].mxu0 %v401_v11  ;;  %v1704_v12 = vadd.f32 %v1703_v5, %v8314_v52  ;;  %v404_v11 = vld [vmem:[%s11909_s1 + $0x570] sm:$0xff]  ;;  %v169_v52 = vld [vmem:[%s11910_s2 + $0x440] sm:$0xff]  ;;  %6626 = vmatprep.mubr.msk.f32.mxu1 %vm1238_vm0, %v598_v20  ;;  %vm3010_vm4 = vcmp.gt.f32.partialorder %v9162_v43, 0.0 }
 0x129   :  { %1971 = vmatprep.mubr.f32.mxu0 %v405_v30  ;;  %v408_v0 = vld [vmem:[%s11909_s1 + $0x590] sm:$0xff]  ;;  %v9200_v30 = vpop.f32.mrb[26].mxu1  ;;  %v9216_v24 = vpop.permute.xlu1 %885 }
 0x12a   :  { %v7166_v5 = vpop.eup %7165  ;;  %v3265_v39 = vmul.f32 1.442695, %v3136_v62  ;;  %v9195_v54 = vadd.f32 %v8887_v27, %v1704_v12  ;;  %11946 = vst [vmem:[#allocation34_spill] sm:$0xff] %v9200_v30  ;;  %5075 = vperm.xlu1 %7164, %v170_v45   ;;  %v188_v12 = vld [vmem:[%s11910_s2 + $0x4d8] sm:$0xff]  ;;  %v9211_v25 = vpop.f32.mrb[27].mxu1  ;;  %11947 = vst [vmem:[#allocation35_spill] sm:$0xff] %v9216_v24 }
 0x12b   :  { %v1708_v51 = vpop.f32.mrb[10].mxu0  ;;  %5070 = vperm.xlu0 %7163, %v169_v52   ;;  %v601_v45 = vld [vmem:[%s11909_s1 + $0xb98] sm:$0xff]  ;;  %v9234_v24 = vpop.permute.xlu0 %880 }
 0x12c   :  { %7171 = vpow2.f32 %v3265_v39  ;;  %v3137_v60 = vmin.f32 %v9195_v54, 0.0  ;;  %v1709_v27 = vadd.f32 %v1708_v51, %v8309_v50  ;;  %v1710_v62 = vpop.f32.mrb[11].mxu0  ;;  %1972 = vmatmul.mubr.f32.gmra.mrb[116].mxu0 %v404_v11  ;;  %v6026_v39 = vadd.f32 -1.0, %v7166_v5  ;;  %v407_v50 = vld [vmem:[%s11909_s1 + $0x588] sm:$0xff]  ;;  %v187_v51 = vld [vmem:[%s11910_s2 + $0x4d0] sm:$0xff]  ;;  %6627 = vmatmul.mubr.msk.f32.gmra.mrb[122].mxu1 %vm1238_vm0, %v601_v45  ;;  %11949 = vst [vmem:[#allocation37_spill] sm:$0xff] %v9234_v24 }
 0x12d   :  { %1976 = vmatprep.mubr.f32.mxu0 %v408_v0  ;;  %v411_v5 = vld [vmem:[%s11909_s1 + $0x5a8] sm:$0xff]  ;;  %v9231_v0 = vpop.f32.mrb[28].mxu1  ;;  %v172_v24 = vld [vmem:[%s11910_s2 + $0x458] sm:$0xff]  ;;  %vm3011_vm5 = vcmp.gt.f32.partialorder %v9195_v54, 0.0 }
 0x12e   :  { %v7168_v11 = vpop.eup %7167  ;;  %v3267_v52 = vmul.f32 1.442695, %v3137_v60  ;;  %v9226_v62 = vadd.f32 %v8882_v21, %v1709_v27  ;;  %11948 = vst [vmem:[#allocation36_spill] sm:$0xff] %v9231_v0  ;;  %5165 = vperm.xlu1 %7164, %v188_v12   ;;  %v604_v21 = vld [vmem:[%s11909_s1 + $0xbb0] sm:$0xff]  ;;  %v9246_v12 = vpop.f32.mrb[29].mxu1  ;;  %v3637_v0 = vsel %vm3007_vm1, %v9067_v34, %v6026_v39  ;;  %v414_v34 = vld [vmem:[%s11909_s1 + $0x5c0] sm:$0xff] }
 0x12f   :  { %v1713_v30 = vpop.f32.mrb[12].mxu0  ;;  %v6027_v20 = vadd.f32 -1.0, %v7168_v11  ;;  %5160 = vperm.xlu0 %7163, %v187_v51   ;;  %11950 = vst [vmem:[#allocation38_spill] sm:$0xff] %v9246_v12  ;;  %v607_v11 = vld [vmem:[%s11909_s1 + $0xbc8] sm:$0xff]  ;;  %6629 = vmatprep.mubr.msk.f32.mxu1 %vm1238_vm0, %v604_v21  ;;  %v171_v12 = vld [vmem:[%s11910_s2 + $0x450] sm:$0xff] }
 0x130   :  { %7173 = vpow2.f32 %v3267_v52  ;;  %v3138_v60 = vmin.f32 %v9226_v62, 0.0  ;;  %v1715_v27 = vpop.f32.mrb[13].mxu0  ;;  %1977 = vmatmul.mubr.f32.gmra.mrb[118].mxu0 %v407_v50  ;;  %v1714_v45 = vadd.f32 %v1713_v30, %v8347_v63  ;;  %v410_v50 = vld [vmem:[%s11909_s1 + $0x5a0] sm:$0xff]  ;;  %6630 = vmatmul.mubr.msk.f32.gmra.mrb[124].mxu1 %vm1238_vm0, %v607_v11  ;;  %v9281_v11 = vpop.permute.xlu0 %890  ;;  %vm3012_vm6 = vcmp.gt.f32.partialorder %v9226_v62, 0.0 }
 0x131   :  { %1981 = vmatprep.mubr.f32.mxu0 %v411_v5  ;;  %v3638_v51 = vsel %vm3008_vm2, %v9100_v35, %v6027_v20  ;;  %v9266_v39 = vpop.f32.mrb[30].mxu1  ;;  %v9269_v35 = vpop.permute.xlu1 %895  ;;  %11952 = vst [vmem:[#allocation40_spill] sm:$0xff] %v9281_v11 }
 0x132   :  { %v7170_v63 = vpop.eup %7169  ;;  %v3269_v30 = vmul.f32 1.442695, %v3138_v60  ;;  %v9258_v52 = vadd.f32 %v8913_v56, %v1714_v45  ;;  %v6704_v27 = vpack.c.bf16 %v3638_v51, %v3637_v0  ;;  %11951 = vst [vmem:[#allocation39_spill] sm:$0xff] %v9269_v35  ;;  %5085 = vperm.xlu1 %7164, %v172_v24   ;;  %v3764_v56 = vld [vmem:[%s11911_s3 + $0x8] sm:$0xff]  ;;  %v9279_v45 = vpop.f32.mrb[31].mxu1  ;;  %v413_v51 = vld [vmem:[%s11909_s1 + $0x5b8] sm:$0xff] }
 0x133   :  { %v1718_v5 = vpop.f32.mrb[14].mxu0  ;;  %v190_v60 = vld [vmem:[%s11910_s2 + $0x4e8] sm:$0xff]  ;;  %v6028_v24 = vadd.f32 -1.0, %v7170_v63  ;;  %5080 = vperm.xlu0 %7163, %v171_v12   ;;  %v11953_v63 = vmov 0.0|0.0   ;;  %4158 = vmatprep.mubr.f32.mxu1 %v3764_v56 }
 0x134   :  { %7175 = vpow2.f32 %v3269_v30  ;;  %v3139_v0 = vmin.f32 %v9258_v52, 0.0  ;;  %v1719_v20 = vadd.f32 %v1718_v5, %v8334_v59  ;;  %v1720_v21 = vpop.f32.mrb[15].mxu0  ;;  %1982 = vmatmul.mubr.f32.gmra.mrb[120].mxu0 %v410_v50  ;;  %6705 = vmatpush1.bf16.msra.mxu1 %v6704_v27  ;;  %v189_v27 = vld [vmem:[%s11910_s2 + $0x4e0] sm:$0xff]  ;;  %v417_v5 = vld [vmem:[%s11909_s1 + $0x5d8] sm:$0xff]  ;;  %v174_v35 = vld [vmem:[%s11910_s2 + $0x468] sm:$0xff]  ;;  %vm3013_vm7 = vcmp.gt.f32.partialorder %v9258_v52, 0.0 }
 0x135   :  { %1986 = vmatprep.mubr.f32.mxu0 %v414_v34  ;;  %6706 = vmatprep.subr.bf16.mxu1 %v11953_v63  ;;  %v9296_v12 = vpop.f32.mrb[32].mxu1  ;;  %v3639_v56 = vsel %vm3009_vm3, %v9131_v42, %v6028_v24  ;;  %v173_v42 = vld [vmem:[%s11910_s2 + $0x460] sm:$0xff]  ;;  %v420_v24 = vld [vmem:[%s11909_s1 + $0x5f0] sm:$0xff] }
 0x136   :  { %v7172_v30 = vpop.eup %7171  ;;  %v3271_v59 = vmul.f32 1.442695, %v3139_v0  ;;  %v9287_v50 = vadd.f32 %v8908_v49, %v1719_v20  ;;  %5175 = vperm.xlu1 %7164, %v190_v60   ;;  %v9305_v11 = vpop.f32.mrb[33].mxu1  ;;  %v416_v60 = vld [vmem:[%s11909_s1 + $0x5d0] sm:$0xff] }
 0x137   :  { %v1723_v34 = vpop.f32.mrb[16].mxu0  ;;  %v6029_v0 = vadd.f32 -1.0, %v7172_v30  ;;  %5170 = vperm.xlu0 %7163, %v189_v27  }
 0x138   :  { %7177 = vpow2.f32 %v3271_v59  ;;  %v3140_v49 = vmin.f32 %v9287_v50, 0.0  ;;  %v1725_v20 = vpop.f32.mrb[17].mxu0  ;;  %1987 = vmatmul.mubr.f32.gmra.mrb[122].mxu0 %v413_v51  ;;  %v1724_v21 = vadd.f32 %v1723_v34, %v8372_v9  ;;  %v9312_v51 = vpop.permute.xlu1 %905  ;;  %vm3014_vm8 = vcmp.gt.f32.partialorder %v9287_v50, 0.0 }
 0x139   :  { %1991 = vmatprep.mubr.f32.mxu0 %v417_v5  ;;  %v3640_v30 = vsel %vm3010_vm4, %v9162_v43, %v6029_v0  ;;  %11954 = vst [vmem:[#allocation41_spill] sm:$0xff] %v9312_v51  ;;  %v9323_v27 = vpop.f32.mrb[34].mxu1  ;;  %v9325_v5 = vpop.permute.xlu0 %900 }
 0x13a   :  { %v7174_v59 = vpop.eup %7173  ;;  %v3273_v9 = vmul.f32 1.442695, %v3140_v49  ;;  %v9315_v34 = vadd.f32 %v8939_v28, %v1724_v21  ;;  %v6707_v20 = vpack.c.bf16 %v3640_v30, %v3639_v56  ;;  %11955 = vst [vmem:[#allocation42_spill] sm:$0xff] %v9325_v5  ;;  %5095 = vperm.xlu1 %7164, %v174_v35   ;;  %v9329_v21 = vpop.f32.mrb[35].mxu1  ;;  %v419_v30 = vld [vmem:[%s11909_s1 + $0x5e8] sm:$0xff] }
 0x13b   :  { %v1728_v43 = vpop.f32.mrb[18].mxu0  ;;  %v6030_v56 = vadd.f32 -1.0, %v7174_v59  ;;  %5090 = vperm.xlu0 %7163, %v173_v42  }
 0x13c   :  { %7179 = vpow2.f32 %v3273_v9  ;;  %v3141_v0 = vmin.f32 %v9315_v34, 0.0  ;;  %v1729_v28 = vadd.f32 %v1728_v43, %v8361_v4  ;;  %v1730_v49 = vpop.f32.mrb[19].mxu0  ;;  %1992 = vmatmul.mubr.f32.gmra.mrb[124].mxu0 %v416_v60  ;;  %6708 = vmatpush1.bf16.msra.mxu1 %v6707_v20  ;;  %v5789_v4 = vld [vmem:[%s11915_s7] sm:$0xff]  ;;  %v423_v60 = vld [vmem:[%s11909_s1 + $0x608] sm:$0xff]  ;;  %vm3015_vm9 = vcmp.gt.f32.partialorder %v9315_v34, 0.0 }
 0x13d   :  { %1996 = vmatprep.mubr.f32.mxu0 %v420_v24  ;;  %6709 = vmatprep.subr.bf16.mxu1 %v11953_v63  ;;  %v9344_v59 = vpop.f32.mrb[36].mxu1 }
 0x13e   :  { %v7176_v51 = vpop.eup %7175  ;;  %v3275_v5 = vmul.f32 1.442695, %v3141_v0  ;;  %v9335_v35 = vadd.f32 %v8936_v18, %v1729_v28  ;;  %11956 = vst [vmem:[#allocation43_spill] sm:$0xff] %v9344_v59  ;;  %v9350_v43 = vpop.f32.mrb[37].mxu1  ;;  %v3641_v28 = vsel %vm3011_vm5, %v9195_v54, %v6030_v56 }
 0x13f   :  { %v1733_v9 = vpop.f32.mrb[20].mxu0  ;;  %v6031_v20 = vadd.f32 -1.0, %v7176_v51  ;;  %v9352_v0 = vpop.permute.xlu0 %910  ;;  %5792 = vperm.xlu0 %7163, %v5789_v4   ;;  %v422_v51 = vld [vmem:[%s11909_s1 + $0x600] sm:$0xff] }
 0x140   :  { %7181 = vpow2.f32 %v3275_v5  ;;  %v3142_v18 = vmin.f32 %v9335_v35, 0.0  ;;  %v1735_v42 = vpop.f32.mrb[21].mxu0  ;;  %1997 = vmatmul.mubr.f32.gmra.mrb[126].mxu0 %v419_v30  ;;  %v1734_v24 = vadd.f32 %v1733_v9, %v8402_v19  ;;  %v426_v9 = vld [vmem:[%s11909_s1 + $0x620] sm:$0xff]  ;;  %vm3016_vm10 = vcmp.gt.f32.partialorder %v9335_v35, 0.0 }
 0x141   :  { %2001 = vmatprep.mubr.f32.mxu0 %v423_v60  ;;  %v3642_v5 = vsel %vm3012_vm6, %v9226_v62, %v6031_v20  ;;  %v9365_v42 = vpop.f32.mrb[38].mxu1  ;;  %v425_v20 = vld [vmem:[%s11909_s1 + $0x618] sm:$0xff] }
 0x142   :  { %v7178_v49 = vpop.eup %7177  ;;  %v3277_v59 = vmul.f32 1.442695, %v3142_v18  ;;  %v9360_v30 = vadd.f32 %v8967_v13, %v1734_v24  ;;  %v6710_v19 = vpack.c.bf16 %v3642_v5, %v3641_v28  ;;  %v9369_v62 = vpop.f32.mrb[39].mxu1 }
 0x143   :  { %v1738_v54 = vpop.f32.mrb[22].mxu0  ;;  %v6032_v13 = vadd.f32 -1.0, %v7178_v49 }
 0x144   :  { %7183 = vpow2.f32 %v3277_v59  ;;  %v3143_v56 = vmin.f32 %v9360_v30, 0.0  ;;  %v1739_v4 = vadd.f32 %v1738_v54, %v8388_v14  ;;  %v1740_v60 = vpop.f32.mrb[23].mxu0  ;;  %2002 = vmatmul.mubr.f32.gmra.mrb[128].mxu0 %v422_v51  ;;  %6711 = vmatpush1.bf16.msra.mxu1 %v6710_v19  ;;  %v429_v14 = vld [vmem:[%s11909_s1 + $0x638] sm:$0xff]  ;;  %vm3017_vm11 = vcmp.gt.f32.partialorder %v9360_v30, 0.0 }
 0x145   :  { %2006 = vmatprep.mubr.f32.mxu0 %v426_v9  ;;  %6712 = vmatprep.subr.bf16.mxu1 %v11953_v63  ;;  %v9381_v28 = vpop.f32.mrb[40].mxu1  ;;  %v3643_v54 = vsel %vm3013_vm7, %v9258_v52, %v6032_v13 }
 0x146   :  { %v7180_v18 = vpop.eup %7179  ;;  %v3279_v24 = vmul.f32 1.442695, %v3143_v56  ;;  %v9376_v59 = vadd.f32 %v8962_v6, %v1739_v4  ;;  %v9387_v9 = vpop.f32.mrb[41].mxu1  ;;  %v428_v56 = vld [vmem:[%s11909_s1 + $0x630] sm:$0xff] }
 0x147   :  { %v1743_v51 = vpop.f32.mrb[24].mxu0  ;;  %v6033_v5 = vadd.f32 -1.0, %v7180_v18 }
 0x148   :  { %7185 = vpow2.f32 %v3279_v24  ;;  %v3144_v49 = vmin.f32 %v9376_v59, 0.0  ;;  %v1745_v19 = vpop.f32.mrb[25].mxu0  ;;  %2007 = vmatmul.mubr.f32.gmra.mrb[130].mxu0 %v425_v20  ;;  %v1744_v6 = vadd.f32 %v1743_v51, %v8433_v29  ;;  %v432_v29 = vld [vmem:[%s11909_s1 + $0x650] sm:$0xff]  ;;  %vm3018_vm12 = vcmp.gt.f32.partialorder %v9376_v59, 0.0 }
 0x149   :  { %2011 = vmatprep.mubr.f32.mxu0 %v429_v14  ;;  %v3644_v4 = vsel %vm3014_vm8, %v9287_v50, %v6033_v5  ;;  %v9400_v20 = vpop.f32.mrb[42].mxu1  ;;  %v431_v5 = vld [vmem:[%s11909_s1 + $0x648] sm:$0xff] }
 0x14a   :  { %v7182_v60 = vpop.eup %7181  ;;  %v3281_v18 = vmul.f32 1.442695, %v3144_v49  ;;  %v9395_v24 = vadd.f32 %v8993_v61, %v1744_v6  ;;  %v6713_v19 = vpack.c.bf16 %v3644_v4, %v3643_v54  ;;  %v9404_v50 = vpop.f32.mrb[43].mxu1 }
 0x14b   :  { %v1748_v52 = vpop.f32.mrb[26].mxu0  ;;  %v6034_v61 = vadd.f32 -1.0, %v7182_v60 }
 0x14c   :  { %7187 = vpow2.f32 %v3281_v18  ;;  %v3145_v13 = vmin.f32 %v9395_v24, 0.0  ;;  %v1749_v14 = vadd.f32 %v1748_v52, %v8424_v26  ;;  %v1750_v51 = vpop.f32.mrb[27].mxu0  ;;  %2012 = vmatmul.mubr.f32.gmra.mrb[132].mxu0 %v428_v56  ;;  %6714 = vmatpush1.bf16.msra.mxu1 %v6713_v19  ;;  %v435_v26 = vld [vmem:[%s11909_s1 + $0x668] sm:$0xff]  ;;  %vm3019_vm13 = vcmp.gt.f32.partialorder %v9395_v24, 0.0 }
 0x14d   :  { %2016 = vmatprep.mubr.f32.mxu0 %v432_v29  ;;  %6715 = vmatprep.subr.bf16.mxu1 %v11953_v63  ;;  %v9416_v56 = vpop.f32.mrb[44].mxu1  ;;  %v3645_v52 = vsel %vm3015_vm9, %v9315_v34, %v6034_v61 }
 0x14e   :  { %v7184_v49 = vpop.eup %7183  ;;  %v3283_v6 = vmul.f32 1.442695, %v3145_v13  ;;  %v9411_v54 = vadd.f32 %v8988_v58, %v1749_v14  ;;  %v9422_v29 = vpop.f32.mrb[45].mxu1  ;;  %v434_v13 = vld [vmem:[%s11909_s1 + $0x660] sm:$0xff] }
 0x14f   :  { %v1753_v4 = vpop.f32.mrb[28].mxu0  ;;  %v6035_v60 = vadd.f32 -1.0, %v7184_v49 }
 0x150   :  { %7189 = vpow2.f32 %v3283_v6  ;;  %v3146_v18 = vmin.f32 %v9411_v54, 0.0  ;;  %v1755_v19 = vpop.f32.mrb[29].mxu0  ;;  %2017 = vmatmul.mubr.f32.gmra.mrb[134].mxu0 %v431_v5  ;;  %v1754_v58 = vadd.f32 %v1753_v4, %v8467_v44  ;;  %v438_v44 = vld [vmem:[%s11909_s1 + $0x680] sm:$0xff]  ;;  %vm3020_vm14 = vcmp.gt.f32.partialorder %v9411_v54, 0.0 }
 0x151   :  { %2021 = vmatprep.mubr.f32.mxu0 %v435_v26  ;;  %v3646_v14 = vsel %vm3016_vm10, %v9335_v35, %v6035_v60  ;;  %v9435_v5 = vpop.f32.mrb[46].mxu1  ;;  %v437_v60 = vld [vmem:[%s11909_s1 + $0x678] sm:$0xff] }
 0x152   :  { %v7186_v51 = vpop.eup %7185  ;;  %v3285_v49 = vmul.f32 1.442695, %v3146_v18  ;;  %v9430_v6 = vadd.f32 %v9019_v47, %v1754_v58  ;;  %v6716_v19 = vpack.c.bf16 %v3646_v14, %v3645_v52  ;;  %v9439_v35 = vpop.f32.mrb[47].mxu1 }
 0x153   :  { %v1758_v34 = vpop.f32.mrb[30].mxu0  ;;  %v6036_v47 = vadd.f32 -1.0, %v7186_v51 }
 0x154   :  { %7191 = vpow2.f32 %v3285_v49  ;;  %v3147_v61 = vmin.f32 %v9430_v6, 0.0  ;;  %v1759_v26 = vadd.f32 %v1758_v34, %v8455_v38  ;;  %v1760_v4 = vpop.f32.mrb[31].mxu0  ;;  %2022 = vmatmul.mubr.f32.gmra.mrb[136].mxu0 %v434_v13  ;;  %6717 = vmatpush1.bf16.msra.mxu1 %v6716_v19  ;;  %v441_v38 = vld [vmem:[%s11909_s1 + $0x698] sm:$0xff]  ;;  %vm3021_vm15 = vcmp.gt.f32.partialorder %v9430_v6, 0.0 }
 0x155   :  { %2026 = vmatprep.mubr.f32.mxu0 %v438_v44  ;;  %6718 = vmatprep.subr.bf16.mxu1 %v11953_v63  ;;  %v440_v44 = vld [vmem:[%s11909_s1 + $0x690] sm:$0xff] }
 0x156   :  { %v7188_v18 = vpop.eup %7187  ;;  %v3287_v58 = vmul.f32 1.442695, %v3147_v61  ;;  %v9446_v52 = vadd.f32 %v9016_v36, %v1759_v26  ;;  %v3647_v36 = vsel %vm3017_vm11, %v9360_v30, %v6036_v47  ;;  %v9460_v61 = vpop.f32.mrb[48].mxu1 }
 0x157   :  { %v1763_v13 = vpop.f32.mrb[32].mxu0  ;;  %v6037_v14 = vadd.f32 -1.0, %v7188_v18  ;;  %v9468_v30 = vpop.f32.mrb[49].mxu1 }
 0x158   :  { %7193 = vpow2.f32 %v3287_v58  ;;  %v3148_v51 = vmin.f32 %v9446_v52, 0.0  ;;  %v1765_v49 = vpop.f32.mrb[33].mxu0  ;;  %2027 = vmatmul.mubr.f32.gmra.mrb[138].mxu0 %v437_v60  ;;  %v1764_v19 = vadd.f32 %v1763_v13, %v8500_v57  ;;  %v444_v57 = vld [vmem:[%s11909_s1 + $0x6b0] sm:$0xff]  ;;  %vm3022_vm0 = vcmp.gt.f32.partialorder %v9446_v52, 0.0 }
 0x159   :  { %2031 = vmatprep.mubr.f32.mxu0 %v441_v38  ;;  %v3648_v34 = vsel %vm3018_vm12, %v9376_v59, %v6037_v14 }
 0x15a   :  { %v7190_v26 = vpop.eup %7189  ;;  %v3289_v4 = vmul.f32 1.442695, %v3148_v51  ;;  %v9463_v18 = vadd.f32 %v9054_v16, %v1764_v19  ;;  %v6719_v58 = vpack.c.bf16 %v3648_v34, %v3647_v36  ;;  %v443_v16 = vld [vmem:[%s11909_s1 + $0x6a8] sm:$0xff] }
 0x15b   :  { %v1768_v47 = vpop.f32.mrb[34].mxu0  ;;  %v6038_v13 = vadd.f32 -1.0, %v7190_v26 }
 0x15c   :  { %7195 = vpow2.f32 %v3289_v4  ;;  %v3149_v60 = vmin.f32 %v9463_v18, 0.0  ;;  %v1769_v59 = vadd.f32 %v1768_v47, %v8489_v53  ;;  %v1770_v38 = vpop.f32.mrb[35].mxu0  ;;  %2032 = vmatmul.mubr.f32.gmra.mrb[140].mxu0 %v440_v44  ;;  %6720 = vmatpush1.bf16.msra.mxu1 %v6719_v58  ;;  %v447_v53 = vld [vmem:[%s11909_s1 + $0x6c8] sm:$0xff]  ;;  %v446_v4 = vld [vmem:[%s11909_s1 + $0x6c0] sm:$0xff]  ;;  %vm3023_vm1 = vcmp.gt.f32.partialorder %v9463_v18, 0.0 }
 0x15d   :  { %2036 = vmatprep.mubr.f32.mxu0 %v444_v57  ;;  %6721 = vmatprep.subr.bf16.mxu1 %v11953_v63  ;;  %v9491_v57 = vpop.f32.mrb[50].mxu1 }
 0x15e   :  { %v7192_v14 = vpop.eup %7191  ;;  %v3291_v51 = vmul.f32 1.442695, %v3149_v60  ;;  %v9477_v49 = vadd.f32 %v9042_v33, %v1769_v59  ;;  %v3649_v33 = vsel %vm3019_vm13, %v9395_v24, %v6038_v13  ;;  %v9499_v24 = vpop.f32.mrb[51].mxu1 }
 0x15f   :  { %v1773_v19 = vpop.f32.mrb[36].mxu0  ;;  %v6039_v36 = vadd.f32 -1.0, %v7192_v14 }
 0x160   :  { %7197 = vpow2.f32 %v3291_v51  ;;  %v3150_v44 = vmin.f32 %v9477_v49, 0.0  ;;  %v1775_v34 = vpop.f32.mrb[37].mxu0  ;;  %2037 = vmatmul.mubr.f32.gmra.mrb[142].mxu0 %v443_v16  ;;  %v1774_v26 = vadd.f32 %v1773_v19, %v8535_v8  ;;  %v450_v8 = vld [vmem:[%s11909_s1 + $0x6e0] sm:$0xff]  ;;  %vm3024_vm2 = vcmp.gt.f32.partialorder %v9477_v49, 0.0 }
 0x161   :  { %2041 = vmatprep.mubr.f32.mxu0 %v447_v53  ;;  %v3650_v58 = vsel %vm3020_vm14, %v9411_v54, %v6039_v36 }
 0x162   :  { %v7194_v47 = vpop.eup %7193  ;;  %v3293_v60 = vmul.f32 1.442695, %v3150_v44  ;;  %v9494_v59 = vadd.f32 %v9085_v7, %v1774_v26  ;;  %v6722_v38 = vpack.c.bf16 %v3650_v58, %v3649_v33  ;;  %v449_v7 = vld [vmem:[%s11909_s1 + $0x6d8] sm:$0xff]  ;;  %v452_v58 = vld [vmem:[%s11909_s1 + $0x6f0] sm:$0xff] }
 0x163   :  { %v1778_v13 = vpop.f32.mrb[38].mxu0  ;;  %v6040_v51 = vadd.f32 -1.0, %v7194_v47 }
 0x164   :  { %7199 = vpow2.f32 %v3293_v60  ;;  %v3151_v16 = vmin.f32 %v9494_v59, 0.0  ;;  %v1779_v54 = vadd.f32 %v1778_v13, %v8522_v2  ;;  %v1780_v14 = vpop.f32.mrb[39].mxu0  ;;  %2042 = vmatmul.mubr.f32.gmra.mrb[144].mxu0 %v446_v4  ;;  %6723 = vmatpush1.bf16.msra.mxu1 %v6722_v38  ;;  %v453_v2 = vld [vmem:[%s11909_s1 + $0x6f8] sm:$0xff]  ;;  %v9522_v60 = vpop.f32.mrb[52].mxu1  ;;  %vm3025_vm3 = vcmp.gt.f32.partialorder %v9494_v59, 0.0 }
 0x165   :  { %2046 = vmatprep.mubr.f32.mxu0 %v450_v8  ;;  %6724 = vmatprep.subr.bf16.mxu1 %v11953_v63 }
 0x166   :  { %v7196_v53 = vpop.eup %7195  ;;  %v3295_v19 = vmul.f32 1.442695, %v3151_v16  ;;  %v9508_v36 = vadd.f32 %v9072_v15, %v1779_v54  ;;  %v3651_v15 = vsel %vm3021_vm15, %v9430_v6, %v6040_v51  ;;  %v9530_v6 = vpop.f32.mrb[53].mxu1 }
 0x167   :  { %v1783_v44 = vpop.f32.mrb[40].mxu0  ;;  %v6041_v34 = vadd.f32 -1.0, %v7196_v53 }
 0x168   :  { %7201 = vpow2.f32 %v3295_v19  ;;  %v3152_v26 = vmin.f32 %v9508_v36, 0.0  ;;  %v1785_v33 = vpop.f32.mrb[41].mxu0  ;;  %2047 = vmatmul.mubr.f32.gmra.mrb[146].mxu0 %v449_v7  ;;  %v1784_v4 = vadd.f32 %v1783_v44, %v8568_v22  ;;  %v456_v22 = vld [vmem:[%s11909_s1 + $0x710] sm:$0xff]  ;;  %vm3026_vm4 = vcmp.gt.f32.partialorder %v9508_v36, 0.0 }
 0x169   :  { %2051 = vmatprep.mubr.f32.mxu0 %v453_v2  ;;  %v3652_v47 = vsel %vm3022_vm0, %v9446_v52, %v6041_v34 }
 0x16a   :  { %v7198_v38 = vpop.eup %7197  ;;  %v3297_v8 = vmul.f32 1.442695, %v3152_v26  ;;  %v9525_v13 = vadd.f32 %v9116_v3, %v1784_v4  ;;  %v6725_v16 = vpack.c.bf16 %v3652_v47, %v3651_v15  ;;  %v455_v3 = vld [vmem:[%s11909_s1 + $0x708] sm:$0xff]  ;;  %v458_v15 = vld [vmem:[%s11909_s1 + $0x720] sm:$0xff]  ;;  %v9553_v47 = vpop.f32.mrb[54].mxu1 }
 0x16b   :  { %v1788_v54 = vpop.f32.mrb[42].mxu0  ;;  %v6042_v7 = vadd.f32 -1.0, %v7198_v38 }
 0x16c   :  { %7203 = vpow2.f32 %v3297_v8  ;;  %v3153_v14 = vmin.f32 %v9525_v13, 0.0  ;;  %v1789_v52 = vadd.f32 %v1788_v54, %v8557_v17  ;;  %v1790_v51 = vpop.f32.mrb[43].mxu0  ;;  %2052 = vmatmul.mubr.f32.gmra.mrb[148].mxu0 %v452_v58  ;;  %6726 = vmatpush1.bf16.msra.mxu1 %v6725_v16  ;;  %v459_v17 = vld [vmem:[%s11909_s1 + $0x728] sm:$0xff]  ;;  %vm3027_vm5 = vcmp.gt.f32.partialorder %v9525_v13, 0.0 }
 0x16d   :  { %2056 = vmatprep.mubr.f32.mxu0 %v456_v22  ;;  %6727 = vmatprep.subr.bf16.mxu1 %v11953_v63 }
 0x16e   :  { %v7200_v53 = vpop.eup %7199  ;;  %v3299_v19 = vmul.f32 1.442695, %v3153_v14  ;;  %v9539_v2 = vadd.f32 %v9105_v31, %v1789_v52  ;;  %v3653_v31 = vsel %vm3023_vm1, %v9463_v18, %v6042_v7  ;;  %v9561_v18 = vpop.f32.mrb[55].mxu1 }
 0x16f   :  { %v1793_v44 = vpop.f32.mrb[44].mxu0  ;;  %v6043_v34 = vadd.f32 -1.0, %v7200_v53 }
 0x170   :  { %7205 = vpow2.f32 %v3299_v19  ;;  %v3154_v26 = vmin.f32 %v9539_v2, 0.0  ;;  %v1795_v33 = vpop.f32.mrb[45].mxu0  ;;  %2057 = vmatmul.mubr.f32.gmra.mrb[150].mxu0 %v455_v3  ;;  %v1794_v4 = vadd.f32 %v1793_v44, %v8603_v37  ;;  %v462_v37 = vld [vmem:[%s11909_s1 + $0x740] sm:$0xff]  ;;  %vm3028_vm6 = vcmp.gt.f32.partialorder %v9539_v2, 0.0 }
 0x171   :  { %2061 = vmatprep.mubr.f32.mxu0 %v459_v17  ;;  %v3654_v58 = vsel %vm3024_vm2, %v9477_v49, %v6043_v34  ;;  %v464_v33 = vld [vmem:[%s11909_s1 + $0x750] sm:$0xff] }
 0x172   :  { %v7202_v38 = vpop.eup %7201  ;;  %v3301_v8 = vmul.f32 1.442695, %v3154_v26  ;;  %v9556_v16 = vadd.f32 %v9149_v40, %v1794_v4  ;;  %v6728_v22 = vpack.c.bf16 %v3654_v58, %v3653_v31  ;;  %v461_v40 = vld [vmem:[%s11909_s1 + $0x738] sm:$0xff]  ;;  %v9584_v31 = vpop.f32.mrb[56].mxu1 }
 0x173   :  { %v1798_v54 = vpop.f32.mrb[46].mxu0  ;;  %v6044_v51 = vadd.f32 -1.0, %v7202_v38 }
 0x174   :  { %7207 = vpow2.f32 %v3301_v8  ;;  %v3155_v14 = vmin.f32 %v9556_v16, 0.0  ;;  %v1799_v49 = vadd.f32 %v1798_v54, %v8590_v32  ;;  %v1800_v52 = vpop.f32.mrb[47].mxu0  ;;  %2062 = vmatmul.mubr.f32.gmra.mrb[152].mxu0 %v458_v15  ;;  %6729 = vmatpush1.bf16.msra.mxu1 %v6728_v22  ;;  %v465_v32 = vld [vmem:[%s11909_s1 + $0x758] sm:$0xff]  ;;  %vm3029_vm7 = vcmp.gt.f32.partialorder %v9556_v16, 0.0 }
 0x175   :  { %2066 = vmatprep.mubr.f32.mxu0 %v462_v37  ;;  %6730 = vmatprep.subr.bf16.mxu1 %v11953_v63 }
 0x176   :  { %v7204_v7 = vpop.eup %7203  ;;  %v3303_v3 = vmul.f32 1.442695, %v3155_v14  ;;  %v9570_v53 = vadd.f32 %v9136_v23, %v1799_v49  ;;  %v3655_v23 = vsel %vm3025_vm3, %v9494_v59, %v6044_v51  ;;  %v9592_v59 = vpop.f32.mrb[57].mxu1 }
 0x177   :  { %v1803_v19 = vpop.f32.mrb[48].mxu0  ;;  %v6045_v17 = vadd.f32 -1.0, %v7204_v7 }
 0x178   :  { %7209 = vpow2.f32 %v3303_v3  ;;  %v3156_v44 = vmin.f32 %v9570_v53, 0.0  ;;  %v1805_v34 = vpop.f32.mrb[49].mxu0  ;;  %2067 = vmatmul.mubr.f32.gmra.mrb[154].mxu0 %v461_v40  ;;  %v1804_v26 = vadd.f32 %v1803_v19, %v8636_v55  ;;  %v468_v55 = vld [vmem:[%s11909_s1 + $0x770] sm:$0xff]  ;;  %vm3030_vm8 = vcmp.gt.f32.partialorder %v9570_v53, 0.0 }
 0x179   :  { %2071 = vmatprep.mubr.f32.mxu0 %v465_v32  ;;  %v3656_v4 = vsel %vm3026_vm4, %v9508_v36, %v6045_v17  ;;  %v470_v17 = vld [vmem:[%s11909_s1 + $0x780] sm:$0xff]  ;;  %v9615_v34 = vpop.f32.mrb[58].mxu1 }
 0x17a   :  { %v7206_v15 = vpop.eup %7205  ;;  %v3305_v58 = vmul.f32 1.442695, %v3156_v44  ;;  %v9587_v38 = vadd.f32 %v9180_v46, %v1804_v26  ;;  %v6731_v8 = vpack.c.bf16 %v3656_v4, %v3655_v23  ;;  %v467_v46 = vld [vmem:[%s11909_s1 + $0x768] sm:$0xff] }
 0x17b   :  { %v1808_v22 = vpop.f32.mrb[50].mxu0  ;;  %v6046_v14 = vadd.f32 -1.0, %v7206_v15 }
 0x17c   :  { %7211 = vpow2.f32 %v3305_v58  ;;  %v3157_v37 = vmin.f32 %v9587_v38, 0.0  ;;  %v1809_v36 = vadd.f32 %v1808_v22, %v8625_v48  ;;  %v1810_v54 = vpop.f32.mrb[51].mxu0  ;;  %2072 = vmatmul.mubr.f32.gmra.mrb[156].mxu0 %v464_v33  ;;  %6732 = vmatpush1.bf16.msra.mxu1 %v6731_v8  ;;  %v471_v48 = vld [vmem:[%s11909_s1 + $0x788] sm:$0xff]  ;;  %vm3031_vm9 = vcmp.gt.f32.partialorder %v9587_v38, 0.0 }
 0x17d   :  { %2076 = vmatprep.mubr.f32.mxu0 %v468_v55  ;;  %6733 = vmatprep.subr.bf16.mxu1 %v11953_v63 }
 0x17e   :  { %v7208_v49 = vpop.eup %7207  ;;  %v3307_v52 = vmul.f32 1.442695, %v3157_v37  ;;  %v9601_v51 = vadd.f32 %v9167_v41, %v1809_v36  ;;  %v3657_v41 = vsel %vm3027_vm5, %v9525_v13, %v6046_v14  ;;  %v9623_v13 = vpop.f32.mrb[59].mxu1  ;;  %v11957_v36 = vld [vmem:[#allocation34_spill] sm:$0xff] }
 0x17f   :  { %v1813_v40 = vpop.f32.mrb[52].mxu0  ;;  %v6047_v7 = vadd.f32 -1.0, %v7208_v49 }
 0x180   :  { %7213 = vpow2.f32 %v3307_v52  ;;  %v3158_v3 = vmin.f32 %v9601_v51, 0.0  ;;  %v1815_v32 = vpop.f32.mrb[53].mxu0  ;;  %2077 = vmatmul.mubr.f32.gmra.mrb[158].mxu0 %v467_v46  ;;  %v1814_v19 = vadd.f32 %v1813_v40, %v8671_v10  ;;  %v474_v10 = vld [vmem:[%s11909_s1 + $0x7a0] sm:$0xff]  ;;  %vm3032_vm10 = vcmp.gt.f32.partialorder %v9601_v51, 0.0 }
 0x181   :  { %2081 = vmatprep.mubr.f32.mxu0 %v471_v48  ;;  %v3658_v44 = vsel %vm3028_vm6, %v9539_v2, %v6047_v7  ;;  %v11958_v48 = vld [vmem:[#allocation9_spill] sm:$0xff] }
 0x182   :  { %v7210_v26 = vpop.eup %7209  ;;  %v3309_v23 = vmul.f32 1.442695, %v3158_v3  ;;  %v9618_v33 = vadd.f32 %v9211_v25, %v1814_v19  ;;  %v6734_v4 = vpack.c.bf16 %v3658_v44, %v3657_v41  ;;  %v473_v25 = vld [vmem:[%s11909_s1 + $0x798] sm:$0xff]  ;;  %v476_v3 = vld [vmem:[%s11909_s1 + $0x7b0] sm:$0xff]  ;;  %v9646_v19 = vpop.f32.mrb[60].mxu1 }
 0x183   :  { %v1818_v15 = vpop.f32.mrb[54].mxu0  ;;  %v6048_v55 = vadd.f32 -1.0, %v7210_v26  ;;  %v11959_v44 = vld [vmem:[#allocation38_spill] sm:$0xff] }
 0x184   :  { %7215 = vpow2.f32 %v3309_v23  ;;  %v3159_v58 = vmin.f32 %v9618_v33, 0.0  ;;  %v1819_v2 = vadd.f32 %v1818_v15, %v8658_v1  ;;  %v1820_v8 = vpop.f32.mrb[55].mxu0  ;;  %2082 = vmatmul.mubr.f32.gmra.mrb[160].mxu0 %v470_v17  ;;  %6735 = vmatpush1.bf16.msra.mxu1 %v6734_v4  ;;  %v477_v1 = vld [vmem:[%s11909_s1 + $0x7b8] sm:$0xff]  ;;  %v480_v4 = vld [vmem:[%s11909_s1 + $0x7d0] sm:$0xff]  ;;  %vm3033_vm11 = vcmp.gt.f32.partialorder %v9618_v33, 0.0 }
 0x185   :  { %2086 = vmatprep.mubr.f32.mxu0 %v474_v10  ;;  %6736 = vmatprep.subr.bf16.mxu1 %v11953_v63  ;;  %v3659_v7 = vsel %vm3029_vm7, %v9556_v16, %v6048_v55  ;;  %v9654_v16 = vpop.f32.mrb[61].mxu1  ;;  %v479_v55 = vld [vmem:[%s11909_s1 + $0x7c8] sm:$0xff] }
 0x186   :  { %v7212_v22 = vpop.eup %7211  ;;  %v3311_v37 = vmul.f32 1.442695, %v3159_v58  ;;  %v9632_v54 = vadd.f32 %v11957_v36, %v1819_v2  ;;  %v11960_v58 = vld [vmem:[#allocation8_spill] sm:$0xff] }
 0x187   :  { %v1823_v14 = vpop.f32.mrb[56].mxu0  ;;  %v6049_v46 = vadd.f32 -1.0, %v7212_v22 }
 0x188   :  { %7217 = vpow2.f32 %v3311_v37  ;;  %v3160_v49 = vmin.f32 %v9632_v54, 0.0  ;;  %v1825_v52 = vpop.f32.mrb[57].mxu0  ;;  %2087 = vmatmul.mubr.f32.gmra.mrb[162].mxu0 %v473_v25  ;;  %v1824_v40 = vadd.f32 %v1823_v14, %v11958_v48  ;;  %v11961_v37 = vld [vmem:[#allocation36_spill] sm:$0xff]  ;;  %v11962_v48 = vld [vmem:[#allocation11_spill] sm:$0xff]  ;;  %vm3034_vm12 = vcmp.gt.f32.partialorder %v9632_v54, 0.0 }
 0x189   :  { %2091 = vmatprep.mubr.f32.mxu0 %v477_v1  ;;  %v3660_v32 = vsel %vm3030_vm8, %v9570_v53, %v6049_v46  ;;  %v483_v1 = vld [vmem:[%s11909_s1 + $0x7e8] sm:$0xff] }
 0x18a   :  { %v7214_v41 = vpop.eup %7213  ;;  %v3313_v17 = vmul.f32 1.442695, %v3160_v49  ;;  %v9649_v26 = vadd.f32 %v11959_v44, %v1824_v40  ;;  %v6737_v23 = vpack.c.bf16 %v3660_v32, %v3659_v7 }
 0x18b   :  { %v1828_v10 = vpop.f32.mrb[58].mxu0  ;;  %v6050_v8 = vadd.f32 -1.0, %v7214_v41  ;;  %v9677_v41 = vpop.f32.mrb[62].mxu1 }
 0x18c   :  { %7219 = vpow2.f32 %v3313_v17  ;;  %v3161_v15 = vmin.f32 %v9649_v26, 0.0  ;;  %v1829_v53 = vadd.f32 %v1828_v10, %v11960_v58  ;;  %v1830_v2 = vpop.f32.mrb[59].mxu0  ;;  %2092 = vmatmul.mubr.f32.gmra.mrb[164].mxu0 %v476_v3  ;;  %6738 = vmatpush1.bf16.msra.mxu1 %v6737_v23  ;;  %v482_v3 = vld [vmem:[%s11909_s1 + $0x7e0] sm:$0xff]  ;;  %vm3035_vm13 = vcmp.gt.f32.partialorder %v9649_v26, 0.0 }
 0x18d   :  { %2096 = vmatprep.mubr.f32.mxu0 %v480_v4  ;;  %6739 = vmatprep.subr.bf16.mxu1 %v11953_v63  ;;  %v3661_v7 = vsel %vm3031_vm9, %v9587_v38, %v6050_v8  ;;  %v486_v10 = vld [vmem:[%s11909_s1 + $0x800] sm:$0xff]  ;;  %v9685_v38 = vpop.f32.mrb[63].mxu1 }
 0x18e   :  { %v7216_v25 = vpop.eup %7215  ;;  %v3315_v22 = vmul.f32 1.442695, %v3161_v15  ;;  %v9663_v36 = vadd.f32 %v11961_v37, %v1829_v53  ;;  %v11963_v53 = vld [vmem:[#allocation10_spill] sm:$0xff] }
 0x18f   :  { %v1833_v14 = vpop.f32.mrb[60].mxu0  ;;  %v6051_v46 = vadd.f32 -1.0, %v7216_v25  ;;  %v489_v37 = vld [vmem:[%s11909_s1 + $0x818] sm:$0xff] }
 0x190   :  { %7221 = vpow2.f32 %v3315_v22  ;;  %v3162_v49 = vmin.f32 %v9663_v36, 0.0  ;;  %v1835_v52 = vpop.f32.mrb[61].mxu0  ;;  %2097 = vmatmul.mubr.f32.gmra.mrb[166].mxu0 %v479_v55  ;;  %v1834_v40 = vadd.f32 %v1833_v14, %v11962_v48  ;;  %v11964_v48 = vld [vmem:[#allocation13_spill] sm:$0xff]  ;;  %vm3036_vm14 = vcmp.gt.f32.partialorder %v9663_v36, 0.0 }
 0x191   :  { %2101 = vmatprep.mubr.f32.mxu0 %v483_v1  ;;  %v3662_v32 = vsel %vm3032_vm10, %v9601_v51, %v6051_v46  ;;  %v9699_v1 = vpop.f32.mrb[64].mxu1 }
 0x192   :  { %v7218_v17 = vpop.eup %7217  ;;  %v3317_v44 = vmul.f32 1.442695, %v3162_v49  ;;  %v9680_v23 = vadd.f32 %v9279_v45, %v1834_v40  ;;  %v6740_v4 = vpack.c.bf16 %v3662_v32, %v3661_v7  ;;  %v485_v45 = vld [vmem:[%s11909_s1 + $0x7f8] sm:$0xff]  ;;  %v9705_v40 = vpop.f32.mrb[65].mxu1 }
 0x193   :  { %v1838_v15 = vpop.f32.mrb[62].mxu0  ;;  %v6052_v8 = vadd.f32 -1.0, %v7218_v17 }
 0x194   :  { %7223 = vpow2.f32 %v3317_v44  ;;  %v3163_v58 = vmin.f32 %v9680_v23, 0.0  ;;  %v1839_v51 = vadd.f32 %v1838_v15, %v11963_v53  ;;  %v1840_v2 = vpop.f32.mrb[63].mxu0  ;;  %2102 = vmatmul.mubr.f32.gmra.mrb[168].mxu0 %v482_v3  ;;  %6741 = vmatpush1.bf16.msra.mxu1 %v6740_v4  ;;  %v488_v3 = vld [vmem:[%s11909_s1 + $0x810] sm:$0xff]  ;;  %vm3037_vm15 = vcmp.gt.f32.partialorder %v9680_v23, 0.0 }
 0x195   :  { %2106 = vmatprep.mubr.f32.mxu0 %v486_v10  ;;  %6742 = vmatprep.subr.bf16.mxu1 %v11953_v63  ;;  %v3663_v7 = vsel %vm3033_vm11, %v9618_v33, %v6052_v8  ;;  %v492_v15 = vld [vmem:[%s11909_s1 + $0x830] sm:$0xff] }
 0x196   :  { %v7220_v55 = vpop.eup %7219  ;;  %v3319_v25 = vmul.f32 1.442695, %v3163_v58  ;;  %v9694_v22 = vadd.f32 %v9266_v39, %v1839_v51  ;;  %v9718_v58 = vpop.f32.mrb[66].mxu1  ;;  %v11965_v51 = vld [vmem:[#allocation12_spill] sm:$0xff] }
 0x197   :  { %v1843_v14 = vpop.f32.mrb[64].mxu0  ;;  %v6053_v46 = vadd.f32 -1.0, %v7220_v55 }
 0x198   :  { %7225 = vpow2.f32 %v3319_v25  ;;  %v3164_v49 = vmin.f32 %v9694_v22, 0.0  ;;  %v1845_v52 = vpop.f32.mrb[65].mxu0  ;;  %2107 = vmatmul.mubr.f32.gmra.mrb[170].mxu0 %v485_v45  ;;  %v1844_v39 = vadd.f32 %v1843_v14, %v11964_v48  ;;  %v491_v45 = vld [vmem:[%s11909_s1 + $0x828] sm:$0xff]  ;;  %vm3038_vm0 = vcmp.gt.f32.partialorder %v9694_v22, 0.0 }
 0x199   :  { %2111 = vmatprep.mubr.f32.mxu0 %v489_v37  ;;  %v3664_v32 = vsel %vm3034_vm12, %v9632_v54, %v6053_v46  ;;  %v9722_v54 = vpop.f32.mrb[67].mxu1  ;;  %v495_v14 = vld [vmem:[%s11909_s1 + $0x848] sm:$0xff] }
 0x19a   :  { %v7222_v17 = vpop.eup %7221  ;;  %v3321_v44 = vmul.f32 1.442695, %v3164_v49  ;;  %v9713_v4 = vadd.f32 %v9305_v11, %v1844_v39  ;;  %v6743_v10 = vpack.c.bf16 %v3664_v32, %v3663_v7  ;;  %v9734_v46 = vpop.f32.mrb[68].mxu1  ;;  %v11966_v7 = vld [vmem:[#allocation15_spill] sm:$0xff] }
 0x19b   :  { %v1848_v33 = vpop.f32.mrb[66].mxu0  ;;  %v6054_v11 = vadd.f32 -1.0, %v7222_v17  ;;  %v494_v17 = vld [vmem:[%s11909_s1 + $0x840] sm:$0xff] }
 0x19c   :  { %7227 = vpow2.f32 %v3321_v44  ;;  %v3165_v53 = vmin.f32 %v9713_v4, 0.0  ;;  %v1849_v2 = vadd.f32 %v1848_v33, %v11965_v51  ;;  %v1850_v8 = vpop.f32.mrb[67].mxu0  ;;  %2112 = vmatmul.mubr.f32.gmra.mrb[172].mxu0 %v488_v3  ;;  %6744 = vmatpush1.bf16.msra.mxu1 %v6743_v10  ;;  %v9740_v3 = vpop.f32.mrb[69].mxu1  ;;  %v498_v51 = vld [vmem:[%s11909_s1 + $0x860] sm:$0xff]  ;;  %vm3039_vm1 = vcmp.gt.f32.partialorder %v9713_v4, 0.0 }
 0x19d   :  { %2116 = vmatprep.mubr.f32.mxu0 %v492_v15  ;;  %6745 = vmatprep.subr.bf16.mxu1 %v11953_v63  ;;  %v3665_v32 = vsel %vm3035_vm13, %v9649_v26, %v6054_v11  ;;  %v11967_v11 = vld [vmem:[#allocation14_spill] sm:$0xff] }
 0x19e   :  { %v7224_v55 = vpop.eup %7223  ;;  %v3323_v25 = vmul.f32 1.442695, %v3165_v53  ;;  %v9729_v37 = vadd.f32 %v9296_v12, %v1849_v2  ;;  %v9753_v2 = vpop.f32.mrb[70].mxu1 }
 0x19f   :  { %v1853_v49 = vpop.f32.mrb[68].mxu0  ;;  %v6055_v52 = vadd.f32 -1.0, %v7224_v55 }
 0x1a0   :  { %7229 = vpow2.f32 %v3323_v25  ;;  %v3166_v48 = vmin.f32 %v9729_v37, 0.0  ;;  %v1855_v39 = vpop.f32.mrb[69].mxu0  ;;  %2117 = vmatmul.mubr.f32.gmra.mrb[174].mxu0 %v491_v45  ;;  %v1854_v12 = vadd.f32 %v1853_v49, %v11966_v7  ;;  %v497_v25 = vld [vmem:[%s11909_s1 + $0x858] sm:$0xff]  ;;  %vm3040_vm2 = vcmp.gt.f32.partialorder %v9729_v37, 0.0 }
 0x1a1   :  { %2121 = vmatprep.mubr.f32.mxu0 %v495_v14  ;;  %v3666_v44 = vsel %vm3036_vm14, %v9663_v36, %v6055_v52  ;;  %v9757_v36 = vpop.f32.mrb[71].mxu1 }
 0x1a2   :  { %v7226_v10 = vpop.eup %7225  ;;  %v3325_v15 = vmul.f32 1.442695, %v3166_v48  ;;  %v9748_v33 = vadd.f32 %v9329_v21, %v1854_v12  ;;  %v6746_v53 = vpack.c.bf16 %v3666_v44, %v3665_v32  ;;  %v501_v48 = vld [vmem:[%s11909_s1 + $0x878] sm:$0xff]  ;;  %v9769_v39 = vpop.f32.mrb[72].mxu1 }
 0x1a3   :  { %v1858_v26 = vpop.f32.mrb[70].mxu0  ;;  %v6056_v21 = vadd.f32 -1.0, %v7226_v10 }
 0x1a4   :  { %7231 = vpow2.f32 %v3325_v15  ;;  %v3167_v8 = vmin.f32 %v9748_v33, 0.0  ;;  %v1859_v45 = vadd.f32 %v1858_v26, %v11967_v11  ;;  %v1860_v55 = vpop.f32.mrb[71].mxu0  ;;  %2122 = vmatmul.mubr.f32.gmra.mrb[176].mxu0 %v494_v17  ;;  %6747 = vmatpush1.bf16.msra.mxu1 %v6746_v53  ;;  %v11968_v17 = vld [vmem:[#allocation17_spill] sm:$0xff]  ;;  %vm3041_vm3 = vcmp.gt.f32.partialorder %v9748_v33, 0.0 }
 0x1a5   :  { %2126 = vmatprep.mubr.f32.mxu0 %v498_v51  ;;  %6748 = vmatprep.subr.bf16.mxu1 %v11953_v63  ;;  %v3667_v15 = vsel %vm3037_vm15, %v9680_v23, %v6056_v21  ;;  %v500_v53 = vld [vmem:[%s11909_s1 + $0x870] sm:$0xff] }
 0x1a6   :  { %v7228_v14 = vpop.eup %7227  ;;  %v3327_v49 = vmul.f32 1.442695, %v3167_v8  ;;  %v9764_v52 = vadd.f32 %v9323_v27, %v1859_v45  ;;  %v9775_v27 = vpop.f32.mrb[73].mxu1  ;;  %v504_v55 = vld [vmem:[%s11909_s1 + $0x890] sm:$0xff] }
 0x1a7   :  { %v1863_v7 = vpop.f32.mrb[72].mxu0  ;;  %v6057_v12 = vadd.f32 -1.0, %v7228_v14  ;;  %v11969_v14 = vld [vmem:[#allocation16_spill] sm:$0xff] }
 0x1a8   :  { %7233 = vpow2.f32 %v3327_v49  ;;  %v3168_v32 = vmin.f32 %v9764_v52, 0.0  ;;  %v1864_v44 = vadd.f32 %v1863_v7, %v11968_v17  ;;  %v1865_v10 = vpop.f32.mrb[73].mxu0  ;;  %2127 = vmatmul.mubr.f32.gmra.mrb[178].mxu0 %v497_v25  ;;  %v9788_v25 = vpop.f32.mrb[74].mxu1  ;;  %vm3042_vm4 = vcmp.gt.f32.partialorder %v9764_v52, 0.0 }
 0x1a9   :  { %2131 = vmatprep.mubr.f32.mxu0 %v501_v48  ;;  %v3668_v51 = vsel %vm3038_vm0, %v9694_v22, %v6057_v12  ;;  %v9795_v22 = vpop.f32.mrb[75].mxu1  ;;  %v503_v12 = vld [vmem:[%s11909_s1 + $0x888] sm:$0xff]  ;;  %v11970_v10 = vld [vmem:[#allocation43_spill] sm:$0xff] }
 0x1aa   :  { %v7230_v26 = vpop.eup %7229  ;;  %v3329_v8 = vmul.f32 1.442695, %v3168_v32  ;;  %v9783_v11 = vadd.f32 %v9350_v43, %v1864_v44  ;;  %v6749_v45 = vpack.c.bf16 %v3668_v51, %v3667_v15  ;;  %v3763_v43 = vld [vmem:[%s11911_s3] sm:$0xff]  ;;  %v3772_v32 = vld [vmem:[%s11911_s3 + $0x48] sm:$0xff]  ;;  %v9810_v51 = vpop.f32.mrb[76].mxu1 }
 0x1ab   :  { %v1868_v23 = vpop.f32.mrb[74].mxu0  ;;  %v6058_v7 = vadd.f32 -1.0, %v7230_v26 }
 0x1ac   :  { %7235 = vpow2.f32 %v3329_v8  ;;  %v3169_v21 = vmin.f32 %v9783_v11, 0.0  ;;  %v1869_v49 = vadd.f32 %v1868_v23, %v11969_v14  ;;  %v1870_v48 = vpop.f32.mrb[75].mxu0  ;;  %2132 = vmatmul.mubr.f32.gmra.mrb[180].mxu0 %v500_v53  ;;  %6750 = vmatpush1.bf16.msra.mxu1 %v6749_v45  ;;  %v507_v53 = vld [vmem:[%s11909_s1 + $0x8a8] sm:$0xff]  ;;  %v3771_v14 = vld [vmem:[%s11911_s3 + $0x40] sm:$0xff]  ;;  %vm3043_vm5 = vcmp.gt.f32.partialorder %v9783_v11, 0.0 }
 0x1ad   :  { %2136 = vmatprep.mubr.f32.mxu0 %v504_v55  ;;  %6751 = vmatprep.subr.bf16.mxu1 %v11953_v63  ;;  %v11971_v55 = vld [vmem:[#allocation19_spill] sm:$0xff]  ;;  %v3669_v48 = vsel %vm3039_vm1, %v9713_v4, %v6058_v7  ;;  %v3780_v7 = vld [vmem:[%s11911_s3 + $0x88] sm:$0xff] }
 0x1ae   :  { %v7232_v17 = vpop.eup %7231  ;;  %v3331_v44 = vmul.f32 1.442695, %v3169_v21  ;;  %v9805_v15 = vadd.f32 %v11970_v10, %v1869_v49  ;;  %v9819_v49 = vpop.f32.mrb[77].mxu1 }
 0x1af   :  { %v1873_v26 = vpop.f32.mrb[76].mxu0  ;;  %4159 = vmatmul.mubr.f32.vlgmr.msra.gmra.mrb[126].mxu1 %v3763_v43  ;;  %v6059_v8 = vadd.f32 -1.0, %v7232_v17  ;;  %v506_v43 = vld [vmem:[%s11909_s1 + $0x8a0] sm:$0xff] }
 0x1b0   :  { %7237 = vpow2.f32 %v3331_v44  ;;  %v3170_v45 = vmin.f32 %v9805_v15, 0.0  ;;  %v1874_v23 = vadd.f32 %v1873_v26, %v11971_v55  ;;  %v1875_v21 = vpop.f32.mrb[77].mxu0  ;;  %2137 = vmatmul.mubr.f32.gmra.mrb[182].mxu0 %v503_v12  ;;  %4163 = vmatprep.mubr.f32.mxu1 %v3772_v32  ;;  %v510_v26 = vld [vmem:[%s11909_s1 + $0x8c0] sm:$0xff]  ;;  %v9832_v55 = vpop.f32.mrb[78].mxu1  ;;  %vm3044_vm6 = vcmp.gt.f32.partialorder %v9805_v15, 0.0 }
 0x1b1   :  { %2141 = vmatprep.mubr.f32.mxu0 %v507_v53  ;;  %v3670_v17 = vsel %vm3040_vm2, %v9729_v37, %v6059_v8  ;;  %v9837_v53 = vpop.f32.mrb[79].mxu1 }
 0x1b2   :  { %v7234_v44 = vpop.eup %7233  ;;  %v3333_v10 = vmul.f32 1.442695, %v3170_v45  ;;  %v9827_v12 = vadd.f32 %v9369_v62, %v1874_v23  ;;  %v6752_v32 = vpack.c.bf16 %v3670_v17, %v3669_v48  ;;  %v11972_v62 = vld [vmem:[#allocation18_spill] sm:$0xff]  ;;  %v3779_v23 = vld [vmem:[%s11911_s3 + $0x80] sm:$0xff]  ;;  %v3788_v48 = vld [vmem:[%s11911_s3 + $0xc8] sm:$0xff] }
 0x1b3   :  { %v1878_v4 = vpop.f32.mrb[78].mxu0  ;;  %4164 = vmatmul.mubr.f32.gmra.mrb[128].mxu1 %v3771_v14  ;;  %v6060_v21 = vadd.f32 -1.0, %v7234_v44  ;;  %v509_v14 = vld [vmem:[%s11909_s1 + $0x8b8] sm:$0xff] }
 0x1b4   :  { %7239 = vpow2.f32 %v3333_v10  ;;  %v3171_v37 = vmin.f32 %v9827_v12, 0.0  ;;  %v1879_v8 = vadd.f32 %v1878_v4, %v11972_v62  ;;  %v1880_v45 = vpop.f32.mrb[79].mxu0  ;;  %2142 = vmatmul.mubr.f32.gmra.mrb[184].mxu0 %v506_v43  ;;  %6753 = vmatpush1.bf16.msra.mxu1 %v6752_v32  ;;  %v513_v44 = vld [vmem:[%s11909_s1 + $0x8d8] sm:$0xff]  ;;  %v9857_v32 = vpop.f32.mrb[80].mxu1  ;;  %vm3045_vm7 = vcmp.gt.f32.partialorder %v9827_v12, 0.0 }
 0x1b5   :  { %2146 = vmatprep.mubr.f32.mxu0 %v510_v26  ;;  %6754 = vmatprep.subr.bf16.mxu1 %v11953_v63  ;;  %11973 = vst [vmem:[#allocation34_spill] sm:$0xff] %v9857_v32  ;;  %v9860_v62 = vpop.f32.mrb[81].mxu1 }
 0x1b6   :  { %v7236_v17 = vpop.eup %7235  ;;  %v3335_v10 = vmul.f32 1.442695, %v3171_v37  ;;  %v9852_v43 = vadd.f32 %v9365_v42, %v1879_v8  ;;  %4168 = vmatprep.mubr.f32.mxu1 %v3780_v7  ;;  %11974 = vst [vmem:[#allocation9_spill] sm:$0xff] %v9860_v62  ;;  %v11975_v37 = vld [vmem:[#allocation21_spill] sm:$0xff]  ;;  %v3787_v7 = vld [vmem:[%s11911_s3 + $0xc0] sm:$0xff] }
 0x1b7   :  { %v6061_v26 = vadd.f32 -1.0, %v7236_v17  ;;  %v1883_v4 = vpop.f32.mrb[80].mxu0  ;;  %4169 = vmatmul.mubr.f32.gmra.mrb[130].mxu1 %v3779_v23  ;;  %v3671_v17 = vsel %vm3041_vm3, %v9748_v33, %v6060_v21 }
 0x1b8   :  { %7241 = vpow2.f32 %v3335_v10  ;;  %v3172_v42 = vmin.f32 %v9852_v43, 0.0  ;;  %v1884_v8 = vadd.f32 %v1883_v4, %v11975_v37  ;;  %v1885_v45 = vpop.f32.mrb[81].mxu0  ;;  %2147 = vmatmul.mubr.f32.gmra.mrb[186].mxu0 %v509_v14  ;;  %4173 = vmatprep.mubr.f32.mxu1 %v3788_v48  ;;  %v512_v10 = vld [vmem:[%s11909_s1 + $0x8d0] sm:$0xff]  ;;  %v9879_v37 = vpop.f32.mrb[82].mxu1  ;;  %vm3046_vm8 = vcmp.gt.f32.partialorder %v9852_v43, 0.0 }
 0x1b9   :  { %v3672_v23 = vsel %vm3042_vm4, %v9764_v52, %v6061_v26  ;;  %2151 = vmatprep.mubr.f32.mxu0 %v513_v44  ;;  %v516_v48 = vld [vmem:[%s11909_s1 + $0x8f0] sm:$0xff]  ;;  %v3796_v52 = vld [vmem:[%s11911_s3 + $0x108] sm:$0xff]  ;;  %v9884_v21 = vpop.f32.mrb[83].mxu1 }
 0x1ba   :  { %v7238_v32 = vpop.eup %7237  ;;  %v3337_v62 = vmul.f32 1.442695, %v3172_v42  ;;  %v9874_v4 = vadd.f32 %v9387_v9, %v1884_v8  ;;  %v6755_v14 = vpack.c.bf16 %v3672_v23, %v3671_v17  ;;  %v11976_v9 = vld [vmem:[#allocation20_spill] sm:$0xff]  ;;  %v3795_v8 = vld [vmem:[%s11911_s3 + $0x100] sm:$0xff] }
 0x1bb   :  { %v1888_v33 = vpop.f32.mrb[82].mxu0  ;;  %4174 = vmatmul.mubr.f32.gmra.mrb[132].mxu1 %v3787_v7  ;;  %v6062_v45 = vadd.f32 -1.0, %v7238_v32  ;;  %v515_v7 = vld [vmem:[%s11909_s1 + $0x8e8] sm:$0xff] }
 0x1bc   :  { %7243 = vpow2.f32 %v3337_v62  ;;  %v3173_v44 = vmin.f32 %v9874_v4, 0.0  ;;  %v1889_v26 = vadd.f32 %v1888_v33, %v11976_v9  ;;  %v1890_v42 = vpop.f32.mrb[83].mxu0  ;;  %2152 = vmatmul.mubr.f32.gmra.mrb[188].mxu0 %v512_v10  ;;  %6756 = vmatpush1.bf16.msra.mxu1 %v6755_v14  ;;  %v3804_v62 = vld [vmem:[%s11911_s3 + $0x148] sm:$0xff]  ;;  %v9904_v14 = vpop.f32.mrb[84].mxu1  ;;  %vm3047_vm9 = vcmp.gt.f32.partialorder %v9874_v4, 0.0 }
 0x1bd   :  { %2156 = vmatprep.mubr.f32.mxu0 %v516_v48  ;;  %6757 = vmatprep.subr.bf16.mxu1 %v11953_v63  ;;  %v519_v32 = vld [vmem:[%s11909_s1 + $0x908] sm:$0xff]  ;;  %11977 = vst [vmem:[#allocation38_spill] sm:$0xff] %v9904_v14  ;;  %v9907_v9 = vpop.f32.mrb[85].mxu1 }
 0x1be   :  { %v7240_v17 = vpop.eup %7239  ;;  %v3339_v23 = vmul.f32 1.442695, %v3173_v44  ;;  %v9899_v10 = vadd.f32 %v9381_v28, %v1889_v26  ;;  %4178 = vmatprep.mubr.f32.mxu1 %v3796_v52  ;;  %11978 = vst [vmem:[#allocation8_spill] sm:$0xff] %v9907_v9  ;;  %v11979_v44 = vld [vmem:[#allocation23_spill] sm:$0xff] }
 0x1bf   :  { %v6063_v48 = vadd.f32 -1.0, %v7240_v17  ;;  %v1893_v33 = vpop.f32.mrb[84].mxu0  ;;  %4179 = vmatmul.mubr.f32.gmra.mrb[134].mxu1 %v3795_v8  ;;  %v3803_v52 = vld [vmem:[%s11911_s3 + $0x140] sm:$0xff]  ;;  %v3673_v17 = vsel %vm3043_vm5, %v9783_v11, %v6062_v45 }
 0x1c0   :  { %7245 = vpow2.f32 %v3339_v23  ;;  %v3174_v28 = vmin.f32 %v9899_v10, 0.0  ;;  %v1894_v26 = vadd.f32 %v1893_v33, %v11979_v44  ;;  %v1895_v42 = vpop.f32.mrb[85].mxu0  ;;  %2157 = vmatmul.mubr.f32.gmra.mrb[190].mxu0 %v515_v7  ;;  %4183 = vmatprep.mubr.f32.mxu1 %v3804_v62  ;;  %v518_v23 = vld [vmem:[%s11909_s1 + $0x900] sm:$0xff]  ;;  %v9926_v44 = vpop.f32.mrb[86].mxu1  ;;  %vm3048_vm10 = vcmp.gt.f32.partialorder %v9899_v10, 0.0 }
 0x1c1   :  { %v3674_v8 = vsel %vm3044_vm6, %v9805_v15, %v6063_v48  ;;  %2161 = vmatprep.mubr.f32.mxu0 %v519_v32  ;;  %v522_v62 = vld [vmem:[%s11909_s1 + $0x920] sm:$0xff]  ;;  %v3812_v15 = vld [vmem:[%s11911_s3 + $0x188] sm:$0xff]  ;;  %v9931_v45 = vpop.f32.mrb[87].mxu1 }
 0x1c2   :  { %v7242_v14 = vpop.eup %7241  ;;  %v3341_v9 = vmul.f32 1.442695, %v3174_v28  ;;  %v9921_v33 = vadd.f32 %v9404_v50, %v1894_v26  ;;  %v6758_v7 = vpack.c.bf16 %v3674_v8, %v3673_v17  ;;  %v11980_v50 = vld [vmem:[#allocation22_spill] sm:$0xff]  ;;  %v3811_v26 = vld [vmem:[%s11911_s3 + $0x180] sm:$0xff] }
 0x1c3   :  { %v1898_v11 = vpop.f32.mrb[86].mxu0  ;;  %4184 = vmatmul.mubr.f32.gmra.mrb[136].mxu1 %v3803_v52  ;;  %v6064_v42 = vadd.f32 -1.0, %v7242_v14  ;;  %v521_v52 = vld [vmem:[%s11909_s1 + $0x918] sm:$0xff] }
 0x1c4   :  { %7247 = vpow2.f32 %v3341_v9  ;;  %v3175_v32 = vmin.f32 %v9921_v33, 0.0  ;;  %v1899_v48 = vadd.f32 %v1898_v11, %v11980_v50  ;;  %v1900_v28 = vpop.f32.mrb[87].mxu0  ;;  %2162 = vmatmul.mubr.f32.gmra.mrb[192].mxu0 %v518_v23  ;;  %6759 = vmatpush1.bf16.msra.mxu1 %v6758_v7  ;;  %v3820_v9 = vld [vmem:[%s11911_s3 + $0x1c8] sm:$0xff]  ;;  %v525_v14 = vld [vmem:[%s11909_s1 + $0x938] sm:$0xff]  ;;  %v9951_v7 = vpop.f32.mrb[88].mxu1  ;;  %vm3049_vm11 = vcmp.gt.f32.partialorder %v9921_v33, 0.0 }
 0x1c5   :  { %2166 = vmatprep.mubr.f32.mxu0 %v522_v62  ;;  %6760 = vmatprep.subr.bf16.mxu1 %v11953_v63  ;;  %11981 = vst [vmem:[#allocation36_spill] sm:$0xff] %v9951_v7  ;;  %v9954_v50 = vpop.f32.mrb[89].mxu1 }
 0x1c6   :  { %v7244_v17 = vpop.eup %7243  ;;  %v3343_v8 = vmul.f32 1.442695, %v3175_v32  ;;  %v9946_v23 = vadd.f32 %v9400_v20, %v1899_v48  ;;  %4188 = vmatprep.mubr.f32.mxu1 %v3812_v15  ;;  %11982 = vst [vmem:[#allocation11_spill] sm:$0xff] %v9954_v50  ;;  %v11983_v32 = vld [vmem:[#allocation25_spill] sm:$0xff]  ;;  %v3819_v15 = vld [vmem:[%s11911_s3 + $0x1c0] sm:$0xff] }
 0x1c7   :  { %v6065_v62 = vadd.f32 -1.0, %v7244_v17  ;;  %v1903_v11 = vpop.f32.mrb[88].mxu0  ;;  %4189 = vmatmul.mubr.f32.gmra.mrb[138].mxu1 %v3811_v26  ;;  %v3675_v17 = vsel %vm3045_vm7, %v9827_v12, %v6064_v42 }
 0x1c8   :  { %7249 = vpow2.f32 %v3343_v8  ;;  %v3176_v20 = vmin.f32 %v9946_v23, 0.0  ;;  %v1904_v48 = vadd.f32 %v1903_v11, %v11983_v32  ;;  %v1905_v28 = vpop.f32.mrb[89].mxu0  ;;  %2167 = vmatmul.mubr.f32.gmra.mrb[194].mxu0 %v521_v52  ;;  %4193 = vmatprep.mubr.f32.mxu1 %v3820_v9  ;;  %v524_v8 = vld [vmem:[%s11909_s1 + $0x930] sm:$0xff]  ;;  %v9973_v32 = vpop.f32.mrb[90].mxu1  ;;  %vm3050_vm12 = vcmp.gt.f32.partialorder %v9946_v23, 0.0 }
 0x1c9   :  { %v3676_v26 = vsel %vm3046_vm8, %v9852_v43, %v6065_v62  ;;  %2171 = vmatprep.mubr.f32.mxu0 %v525_v14  ;;  %v528_v9 = vld [vmem:[%s11909_s1 + $0x950] sm:$0xff]  ;;  %v3828_v43 = vld [vmem:[%s11911_s3 + $0x208] sm:$0xff]  ;;  %v9978_v42 = vpop.f32.mrb[91].mxu1 }
 0x1ca   :  { %v7246_v7 = vpop.eup %7245  ;;  %v3345_v50 = vmul.f32 1.442695, %v3176_v20  ;;  %v9968_v11 = vadd.f32 %v9422_v29, %v1904_v48  ;;  %v6761_v52 = vpack.c.bf16 %v3676_v26, %v3675_v17  ;;  %v11984_v29 = vld [vmem:[#allocation24_spill] sm:$0xff]  ;;  %v3827_v48 = vld [vmem:[%s11911_s3 + $0x200] sm:$0xff] }
 0x1cb   :  { %v1908_v12 = vpop.f32.mrb[90].mxu0  ;;  %4194 = vmatmul.mubr.f32.gmra.mrb[140].mxu1 %v3819_v15  ;;  %v6066_v28 = vadd.f32 -1.0, %v7246_v7  ;;  %v527_v15 = vld [vmem:[%s11909_s1 + $0x948] sm:$0xff] }
 0x1cc   :  { %7251 = vpow2.f32 %v3345_v50  ;;  %v3177_v14 = vmin.f32 %v9968_v11, 0.0  ;;  %v1909_v62 = vadd.f32 %v1908_v12, %v11984_v29  ;;  %v1910_v20 = vpop.f32.mrb[91].mxu0  ;;  %2172 = vmatmul.mubr.f32.gmra.mrb[196].mxu0 %v524_v8  ;;  %6762 = vmatpush1.bf16.msra.mxu1 %v6761_v52  ;;  %v3836_v50 = vld [vmem:[%s11911_s3 + $0x248] sm:$0xff]  ;;  %v9998_v52 = vpop.f32.mrb[92].mxu1  ;;  %vm3051_vm13 = vcmp.gt.f32.partialorder %v9968_v11, 0.0 }
 0x1cd   :  { %2176 = vmatprep.mubr.f32.mxu0 %v528_v9  ;;  %6763 = vmatprep.subr.bf16.mxu1 %v11953_v63  ;;  %v531_v7 = vld [vmem:[%s11909_s1 + $0x968] sm:$0xff]  ;;  %11985 = vst [vmem:[#allocation10_spill] sm:$0xff] %v9998_v52  ;;  %v10001_v29 = vpop.f32.mrb[93].mxu1 }
 0x1ce   :  { %v7248_v17 = vpop.eup %7247  ;;  %v3347_v26 = vmul.f32 1.442695, %v3177_v14  ;;  %v9993_v8 = vadd.f32 %v9416_v56, %v1909_v62  ;;  %4198 = vmatprep.mubr.f32.mxu1 %v3828_v43  ;;  %11986 = vst [vmem:[#allocation13_spill] sm:$0xff] %v10001_v29  ;;  %v11987_v14 = vld [vmem:[#allocation27_spill] sm:$0xff] }
 0x1cf   :  { %v6067_v9 = vadd.f32 -1.0, %v7248_v17  ;;  %v1913_v12 = vpop.f32.mrb[92].mxu0  ;;  %4199 = vmatmul.mubr.f32.gmra.mrb[142].mxu1 %v3827_v48  ;;  %v3835_v43 = vld [vmem:[%s11911_s3 + $0x240] sm:$0xff]  ;;  %v3677_v17 = vsel %vm3047_vm9, %v9874_v4, %v6066_v28 }
 0x1d0   :  { %7253 = vpow2.f32 %v3347_v26  ;;  %v3178_v56 = vmin.f32 %v9993_v8, 0.0  ;;  %v1914_v62 = vadd.f32 %v1913_v12, %v11987_v14  ;;  %v1915_v20 = vpop.f32.mrb[93].mxu0  ;;  %2177 = vmatmul.mubr.f32.gmra.mrb[198].mxu0 %v527_v15  ;;  %4203 = vmatprep.mubr.f32.mxu1 %v3836_v50  ;;  %v530_v26 = vld [vmem:[%s11909_s1 + $0x960] sm:$0xff]  ;;  %v10020_v14 = vpop.f32.mrb[94].mxu1  ;;  %vm3052_vm14 = vcmp.gt.f32.partialorder %v9993_v8, 0.0 }
 0x1d1   :  { %v3678_v48 = vsel %vm3048_vm10, %v9899_v10, %v6067_v9  ;;  %2181 = vmatprep.mubr.f32.mxu0 %v531_v7  ;;  %v534_v50 = vld [vmem:[%s11909_s1 + $0x980] sm:$0xff]  ;;  %v3844_v10 = vld [vmem:[%s11911_s3 + $0x288] sm:$0xff]  ;;  %v10025_v28 = vpop.f32.mrb[95].mxu1 }
 0x1d2   :  { %v7250_v52 = vpop.eup %7249  ;;  %v3349_v29 = vmul.f32 1.442695, %v3178_v56  ;;  %v10015_v12 = vadd.f32 %v9439_v35, %v1914_v62  ;;  %v6764_v15 = vpack.c.bf16 %v3678_v48, %v3677_v17  ;;  %v11988_v35 = vld [vmem:[#allocation26_spill] sm:$0xff]  ;;  %v3843_v62 = vld [vmem:[%s11911_s3 + $0x280] sm:$0xff] }
 0x1d3   :  { %v1918_v4 = vpop.f32.mrb[94].mxu0  ;;  %4204 = vmatmul.mubr.f32.gmra.mrb[144].mxu1 %v3835_v43  ;;  %v6068_v20 = vadd.f32 -1.0, %v7250_v52  ;;  %v533_v43 = vld [vmem:[%s11909_s1 + $0x978] sm:$0xff] }
 0x1d4   :  { %7255 = vpow2.f32 %v3349_v29  ;;  %v3179_v7 = vmin.f32 %v10015_v12, 0.0  ;;  %v1919_v9 = vadd.f32 %v1918_v4, %v11988_v35  ;;  %v1920_v56 = vpop.f32.mrb[95].mxu0  ;;  %2182 = vmatmul.mubr.f32.gmra.mrb[200].mxu0 %v530_v26  ;;  %6765 = vmatpush1.bf16.msra.mxu1 %v6764_v15  ;;  %v3852_v29 = vld [vmem:[%s11911_s3 + $0x2c8] sm:$0xff]  ;;  %v537_v52 = vld [vmem:[%s11909_s1 + $0x998] sm:$0xff]  ;;  %v10045_v15 = vpop.f32.mrb[96].mxu1  ;;  %vm3053_vm15 = vcmp.gt.f32.partialorder %v10015_v12, 0.0 }
 0x1d5   :  { %2186 = vmatprep.mubr.f32.mxu0 %v534_v50  ;;  %6766 = vmatprep.subr.bf16.mxu1 %v11953_v63  ;;  %11989 = vst [vmem:[#allocation12_spill] sm:$0xff] %v10045_v15  ;;  %v10048_v35 = vpop.f32.mrb[97].mxu1 }
 0x1d6   :  { %v7252_v17 = vpop.eup %7251  ;;  %v3351_v48 = vmul.f32 1.442695, %v3179_v7  ;;  %v10040_v26 = vadd.f32 %v9435_v5, %v1919_v9  ;;  %4208 = vmatprep.mubr.f32.mxu1 %v3844_v10  ;;  %11990 = vst [vmem:[#allocation15_spill] sm:$0xff] %v10048_v35  ;;  %v11991_v7 = vld [vmem:[#allocation29_spill] sm:$0xff]  ;;  %v3851_v10 = vld [vmem:[%s11911_s3 + $0x2c0] sm:$0xff] }
 0x1d7   :  { %v6069_v50 = vadd.f32 -1.0, %v7252_v17  ;;  %v1923_v4 = vpop.f32.mrb[96].mxu0  ;;  %4209 = vmatmul.mubr.f32.gmra.mrb[146].mxu1 %v3843_v62  ;;  %v3679_v17 = vsel %vm3049_vm11, %v9921_v33, %v6068_v20 }
 0x1d8   :  { %7257 = vpow2.f32 %v3351_v48  ;;  %v3180_v5 = vmin.f32 %v10040_v26, 0.0  ;;  %v1924_v9 = vadd.f32 %v1923_v4, %v11991_v7  ;;  %v1925_v56 = vpop.f32.mrb[97].mxu0  ;;  %2187 = vmatmul.mubr.f32.gmra.mrb[202].mxu0 %v533_v43  ;;  %4213 = vmatprep.mubr.f32.mxu1 %v3852_v29  ;;  %v536_v48 = vld [vmem:[%s11909_s1 + $0x990] sm:$0xff]  ;;  %v10067_v7 = vpop.f32.mrb[98].mxu1  ;;  %vm3054_vm0 = vcmp.gt.f32.partialorder %v10040_v26, 0.0 }
 0x1d9   :  { %v3680_v62 = vsel %vm3050_vm12, %v9946_v23, %v6069_v50  ;;  %2191 = vmatprep.mubr.f32.mxu0 %v537_v52  ;;  %v540_v29 = vld [vmem:[%s11909_s1 + $0x9b0] sm:$0xff]  ;;  %v3860_v23 = vld [vmem:[%s11911_s3 + $0x308] sm:$0xff]  ;;  %v10072_v20 = vpop.f32.mrb[99].mxu1 }
 0x1da   :  { %v7254_v15 = vpop.eup %7253  ;;  %v3353_v35 = vmul.f32 1.442695, %v3180_v5  ;;  %v10062_v4 = vadd.f32 %v9468_v30, %v1924_v9  ;;  %v6767_v43 = vpack.c.bf16 %v3680_v62, %v3679_v17  ;;  %v11992_v30 = vld [vmem:[#allocation28_spill] sm:$0xff]  ;;  %v3859_v9 = vld [vmem:[%s11911_s3 + $0x300] sm:$0xff] }
 0x1db   :  { %v1928_v33 = vpop.f32.mrb[98].mxu0  ;;  %4214 = vmatmul.mubr.f32.gmra.mrb[148].mxu1 %v3851_v10  ;;  %v6070_v56 = vadd.f32 -1.0, %v7254_v15  ;;  %v539_v10 = vld [vmem:[%s11909_s1 + $0x9a8] sm:$0xff] }
 0x1dc   :  { %7259 = vpow2.f32 %v3353_v35  ;;  %v3181_v52 = vmin.f32 %v10062_v4, 0.0  ;;  %v1929_v50 = vadd.f32 %v1928_v33, %v11992_v30  ;;  %v1930_v5 = vpop.f32.mrb[99].mxu0  ;;  %2192 = vmatmul.mubr.f32.gmra.mrb[204].mxu0 %v536_v48  ;;  %6768 = vmatpush1.bf16.msra.mxu1 %v6767_v43  ;;  %v3868_v35 = vld [vmem:[%s11911_s3 + $0x348] sm:$0xff]  ;;  %v10092_v43 = vpop.f32.mrb[100].mxu1  ;;  %vm3055_vm1 = vcmp.gt.f32.partialorder %v10062_v4, 0.0 }
 0x1dd   :  { %2196 = vmatprep.mubr.f32.mxu0 %v540_v29  ;;  %6769 = vmatprep.subr.bf16.mxu1 %v11953_v63  ;;  %v543_v15 = vld [vmem:[%s11909_s1 + $0x9c8] sm:$0xff]  ;;  %11993 = vst [vmem:[#allocation14_spill] sm:$0xff] %v10092_v43  ;;  %v10095_v30 = vpop.f32.mrb[101].mxu1 }
 0x1de   :  { %v7256_v17 = vpop.eup %7255  ;;  %v3355_v62 = vmul.f32 1.442695, %v3181_v52  ;;  %v10087_v48 = vadd.f32 %v9460_v61, %v1929_v50  ;;  %4218 = vmatprep.mubr.f32.mxu1 %v3860_v23  ;;  %11994 = vst [vmem:[#allocation17_spill] sm:$0xff] %v10095_v30  ;;  %v11995_v52 = vld [vmem:[#allocation31_spill] sm:$0xff] }
 0x1df   :  { %v6071_v29 = vadd.f32 -1.0, %v7256_v17  ;;  %v1933_v33 = vpop.f32.mrb[100].mxu0  ;;  %4219 = vmatmul.mubr.f32.gmra.mrb[150].mxu1 %v3859_v9  ;;  %v3867_v23 = vld [vmem:[%s11911_s3 + $0x340] sm:$0xff]  ;;  %v3681_v17 = vsel %vm3051_vm13, %v9968_v11, %v6070_v56 }
 0x1e0   :  { %7261 = vpow2.f32 %v3355_v62  ;;  %v3182_v61 = vmin.f32 %v10087_v48, 0.0  ;;  %v1934_v50 = vadd.f32 %v1933_v33, %v11995_v52  ;;  %v1935_v5 = vpop.f32.mrb[101].mxu0  ;;  %2197 = vmatmul.mubr.f32.gmra.mrb[206].mxu0 %v539_v10  ;;  %4223 = vmatprep.mubr.f32.mxu1 %v3868_v35  ;;  %v542_v62 = vld [vmem:[%s11909_s1 + $0x9c0] sm:$0xff]  ;;  %v10114_v52 = vpop.f32.mrb[102].mxu1  ;;  %vm3056_vm2 = vcmp.gt.f32.partialorder %v10087_v48, 0.0 }
 0x1e1   :  { %v3682_v9 = vsel %vm3052_vm14, %v9993_v8, %v6071_v29  ;;  %2201 = vmatprep.mubr.f32.mxu0 %v543_v15  ;;  %v546_v35 = vld [vmem:[%s11909_s1 + $0x9e0] sm:$0xff]  ;;  %v3876_v8 = vld [vmem:[%s11911_s3 + $0x388] sm:$0xff]  ;;  %v10119_v56 = vpop.f32.mrb[103].mxu1 }
 0x1e2   :  { %v7258_v43 = vpop.eup %7257  ;;  %v3357_v30 = vmul.f32 1.442695, %v3182_v61  ;;  %v10109_v33 = vadd.f32 %v9499_v24, %v1934_v50  ;;  %v6770_v10 = vpack.c.bf16 %v3682_v9, %v3681_v17  ;;  %v11996_v24 = vld [vmem:[#allocation30_spill] sm:$0xff]  ;;  %v3875_v50 = vld [vmem:[%s11911_s3 + $0x380] sm:$0xff] }
 0x1e3   :  { %v1938_v11 = vpop.f32.mrb[102].mxu0  ;;  %4224 = vmatmul.mubr.f32.gmra.mrb[152].mxu1 %v3867_v23  ;;  %v6072_v5 = vadd.f32 -1.0, %v7258_v43  ;;  %v545_v23 = vld [vmem:[%s11909_s1 + $0x9d8] sm:$0xff] }
 0x1e4   :  { %7263 = vpow2.f32 %v3357_v30  ;;  %v3183_v15 = vmin.f32 %v10109_v33, 0.0  ;;  %v1939_v29 = vadd.f32 %v1938_v11, %v11996_v24  ;;  %v1940_v61 = vpop.f32.mrb[103].mxu0  ;;  %2202 = vmatmul.mubr.f32.gmra.mrb[208].mxu0 %v542_v62  ;;  %6771 = vmatpush1.bf16.msra.mxu1 %v6770_v10  ;;  %v3884_v30 = vld [vmem:[%s11911_s3 + $0x3c8] sm:$0xff]  ;;  %v549_v43 = vld [vmem:[%s11909_s1 + $0x9f8] sm:$0xff]  ;;  %v10139_v10 = vpop.f32.mrb[104].mxu1  ;;  %vm3057_vm3 = vcmp.gt.f32.partialorder %v10109_v33, 0.0 }
 0x1e5   :  { %2206 = vmatprep.mubr.f32.mxu0 %v546_v35  ;;  %6772 = vmatprep.subr.bf16.mxu1 %v11953_v63  ;;  %11997 = vst [vmem:[#allocation16_spill] sm:$0xff] %v10139_v10  ;;  %v10142_v24 = vpop.f32.mrb[105].mxu1 }
 0x1e6   :  { %v7260_v17 = vpop.eup %7259  ;;  %v3359_v9 = vmul.f32 1.442695, %v3183_v15  ;;  %v10134_v62 = vadd.f32 %v9491_v57, %v1939_v29  ;;  %4228 = vmatprep.mubr.f32.mxu1 %v3876_v8  ;;  %11998 = vst [vmem:[#allocation43_spill] sm:$0xff] %v10142_v24  ;;  %v11999_v15 = vld [vmem:[#allocation33_spill] sm:$0xff]  ;;  %v3883_v8 = vld [vmem:[%s11911_s3 + $0x3c0] sm:$0xff] }
 0x1e7   :  { %v6073_v35 = vadd.f32 -1.0, %v7260_v17  ;;  %v1943_v11 = vpop.f32.mrb[104].mxu0  ;;  %4229 = vmatmul.mubr.f32.gmra.mrb[154].mxu1 %v3875_v50  ;;  %v3683_v17 = vsel %vm3053_vm15, %v10015_v12, %v6072_v5 }
 0x1e8   :  { %7265 = vpow2.f32 %v3359_v9  ;;  %v3184_v57 = vmin.f32 %v10134_v62, 0.0  ;;  %v1944_v29 = vadd.f32 %v1943_v11, %v11999_v15  ;;  %v1945_v61 = vpop.f32.mrb[105].mxu0  ;;  %2207 = vmatmul.mubr.f32.gmra.mrb[210].mxu0 %v545_v23  ;;  %4233 = vmatprep.mubr.f32.mxu1 %v3884_v30  ;;  %v548_v9 = vld [vmem:[%s11909_s1 + $0x9f0] sm:$0xff]  ;;  %v10161_v15 = vpop.f32.mrb[106].mxu1  ;;  %vm3058_vm4 = vcmp.gt.f32.partialorder %v10134_v62, 0.0 }
 0x1e9   :  { %v3684_v50 = vsel %vm3054_vm0, %v10040_v26, %v6073_v35  ;;  %2211 = vmatprep.mubr.f32.mxu0 %v549_v43  ;;  %v552_v30 = vld [vmem:[%s11909_s1 + $0xa10] sm:$0xff]  ;;  %v3892_v26 = vld [vmem:[%s11911_s3 + $0x408] sm:$0xff]  ;;  %v10166_v5 = vpop.f32.mrb[107].mxu1 }
 0x1ea   :  { %v7262_v10 = vpop.eup %7261  ;;  %v3361_v24 = vmul.f32 1.442695, %v3184_v57  ;;  %v10156_v11 = vadd.f32 %v9530_v6, %v1944_v29  ;;  %v6773_v23 = vpack.c.bf16 %v3684_v50, %v3683_v17  ;;  %v12000_v6 = vld [vmem:[#allocation32_spill] sm:$0xff]  ;;  %v3891_v29 = vld [vmem:[%s11911_s3 + $0x400] sm:$0xff] }
 0x1eb   :  { %v1948_v12 = vpop.f32.mrb[106].mxu0  ;;  %4234 = vmatmul.mubr.f32.gmra.mrb[156].mxu1 %v3883_v8  ;;  %v6074_v61 = vadd.f32 -1.0, %v7262_v10  ;;  %v551_v8 = vld [vmem:[%s11909_s1 + $0xa08] sm:$0xff] }
 0x1ec   :  { %7267 = vpow2.f32 %v3361_v24  ;;  %v3185_v43 = vmin.f32 %v10156_v11, 0.0  ;;  %v1949_v35 = vadd.f32 %v1948_v12, %v12000_v6  ;;  %v1950_v57 = vpop.f32.mrb[107].mxu0  ;;  %2212 = vmatmul.mubr.f32.gmra.mrb[212].mxu0 %v548_v9  ;;  %6774 = vmatpush1.bf16.msra.mxu1 %v6773_v23  ;;  %v3900_v24 = vld [vmem:[%s11911_s3 + $0x448] sm:$0xff]  ;;  %v10186_v23 = vpop.f32.mrb[108].mxu1  ;;  %vm3059_vm5 = vcmp.gt.f32.partialorder %v10156_v11, 0.0 }
 0x1ed   :  { %2216 = vmatprep.mubr.f32.mxu0 %v552_v30  ;;  %6775 = vmatprep.subr.bf16.mxu1 %v11953_v63  ;;  %v555_v10 = vld [vmem:[%s11909_s1 + $0xa28] sm:$0xff]  ;;  %12001 = vst [vmem:[#allocation19_spill] sm:$0xff] %v10186_v23  ;;  %v10189_v6 = vpop.f32.mrb[109].mxu1 }
 0x1ee   :  { %v7264_v17 = vpop.eup %7263  ;;  %v3363_v50 = vmul.f32 1.442695, %v3185_v43  ;;  %v10181_v9 = vadd.f32 %v9522_v60, %v1949_v35  ;;  %4238 = vmatprep.mubr.f32.mxu1 %v3892_v26  ;;  %12002 = vst [vmem:[#allocation18_spill] sm:$0xff] %v10189_v6  ;;  %v12003_v43 = vld [vmem:[#allocation37_spill] sm:$0xff]  ;;  %v3899_v26 = vld [vmem:[%s11911_s3 + $0x440] sm:$0xff] }
 0x1ef   :  { %v6075_v30 = vadd.f32 -1.0, %v7264_v17  ;;  %v1953_v12 = vpop.f32.mrb[108].mxu0  ;;  %4239 = vmatmul.mubr.f32.gmra.mrb[158].mxu1 %v3891_v29  ;;  %v3685_v17 = vsel %vm3055_vm1, %v10062_v4, %v6074_v61 }
 0x1f0   :  { %7269 = vpow2.f32 %v3363_v50  ;;  %v3186_v60 = vmin.f32 %v10181_v9, 0.0  ;;  %v1954_v35 = vadd.f32 %v1953_v12, %v12003_v43  ;;  %v1955_v57 = vpop.f32.mrb[109].mxu0  ;;  %2217 = vmatmul.mubr.f32.gmra.mrb[214].mxu0 %v551_v8  ;;  %4243 = vmatprep.mubr.f32.mxu1 %v3900_v24  ;;  %v554_v50 = vld [vmem:[%s11909_s1 + $0xa20] sm:$0xff]  ;;  %v10208_v43 = vpop.f32.mrb[110].mxu1  ;;  %vm3060_vm6 = vcmp.gt.f32.partialorder %v10181_v9, 0.0 }
 0x1f1   :  { %v3686_v29 = vsel %vm3056_vm2, %v10087_v48, %v6075_v30  ;;  %2221 = vmatprep.mubr.f32.mxu0 %v555_v10  ;;  %v558_v24 = vld [vmem:[%s11909_s1 + $0xa40] sm:$0xff]  ;;  %v3908_v48 = vld [vmem:[%s11911_s3 + $0x488] sm:$0xff]  ;;  %v10213_v61 = vpop.f32.mrb[111].mxu1 }
 0x1f2   :  { %v7266_v23 = vpop.eup %7265  ;;  %v3365_v6 = vmul.f32 1.442695, %v3186_v60  ;;  %v10203_v12 = vadd.f32 %v9561_v18, %v1954_v35  ;;  %v6776_v8 = vpack.c.bf16 %v3686_v29, %v3685_v17  ;;  %v12004_v18 = vld [vmem:[#allocation35_spill] sm:$0xff] }
 0x1f3   :  { %v1958_v4 = vpop.f32.mrb[110].mxu0  ;;  %4244 = vmatmul.mubr.f32.gmra.mrb[160].mxu1 %v3899_v26  ;;  %v3907_v35 = vld [vmem:[%s11911_s3 + $0x480] sm:$0xff]  ;;  %v6076_v57 = vadd.f32 -1.0, %v7266_v23  ;;  %v557_v26 = vld [vmem:[%s11909_s1 + $0xa38] sm:$0xff] }
 0x1f4   :  { %7271 = vpow2.f32 %v3365_v6  ;;  %v3187_v10 = vmin.f32 %v10203_v12, 0.0  ;;  %v1959_v30 = vadd.f32 %v1958_v4, %v12004_v18  ;;  %v1960_v60 = vpop.f32.mrb[111].mxu0  ;;  %2222 = vmatmul.mubr.f32.gmra.mrb[216].mxu0 %v554_v50  ;;  %6777 = vmatpush1.bf16.msra.mxu1 %v6776_v8  ;;  %v3916_v6 = vld [vmem:[%s11911_s3 + $0x4c8] sm:$0xff]  ;;  %v561_v23 = vld [vmem:[%s11909_s1 + $0xa58] sm:$0xff]  ;;  %v10233_v8 = vpop.f32.mrb[112].mxu1  ;;  %vm3061_vm7 = vcmp.gt.f32.partialorder %v10203_v12, 0.0 }
 0x1f5   :  { %2226 = vmatprep.mubr.f32.mxu0 %v558_v24  ;;  %6778 = vmatprep.subr.bf16.mxu1 %v11953_v63  ;;  %12005 = vst [vmem:[#allocation21_spill] sm:$0xff] %v10233_v8  ;;  %v10236_v18 = vpop.f32.mrb[113].mxu1 }
 0x1f6   :  { %v7268_v17 = vpop.eup %7267  ;;  %v3367_v29 = vmul.f32 1.442695, %v3187_v10  ;;  %v10228_v50 = vadd.f32 %v9553_v47, %v1959_v30  ;;  %4248 = vmatprep.mubr.f32.mxu1 %v3908_v48  ;;  %12006 = vst [vmem:[#allocation20_spill] sm:$0xff] %v10236_v18  ;;  %v12007_v10 = vld [vmem:[#allocation40_spill] sm:$0xff]  ;;  %v3915_v48 = vld [vmem:[%s11911_s3 + $0x4c0] sm:$0xff] }
 0x1f7   :  { %v6077_v24 = vadd.f32 -1.0, %v7268_v17  ;;  %v1963_v4 = vpop.f32.mrb[112].mxu0  ;;  %4249 = vmatmul.mubr.f32.gmra.mrb[162].mxu1 %v3907_v35  ;;  %v3687_v17 = vsel %vm3057_vm3, %v10109_v33, %v6076_v57 }
 0x1f8   :  { %7273 = vpow2.f32 %v3367_v29  ;;  %v3188_v47 = vmin.f32 %v10228_v50, 0.0  ;;  %v1964_v30 = vadd.f32 %v1963_v4, %v12007_v10  ;;  %v1965_v60 = vpop.f32.mrb[113].mxu0  ;;  %2227 = vmatmul.mubr.f32.gmra.mrb[218].mxu0 %v557_v26  ;;  %4253 = vmatprep.mubr.f32.mxu1 %v3916_v6  ;;  %v560_v29 = vld [vmem:[%s11909_s1 + $0xa50] sm:$0xff]  ;;  %v10255_v10 = vpop.f32.mrb[114].mxu1  ;;  %vm3062_vm8 = vcmp.gt.f32.partialorder %v10228_v50, 0.0 }
 0x1f9   :  { %v3688_v35 = vsel %vm3058_vm4, %v10134_v62, %v6077_v24  ;;  %2231 = vmatprep.mubr.f32.mxu0 %v561_v23  ;;  %v564_v6 = vld [vmem:[%s11909_s1 + $0xa70] sm:$0xff]  ;;  %v3924_v62 = vld [vmem:[%s11911_s3 + $0x508] sm:$0xff]  ;;  %v10260_v57 = vpop.f32.mrb[115].mxu1 }
 0x1fa   :  { %v7270_v8 = vpop.eup %7269  ;;  %v3369_v18 = vmul.f32 1.442695, %v3188_v47  ;;  %v10250_v4 = vadd.f32 %v9592_v59, %v1964_v30  ;;  %v6779_v26 = vpack.c.bf16 %v3688_v35, %v3687_v17  ;;  %v12008_v59 = vld [vmem:[#allocation39_spill] sm:$0xff] }
 0x1fb   :  { %v1968_v33 = vpop.f32.mrb[114].mxu0  ;;  %4254 = vmatmul.mubr.f32.gmra.mrb[164].mxu1 %v3915_v48  ;;  %v3923_v30 = vld [vmem:[%s11911_s3 + $0x500] sm:$0xff]  ;;  %v6078_v60 = vadd.f32 -1.0, %v7270_v8  ;;  %v563_v48 = vld [vmem:[%s11909_s1 + $0xa68] sm:$0xff] }
 0x1fc   :  { %7275 = vpow2.f32 %v3369_v18  ;;  %v3189_v23 = vmin.f32 %v10250_v4, 0.0  ;;  %v1969_v24 = vadd.f32 %v1968_v33, %v12008_v59  ;;  %v1970_v47 = vpop.f32.mrb[115].mxu0  ;;  %2232 = vmatmul.mubr.f32.gmra.mrb[220].mxu0 %v560_v29  ;;  %6780 = vmatpush1.bf16.msra.mxu1 %v6779_v26  ;;  %v3932_v18 = vld [vmem:[%s11911_s3 + $0x548] sm:$0xff]  ;;  %v10280_v26 = vpop.f32.mrb[116].mxu1  ;;  %vm3063_vm9 = vcmp.gt.f32.partialorder %v10250_v4, 0.0 }
 0x1fd   :  { %2236 = vmatprep.mubr.f32.mxu0 %v564_v6  ;;  %6781 = vmatprep.subr.bf16.mxu1 %v11953_v63  ;;  %v567_v8 = vld [vmem:[%s11909_s1 + $0xa88] sm:$0xff]  ;;  %12009 = vst [vmem:[#allocation23_spill] sm:$0xff] %v10280_v26  ;;  %v10283_v59 = vpop.f32.mrb[117].mxu1 }
 0x1fe   :  { %v7272_v17 = vpop.eup %7271  ;;  %v3371_v35 = vmul.f32 1.442695, %v3189_v23  ;;  %v10275_v29 = vadd.f32 %v9584_v31, %v1969_v24  ;;  %4258 = vmatprep.mubr.f32.mxu1 %v3924_v62  ;;  %12010 = vst [vmem:[#allocation22_spill] sm:$0xff] %v10283_v59  ;;  %v12011_v23 = vld [vmem:[#allocation42_spill] sm:$0xff]  ;;  %v3931_v62 = vld [vmem:[%s11911_s3 + $0x540] sm:$0xff] }
 0x1ff   :  { %v6079_v6 = vadd.f32 -1.0, %v7272_v17  ;;  %v1973_v33 = vpop.f32.mrb[116].mxu0  ;;  %4259 = vmatmul.mubr.f32.gmra.mrb[166].mxu1 %v3923_v30  ;;  %v3689_v17 = vsel %vm3059_vm5, %v10156_v11, %v6078_v60 }
 0x200   :  { %7277 = vpow2.f32 %v3371_v35  ;;  %v3190_v31 = vmin.f32 %v10275_v29, 0.0  ;;  %v1974_v24 = vadd.f32 %v1973_v33, %v12011_v23  ;;  %v1975_v47 = vpop.f32.mrb[117].mxu0  ;;  %2237 = vmatmul.mubr.f32.gmra.mrb[222].mxu0 %v563_v48  ;;  %4263 = vmatprep.mubr.f32.mxu1 %v3932_v18  ;;  %v566_v35 = vld [vmem:[%s11909_s1 + $0xa80] sm:$0xff]  ;;  %v10302_v23 = vpop.f32.mrb[118].mxu1  ;;  %vm3064_vm10 = vcmp.gt.f32.partialorder %v10275_v29, 0.0 }
 0x201   :  { %v3690_v30 = vsel %vm3060_vm6, %v10181_v9, %v6079_v6  ;;  %2241 = vmatprep.mubr.f32.mxu0 %v567_v8  ;;  %v570_v18 = vld [vmem:[%s11909_s1 + $0xaa0] sm:$0xff]  ;;  %v3940_v9 = vld [vmem:[%s11911_s3 + $0x588] sm:$0xff]  ;;  %v10307_v60 = vpop.f32.mrb[119].mxu1 }
 0x202   :  { %v7274_v26 = vpop.eup %7273  ;;  %v3373_v59 = vmul.f32 1.442695, %v3190_v31  ;;  %v10297_v33 = vadd.f32 %v9623_v13, %v1974_v24  ;;  %v6782_v48 = vpack.c.bf16 %v3690_v30, %v3689_v17  ;;  %v12012_v13 = vld [vmem:[#allocation41_spill] sm:$0xff]  ;;  %v3939_v24 = vld [vmem:[%s11911_s3 + $0x580] sm:$0xff] }
 0x203   :  { %v1978_v11 = vpop.f32.mrb[118].mxu0  ;;  %4264 = vmatmul.mubr.f32.gmra.mrb[168].mxu1 %v3931_v62  ;;  %v6080_v47 = vadd.f32 -1.0, %v7274_v26  ;;  %v569_v62 = vld [vmem:[%s11909_s1 + $0xa98] sm:$0xff] }
 0x204   :  { %7279 = vpow2.f32 %v3373_v59  ;;  %v3191_v8 = vmin.f32 %v10297_v33, 0.0  ;;  %v1979_v6 = vadd.f32 %v1978_v11, %v12012_v13  ;;  %v1980_v31 = vpop.f32.mrb[119].mxu0  ;;  %2242 = vmatmul.mubr.f32.gmra.mrb[224].mxu0 %v566_v35  ;;  %6783 = vmatpush1.bf16.msra.mxu1 %v6782_v48  ;;  %v3948_v59 = vld [vmem:[%s11911_s3 + $0x5c8] sm:$0xff]  ;;  %v573_v26 = vld [vmem:[%s11909_s1 + $0xab8] sm:$0xff]  ;;  %v10327_v48 = vpop.f32.mrb[120].mxu1  ;;  %vm3065_vm11 = vcmp.gt.f32.partialorder %v10297_v33, 0.0 }
 0x205   :  { %2246 = vmatprep.mubr.f32.mxu0 %v570_v18  ;;  %6784 = vmatprep.subr.bf16.mxu1 %v11953_v63  ;;  %12013 = vst [vmem:[#allocation25_spill] sm:$0xff] %v10327_v48  ;;  %v10330_v13 = vpop.f32.mrb[121].mxu1  ;;  %v3691_v31 = vsel %vm3061_vm7, %v10203_v12, %v6080_v47  ;;  %v916_v48 = vpop.permute.xlu1 %915 }
 0x206   :  { %v7276_v17 = vpop.eup %7275  ;;  %v3375_v30 = vmul.f32 1.442695, %v3191_v8  ;;  %v10322_v35 = vadd.f32 %v9615_v34, %v1979_v6  ;;  %4268 = vmatprep.mubr.f32.mxu1 %v3940_v9  ;;  %12014 = vst [vmem:[#allocation24_spill] sm:$0xff] %v10330_v13  ;;  %v3947_v9 = vld [vmem:[%s11911_s3 + $0x5c0] sm:$0xff] }
 0x207   :  { %v6081_v18 = vadd.f32 -1.0, %v7276_v17  ;;  %v1983_v11 = vpop.f32.mrb[120].mxu0  ;;  %4269 = vmatmul.mubr.f32.gmra.mrb[170].mxu1 %v3939_v24  ;;  %v572_v17 = vld [vmem:[%s11909_s1 + $0xab0] sm:$0xff] }
 0x208   :  { %7281 = vpow2.f32 %v3375_v30  ;;  %v3192_v34 = vmin.f32 %v10322_v35, 0.0  ;;  %v1984_v8 = vadd.f32 %v1983_v11, %v9352_v0  ;;  %v1985_v6 = vpop.f32.mrb[121].mxu0  ;;  %2247 = vmatmul.mubr.f32.gmra.mrb[226].mxu0 %v569_v62  ;;  %4273 = vmatprep.mubr.f32.mxu1 %v3948_v59  ;;  %v576_v59 = vld [vmem:[%s11909_s1 + $0xad0] sm:$0xff]  ;;  %v10349_v11 = vpop.f32.mrb[122].mxu1  ;;  %vm3066_vm12 = vcmp.gt.f32.partialorder %v10322_v35, 0.0 }
 0x209   :  { %v3692_v24 = vsel %vm3062_vm8, %v10228_v50, %v6081_v18  ;;  %2251 = vmatprep.mubr.f32.mxu0 %v573_v26  ;;  %v3956_v50 = vld [vmem:[%s11911_s3 + $0x608] sm:$0xff]  ;;  %v10354_v47 = vpop.f32.mrb[123].mxu1 }
 0x20a   :  { %v7278_v30 = vpop.eup %7277  ;;  %v3377_v13 = vmul.f32 1.442695, %v3192_v34  ;;  %v10344_v0 = vadd.f32 %v9654_v16, %v1984_v8  ;;  %v6785_v62 = vpack.c.bf16 %v3692_v24, %v3691_v31  ;;  %v3955_v34 = vld [vmem:[%s11911_s3 + $0x600] sm:$0xff]  ;;  %v575_v6 = vld [vmem:[%s11909_s1 + $0xac8] sm:$0xff] }
 0x20b   :  { %v1988_v12 = vpop.f32.mrb[122].mxu0  ;;  %4274 = vmatmul.mubr.f32.gmra.mrb[172].mxu1 %v3947_v9  ;;  %v6082_v8 = vadd.f32 -1.0, %v7278_v30  ;;  %v921_v9 = vpop.permute.xlu0 %920 }
 0x20c   :  { %7283 = vpow2.f32 %v3377_v13  ;;  %v3193_v26 = vmin.f32 %v10344_v0, 0.0  ;;  %v1989_v16 = vadd.f32 %v1988_v12, %v916_v48  ;;  %v1990_v18 = vpop.f32.mrb[123].mxu0  ;;  %2252 = vmatmul.mubr.f32.gmra.mrb[228].mxu0 %v572_v17  ;;  %6786 = vmatpush1.bf16.msra.mxu1 %v6785_v62  ;;  %v3964_v13 = vld [vmem:[%s11911_s3 + $0x648] sm:$0xff]  ;;  %v10373_v30 = vpop.f32.mrb[124].mxu1  ;;  %vm3067_vm13 = vcmp.gt.f32.partialorder %v10344_v0, 0.0 }
 0x20d   :  { %2256 = vmatprep.mubr.f32.mxu0 %v576_v59  ;;  %6787 = vmatprep.subr.bf16.mxu1 %v11953_v63  ;;  %v579_v17 = vld [vmem:[%s11909_s1 + $0xae8] sm:$0xff]  ;;  %12015 = vst [vmem:[#allocation27_spill] sm:$0xff] %v10373_v30  ;;  %v10376_v12 = vpop.f32.mrb[125].mxu1  ;;  %v3693_v18 = vsel %vm3063_vm9, %v10250_v4, %v6082_v8 }
 0x20e   :  { %v7280_v48 = vpop.eup %7279  ;;  %v3379_v31 = vmul.f32 1.442695, %v3193_v26  ;;  %v10368_v24 = vadd.f32 %v9646_v19, %v1989_v16  ;;  %4278 = vmatprep.mubr.f32.mxu1 %v3956_v50  ;;  %v3963_v50 = vld [vmem:[%s11911_s3 + $0x640] sm:$0xff]  ;;  %v3972_v4 = vld [vmem:[%s11911_s3 + $0x688] sm:$0xff] }
 0x20f   :  { %v6083_v62 = vadd.f32 -1.0, %v7280_v48  ;;  %v1993_v59 = vpop.f32.mrb[124].mxu0  ;;  %4279 = vmatmul.mubr.f32.gmra.mrb[174].mxu1 %v3955_v34  ;;  %v578_v34 = vld [vmem:[%s11909_s1 + $0xae0] sm:$0xff] }
 0x210   :  { %7285 = vpow2.f32 %v3379_v31  ;;  %v3194_v19 = vmin.f32 %v10368_v24, 0.0  ;;  %v1994_v26 = vadd.f32 %v1993_v59, %v921_v9  ;;  %v1995_v16 = vpop.f32.mrb[125].mxu0  ;;  %2257 = vmatmul.mubr.f32.gmra.mrb[230].mxu0 %v575_v6  ;;  %4283 = vmatprep.mubr.f32.mxu1 %v3964_v13  ;;  %v582_v13 = vld [vmem:[%s11909_s1 + $0xb00] sm:$0xff]  ;;  %v926_v59 = vpop.permute.xlu1 %925  ;;  %vm3068_vm14 = vcmp.gt.f32.partialorder %v10368_v24, 0.0 }
 0x211   :  { %v3694_v48 = vsel %vm3064_vm10, %v10275_v29, %v6083_v62  ;;  %2261 = vmatprep.mubr.f32.mxu0 %v579_v17 }
 0x212   :  { %v7282_v31 = vpop.eup %7281  ;;  %v3381_v30 = vmul.f32 1.442695, %v3194_v19  ;;  %v10389_v9 = vadd.f32 %v9685_v38, %v1994_v26  ;;  %v6788_v6 = vpack.c.bf16 %v3694_v48, %v3693_v18  ;;  %v3971_v38 = vld [vmem:[%s11911_s3 + $0x680] sm:$0xff]  ;;  %v581_v19 = vld [vmem:[%s11909_s1 + $0xaf8] sm:$0xff] }
 0x213   :  { %v1998_v16 = vpop.f32.mrb[126].mxu0  ;;  %4284 = vmatmul.mubr.f32.gmra.mrb[176].mxu1 %v3963_v50  ;;  %v6084_v62 = vadd.f32 -1.0, %v7282_v31  ;;  %v585_v48 = vld [vmem:[%s11909_s1 + $0xb18] sm:$0xff] }
 0x214   :  { %7287 = vpow2.f32 %v3381_v30  ;;  %v3195_v29 = vmin.f32 %v10389_v9, 0.0  ;;  %v1999_v8 = vadd.f32 %v1998_v16, %v926_v59  ;;  %v2000_v17 = vpop.f32.mrb[127].mxu0  ;;  %2262 = vmatmul.mubr.f32.gmra.mrb[232].mxu0 %v578_v34  ;;  %6789 = vmatpush1.bf16.msra.mxu1 %v6788_v6  ;;  %v3980_v30 = vld [vmem:[%s11911_s3 + $0x6c8] sm:$0xff]  ;;  %v931_v34 = vpop.permute.xlu0 %930  ;;  %vm3069_vm15 = vcmp.gt.f32.partialorder %v10389_v9, 0.0 }
 0x215   :  { %2266 = vmatprep.mubr.f32.mxu0 %v582_v13  ;;  %6790 = vmatprep.subr.bf16.mxu1 %v11953_v63 }
 0x216   :  { %v7284_v26 = vpop.eup %7283  ;;  %v3383_v50 = vmul.f32 1.442695, %v3195_v29  ;;  %v10409_v18 = vadd.f32 %v9677_v41, %v1999_v8  ;;  %4288 = vmatprep.mubr.f32.mxu1 %v3972_v4  ;;  %v3979_v41 = vld [vmem:[%s11911_s3 + $0x6c0] sm:$0xff]  ;;  %v3695_v4 = vsel %vm3065_vm11, %v10297_v33, %v6084_v62  ;;  %v584_v8 = vld [vmem:[%s11909_s1 + $0xb10] sm:$0xff]  ;;  %v3988_v33 = vld [vmem:[%s11911_s3 + $0x708] sm:$0xff] }
 0x217   :  { %v6085_v31 = vadd.f32 -1.0, %v7284_v26  ;;  %v2003_v6 = vpop.f32.mrb[128].mxu0  ;;  %4289 = vmatmul.mubr.f32.gmra.mrb[178].mxu1 %v3971_v38 }
 0x218   :  { %7289 = vpow2.f32 %v3383_v50  ;;  %v3196_v13 = vmin.f32 %v10409_v18, 0.0  ;;  %v2004_v59 = vadd.f32 %v2003_v6, %v931_v34  ;;  %v2005_v16 = vpop.f32.mrb[129].mxu0  ;;  %2267 = vmatmul.mubr.f32.gmra.mrb[234].mxu0 %v581_v19  ;;  %4293 = vmatprep.mubr.f32.mxu1 %v3980_v30  ;;  %v588_v30 = vld [vmem:[%s11909_s1 + $0xb30] sm:$0xff]  ;;  %v936_v50 = vpop.permute.xlu1 %935  ;;  %v587_v6 = vld [vmem:[%s11909_s1 + $0xb28] sm:$0xff]  ;;  %vm3070_vm0 = vcmp.gt.f32.partialorder %v10409_v18, 0.0 }
 0x219   :  { %v3696_v29 = vsel %vm3066_vm12, %v10322_v35, %v6085_v31  ;;  %2271 = vmatprep.mubr.f32.mxu0 %v585_v48 }
 0x21a   :  { %v7286_v17 = vpop.eup %7285  ;;  %v3385_v38 = vmul.f32 1.442695, %v3196_v13  ;;  %v10426_v26 = vadd.f32 %v9705_v40, %v2004_v59  ;;  %v6791_v19 = vpack.c.bf16 %v3696_v29, %v3695_v4  ;;  %v3987_v40 = vld [vmem:[%s11911_s3 + $0x700] sm:$0xff]  ;;  %v3996_v13 = vld [vmem:[%s11911_s3 + $0x748] sm:$0xff]  ;;  %v941_v29 = vpop.permute.xlu0 %940 }
 0x21b   :  { %v2008_v34 = vpop.f32.mrb[130].mxu0  ;;  %4294 = vmatmul.mubr.f32.gmra.mrb[180].mxu1 %v3979_v41  ;;  %v6086_v31 = vadd.f32 -1.0, %v7286_v17  ;;  %v591_v4 = vld [vmem:[%s11909_s1 + $0xb48] sm:$0xff] }
 0x21c   :  { %7291 = vpow2.f32 %v3385_v38  ;;  %v3197_v35 = vmin.f32 %v10426_v26, 0.0  ;;  %v2009_v62 = vadd.f32 %v2008_v34, %v936_v50  ;;  %v2010_v48 = vpop.f32.mrb[131].mxu0  ;;  %2272 = vmatmul.mubr.f32.gmra.mrb[236].mxu0 %v584_v8  ;;  %6792 = vmatpush1.bf16.msra.mxu1 %v6791_v19  ;;  %vm3071_vm1 = vcmp.gt.f32.partialorder %v10426_v26, 0.0 }
 0x21d   :  { %2276 = vmatprep.mubr.f32.mxu0 %v588_v30  ;;  %6793 = vmatprep.subr.bf16.mxu1 %v11953_v63  ;;  %v3697_v50 = vsel %vm3067_vm13, %v10344_v0, %v6086_v31  ;;  %v3766_v0 = vld [vmem:[%s11911_s3 + $0x18] sm:$0xff] }
 0x21e   :  { %v7288_v59 = vpop.eup %7287  ;;  %v3387_v16 = vmul.f32 1.442695, %v3197_v35  ;;  %v10446_v41 = vadd.f32 %v9699_v1, %v2009_v62  ;;  %4298 = vmatprep.mubr.f32.mxu1 %v3988_v33  ;;  %v3995_v1 = vld [vmem:[%s11911_s3 + $0x740] sm:$0xff] }
 0x21f   :  { %v6087_v8 = vadd.f32 -1.0, %v7288_v59  ;;  %v2013_v17 = vpop.f32.mrb[132].mxu0  ;;  %4299 = vmatmul.mubr.f32.gmra.mrb[182].mxu1 %v3987_v40  ;;  %v590_v33 = vld [vmem:[%s11909_s1 + $0xb40] sm:$0xff] }
 0x220   :  { %7293 = vpow2.f32 %v3387_v16  ;;  %v3198_v38 = vmin.f32 %v10446_v41, 0.0  ;;  %v2014_v19 = vadd.f32 %v2013_v17, %v941_v29  ;;  %v2015_v30 = vpop.f32.mrb[133].mxu0  ;;  %2277 = vmatmul.mubr.f32.gmra.mrb[238].mxu0 %v587_v6  ;;  %4303 = vmatprep.mubr.f32.mxu1 %v3996_v13  ;;  %v594_v6 = vld [vmem:[%s11909_s1 + $0xb60] sm:$0xff]  ;;  %v946_v13 = vpop.permute.xlu1 %945  ;;  %vm3072_vm2 = vcmp.gt.f32.partialorder %v10446_v41, 0.0 }
 0x221   :  { %v3698_v34 = vsel %vm3068_vm14, %v10368_v24, %v6087_v8  ;;  %2281 = vmatprep.mubr.f32.mxu0 %v591_v4  ;;  %v593_v4 = vld [vmem:[%s11909_s1 + $0xb58] sm:$0xff] }
 0x222   :  { %v7290_v35 = vpop.eup %7289  ;;  %v3389_v62 = vmul.f32 1.442695, %v3198_v38  ;;  %v10463_v48 = vadd.f32 %v9722_v54, %v2014_v19  ;;  %v6794_v40 = vpack.c.bf16 %v3698_v34, %v3697_v50  ;;  %v597_v38 = vld [vmem:[%s11909_s1 + $0xb78] sm:$0xff]  ;;  %v951_v19 = vpop.permute.xlu0 %950 }
 0x223   :  { %v2018_v59 = vpop.f32.mrb[134].mxu0  ;;  %4304 = vmatmul.mubr.f32.gmra.mrb[184].mxu1 %v3995_v1  ;;  %v6088_v54 = vadd.f32 -1.0, %v7290_v35 }
 0x224   :  { %7295 = vpow2.f32 %v3389_v62  ;;  %v3199_v24 = vmin.f32 %v10463_v48, 0.0  ;;  %v2019_v31 = vadd.f32 %v2018_v59, %v946_v13  ;;  %v2020_v16 = vpop.f32.mrb[135].mxu0  ;;  %2282 = vmatmul.mubr.f32.gmra.mrb[240].mxu0 %v590_v33  ;;  %6795 = vmatpush1.bf16.msra.mxu1 %v6794_v40  ;;  %v596_v62 = vld [vmem:[%s11909_s1 + $0xb70] sm:$0xff]  ;;  %vm3073_vm3 = vcmp.gt.f32.partialorder %v10463_v48, 0.0 }
 0x225   :  { %2286 = vmatprep.mubr.f32.mxu0 %v594_v6  ;;  %6796 = vmatprep.subr.bf16.mxu1 %v11953_v63 }
 0x226   :  { %v7292_v29 = vpop.eup %7291  ;;  %v3391_v8 = vmul.f32 1.442695, %v3199_v24  ;;  %v10477_v17 = vadd.f32 %v9718_v58, %v2019_v31  ;;  %4373 = vmatprep.mubr.f32.mxu1 %v3766_v0  ;;  %v3699_v58 = vsel %vm3069_vm15, %v10389_v9, %v6088_v54  ;;  %v600_v0 = vld [vmem:[%s11909_s1 + $0xb90] sm:$0xff]  ;;  %v956_v24 = vpop.permute.xlu1 %955 }
 0x227   :  { %v6089_v30 = vadd.f32 -1.0, %v7292_v29  ;;  %v2023_v1 = vpop.f32.mrb[136].mxu0  ;;  %v3765_v54 = vld [vmem:[%s11911_s3 + $0x10] sm:$0xff]  ;;  %v3774_v29 = vld [vmem:[%s11911_s3 + $0x58] sm:$0xff] }
 0x228   :  { %7297 = vpow2.f32 %v3391_v8  ;;  %v3200_v50 = vmin.f32 %v10477_v17, 0.0  ;;  %v2024_v34 = vadd.f32 %v2023_v1, %v951_v19  ;;  %v2025_v33 = vpop.f32.mrb[137].mxu0  ;;  %2287 = vmatmul.mubr.f32.gmra.mrb[242].mxu0 %v593_v4  ;;  %v599_v4 = vld [vmem:[%s11909_s1 + $0xb88] sm:$0xff]  ;;  %v961_v1 = vpop.permute.xlu0 %960  ;;  %vm3074_vm4 = vcmp.gt.f32.partialorder %v10477_v17, 0.0 }
 0x229   :  { %v3700_v35 = vsel %vm3070_vm0, %v10409_v18, %v6089_v30  ;;  %2291 = vmatprep.mubr.f32.mxu0 %v597_v38  ;;  %v603_v30 = vld [vmem:[%s11909_s1 + $0xba8] sm:$0xff] }
 0x22a   :  { %v7294_v40 = vpop.eup %7293  ;;  %v3393_v6 = vmul.f32 1.442695, %v3200_v50  ;;  %v10491_v13 = vadd.f32 %v9740_v3, %v2024_v34  ;;  %v6797_v59 = vpack.c.bf16 %v3700_v35, %v3699_v58 }
 0x22b   :  { %v2028_v31 = vpop.f32.mrb[138].mxu0  ;;  %v6090_v3 = vadd.f32 -1.0, %v7294_v40 }
 0x22c   :  { %7299 = vpow2.f32 %v3393_v6  ;;  %v3201_v9 = vmin.f32 %v10491_v13, 0.0  ;;  %v2029_v18 = vadd.f32 %v2028_v31, %v956_v24  ;;  %v2030_v16 = vpop.f32.mrb[139].mxu0  ;;  %2292 = vmatmul.mubr.f32.gmra.mrb[244].mxu0 %v596_v62  ;;  %6798 = vmatpush1.bf16.msra.mxu1 %v6797_v59  ;;  %v602_v6 = vld [vmem:[%s11909_s1 + $0xba0] sm:$0xff]  ;;  %vm3075_vm5 = vcmp.gt.f32.partialorder %v10491_v13, 0.0 }
 0x22d   :  { %2296 = vmatprep.mubr.f32.mxu0 %v600_v0  ;;  %6799 = vmatprep.subr.bf16.mxu1 %v11953_v63  ;;  %v3701_v62 = vsel %vm3071_vm1, %v10426_v26, %v6090_v3  ;;  %v3782_v26 = vld [vmem:[%s11911_s3 + $0x98] sm:$0xff] }
 0x22e   :  { %v7296_v8 = vpop.eup %7295  ;;  %v3395_v38 = vmul.f32 1.442695, %v3201_v9  ;;  %v10508_v19 = vadd.f32 %v9734_v46, %v2029_v18  ;;  %v3773_v46 = vld [vmem:[%s11911_s3 + $0x50] sm:$0xff]  ;;  %v606_v9 = vld [vmem:[%s11909_s1 + $0xbc0] sm:$0xff]  ;;  %v966_v18 = vpop.permute.xlu1 %965 }
 0x22f   :  { %v6091_v50 = vadd.f32 -1.0, %v7296_v8  ;;  %v2033_v34 = vpop.f32.mrb[140].mxu0  ;;  %4374 = vmatmul.mubr.f32.vlgmr.msra.gmra.mrb[126].mxu1 %v3765_v54  ;;  %v3790_v8 = vld [vmem:[%s11911_s3 + $0xd8] sm:$0xff] }
 0x230   :  { %7301 = vpow2.f32 %v3395_v38  ;;  %v3202_v33 = vmin.f32 %v10508_v19, 0.0  ;;  %v2034_v58 = vadd.f32 %v2033_v34, %v961_v1  ;;  %v2035_v35 = vpop.f32.mrb[141].mxu0  ;;  %2297 = vmatmul.mubr.f32.gmra.mrb[246].mxu0 %v599_v4  ;;  %4378 = vmatprep.mubr.f32.mxu1 %v3774_v29  ;;  %v605_v29 = vld [vmem:[%s11909_s1 + $0xbb8] sm:$0xff]  ;;  %vm3076_vm6 = vcmp.gt.f32.partialorder %v10508_v19, 0.0 }
 0x231   :  { %v3702_v40 = vsel %vm3072_vm2, %v10446_v41, %v6091_v50  ;;  %2301 = vmatprep.mubr.f32.mxu0 %v603_v30  ;;  %v971_v50 = vpop.permute.xlu0 %970 }
 0x232   :  { %v7298_v59 = vpop.eup %7297  ;;  %v3397_v0 = vmul.f32 1.442695, %v3202_v33  ;;  %v10525_v24 = vadd.f32 %v9757_v36, %v2034_v58  ;;  %v6800_v31 = vpack.c.bf16 %v3702_v40, %v3701_v62  ;;  %v3781_v36 = vld [vmem:[%s11911_s3 + $0x90] sm:$0xff] }
 0x233   :  { %v2038_v16 = vpop.f32.mrb[142].mxu0  ;;  %4379 = vmatmul.mubr.f32.gmra.mrb[128].mxu1 %v3773_v46  ;;  %v6092_v4 = vadd.f32 -1.0, %v7298_v59 }
 0x234   :  { %7303 = vpow2.f32 %v3397_v0  ;;  %v3203_v41 = vmin.f32 %v10525_v24, 0.0  ;;  %v2039_v54 = vadd.f32 %v2038_v16, %v966_v18  ;;  %v2040_v3 = vpop.f32.mrb[143].mxu0  ;;  %2302 = vmatmul.mubr.f32.gmra.mrb[248].mxu0 %v602_v6  ;;  %6801 = vmatpush1.bf16.msra.mxu1 %v6800_v31  ;;  %v3798_v6 = vld [vmem:[%s11911_s3 + $0x118] sm:$0xff]  ;;  %v976_v18 = vpop.permute.xlu1 %975  ;;  %vm3077_vm7 = vcmp.gt.f32.partialorder %v10525_v24, 0.0 }
 0x235   :  { %2306 = vmatprep.mubr.f32.mxu0 %v606_v9  ;;  %6802 = vmatprep.subr.bf16.mxu1 %v11953_v63  ;;  %v3703_v62 = vsel %vm3073_vm3, %v10463_v48, %v6092_v4 }
 0x236   :  { %v7300_v38 = vpop.eup %7299  ;;  %v3399_v30 = vmul.f32 1.442695, %v3203_v41  ;;  %v10545_v1 = vadd.f32 %v9753_v2, %v2039_v54  ;;  %4383 = vmatprep.mubr.f32.mxu1 %v3782_v26  ;;  %v3789_v2 = vld [vmem:[%s11911_s3 + $0xd0] sm:$0xff] }
 0x237   :  { %v6093_v34 = vadd.f32 -1.0, %v7300_v38  ;;  %v2043_v33 = vpop.f32.mrb[144].mxu0  ;;  %4384 = vmatmul.mubr.f32.gmra.mrb[130].mxu1 %v3781_v36 }
 0x238   :  { %7305 = vpow2.f32 %v3399_v30  ;;  %v3204_v58 = vmin.f32 %v10545_v1, 0.0  ;;  %v2044_v35 = vadd.f32 %v2043_v33, %v971_v50  ;;  %v2045_v46 = vpop.f32.mrb[145].mxu0  ;;  %2307 = vmatmul.mubr.f32.gmra.mrb[250].mxu0 %v605_v29  ;;  %4388 = vmatprep.mubr.f32.mxu1 %v3790_v8  ;;  %v981_v29 = vpop.permute.xlu0 %980  ;;  %v3805_v33 = vld [vmem:[%s11911_s3 + $0x150] sm:$0xff]  ;;  %vm3078_vm8 = vcmp.gt.f32.partialorder %v10545_v1, 0.0 }
 0x239   :  { %v3704_v40 = vsel %vm3074_vm4, %v10477_v17, %v6093_v34  ;;  %v3797_v17 = vld [vmem:[%s11911_s3 + $0x110] sm:$0xff] }
 0x23a   :  { %v7302_v59 = vpop.eup %7301  ;;  %v3401_v0 = vmul.f32 1.442695, %v3204_v58  ;;  %v10559_v31 = vadd.f32 %v9775_v27, %v2044_v35  ;;  %v6803_v9 = vpack.c.bf16 %v3704_v40, %v3703_v62  ;;  %v3806_v27 = vld [vmem:[%s11911_s3 + $0x158] sm:$0xff] }
 0x23b   :  { %v2048_v16 = vpop.f32.mrb[146].mxu0  ;;  %4389 = vmatmul.mubr.f32.gmra.mrb[132].mxu1 %v3789_v2  ;;  %v6094_v54 = vadd.f32 -1.0, %v7302_v59  ;;  %v3814_v35 = vld [vmem:[%s11911_s3 + $0x198] sm:$0xff] }
 0x23c   :  { %7307 = vpow2.f32 %v3401_v0  ;;  %v3205_v26 = vmin.f32 %v10559_v31, 0.0  ;;  %v2049_v41 = vadd.f32 %v2048_v16, %v976_v18  ;;  %v2050_v48 = vpop.f32.mrb[147].mxu0  ;;  %6804 = vmatpush1.bf16.msra.mxu1 %v6803_v9  ;;  %4393 = vmatprep.mubr.f32.mxu1 %v3798_v6  ;;  %v986_v6 = vpop.permute.xlu1 %985  ;;  %vm3079_vm9 = vcmp.gt.f32.partialorder %v10559_v31, 0.0 }
 0x23d   :  { %6805 = vmatprep.subr.bf16.mxu1 %v11953_v63  ;;  %v991_v48 = vpop.permute.xlu0 %990 }
 0x23e   :  { %v7304_v3 = vpop.eup %7303  ;;  %v3403_v36 = vmul.f32 1.442695, %v3205_v26  ;;  %v10570_v4 = vadd.f32 %v9769_v39, %v2049_v41  ;;  %v3705_v39 = vsel %vm3075_vm5, %v10491_v13, %v6094_v54 }
 0x23f   :  { %v6095_v8 = vadd.f32 -1.0, %v7304_v3  ;;  %v2053_v38 = vpop.f32.mrb[148].mxu0  ;;  %4394 = vmatmul.mubr.f32.gmra.mrb[134].mxu1 %v3797_v17 }
 0x240   :  { %7309 = vpow2.f32 %v3403_v36  ;;  %v3206_v30 = vmin.f32 %v10570_v4, 0.0  ;;  %v2054_v50 = vadd.f32 %v2053_v38, %v981_v29  ;;  %v2055_v34 = vpop.f32.mrb[149].mxu0  ;;  %4398 = vmatprep.mubr.f32.mxu1 %v3806_v27  ;;  %v3821_v29 = vld [vmem:[%s11911_s3 + $0x1d0] sm:$0xff]  ;;  %v3830_v38 = vld [vmem:[%s11911_s3 + $0x218] sm:$0xff]  ;;  %vm3080_vm10 = vcmp.gt.f32.partialorder %v10570_v4, 0.0 }
 0x241   :  { %v3706_v58 = vsel %vm3076_vm6, %v10508_v19, %v6095_v8  ;;  %v3813_v19 = vld [vmem:[%s11911_s3 + $0x190] sm:$0xff] }
 0x242   :  { %v7306_v46 = vpop.eup %7305  ;;  %v3405_v2 = vmul.f32 1.442695, %v3206_v30  ;;  %v10584_v62 = vadd.f32 %v9795_v22, %v2054_v50  ;;  %v6806_v40 = vpack.c.bf16 %v3706_v58, %v3705_v39  ;;  %v3822_v22 = vld [vmem:[%s11911_s3 + $0x1d8] sm:$0xff]  ;;  %v996_v39 = vpop.permute.xlu1 %995 }
 0x243   :  { %v2058_v59 = vpop.f32.mrb[150].mxu0  ;;  %4399 = vmatmul.mubr.f32.gmra.mrb[136].mxu1 %v3805_v33  ;;  %v6096_v18 = vadd.f32 -1.0, %v7306_v46 }
 0x244   :  { %7311 = vpow2.f32 %v3405_v2  ;;  %v3207_v0 = vmin.f32 %v10584_v62, 0.0  ;;  %v2059_v9 = vadd.f32 %v2058_v59, %v986_v6  ;;  %v2060_v13 = vpop.f32.mrb[151].mxu0  ;;  %6807 = vmatpush1.bf16.msra.mxu1 %v6806_v40  ;;  %4403 = vmatprep.mubr.f32.mxu1 %v3814_v35  ;;  %vm3081_vm11 = vcmp.gt.f32.partialorder %v10584_v62, 0.0 }
 0x245   :  { %6808 = vmatprep.subr.bf16.mxu1 %v11953_v63 }
 0x246   :  { %v7308_v16 = vpop.eup %7307  ;;  %v3407_v26 = vmul.f32 1.442695, %v3207_v0  ;;  %v10595_v41 = vadd.f32 %v9788_v25, %v2059_v9  ;;  %v3707_v25 = vsel %vm3077_vm7, %v10525_v24, %v6096_v18  ;;  %v1001_v0 = vpop.permute.xlu0 %1000 }
 0x247   :  { %v6097_v17 = vadd.f32 -1.0, %v7308_v16  ;;  %v2063_v54 = vpop.f32.mrb[152].mxu0  ;;  %4404 = vmatmul.mubr.f32.gmra.mrb[138].mxu1 %v3813_v19  ;;  %v3837_v16 = vld [vmem:[%s11911_s3 + $0x250] sm:$0xff] }
 0x248   :  { %7313 = vpow2.f32 %v3407_v26  ;;  %v3208_v27 = vmin.f32 %v10595_v41, 0.0  ;;  %v2064_v3 = vadd.f32 %v2063_v54, %v991_v48  ;;  %v2065_v36 = vpop.f32.mrb[153].mxu0  ;;  %4408 = vmatprep.mubr.f32.mxu1 %v3822_v22  ;;  %v3846_v48 = vld [vmem:[%s11911_s3 + $0x298] sm:$0xff]  ;;  %vm3082_vm12 = vcmp.gt.f32.partialorder %v10595_v41, 0.0 }
 0x249   :  { %v3708_v8 = vsel %vm3078_vm8, %v10545_v1, %v6097_v17  ;;  %v3829_v1 = vld [vmem:[%s11911_s3 + $0x210] sm:$0xff]  ;;  %v1006_v36 = vpop.permute.xlu1 %1005 }
 0x24a   :  { %v7310_v30 = vpop.eup %7309  ;;  %v3409_v50 = vmul.f32 1.442695, %v3208_v27  ;;  %v10609_v34 = vadd.f32 %v9819_v49, %v2064_v3  ;;  %v6809_v33 = vpack.c.bf16 %v3708_v8, %v3707_v25  ;;  %v3838_v49 = vld [vmem:[%s11911_s3 + $0x258] sm:$0xff] }
 0x24b   :  { %v2068_v58 = vpop.f32.mrb[154].mxu0  ;;  %4409 = vmatmul.mubr.f32.gmra.mrb[140].mxu1 %v3821_v29  ;;  %v6098_v2 = vadd.f32 -1.0, %v7310_v30 }
 0x24c   :  { %7315 = vpow2.f32 %v3409_v50  ;;  %v3209_v35 = vmin.f32 %v10609_v34, 0.0  ;;  %v2069_v46 = vadd.f32 %v2068_v58, %v996_v39  ;;  %v2070_v24 = vpop.f32.mrb[155].mxu0  ;;  %6810 = vmatpush1.bf16.msra.mxu1 %v6809_v33  ;;  %4413 = vmatprep.mubr.f32.mxu1 %v3830_v38  ;;  %v1011_v39 = vpop.permute.xlu0 %1010  ;;  %vm3083_vm13 = vcmp.gt.f32.partialorder %v10609_v34, 0.0 }
 0x24d   :  { %6811 = vmatprep.subr.bf16.mxu1 %v11953_v63 }
 0x24e   :  { %v7312_v40 = vpop.eup %7311  ;;  %v3411_v6 = vmul.f32 1.442695, %v3209_v35  ;;  %v10620_v59 = vadd.f32 %v9810_v51, %v2069_v46  ;;  %v3709_v51 = vsel %vm3079_vm9, %v10559_v31, %v6098_v2  ;;  %v3853_v2 = vld [vmem:[%s11911_s3 + $0x2d0] sm:$0xff] }
 0x24f   :  { %v6099_v9 = vadd.f32 -1.0, %v7312_v40  ;;  %v2073_v13 = vpop.f32.mrb[156].mxu0  ;;  %4414 = vmatmul.mubr.f32.gmra.mrb[142].mxu1 %v3829_v1  ;;  %v3862_v40 = vld [vmem:[%s11911_s3 + $0x318] sm:$0xff] }
 0x250   :  { %7317 = vpow2.f32 %v3411_v6  ;;  %v3210_v19 = vmin.f32 %v10620_v59, 0.0  ;;  %v2074_v18 = vadd.f32 %v2073_v13, %v1001_v0  ;;  %v2075_v22 = vpop.f32.mrb[157].mxu0  ;;  %4418 = vmatprep.mubr.f32.mxu1 %v3838_v49  ;;  %vm3084_vm14 = vcmp.gt.f32.partialorder %v10620_v59, 0.0 }
 0x251   :  { %v3710_v26 = vsel %vm3080_vm10, %v10570_v4, %v6099_v9  ;;  %v3845_v4 = vld [vmem:[%s11911_s3 + $0x290] sm:$0xff] }
 0x252   :  { %v7314_v17 = vpop.eup %7313  ;;  %v3413_v54 = vmul.f32 1.442695, %v3210_v19  ;;  %v10634_v27 = vadd.f32 %v9837_v53, %v2074_v18  ;;  %v6812_v3 = vpack.c.bf16 %v3710_v26, %v3709_v51  ;;  %v3854_v53 = vld [vmem:[%s11911_s3 + $0x2d8] sm:$0xff]  ;;  %v12016_v9 = vld [vmem:[#allocation9_spill] sm:$0xff]  ;;  %v1016_v18 = vpop.permute.xlu1 %1015 }
 0x253   :  { %v2078_v29 = vpop.f32.mrb[158].mxu0  ;;  %4419 = vmatmul.mubr.f32.gmra.mrb[144].mxu1 %v3837_v16  ;;  %v6100_v38 = vadd.f32 -1.0, %v7314_v17 }
 0x254   :  { %7319 = vpow2.f32 %v3413_v54  ;;  %v3211_v25 = vmin.f32 %v10634_v27, 0.0  ;;  %v2079_v8 = vadd.f32 %v2078_v29, %v1006_v36  ;;  %v2080_v31 = vpop.f32.mrb[159].mxu0  ;;  %6813 = vmatpush1.bf16.msra.mxu1 %v6812_v3  ;;  %4423 = vmatprep.mubr.f32.mxu1 %v3846_v48  ;;  %v3870_v48 = vld [vmem:[%s11911_s3 + $0x358] sm:$0xff]  ;;  %v1021_v29 = vpop.permute.xlu0 %1020  ;;  %vm3085_vm15 = vcmp.gt.f32.partialorder %v10634_v27, 0.0 }
 0x255   :  { %6814 = vmatprep.subr.bf16.mxu1 %v11953_v63  ;;  %v12017_v3 = vld [vmem:[#allocation34_spill] sm:$0xff] }
 0x256   :  { %v7316_v30 = vpop.eup %7315  ;;  %v3415_v50 = vmul.f32 1.442695, %v3211_v25  ;;  %v10645_v33 = vadd.f32 %v9832_v55, %v2079_v8  ;;  %v3711_v55 = vsel %vm3081_vm11, %v10584_v62, %v6100_v38 }
 0x257   :  { %v6101_v58 = vadd.f32 -1.0, %v7316_v30  ;;  %v2083_v35 = vpop.f32.mrb[160].mxu0  ;;  %4424 = vmatmul.mubr.f32.gmra.mrb[146].mxu1 %v3845_v4 }
 0x258   :  { %7321 = vpow2.f32 %v3415_v50  ;;  %v3212_v46 = vmin.f32 %v10645_v33, 0.0  ;;  %v2084_v24 = vadd.f32 %v2083_v35, %v1011_v39  ;;  %v2085_v1 = vpop.f32.mrb[161].mxu0  ;;  %4428 = vmatprep.mubr.f32.mxu1 %v3854_v53  ;;  %v3869_v53 = vld [vmem:[%s11911_s3 + $0x350] sm:$0xff]  ;;  %v3878_v39 = vld [vmem:[%s11911_s3 + $0x398] sm:$0xff]  ;;  %vm3086_vm0 = vcmp.gt.f32.partialorder %v10645_v33, 0.0 }
 0x259   :  { %v3712_v49 = vsel %vm3082_vm12, %v10595_v41, %v6101_v58  ;;  %v3861_v41 = vld [vmem:[%s11911_s3 + $0x310] sm:$0xff]  ;;  %v1026_v1 = vpop.permute.xlu1 %1025 }
 0x25a   :  { %v7318_v6 = vpop.eup %7317  ;;  %v3417_v0 = vmul.f32 1.442695, %v3212_v46  ;;  %v10659_v13 = vadd.f32 %v12016_v9, %v2084_v24  ;;  %v6815_v19 = vpack.c.bf16 %v3712_v49, %v3711_v55 }
 0x25b   :  { %v2088_v22 = vpop.f32.mrb[162].mxu0  ;;  %4429 = vmatmul.mubr.f32.gmra.mrb[148].mxu1 %v3853_v2  ;;  %v6102_v26 = vadd.f32 -1.0, %v7318_v6 }
 0x25c   :  { %7323 = vpow2.f32 %v3417_v0  ;;  %v3213_v16 = vmin.f32 %v10659_v13, 0.0  ;;  %v2089_v51 = vadd.f32 %v2088_v22, %v1016_v18  ;;  %v2090_v62 = vpop.f32.mrb[163].mxu0  ;;  %6816 = vmatpush1.bf16.msra.mxu1 %v6815_v19  ;;  %4433 = vmatprep.mubr.f32.mxu1 %v3862_v40  ;;  %v1031_v19 = vpop.permute.xlu0 %1030  ;;  %vm3087_vm1 = vcmp.gt.f32.partialorder %v10659_v13, 0.0 }
 0x25d   :  { %6817 = vmatprep.subr.bf16.mxu1 %v11953_v63  ;;  %v3713_v30 = vsel %vm3083_vm13, %v10609_v34, %v6102_v26 }
 0x25e   :  { %v7320_v17 = vpop.eup %7319  ;;  %v3419_v54 = vmul.f32 1.442695, %v3213_v16  ;;  %v10670_v36 = vadd.f32 %v12017_v3, %v2089_v51  ;;  %v12018_v3 = vld [vmem:[#allocation8_spill] sm:$0xff] }
 0x25f   :  { %v6103_v25 = vadd.f32 -1.0, %v7320_v17  ;;  %v2093_v8 = vpop.f32.mrb[164].mxu0  ;;  %4434 = vmatmul.mubr.f32.gmra.mrb[150].mxu1 %v3861_v41  ;;  %v3885_v41 = vld [vmem:[%s11911_s3 + $0x3d0] sm:$0xff] }
 0x260   :  { %7325 = vpow2.f32 %v3419_v54  ;;  %v3214_v31 = vmin.f32 %v10670_v36, 0.0  ;;  %v2094_v4 = vadd.f32 %v2093_v8, %v1021_v29  ;;  %v2095_v38 = vpop.f32.mrb[165].mxu0  ;;  %4438 = vmatprep.mubr.f32.mxu1 %v3870_v48  ;;  %v3894_v48 = vld [vmem:[%s11911_s3 + $0x418] sm:$0xff]  ;;  %v1036_v8 = vpop.permute.xlu1 %1035  ;;  %vm3088_vm2 = vcmp.gt.f32.partialorder %v10670_v36, 0.0 }
 0x261   :  { %v3714_v50 = vsel %vm3084_vm14, %v10620_v59, %v6103_v25  ;;  %v3877_v59 = vld [vmem:[%s11911_s3 + $0x390] sm:$0xff] }
 0x262   :  { %v7322_v58 = vpop.eup %7321  ;;  %v3421_v35 = vmul.f32 1.442695, %v3214_v31  ;;  %v10684_v46 = vadd.f32 %v9884_v21, %v2094_v4  ;;  %v6818_v24 = vpack.c.bf16 %v3714_v50, %v3713_v30  ;;  %v3886_v21 = vld [vmem:[%s11911_s3 + $0x3d8] sm:$0xff] }
 0x263   :  { %v2098_v2 = vpop.f32.mrb[166].mxu0  ;;  %4439 = vmatmul.mubr.f32.gmra.mrb[152].mxu1 %v3869_v53  ;;  %v6104_v40 = vadd.f32 -1.0, %v7322_v58  ;;  %v3902_v30 = vld [vmem:[%s11911_s3 + $0x458] sm:$0xff] }
 0x264   :  { %7327 = vpow2.f32 %v3421_v35  ;;  %v3215_v55 = vmin.f32 %v10684_v46, 0.0  ;;  %v2099_v49 = vadd.f32 %v2098_v2, %v1026_v1  ;;  %v2100_v34 = vpop.f32.mrb[167].mxu0  ;;  %6819 = vmatpush1.bf16.msra.mxu1 %v6818_v24  ;;  %4443 = vmatprep.mubr.f32.mxu1 %v3878_v39  ;;  %v12019_v58 = vld [vmem:[#allocation38_spill] sm:$0xff]  ;;  %v1041_v24 = vpop.permute.xlu0 %1040  ;;  %vm3089_vm3 = vcmp.gt.f32.partialorder %v10684_v46, 0.0 }
 0x265   :  { %6820 = vmatprep.subr.bf16.mxu1 %v11953_v63 }
 0x266   :  { %v7324_v6 = vpop.eup %7323  ;;  %v3423_v0 = vmul.f32 1.442695, %v3215_v55  ;;  %v10695_v9 = vadd.f32 %v9879_v37, %v2099_v49  ;;  %v3715_v37 = vsel %vm3085_vm15, %v10634_v27, %v6104_v40 }
 0x267   :  { %v6105_v18 = vadd.f32 -1.0, %v7324_v6  ;;  %v2103_v22 = vpop.f32.mrb[168].mxu0  ;;  %4444 = vmatmul.mubr.f32.gmra.mrb[154].mxu1 %v3877_v59  ;;  %v3901_v59 = vld [vmem:[%s11911_s3 + $0x450] sm:$0xff]  ;;  %v3910_v6 = vld [vmem:[%s11911_s3 + $0x498] sm:$0xff] }
 0x268   :  { %7329 = vpow2.f32 %v3423_v0  ;;  %v3216_v16 = vmin.f32 %v10695_v9, 0.0  ;;  %v2104_v51 = vadd.f32 %v2103_v22, %v1031_v19  ;;  %v2105_v62 = vpop.f32.mrb[169].mxu0  ;;  %4448 = vmatprep.mubr.f32.mxu1 %v3886_v21  ;;  %vm3090_vm4 = vcmp.gt.f32.partialorder %v10695_v9, 0.0 }
 0x269   :  { %v3716_v26 = vsel %vm3086_vm0, %v10645_v33, %v6105_v18  ;;  %v3893_v33 = vld [vmem:[%s11911_s3 + $0x410] sm:$0xff] }
 0x26a   :  { %v7326_v17 = vpop.eup %7325  ;;  %v3425_v54 = vmul.f32 1.442695, %v3216_v16  ;;  %v10709_v29 = vadd.f32 %v12018_v3, %v2104_v51  ;;  %v6821_v25 = vpack.c.bf16 %v3716_v26, %v3715_v37  ;;  %v1046_v16 = vpop.permute.xlu1 %1045 }
 0x26b   :  { %v2108_v31 = vpop.f32.mrb[170].mxu0  ;;  %4449 = vmatmul.mubr.f32.gmra.mrb[156].mxu1 %v3885_v41  ;;  %v6106_v53 = vadd.f32 -1.0, %v7326_v17 }
 0x26c   :  { %7331 = vpow2.f32 %v3425_v54  ;;  %v3217_v4 = vmin.f32 %v10709_v29, 0.0  ;;  %v2109_v38 = vadd.f32 %v2108_v31, %v1036_v8  ;;  %v2110_v27 = vpop.f32.mrb[171].mxu0  ;;  %6822 = vmatpush1.bf16.msra.mxu1 %v6821_v25  ;;  %4453 = vmatprep.mubr.f32.mxu1 %v3894_v48  ;;  %v1051_v54 = vpop.permute.xlu0 %1050  ;;  %vm3091_vm5 = vcmp.gt.f32.partialorder %v10709_v29, 0.0 }
 0x26d   :  { %6823 = vmatprep.subr.bf16.mxu1 %v11953_v63  ;;  %v3717_v40 = vsel %vm3087_vm1, %v10659_v13, %v6106_v53 }
 0x26e   :  { %v7328_v50 = vpop.eup %7327  ;;  %v3427_v39 = vmul.f32 1.442695, %v3217_v4  ;;  %v10720_v35 = vadd.f32 %v12019_v58, %v2109_v38  ;;  %v3917_v38 = vld [vmem:[%s11911_s3 + $0x4d0] sm:$0xff] }
 0x26f   :  { %v6107_v1 = vadd.f32 -1.0, %v7328_v50  ;;  %v2113_v2 = vpop.f32.mrb[172].mxu0  ;;  %4454 = vmatmul.mubr.f32.gmra.mrb[158].mxu1 %v3893_v33  ;;  %v3926_v33 = vld [vmem:[%s11911_s3 + $0x518] sm:$0xff]  ;;  %v12020_v50 = vld [vmem:[#allocation11_spill] sm:$0xff] }
 0x270   :  { %7333 = vpow2.f32 %v3427_v39  ;;  %v3218_v55 = vmin.f32 %v10720_v35, 0.0  ;;  %v2114_v49 = vadd.f32 %v2113_v2, %v1041_v24  ;;  %v2115_v34 = vpop.f32.mrb[173].mxu0  ;;  %4458 = vmatprep.mubr.f32.mxu1 %v3902_v30  ;;  %v1056_v24 = vpop.permute.xlu1 %1055  ;;  %vm3092_vm6 = vcmp.gt.f32.partialorder %v10720_v35, 0.0 }
 0x271   :  { %v3718_v21 = vsel %vm3088_vm2, %v10670_v36, %v6107_v1  ;;  %v3909_v36 = vld [vmem:[%s11911_s3 + $0x490] sm:$0xff]  ;;  %v3934_v34 = vld [vmem:[%s11911_s3 + $0x558] sm:$0xff] }
 0x272   :  { %v7330_v0 = vpop.eup %7329  ;;  %v3429_v19 = vmul.f32 1.442695, %v3218_v55  ;;  %v10734_v18 = vadd.f32 %v9931_v45, %v2114_v49  ;;  %v6824_v22 = vpack.c.bf16 %v3718_v21, %v3717_v40  ;;  %v3918_v45 = vld [vmem:[%s11911_s3 + $0x4d8] sm:$0xff]  ;;  %v12021_v21 = vld [vmem:[#allocation36_spill] sm:$0xff] }
 0x273   :  { %v2118_v51 = vpop.f32.mrb[174].mxu0  ;;  %4459 = vmatmul.mubr.f32.gmra.mrb[160].mxu1 %v3901_v59  ;;  %v6108_v37 = vadd.f32 -1.0, %v7330_v0  ;;  %v1061_v0 = vpop.permute.xlu0 %1060 }
 0x274   :  { %7335 = vpow2.f32 %v3429_v19  ;;  %v3219_v62 = vmin.f32 %v10734_v18, 0.0  ;;  %v2119_v41 = vadd.f32 %v2118_v51, %v1046_v16  ;;  %v2120_v13 = vpop.f32.mrb[175].mxu0  ;;  %6825 = vmatpush1.bf16.msra.mxu1 %v6824_v22  ;;  %4463 = vmatprep.mubr.f32.mxu1 %v3910_v6  ;;  %vm3093_vm7 = vcmp.gt.f32.partialorder %v10734_v18, 0.0 }
 0x275   :  { %6826 = vmatprep.subr.bf16.mxu1 %v11953_v63 }
 0x276   :  { %v7332_v26 = vpop.eup %7331  ;;  %v3431_v48 = vmul.f32 1.442695, %v3219_v62  ;;  %v10745_v17 = vadd.f32 %v9926_v44, %v2119_v41  ;;  %v3719_v44 = vsel %vm3089_vm3, %v10684_v46, %v6108_v37  ;;  %v3933_v41 = vld [vmem:[%s11911_s3 + $0x550] sm:$0xff]  ;;  %v3942_v37 = vld [vmem:[%s11911_s3 + $0x598] sm:$0xff] }
 0x277   :  { %v6109_v3 = vadd.f32 -1.0, %v7332_v26  ;;  %v2123_v25 = vpop.f32.mrb[176].mxu0  ;;  %4464 = vmatmul.mubr.f32.gmra.mrb[162].mxu1 %v3909_v36 }
 0x278   :  { %7337 = vpow2.f32 %v3431_v48  ;;  %v3220_v8 = vmin.f32 %v10745_v17, 0.0  ;;  %v2124_v31 = vadd.f32 %v2123_v25, %v1051_v54  ;;  %v2125_v4 = vpop.f32.mrb[177].mxu0  ;;  %4468 = vmatprep.mubr.f32.mxu1 %v3918_v45  ;;  %vm3094_vm8 = vcmp.gt.f32.partialorder %v10745_v17, 0.0 }
 0x279   :  { %v3720_v27 = vsel %vm3090_vm4, %v10695_v9, %v6109_v3  ;;  %v3925_v9 = vld [vmem:[%s11911_s3 + $0x510] sm:$0xff]  ;;  %v1066_v3 = vpop.permute.xlu1 %1065 }
 0x27a   :  { %v7334_v53 = vpop.eup %7333  ;;  %v3433_v30 = vmul.f32 1.442695, %v3220_v8  ;;  %v10759_v39 = vadd.f32 %v12020_v50, %v2124_v31  ;;  %v6827_v58 = vpack.c.bf16 %v3720_v27, %v3719_v44 }
 0x27b   :  { %v2128_v1 = vpop.f32.mrb[178].mxu0  ;;  %4469 = vmatmul.mubr.f32.gmra.mrb[164].mxu1 %v3917_v38  ;;  %v6110_v49 = vadd.f32 -1.0, %v7334_v53 }
 0x27c   :  { %7339 = vpow2.f32 %v3433_v30  ;;  %v3221_v2 = vmin.f32 %v10759_v39, 0.0  ;;  %v2129_v55 = vadd.f32 %v2128_v1, %v1056_v24  ;;  %v2130_v46 = vpop.f32.mrb[179].mxu0  ;;  %6828 = vmatpush1.bf16.msra.mxu1 %v6827_v58  ;;  %4473 = vmatprep.mubr.f32.mxu1 %v3926_v33  ;;  %v1071_v33 = vpop.permute.xlu0 %1070  ;;  %v3949_v1 = vld [vmem:[%s11911_s3 + $0x5d0] sm:$0xff]  ;;  %vm3095_vm9 = vcmp.gt.f32.partialorder %v10759_v39, 0.0 }
 0x27d   :  { %6829 = vmatprep.subr.bf16.mxu1 %v11953_v63  ;;  %v3721_v13 = vsel %vm3091_vm5, %v10709_v29, %v6110_v49  ;;  %v12022_v49 = vld [vmem:[#allocation13_spill] sm:$0xff] }
 0x27e   :  { %v7336_v59 = vpop.eup %7335  ;;  %v3435_v40 = vmul.f32 1.442695, %v3221_v2  ;;  %v10770_v6 = vadd.f32 %v12021_v21, %v2129_v55  ;;  %v3958_v55 = vld [vmem:[%s11911_s3 + $0x618] sm:$0xff] }
 0x27f   :  { %v6111_v19 = vadd.f32 -1.0, %v7336_v59  ;;  %v2133_v22 = vpop.f32.mrb[180].mxu0  ;;  %4474 = vmatmul.mubr.f32.gmra.mrb[166].mxu1 %v3925_v9 }
 0x280   :  { %7341 = vpow2.f32 %v3435_v40  ;;  %v3222_v16 = vmin.f32 %v10770_v6, 0.0  ;;  %v2134_v51 = vadd.f32 %v2133_v22, %v1061_v0  ;;  %v2135_v62 = vpop.f32.mrb[181].mxu0  ;;  %4478 = vmatprep.mubr.f32.mxu1 %v3934_v34  ;;  %v1076_v40 = vpop.permute.xlu1 %1075  ;;  %vm3096_vm10 = vcmp.gt.f32.partialorder %v10770_v6, 0.0 }
 0x281   :  { %v3722_v36 = vsel %vm3092_vm6, %v10720_v35, %v6111_v19  ;;  %v3941_v35 = vld [vmem:[%s11911_s3 + $0x590] sm:$0xff] }
 0x282   :  { %v7338_v45 = vpop.eup %7337  ;;  %v3437_v26 = vmul.f32 1.442695, %v3222_v16  ;;  %v10784_v48 = vadd.f32 %v9978_v42, %v2134_v51  ;;  %v6830_v54 = vpack.c.bf16 %v3722_v36, %v3721_v13  ;;  %v3950_v42 = vld [vmem:[%s11911_s3 + $0x5d8] sm:$0xff]  ;;  %v1081_v36 = vpop.permute.xlu0 %1080 }
 0x283   :  { %v2138_v25 = vpop.f32.mrb[182].mxu0  ;;  %4479 = vmatmul.mubr.f32.gmra.mrb[168].mxu1 %v3933_v41  ;;  %v6112_v4 = vadd.f32 -1.0, %v7338_v45  ;;  %v3966_v16 = vld [vmem:[%s11911_s3 + $0x658] sm:$0xff] }
 0x284   :  { %7343 = vpow2.f32 %v3437_v26  ;;  %v3223_v8 = vmin.f32 %v10784_v48, 0.0  ;;  %v2139_v31 = vadd.f32 %v2138_v25, %v1066_v3  ;;  %v2140_v29 = vpop.f32.mrb[183].mxu0  ;;  %6831 = vmatpush1.bf16.msra.mxu1 %v6830_v54  ;;  %4483 = vmatprep.mubr.f32.mxu1 %v3942_v37  ;;  %v12023_v41 = vld [vmem:[#allocation10_spill] sm:$0xff]  ;;  %v3965_v25 = vld [vmem:[%s11911_s3 + $0x650] sm:$0xff]  ;;  %vm3097_vm11 = vcmp.gt.f32.partialorder %v10784_v48, 0.0 }
 0x285   :  { %6832 = vmatprep.subr.bf16.mxu1 %v11953_v63  ;;  %v3974_v29 = vld [vmem:[%s11911_s3 + $0x698] sm:$0xff] }
 0x286   :  { %v7340_v38 = vpop.eup %7339  ;;  %v3439_v44 = vmul.f32 1.442695, %v3223_v8  ;;  %v10795_v27 = vadd.f32 %v9973_v32, %v2139_v31  ;;  %v3723_v32 = vsel %vm3093_vm7, %v10734_v18, %v6112_v4 }
 0x287   :  { %v6113_v53 = vadd.f32 -1.0, %v7340_v38  ;;  %v2143_v30 = vpop.f32.mrb[184].mxu0  ;;  %4484 = vmatmul.mubr.f32.gmra.mrb[170].mxu1 %v3941_v35 }
 0x288   :  { %7345 = vpow2.f32 %v3439_v44  ;;  %v3224_v50 = vmin.f32 %v10795_v27, 0.0  ;;  %v2144_v58 = vadd.f32 %v2143_v30, %v1071_v33  ;;  %v2145_v24 = vpop.f32.mrb[185].mxu0  ;;  %4488 = vmatprep.mubr.f32.mxu1 %v3950_v42  ;;  %v1086_v44 = vpop.permute.xlu1 %1085  ;;  %vm3098_vm12 = vcmp.gt.f32.partialorder %v10795_v27, 0.0 }
 0x289   :  { %v3724_v2 = vsel %vm3094_vm8, %v10745_v17, %v6113_v53  ;;  %v3957_v17 = vld [vmem:[%s11911_s3 + $0x610] sm:$0xff] }
 0x28a   :  { %v7342_v46 = vpop.eup %7341  ;;  %v3441_v9 = vmul.f32 1.442695, %v3224_v50  ;;  %v10809_v34 = vadd.f32 %v12022_v49, %v2144_v58  ;;  %v6833_v59 = vpack.c.bf16 %v3724_v2, %v3723_v32  ;;  %v1091_v32 = vpop.permute.xlu0 %1090 }
 0x28b   :  { %v2148_v21 = vpop.f32.mrb[186].mxu0  ;;  %4489 = vmatmul.mubr.f32.gmra.mrb[172].mxu1 %v3949_v1  ;;  %v6114_v22 = vadd.f32 -1.0, %v7342_v46 }
 0x28c   :  { %7347 = vpow2.f32 %v3441_v9  ;;  %v3225_v0 = vmin.f32 %v10809_v34, 0.0  ;;  %v2149_v19 = vadd.f32 %v2148_v21, %v1076_v40  ;;  %v2150_v18 = vpop.f32.mrb[187].mxu0  ;;  %6834 = vmatpush1.bf16.msra.mxu1 %v6833_v59  ;;  %4493 = vmatprep.mubr.f32.mxu1 %v3958_v55  ;;  %v3981_v59 = vld [vmem:[%s11911_s3 + $0x6d0] sm:$0xff]  ;;  %v3990_v21 = vld [vmem:[%s11911_s3 + $0x718] sm:$0xff]  ;;  %vm3099_vm13 = vcmp.gt.f32.partialorder %v10809_v34, 0.0 }
 0x28d   :  { %6835 = vmatprep.subr.bf16.mxu1 %v11953_v63  ;;  %v3725_v8 = vsel %vm3095_vm9, %v10759_v39, %v6114_v22  ;;  %v12024_v18 = vld [vmem:[#allocation15_spill] sm:$0xff] }
 0x28e   :  { %v7344_v51 = vpop.eup %7343  ;;  %v3443_v62 = vmul.f32 1.442695, %v3225_v0  ;;  %v10820_v13 = vadd.f32 %v12023_v41, %v2149_v19 }
 0x28f   :  { %v6115_v37 = vadd.f32 -1.0, %v7344_v51  ;;  %v2153_v45 = vpop.f32.mrb[188].mxu0  ;;  %4494 = vmatmul.mubr.f32.gmra.mrb[174].mxu1 %v3957_v17 }
 0x290   :  { %7349 = vpow2.f32 %v3443_v62  ;;  %v3226_v26 = vmin.f32 %v10820_v13, 0.0  ;;  %v2154_v54 = vadd.f32 %v2153_v45, %v1081_v36  ;;  %v2155_v3 = vpop.f32.mrb[189].mxu0  ;;  %4498 = vmatprep.mubr.f32.mxu1 %v3966_v16  ;;  %v1096_v16 = vpop.permute.xlu1 %1095  ;;  %vm3100_vm14 = vcmp.gt.f32.partialorder %v10820_v13, 0.0 }
 0x291   :  { %v3726_v31 = vsel %vm3096_vm10, %v10770_v6, %v6115_v37  ;;  %v3973_v6 = vld [vmem:[%s11911_s3 + $0x690] sm:$0xff]  ;;  %v3998_v37 = vld [vmem:[%s11911_s3 + $0x758] sm:$0xff] }
 0x292   :  { %v7346_v35 = vpop.eup %7345  ;;  %v3445_v4 = vmul.f32 1.442695, %v3226_v26  ;;  %v10834_v42 = vadd.f32 %v10025_v28, %v2154_v54  ;;  %v6836_v38 = vpack.c.bf16 %v3726_v31, %v3725_v8  ;;  %v3982_v28 = vld [vmem:[%s11911_s3 + $0x6d8] sm:$0xff]  ;;  %v12025_v54 = vld [vmem:[#allocation12_spill] sm:$0xff] }
 0x293   :  { %v2158_v33 = vpop.f32.mrb[190].mxu0  ;;  %4499 = vmatmul.mubr.f32.gmra.mrb[176].mxu1 %v3965_v25  ;;  %v6116_v50 = vadd.f32 -1.0, %v7346_v35  ;;  %v1101_v25 = vpop.permute.xlu0 %1100 }
 0x294   :  { %7351 = vpow2.f32 %v3445_v4  ;;  %v3227_v53 = vmin.f32 %v10834_v42, 0.0  ;;  %v2159_v30 = vadd.f32 %v2158_v33, %v1086_v44  ;;  %v2160_v39 = vpop.f32.mrb[191].mxu0  ;;  %6837 = vmatpush1.bf16.msra.mxu1 %v6836_v38  ;;  %4503 = vmatprep.mubr.f32.mxu1 %v3974_v29  ;;  %v3997_v38 = vld [vmem:[%s11911_s3 + $0x750] sm:$0xff]  ;;  %vm3101_vm15 = vcmp.gt.f32.partialorder %v10834_v42, 0.0 }
 0x295   :  { %6838 = vmatprep.subr.bf16.mxu1 %v11953_v63 }
 0x296   :  { %v7348_v58 = vpop.eup %7347  ;;  %v3447_v24 = vmul.f32 1.442695, %v3227_v53  ;;  %v10845_v1 = vadd.f32 %v10020_v14, %v2159_v30  ;;  %v3727_v14 = vsel %vm3097_vm11, %v10784_v48, %v6116_v50  ;;  %v3768_v53 = vld [vmem:[%s11911_s3 + $0x28] sm:$0xff] }
 0x297   :  { %v6117_v2 = vadd.f32 -1.0, %v7348_v58  ;;  %v2163_v55 = vpop.f32.mrb[192].mxu0  ;;  %4504 = vmatmul.mubr.f32.gmra.mrb[178].mxu1 %v3973_v6 }
 0x298   :  { %7353 = vpow2.f32 %v3447_v24  ;;  %v3228_v46 = vmin.f32 %v10845_v1, 0.0  ;;  %v2164_v9 = vadd.f32 %v2163_v55, %v1091_v32  ;;  %v2165_v49 = vpop.f32.mrb[193].mxu0  ;;  %4508 = vmatprep.mubr.f32.mxu1 %v3982_v28  ;;  %v1106_v28 = vpop.permute.xlu1 %1105  ;;  %vm3102_vm0 = vcmp.gt.f32.partialorder %v10845_v1, 0.0 }
 0x299   :  { %v3728_v40 = vsel %vm3098_vm12, %v10795_v27, %v6117_v2  ;;  %v3989_v27 = vld [vmem:[%s11911_s3 + $0x710] sm:$0xff] }
 0x29a   :  { %v7350_v0 = vpop.eup %7349  ;;  %v3449_v19 = vmul.f32 1.442695, %v3228_v46  ;;  %v10859_v17 = vadd.f32 %v12024_v18, %v2164_v9  ;;  %v6839_v22 = vpack.c.bf16 %v3728_v40, %v3727_v14 }
 0x29b   :  { %v2168_v51 = vpop.f32.mrb[194].mxu0  ;;  %4509 = vmatmul.mubr.f32.gmra.mrb[180].mxu1 %v3981_v59  ;;  %v6118_v36 = vadd.f32 -1.0, %v7350_v0 }
 0x29c   :  { %7355 = vpow2.f32 %v3449_v19  ;;  %v3229_v62 = vmin.f32 %v10859_v17, 0.0  ;;  %v2169_v41 = vadd.f32 %v2168_v51, %v1096_v16  ;;  %v2170_v48 = vpop.f32.mrb[195].mxu0  ;;  %6840 = vmatpush1.bf16.msra.mxu1 %v6839_v22  ;;  %4513 = vmatprep.mubr.f32.mxu1 %v3990_v21  ;;  %v1116_v51 = vpop.permute.xlu1 %1115  ;;  %vm3103_vm1 = vcmp.gt.f32.partialorder %v10859_v17, 0.0 }
 0x29d   :  { %6841 = vmatprep.subr.bf16.mxu1 %v11953_v63  ;;  %v3729_v44 = vsel %vm3099_vm13, %v10809_v34, %v6118_v36 }
 0x29e   :  { %v7352_v45 = vpop.eup %7351  ;;  %v3451_v26 = vmul.f32 1.442695, %v3229_v62  ;;  %v10870_v3 = vadd.f32 %v12025_v54, %v2169_v41 }
 0x29f   :  { %v6119_v8 = vadd.f32 -1.0, %v7352_v45  ;;  %v2173_v31 = vpop.f32.mrb[196].mxu0  ;;  %4514 = vmatmul.mubr.f32.gmra.mrb[182].mxu1 %v3989_v27 }
 0x2a0   :  { %7357 = vpow2.f32 %v3451_v26  ;;  %v3230_v29 = vmin.f32 %v10870_v3, 0.0  ;;  %v2174_v35 = vadd.f32 %v2173_v31, %v1101_v25  ;;  %v2175_v4 = vpop.f32.mrb[197].mxu0  ;;  %4518 = vmatprep.mubr.f32.mxu1 %v3998_v37  ;;  %v12027_v26 = vld [vmem:[#allocation14_spill] sm:$0xff]  ;;  %vm3104_vm2 = vcmp.gt.f32.partialorder %v10870_v3, 0.0 }
 0x2a1   :  { %v3730_v33 = vsel %vm3100_vm14, %v10820_v13, %v6119_v8 }
 0x2a2   :  { %v7354_v30 = vpop.eup %7353  ;;  %v3453_v39 = vmul.f32 1.442695, %v3230_v29  ;;  %v10884_v6 = vadd.f32 %v10072_v20, %v2174_v35  ;;  %v6842_v50 = vpack.c.bf16 %v3730_v33, %v3729_v44  ;;  %v1111_v20 = vpop.permute.xlu0 %1110 }
 0x2a3   :  { %v2178_v58 = vpop.f32.mrb[198].mxu0  ;;  %4519 = vmatmul.mubr.f32.gmra.mrb[184].mxu1 %v3997_v38  ;;  %v6120_v13 = vadd.f32 -1.0, %v7354_v30  ;;  %v3775_v38 = vld [vmem:[%s11911_s3 + $0x60] sm:$0xff] }
 0x2a4   :  { %7359 = vpow2.f32 %v3453_v39  ;;  %v3231_v24 = vmin.f32 %v10884_v6, 0.0  ;;  %v2179_v32 = vadd.f32 %v2178_v58, %v1106_v28  ;;  %v2180_v34 = vpop.f32.mrb[199].mxu0  ;;  %6843 = vmatpush1.bf16.msra.mxu1 %v6842_v50  ;;  %4588 = vmatprep.mubr.f32.mxu1 %v3768_v53  ;;  %v3784_v53 = vld [vmem:[%s11911_s3 + $0xa8] sm:$0xff]  ;;  %v1126_v58 = vpop.permute.xlu1 %1125  ;;  %vm3105_vm3 = vcmp.gt.f32.partialorder %v10884_v6, 0.0 }
 0x2a5   :  { %6844 = vmatprep.subr.bf16.mxu1 %v11953_v63  ;;  %v3731_v21 = vsel %vm3101_vm15, %v10834_v42, %v6120_v13  ;;  %v3767_v42 = vld [vmem:[%s11911_s3 + $0x20] sm:$0xff] }
 0x2a6   :  { %v7356_v2 = vpop.eup %7355  ;;  %v3455_v55 = vmul.f32 1.442695, %v3231_v24  ;;  %v10889_v46 = vadd.f32 %v10067_v7, %v2179_v32  ;;  %v12026_v7 = vld [vmem:[#allocation17_spill] sm:$0xff]  ;;  %v1121_v25 = vpop.permute.xlu0 %1120 }
 0x2a7   :  { %v6121_v9 = vadd.f32 -1.0, %v7356_v2  ;;  %v2183_v49 = vpop.f32.mrb[200].mxu0 }
 0x2a8   :  { %7361 = vpow2.f32 %v3455_v55  ;;  %v3232_v59 = vmin.f32 %v10889_v46, 0.0  ;;  %v2184_v14 = vadd.f32 %v2183_v49, %v1111_v20  ;;  %v2185_v40 = vpop.f32.mrb[201].mxu0  ;;  %vm3106_vm4 = vcmp.gt.f32.partialorder %v10889_v46, 0.0 }
 0x2a9   :  { %v3732_v0 = vsel %vm3102_vm0, %v10845_v1, %v6121_v9  ;;  %v3776_v1 = vld [vmem:[%s11911_s3 + $0x68] sm:$0xff] }
 0x2aa   :  { %v7358_v19 = vpop.eup %7357  ;;  %v3457_v18 = vmul.f32 1.442695, %v3232_v59  ;;  %v10897_v22 = vadd.f32 %v12026_v7, %v2184_v14  ;;  %v6845_v16 = vpack.c.bf16 %v3732_v0, %v3731_v21  ;;  %v1131_v9 = vpop.permute.xlu0 %1130  ;;  %v3791_v0 = vld [vmem:[%s11911_s3 + $0xe0] sm:$0xff] }
 0x2ab   :  { %v2188_v62 = vpop.f32.mrb[202].mxu0  ;;  %v6122_v36 = vadd.f32 -1.0, %v7358_v19 }
 0x2ac   :  { %7363 = vpow2.f32 %v3457_v18  ;;  %v3233_v41 = vmin.f32 %v10897_v22, 0.0  ;;  %v2189_v48 = vadd.f32 %v2188_v62, %v1116_v51  ;;  %v2190_v27 = vpop.f32.mrb[203].mxu0  ;;  %6846 = vmatpush1.bf16.msra.mxu1 %v6845_v16  ;;  %v3800_v18 = vld [vmem:[%s11911_s3 + $0x128] sm:$0xff]  ;;  %v12028_v51 = vld [vmem:[#allocation43_spill] sm:$0xff]  ;;  %vm3107_vm5 = vcmp.gt.f32.partialorder %v10897_v22, 0.0 }
 0x2ad   :  { %6847 = vmatprep.subr.bf16.mxu1 %v11953_v63  ;;  %v3733_v44 = vsel %vm3103_vm1, %v10859_v17, %v6122_v36 }
 0x2ae   :  { %v7360_v37 = vpop.eup %7359  ;;  %v3459_v45 = vmul.f32 1.442695, %v3233_v41  ;;  %v10908_v54 = vadd.f32 %v12027_v26, %v2189_v48  ;;  %v1136_v48 = vpop.permute.xlu1 %1135 }
 0x2af   :  { %v6123_v8 = vadd.f32 -1.0, %v7360_v37  ;;  %v2193_v31 = vpop.f32.mrb[204].mxu0  ;;  %4589 = vmatmul.mubr.f32.vlgmr.msra.gmra.mrb[126].mxu1 %v3767_v42  ;;  %v3808_v37 = vld [vmem:[%s11911_s3 + $0x168] sm:$0xff] }
 0x2b0   :  { %7365 = vpow2.f32 %v3459_v45  ;;  %v3234_v29 = vmin.f32 %v10908_v54, 0.0  ;;  %v2194_v35 = vadd.f32 %v2193_v31, %v1121_v25  ;;  %v2195_v4 = vpop.f32.mrb[205].mxu0  ;;  %4593 = vmatprep.mubr.f32.mxu1 %v3776_v1  ;;  %v12029_v25 = vld [vmem:[#allocation16_spill] sm:$0xff]  ;;  %v1141_v31 = vpop.permute.xlu0 %1140  ;;  %vm3108_vm6 = vcmp.gt.f32.partialorder %v10908_v54, 0.0 }
 0x2b1   :  { %v3734_v33 = vsel %vm3104_vm2, %v10870_v3, %v6123_v8  ;;  %v3783_v3 = vld [vmem:[%s11911_s3 + $0xa0] sm:$0xff] }
 0x2b2   :  { %v7362_v30 = vpop.eup %7361  ;;  %v3461_v39 = vmul.f32 1.442695, %v3234_v29  ;;  %v10922_v50 = vadd.f32 %v10119_v56, %v2194_v35  ;;  %v6848_v28 = vpack.c.bf16 %v3734_v33, %v3733_v44  ;;  %v3792_v56 = vld [vmem:[%s11911_s3 + $0xe8] sm:$0xff]  ;;  %v3807_v33 = vld [vmem:[%s11911_s3 + $0x160] sm:$0xff] }
 0x2b3   :  { %v2198_v24 = vpop.f32.mrb[206].mxu0  ;;  %4594 = vmatmul.mubr.f32.gmra.mrb[128].mxu1 %v3775_v38  ;;  %v6124_v13 = vadd.f32 -1.0, %v7362_v30 }
 0x2b4   :  { %7367 = vpow2.f32 %v3461_v39  ;;  %v3235_v32 = vmin.f32 %v10922_v50, 0.0  ;;  %v2199_v34 = vadd.f32 %v2198_v24, %v1126_v58  ;;  %v2200_v17 = vpop.f32.mrb[207].mxu0  ;;  %6849 = vmatpush1.bf16.msra.mxu1 %v6848_v28  ;;  %4598 = vmatprep.mubr.f32.mxu1 %v3784_v53  ;;  %v3816_v39 = vld [vmem:[%s11911_s3 + $0x1a8] sm:$0xff]  ;;  %vm3109_vm7 = vcmp.gt.f32.partialorder %v10922_v50, 0.0 }
 0x2b5   :  { %6850 = vmatprep.subr.bf16.mxu1 %v11953_v63 }
 0x2b6   :  { %v7364_v2 = vpop.eup %7363  ;;  %v3463_v55 = vmul.f32 1.442695, %v3235_v32  ;;  %v10933_v20 = vadd.f32 %v10114_v52, %v2199_v34  ;;  %v3735_v52 = vsel %vm3105_vm3, %v10884_v6, %v6124_v13  ;;  %v1146_v34 = vpop.permute.xlu1 %1145 }
 0x2b7   :  { %v6125_v49 = vadd.f32 -1.0, %v7364_v2  ;;  %v2203_v59 = vpop.f32.mrb[208].mxu0  ;;  %4599 = vmatmul.mubr.f32.gmra.mrb[130].mxu1 %v3783_v3 }
 0x2b8   :  { %7369 = vpow2.f32 %v3463_v55  ;;  %v3236_v14 = vmin.f32 %v10933_v20, 0.0  ;;  %v2204_v40 = vadd.f32 %v2203_v59, %v1131_v9  ;;  %v2205_v21 = vpop.f32.mrb[209].mxu0  ;;  %4603 = vmatprep.mubr.f32.mxu1 %v3792_v56  ;;  %vm3110_vm8 = vcmp.gt.f32.partialorder %v10933_v20, 0.0 }
 0x2b9   :  { %v3736_v19 = vsel %vm3106_vm4, %v10889_v46, %v6125_v49  ;;  %v3799_v46 = vld [vmem:[%s11911_s3 + $0x120] sm:$0xff]  ;;  %v1151_v49 = vpop.permute.xlu0 %1150 }
 0x2ba   :  { %v7366_v7 = vpop.eup %7365  ;;  %v3465_v16 = vmul.f32 1.442695, %v3236_v14  ;;  %v10947_v62 = vadd.f32 %v12028_v51, %v2204_v40  ;;  %v6851_v41 = vpack.c.bf16 %v3736_v19, %v3735_v52  ;;  %v3823_v52 = vld [vmem:[%s11911_s3 + $0x1e0] sm:$0xff]  ;;  %v12030_v51 = vld [vmem:[#allocation18_spill] sm:$0xff] }
 0x2bb   :  { %v2208_v27 = vpop.f32.mrb[210].mxu0  ;;  %4604 = vmatmul.mubr.f32.gmra.mrb[132].mxu1 %v3791_v0  ;;  %v6126_v1 = vadd.f32 -1.0, %v7366_v7 }
 0x2bc   :  { %7371 = vpow2.f32 %v3465_v16  ;;  %v3237_v42 = vmin.f32 %v10947_v62, 0.0  ;;  %v2209_v36 = vadd.f32 %v2208_v27, %v1136_v48  ;;  %v2210_v6 = vpop.f32.mrb[211].mxu0  ;;  %6852 = vmatpush1.bf16.msra.mxu1 %v6851_v41  ;;  %4608 = vmatprep.mubr.f32.mxu1 %v3800_v18  ;;  %v3832_v18 = vld [vmem:[%s11911_s3 + $0x228] sm:$0xff]  ;;  %v1156_v27 = vpop.permute.xlu1 %1155  ;;  %vm3111_vm9 = vcmp.gt.f32.partialorder %v10947_v62, 0.0 }
 0x2bd   :  { %6853 = vmatprep.subr.bf16.mxu1 %v11953_v63  ;;  %v3737_v53 = vsel %vm3107_vm5, %v10897_v22, %v6126_v1  ;;  %v3840_v1 = vld [vmem:[%s11911_s3 + $0x268] sm:$0xff] }
 0x2be   :  { %v7368_v45 = vpop.eup %7367  ;;  %v3467_v26 = vmul.f32 1.442695, %v3237_v42  ;;  %v10958_v8 = vadd.f32 %v12029_v25, %v2209_v36 }
 0x2bf   :  { %v6127_v29 = vadd.f32 -1.0, %v7368_v45  ;;  %v2213_v35 = vpop.f32.mrb[212].mxu0  ;;  %4609 = vmatmul.mubr.f32.gmra.mrb[134].mxu1 %v3799_v46 }
 0x2c0   :  { %7373 = vpow2.f32 %v3467_v26  ;;  %v3238_v4 = vmin.f32 %v10958_v8, 0.0  ;;  %v2214_v38 = vadd.f32 %v2213_v35, %v1141_v31  ;;  %v2215_v44 = vpop.f32.mrb[213].mxu0  ;;  %4613 = vmatprep.mubr.f32.mxu1 %v3808_v37  ;;  %v12031_v26 = vld [vmem:[#allocation19_spill] sm:$0xff]  ;;  %v1161_v31 = vpop.permute.xlu0 %1160  ;;  %vm3112_vm10 = vcmp.gt.f32.partialorder %v10958_v8, 0.0 }
 0x2c1   :  { %v3738_v30 = vsel %vm3108_vm6, %v10908_v54, %v6127_v29  ;;  %v3815_v54 = vld [vmem:[%s11911_s3 + $0x1a0] sm:$0xff] }
 0x2c2   :  { %v7370_v28 = vpop.eup %7369  ;;  %v3469_v58 = vmul.f32 1.442695, %v3238_v4  ;;  %v10972_v24 = vadd.f32 %v10166_v5, %v2214_v38  ;;  %v6854_v32 = vpack.c.bf16 %v3738_v30, %v3737_v53  ;;  %v3824_v5 = vld [vmem:[%s11911_s3 + $0x1e8] sm:$0xff] }
 0x2c3   :  { %v2218_v17 = vpop.f32.mrb[214].mxu0  ;;  %4614 = vmatmul.mubr.f32.gmra.mrb[136].mxu1 %v3807_v33  ;;  %v6128_v56 = vadd.f32 -1.0, %v7370_v28  ;;  %v3839_v33 = vld [vmem:[%s11911_s3 + $0x260] sm:$0xff] }
 0x2c4   :  { %7375 = vpow2.f32 %v3469_v58  ;;  %v3239_v3 = vmin.f32 %v10972_v24, 0.0  ;;  %v2219_v13 = vadd.f32 %v2218_v17, %v1146_v34  ;;  %v2220_v22 = vpop.f32.mrb[215].mxu0  ;;  %6855 = vmatpush1.bf16.msra.mxu1 %v6854_v32  ;;  %4618 = vmatprep.mubr.f32.mxu1 %v3816_v39  ;;  %v3848_v39 = vld [vmem:[%s11911_s3 + $0x2a8] sm:$0xff]  ;;  %v1166_v17 = vpop.permute.xlu1 %1165  ;;  %vm3113_vm11 = vcmp.gt.f32.partialorder %v10972_v24, 0.0 }
 0x2c5   :  { %6856 = vmatprep.subr.bf16.mxu1 %v11953_v63 }
 0x2c6   :  { %v7372_v2 = vpop.eup %7371  ;;  %v3471_v55 = vmul.f32 1.442695, %v3239_v3  ;;  %v10983_v9 = vadd.f32 %v10161_v15, %v2219_v13  ;;  %v3739_v15 = vsel %vm3109_vm7, %v10922_v50, %v6128_v56 }
 0x2c7   :  { %v6129_v59 = vadd.f32 -1.0, %v7372_v2  ;;  %v2223_v14 = vpop.f32.mrb[216].mxu0  ;;  %4619 = vmatmul.mubr.f32.gmra.mrb[138].mxu1 %v3815_v54 }
 0x2c8   :  { %7377 = vpow2.f32 %v3471_v55  ;;  %v3240_v40 = vmin.f32 %v10983_v9, 0.0  ;;  %v2224_v21 = vadd.f32 %v2223_v14, %v1151_v49  ;;  %v2225_v0 = vpop.f32.mrb[217].mxu0  ;;  %4623 = vmatprep.mubr.f32.mxu1 %v3824_v5  ;;  %v1171_v55 = vpop.permute.xlu0 %1170  ;;  %vm3114_vm12 = vcmp.gt.f32.partialorder %v10983_v9, 0.0 }
 0x2c9   :  { %v3740_v19 = vsel %vm3110_vm8, %v10933_v20, %v6129_v59  ;;  %v3831_v20 = vld [vmem:[%s11911_s3 + $0x220] sm:$0xff] }
 0x2ca   :  { %v7374_v7 = vpop.eup %7373  ;;  %v3473_v16 = vmul.f32 1.442695, %v3240_v40  ;;  %v10997_v41 = vadd.f32 %v12030_v51, %v2224_v21  ;;  %v6857_v48 = vpack.c.bf16 %v3740_v19, %v3739_v15  ;;  %v3855_v0 = vld [vmem:[%s11911_s3 + $0x2e0] sm:$0xff]  ;;  %v3864_v15 = vld [vmem:[%s11911_s3 + $0x328] sm:$0xff] }
 0x2cb   :  { %v2228_v42 = vpop.f32.mrb[218].mxu0  ;;  %4624 = vmatmul.mubr.f32.gmra.mrb[140].mxu1 %v3823_v52  ;;  %v6130_v46 = vadd.f32 -1.0, %v7374_v7  ;;  %v12032_v7 = vld [vmem:[#allocation20_spill] sm:$0xff] }
 0x2cc   :  { %7379 = vpow2.f32 %v3473_v16  ;;  %v3241_v36 = vmin.f32 %v10997_v41, 0.0  ;;  %v2229_v6 = vadd.f32 %v2228_v42, %v1156_v27  ;;  %v2230_v50 = vpop.f32.mrb[219].mxu0  ;;  %6858 = vmatpush1.bf16.msra.mxu1 %v6857_v48  ;;  %4628 = vmatprep.mubr.f32.mxu1 %v3832_v18  ;;  %v1176_v48 = vpop.permute.xlu1 %1175  ;;  %vm3115_vm13 = vcmp.gt.f32.partialorder %v10997_v41, 0.0 }
 0x2cd   :  { %6859 = vmatprep.subr.bf16.mxu1 %v11953_v63  ;;  %v3741_v53 = vsel %vm3111_vm9, %v10947_v62, %v6130_v46  ;;  %v3872_v50 = vld [vmem:[%s11911_s3 + $0x368] sm:$0xff] }
 0x2ce   :  { %v7376_v37 = vpop.eup %7375  ;;  %v3475_v45 = vmul.f32 1.442695, %v3241_v36  ;;  %v11008_v25 = vadd.f32 %v12031_v26, %v2229_v6 }
 0x2cf   :  { %v6131_v29 = vadd.f32 -1.0, %v7376_v37  ;;  %v2233_v35 = vpop.f32.mrb[220].mxu0  ;;  %4629 = vmatmul.mubr.f32.gmra.mrb[142].mxu1 %v3831_v20 }
 0x2d0   :  { %7381 = vpow2.f32 %v3475_v45  ;;  %v3242_v4 = vmin.f32 %v11008_v25, 0.0  ;;  %v2234_v38 = vadd.f32 %v2233_v35, %v1161_v31  ;;  %v2235_v44 = vpop.f32.mrb[221].mxu0  ;;  %4633 = vmatprep.mubr.f32.mxu1 %v3840_v1  ;;  %v12033_v1 = vld [vmem:[#allocation21_spill] sm:$0xff]  ;;  %v1181_v45 = vpop.permute.xlu0 %1180  ;;  %vm3116_vm14 = vcmp.gt.f32.partialorder %v11008_v25, 0.0 }
 0x2d1   :  { %v3742_v30 = vsel %vm3112_vm10, %v10958_v8, %v6131_v29  ;;  %v3847_v8 = vld [vmem:[%s11911_s3 + $0x2a0] sm:$0xff] }
 0x2d2   :  { %v7378_v28 = vpop.eup %7377  ;;  %v3477_v58 = vmul.f32 1.442695, %v3242_v4  ;;  %v11022_v32 = vadd.f32 %v10213_v61, %v2234_v38  ;;  %v6860_v34 = vpack.c.bf16 %v3742_v30, %v3741_v53  ;;  %v3856_v61 = vld [vmem:[%s11911_s3 + $0x2e8] sm:$0xff]  ;;  %v3871_v38 = vld [vmem:[%s11911_s3 + $0x360] sm:$0xff] }
 0x2d3   :  { %v2238_v3 = vpop.f32.mrb[222].mxu0  ;;  %4634 = vmatmul.mubr.f32.gmra.mrb[144].mxu1 %v3839_v33  ;;  %v6132_v54 = vadd.f32 -1.0, %v7378_v28  ;;  %v3880_v53 = vld [vmem:[%s11911_s3 + $0x3a8] sm:$0xff] }
 0x2d4   :  { %7383 = vpow2.f32 %v3477_v58  ;;  %v3243_v13 = vmin.f32 %v11022_v32, 0.0  ;;  %v2239_v22 = vadd.f32 %v2238_v3, %v1166_v17  ;;  %v2240_v62 = vpop.f32.mrb[223].mxu0  ;;  %6861 = vmatpush1.bf16.msra.mxu1 %v6860_v34  ;;  %4638 = vmatprep.mubr.f32.mxu1 %v3848_v39  ;;  %v1186_v34 = vpop.permute.xlu1 %1185  ;;  %vm3117_vm15 = vcmp.gt.f32.partialorder %v11022_v32, 0.0 }
 0x2d5   :  { %6862 = vmatprep.subr.bf16.mxu1 %v11953_v63 }
 0x2d6   :  { %v7380_v56 = vpop.eup %7379  ;;  %v3479_v5 = vmul.f32 1.442695, %v3243_v13  ;;  %v11033_v2 = vadd.f32 %v10208_v43, %v2239_v22  ;;  %v3743_v43 = vsel %vm3113_vm11, %v10972_v24, %v6132_v54 }
 0x2d7   :  { %v6133_v49 = vadd.f32 -1.0, %v7380_v56  ;;  %v2243_v59 = vpop.f32.mrb[224].mxu0  ;;  %4639 = vmatmul.mubr.f32.gmra.mrb[146].mxu1 %v3847_v8 }
 0x2d8   :  { %7385 = vpow2.f32 %v3479_v5  ;;  %v3244_v14 = vmin.f32 %v11033_v2, 0.0  ;;  %v2244_v40 = vadd.f32 %v2243_v59, %v1171_v55  ;;  %v2245_v21 = vpop.f32.mrb[225].mxu0  ;;  %4643 = vmatprep.mubr.f32.mxu1 %v3856_v61  ;;  %v1191_v61 = vpop.permute.xlu0 %1190  ;;  %vm3118_vm0 = vcmp.gt.f32.partialorder %v11033_v2, 0.0 }
 0x2d9   :  { %v3744_v52 = vsel %vm3114_vm12, %v10983_v9, %v6133_v49  ;;  %v3863_v9 = vld [vmem:[%s11911_s3 + $0x320] sm:$0xff]  ;;  %v3896_v21 = vld [vmem:[%s11911_s3 + $0x428] sm:$0xff] }
 0x2da   :  { %v7382_v19 = vpop.eup %7381  ;;  %v3481_v18 = vmul.f32 1.442695, %v3244_v14  ;;  %v11047_v16 = vadd.f32 %v12032_v7, %v2244_v40  ;;  %v6863_v51 = vpack.c.bf16 %v3744_v52, %v3743_v43  ;;  %v3887_v14 = vld [vmem:[%s11911_s3 + $0x3e0] sm:$0xff]  ;;  %v12034_v52 = vld [vmem:[#allocation22_spill] sm:$0xff] }
 0x2db   :  { %v2248_v27 = vpop.f32.mrb[226].mxu0  ;;  %4644 = vmatmul.mubr.f32.gmra.mrb[148].mxu1 %v3855_v0  ;;  %v6134_v6 = vadd.f32 -1.0, %v7382_v19 }
 0x2dc   :  { %7387 = vpow2.f32 %v3481_v18  ;;  %v3245_v42 = vmin.f32 %v11047_v16, 0.0  ;;  %v2249_v36 = vadd.f32 %v2248_v27, %v1176_v48  ;;  %v2250_v24 = vpop.f32.mrb[227].mxu0  ;;  %6864 = vmatpush1.bf16.msra.mxu1 %v6863_v51  ;;  %4648 = vmatprep.mubr.f32.mxu1 %v3864_v15  ;;  %v1196_v18 = vpop.permute.xlu1 %1195  ;;  %vm3119_vm1 = vcmp.gt.f32.partialorder %v11047_v16, 0.0 }
 0x2dd   :  { %6865 = vmatprep.subr.bf16.mxu1 %v11953_v63  ;;  %v3745_v44 = vsel %vm3115_vm13, %v10997_v41, %v6134_v6 }
 0x2de   :  { %v7384_v20 = vpop.eup %7383  ;;  %v3483_v46 = vmul.f32 1.442695, %v3245_v42  ;;  %v11058_v37 = vadd.f32 %v12033_v1, %v2249_v36  ;;  %v3904_v42 = vld [vmem:[%s11911_s3 + $0x468] sm:$0xff] }
 0x2df   :  { %v6135_v26 = vadd.f32 -1.0, %v7384_v20  ;;  %v2253_v31 = vpop.f32.mrb[228].mxu0  ;;  %4649 = vmatmul.mubr.f32.gmra.mrb[150].mxu1 %v3863_v9  ;;  %v12035_v9 = vld [vmem:[#allocation23_spill] sm:$0xff] }
 0x2e0   :  { %7389 = vpow2.f32 %v3483_v46  ;;  %v3246_v29 = vmin.f32 %v11058_v37, 0.0  ;;  %v2254_v35 = vadd.f32 %v2253_v31, %v1181_v45  ;;  %v2255_v4 = vpop.f32.mrb[229].mxu0  ;;  %4653 = vmatprep.mubr.f32.mxu1 %v3872_v50  ;;  %v1201_v50 = vpop.permute.xlu0 %1200  ;;  %vm3120_vm2 = vcmp.gt.f32.partialorder %v11058_v37, 0.0  ;;  %v3903_v31 = vld [vmem:[%s11911_s3 + $0x460] sm:$0xff] }
 0x2e1   :  { %v3746_v33 = vsel %vm3116_vm14, %v11008_v25, %v6135_v26  ;;  %v3879_v25 = vld [vmem:[%s11911_s3 + $0x3a0] sm:$0xff]  ;;  %v3912_v4 = vld [vmem:[%s11911_s3 + $0x4a8] sm:$0xff] }
 0x2e2   :  { %v7386_v30 = vpop.eup %7385  ;;  %v3485_v39 = vmul.f32 1.442695, %v3246_v29  ;;  %v11072_v28 = vadd.f32 %v10260_v57, %v2254_v35  ;;  %v6866_v58 = vpack.c.bf16 %v3746_v33, %v3745_v44  ;;  %v3888_v57 = vld [vmem:[%s11911_s3 + $0x3e8] sm:$0xff] }
 0x2e3   :  { %v2258_v17 = vpop.f32.mrb[230].mxu0  ;;  %4654 = vmatmul.mubr.f32.gmra.mrb[152].mxu1 %v3871_v38  ;;  %v6136_v22 = vadd.f32 -1.0, %v7386_v30  ;;  %v1206_v30 = vpop.permute.xlu1 %1205 }
 0x2e4   :  { %7391 = vpow2.f32 %v3485_v39  ;;  %v3247_v3 = vmin.f32 %v11072_v28, 0.0  ;;  %v2259_v13 = vadd.f32 %v2258_v17, %v1186_v34  ;;  %v2260_v41 = vpop.f32.mrb[231].mxu0  ;;  %6867 = vmatpush1.bf16.msra.mxu1 %v6866_v58  ;;  %4658 = vmatprep.mubr.f32.mxu1 %v3880_v53  ;;  %vm3121_vm3 = vcmp.gt.f32.partialorder %v11072_v28, 0.0 }
 0x2e5   :  { %6868 = vmatprep.subr.bf16.mxu1 %v11953_v63 }
 0x2e6   :  { %v7388_v62 = vpop.eup %7387  ;;  %v3487_v8 = vmul.f32 1.442695, %v3247_v3  ;;  %v11083_v54 = vadd.f32 %v10255_v10, %v2259_v13  ;;  %v3747_v10 = vsel %vm3117_vm15, %v11022_v32, %v6136_v22  ;;  %vm4003_vm15 = vcmask 916480  }
 0x2e7   :  { %v6137_v56 = vadd.f32 -1.0, %v7388_v62  ;;  %v2263_v5 = vpop.f32.mrb[232].mxu0  ;;  %4659 = vmatmul.mubr.f32.gmra.mrb[154].mxu1 %v3879_v25  ;;  %v1211_v25 = vpop.permute.xlu0 %1210 }
 0x2e8   :  { %7393 = vpow2.f32 %v3487_v8  ;;  %v3248_v55 = vmin.f32 %v11083_v54, 0.0  ;;  %v2264_v49 = vadd.f32 %v2263_v5, %v1191_v61  ;;  %v2265_v59 = vpop.f32.mrb[233].mxu0  ;;  %4663 = vmatprep.mubr.f32.mxu1 %v3888_v57  ;;  %vm3122_vm4 = vcmp.gt.f32.partialorder %v11083_v54, 0.0 }
 0x2e9   :  { %v3748_v40 = vsel %vm3118_vm0, %v11033_v2, %v6137_v56  ;;  %v3895_v2 = vld [vmem:[%s11911_s3 + $0x420] sm:$0xff] }
 0x2ea   :  { %v7390_v0 = vpop.eup %7389  ;;  %v3489_v43 = vmul.f32 1.442695, %v3248_v55  ;;  %v11097_v15 = vadd.f32 %v12034_v52, %v2264_v49  ;;  %v6869_v19 = vpack.c.bf16 %v3748_v40, %v3747_v10  ;;  %v3919_v56 = vld [vmem:[%s11911_s3 + $0x4e0] sm:$0xff]  ;;  %v3928_v55 = vld [vmem:[%s11911_s3 + $0x528] sm:$0xff] }
 0x2eb   :  { %v2268_v7 = vpop.f32.mrb[234].mxu0  ;;  %4664 = vmatmul.mubr.f32.gmra.mrb[156].mxu1 %v3887_v14  ;;  %v6138_v27 = vadd.f32 -1.0, %v7390_v0  ;;  %v12036_v14 = vld [vmem:[#allocation24_spill] sm:$0xff] }
 0x2ec   :  { %7395 = vpow2.f32 %v3489_v43  ;;  %v3249_v51 = vmin.f32 %v11097_v15, 0.0  ;;  %v2269_v48 = vadd.f32 %v2268_v7, %v1196_v18  ;;  %v2270_v32 = vpop.f32.mrb[235].mxu0  ;;  %6870 = vmatpush1.bf16.msra.mxu1 %v6869_v19  ;;  %4668 = vmatprep.mubr.f32.mxu1 %v3896_v21  ;;  %v1216_v21 = vpop.permute.xlu1 %1215  ;;  %v3936_v18 = vld [vmem:[%s11911_s3 + $0x568] sm:$0xff]  ;;  %vm3123_vm5 = vcmp.gt.f32.partialorder %v11097_v15, 0.0 }
 0x2ed   :  { %6871 = vmatprep.subr.bf16.mxu1 %v11953_v63  ;;  %v3749_v29 = vsel %vm3119_vm1, %v11047_v16, %v6138_v27 }
 0x2ee   :  { %v7392_v36 = vpop.eup %7391  ;;  %v3491_v24 = vmul.f32 1.442695, %v3249_v51  ;;  %v11108_v6 = vadd.f32 %v12035_v9, %v2269_v48  ;;  %v12037_v48 = vld [vmem:[#allocation25_spill] sm:$0xff] }
 0x2ef   :  { %v6139_v20 = vadd.f32 -1.0, %v7392_v36  ;;  %v2273_v46 = vpop.f32.mrb[236].mxu0  ;;  %4669 = vmatmul.mubr.f32.gmra.mrb[158].mxu1 %v3895_v2  ;;  %v1221_v2 = vpop.permute.xlu0 %1220 }
 0x2f0   :  { %7397 = vpow2.f32 %v3491_v24  ;;  %v3250_v1 = vmin.f32 %v11108_v6, 0.0  ;;  %v2274_v45 = vadd.f32 %v2273_v46, %v1201_v50  ;;  %v2275_v26 = vpop.f32.mrb[237].mxu0  ;;  %4673 = vmatprep.mubr.f32.mxu1 %v3904_v42  ;;  %vm3124_vm6 = vcmp.gt.f32.partialorder %v11108_v6, 0.0  ;;  %v3935_v50 = vld [vmem:[%s11911_s3 + $0x560] sm:$0xff] }
 0x2f1   :  { %v3750_v35 = vsel %vm3120_vm2, %v11058_v37, %v6139_v20  ;;  %v3911_v37 = vld [vmem:[%s11911_s3 + $0x4a0] sm:$0xff] }
 0x2f2   :  { %v7394_v38 = vpop.eup %7393  ;;  %v3493_v44 = vmul.f32 1.442695, %v3250_v1  ;;  %v11122_v33 = vadd.f32 %v10307_v60, %v2274_v45  ;;  %v6872_v53 = vpack.c.bf16 %v3750_v35, %v3749_v29  ;;  %v3920_v60 = vld [vmem:[%s11911_s3 + $0x4e8] sm:$0xff]  ;;  %v1226_v35 = vpop.permute.xlu1 %1225 }
 0x2f3   :  { %v2278_v39 = vpop.f32.mrb[238].mxu0  ;;  %4674 = vmatmul.mubr.f32.gmra.mrb[160].mxu1 %v3903_v31  ;;  %v6140_v17 = vadd.f32 -1.0, %v7394_v38  ;;  %v3944_v1 = vld [vmem:[%s11911_s3 + $0x5a8] sm:$0xff] }
 0x2f4   :  { %7399 = vpow2.f32 %v3493_v44  ;;  %v3251_v58 = vmin.f32 %v11122_v33, 0.0  ;;  %v2279_v34 = vadd.f32 %v2278_v39, %v1206_v30  ;;  %v2280_v16 = vpop.f32.mrb[239].mxu0  ;;  %6873 = vmatpush1.bf16.msra.mxu1 %v6872_v53  ;;  %4678 = vmatprep.mubr.f32.mxu1 %v3912_v4  ;;  %vm3125_vm7 = vcmp.gt.f32.partialorder %v11122_v33, 0.0 }
 0x2f5   :  { %6874 = vmatprep.subr.bf16.mxu1 %v11953_v63 }
 0x2f6   :  { %v7396_v3 = vpop.eup %7395  ;;  %v3495_v13 = vmul.f32 1.442695, %v3251_v58  ;;  %v11133_v41 = vadd.f32 %v10302_v23, %v2279_v34  ;;  %v3751_v23 = vsel %vm3121_vm3, %v11072_v28, %v6140_v17  ;;  %v1231_v34 = vpop.permute.xlu0 %1230 }
 0x2f7   :  { %v6141_v22 = vadd.f32 -1.0, %v7396_v3  ;;  %v2283_v57 = vpop.f32.mrb[240].mxu0  ;;  %4679 = vmatmul.mubr.f32.gmra.mrb[162].mxu1 %v3911_v37 }
 0x2f8   :  { %7401 = vpow2.f32 %v3495_v13  ;;  %v3252_v62 = vmin.f32 %v11133_v41, 0.0  ;;  %v2284_v8 = vadd.f32 %v2283_v57, %v1211_v25  ;;  %v2285_v61 = vpop.f32.mrb[241].mxu0  ;;  %4683 = vmatprep.mubr.f32.mxu1 %v3920_v60  ;;  %vm3126_vm8 = vcmp.gt.f32.partialorder %v11133_v41, 0.0  ;;  %v3951_v13 = vld [vmem:[%s11911_s3 + $0x5e0] sm:$0xff] }
 0x2f9   :  { %v3752_v5 = vsel %vm3122_vm4, %v11083_v54, %v6141_v22  ;;  %v3927_v54 = vld [vmem:[%s11911_s3 + $0x520] sm:$0xff]  ;;  %v3960_v22 = vld [vmem:[%s11911_s3 + $0x628] sm:$0xff] }
 0x2fa   :  { %v7398_v49 = vpop.eup %7397  ;;  %v3497_v59 = vmul.f32 1.442695, %v3252_v62  ;;  %v11147_v10 = vadd.f32 %v12036_v14, %v2284_v8  ;;  %v6875_v40 = vpack.c.bf16 %v3752_v5, %v3751_v23 }
 0x2fb   :  { %v2288_v0 = vpop.f32.mrb[242].mxu0  ;;  %4684 = vmatmul.mubr.f32.gmra.mrb[164].mxu1 %v3919_v56  ;;  %v6142_v19 = vadd.f32 -1.0, %v7398_v49  ;;  %v1236_v56 = vpop.permute.xlu1 %1235 }
 0x2fc   :  { %7403 = vpow2.f32 %v3497_v59  ;;  %v3253_v43 = vmin.f32 %v11147_v10, 0.0  ;;  %v2289_v52 = vadd.f32 %v2288_v0, %v1216_v21  ;;  %v2290_v28 = vpop.f32.mrb[243].mxu0  ;;  %6876 = vmatpush1.bf16.msra.mxu1 %v6875_v40  ;;  %4688 = vmatprep.mubr.f32.mxu1 %v3928_v55  ;;  %v12038_v40 = vld [vmem:[#allocation27_spill] sm:$0xff]  ;;  %vm3127_vm9 = vcmp.gt.f32.partialorder %v11147_v10, 0.0 }
 0x2fd   :  { %6877 = vmatprep.subr.bf16.mxu1 %v11953_v63  ;;  %v3753_v20 = vsel %vm3123_vm5, %v11097_v15, %v6142_v19  ;;  %v3976_v19 = vld [vmem:[%s11911_s3 + $0x6a8] sm:$0xff] }
 0x2fe   :  { %v7400_v7 = vpop.eup %7399  ;;  %v3499_v51 = vmul.f32 1.442695, %v3253_v43  ;;  %v11158_v32 = vadd.f32 %v12037_v48, %v2289_v52  ;;  %v3967_v52 = vld [vmem:[%s11911_s3 + $0x660] sm:$0xff] }
 0x2ff   :  { %v6143_v27 = vadd.f32 -1.0, %v7400_v7  ;;  %v2293_v42 = vpop.f32.mrb[244].mxu0  ;;  %4689 = vmatmul.mubr.f32.gmra.mrb[166].mxu1 %v3927_v54  ;;  %v3975_v48 = vld [vmem:[%s11911_s3 + $0x6a0] sm:$0xff] }
 0x300   :  { %7405 = vpow2.f32 %v3499_v51  ;;  %v3254_v36 = vmin.f32 %v11158_v32, 0.0  ;;  %v2294_v24 = vadd.f32 %v2293_v42, %v1221_v2  ;;  %v2295_v9 = vpop.f32.mrb[245].mxu0  ;;  %4693 = vmatprep.mubr.f32.mxu1 %v3936_v18  ;;  %vm3128_vm10 = vcmp.gt.f32.partialorder %v11158_v32, 0.0  ;;  %v3983_v42 = vld [vmem:[%s11911_s3 + $0x6e0] sm:$0xff] }
 0x301   :  { %v3754_v46 = vsel %vm3124_vm6, %v11108_v6, %v6143_v27  ;;  %v3943_v6 = vld [vmem:[%s11911_s3 + $0x5a0] sm:$0xff]  ;;  %v3992_v9 = vld [vmem:[%s11911_s3 + $0x728] sm:$0xff] }
 0x302   :  { %v7402_v45 = vpop.eup %7401  ;;  %v3501_v26 = vmul.f32 1.442695, %v3254_v36  ;;  %v11172_v31 = vadd.f32 %v10354_v47, %v2294_v24  ;;  %v6878_v29 = vpack.c.bf16 %v3754_v46, %v3753_v20  ;;  %v3952_v47 = vld [vmem:[%s11911_s3 + $0x5e8] sm:$0xff]  ;;  %v3991_v46 = vld [vmem:[%s11911_s3 + $0x720] sm:$0xff] }
 0x303   :  { %v2298_v4 = vpop.f32.mrb[246].mxu0  ;;  %4694 = vmatmul.mubr.f32.gmra.mrb[168].mxu1 %v3935_v50  ;;  %v6144_v53 = vadd.f32 -1.0, %v7402_v45  ;;  %v4000_v45 = vld [vmem:[%s11911_s3 + $0x768] sm:$0xff] }
 0x304   :  { %7407 = vpow2.f32 %v3501_v26  ;;  %v3255_v38 = vmin.f32 %v11172_v31, 0.0  ;;  %v2299_v44 = vadd.f32 %v2298_v4, %v1226_v35  ;;  %v2300_v15 = vpop.f32.mrb[247].mxu0  ;;  %6879 = vmatpush1.bf16.msra.mxu1 %v6878_v29  ;;  %4698 = vmatprep.mubr.f32.mxu1 %v3944_v1  ;;  %vm3129_vm11 = vcmp.gt.f32.partialorder %v11172_v31, 0.0  ;;  %v3999_v29 = vld [vmem:[%s11911_s3 + $0x760] sm:$0xff] }
 0x305   :  { %6880 = vmatprep.subr.bf16.mxu1 %v11953_v63  ;;  %v3769_v15 = vld [vmem:[%s11911_s3 + $0x30] sm:$0xff] }
 0x306   :  { %v7404_v30 = vpop.eup %7403  ;;  %v3503_v39 = vmul.f32 1.442695, %v3255_v38  ;;  %v11183_v58 = vadd.f32 %v10349_v11, %v2299_v44  ;;  %v3755_v11 = vsel %vm3125_vm7, %v11122_v33, %v6144_v53  ;;  %v3770_v38 = vld [vmem:[%s11911_s3 + $0x38] sm:$0xff]  ;;  %v3777_v53 = vld [vmem:[%s11911_s3 + $0x70] sm:$0xff] }
 0x307   :  { %v6145_v16 = vadd.f32 -1.0, %v7404_v30  ;;  %v2303_v37 = vpop.f32.mrb[248].mxu0  ;;  %4699 = vmatmul.mubr.f32.gmra.mrb[170].mxu1 %v3943_v6  ;;  %v3778_v6 = vld [vmem:[%s11911_s3 + $0x78] sm:$0xff]  ;;  %v3785_v30 = vld [vmem:[%s11911_s3 + $0xb0] sm:$0xff] }
 0x308   :  { %7409 = vpow2.f32 %v3503_v39  ;;  %v3256_v17 = vmin.f32 %v11183_v58, 0.0  ;;  %v2304_v60 = vadd.f32 %v2303_v37, %v1231_v34  ;;  %v2305_v3 = vpop.f32.mrb[249].mxu0  ;;  %4703 = vmatprep.mubr.f32.mxu1 %v3952_v47  ;;  %vm3130_vm12 = vcmp.gt.f32.partialorder %v11183_v58, 0.0  ;;  %v3786_v47 = vld [vmem:[%s11911_s3 + $0xb8] sm:$0xff] }
 0x309   :  { %v3756_v25 = vsel %vm3126_vm8, %v11133_v41, %v6145_v16  ;;  %v3959_v41 = vld [vmem:[%s11911_s3 + $0x620] sm:$0xff]  ;;  %v3794_v39 = vld [vmem:[%s11911_s3 + $0xf8] sm:$0xff]  ;;  %v3801_v16 = vld [vmem:[%s11911_s3 + $0x130] sm:$0xff] }
 0x30a   :  { %v7406_v57 = vpop.eup %7405  ;;  %v3505_v62 = vmul.f32 1.442695, %v3256_v17  ;;  %v11197_v8 = vadd.f32 %v10376_v12, %v2304_v60  ;;  %v6881_v61 = vpack.c.bf16 %v3756_v25, %v3755_v11  ;;  %v3968_v12 = vld [vmem:[%s11911_s3 + $0x668] sm:$0xff]  ;;  %v3802_v34 = vld [vmem:[%s11911_s3 + $0x138] sm:$0xff]  ;;  %v3809_v17 = vld [vmem:[%s11911_s3 + $0x170] sm:$0xff] }
 0x30b   :  { %v2308_v23 = vpop.f32.mrb[250].mxu0  ;;  %4704 = vmatmul.mubr.f32.gmra.mrb[172].mxu1 %v3951_v13  ;;  %v6146_v49 = vadd.f32 -1.0, %v7406_v57  ;;  %v3810_v37 = vld [vmem:[%s11911_s3 + $0x178] sm:$0xff]  ;;  %v3817_v3 = vld [vmem:[%s11911_s3 + $0x1b0] sm:$0xff] }
 0x30c   :  { %7411 = vpow2.f32 %v3505_v62  ;;  %v3257_v5 = vmin.f32 %v11197_v8, 0.0  ;;  %v2309_v55 = vadd.f32 %v2308_v23, %v1236_v56  ;;  %v2310_v33 = vpop.f32.mrb[251].mxu0  ;;  %6882 = vmatpush1.bf16.msra.mxu1 %v6881_v61  ;;  %4708 = vmatprep.mubr.f32.mxu1 %v3960_v22  ;;  %vm3131_vm13 = vcmp.gt.f32.partialorder %v11197_v8, 0.0  ;;  %v3818_v60 = vld [vmem:[%s11911_s3 + $0x1b8] sm:$0xff]  ;;  %v3825_v11 = vld [vmem:[%s11911_s3 + $0x1f0] sm:$0xff] }
 0x30d   :  { %6883 = vmatprep.subr.bf16.mxu1 %v11953_v63  ;;  %v3757_v28 = vsel %vm3127_vm9, %v11147_v10, %v6146_v49  ;;  %v3984_v10 = vld [vmem:[%s11911_s3 + $0x6e8] sm:$0xff]  ;;  %v3826_v13 = vld [vmem:[%s11911_s3 + $0x1f8] sm:$0xff]  ;;  %v3833_v22 = vld [vmem:[%s11911_s3 + $0x230] sm:$0xff] }
 0x30e   :  { %v7408_v59 = vpop.eup %7407  ;;  %v3507_v14 = vmul.f32 1.442695, %v3257_v5  ;;  %v3004_v21 = vadd.f32 %v12038_v40, %v2309_v55  ;;  %v3834_v25 = vld [vmem:[%s11911_s3 + $0x238] sm:$0xff]  ;;  %v3841_v62 = vld [vmem:[%s11911_s3 + $0x270] sm:$0xff] }
 0x30f   :  { %v6147_v0 = vadd.f32 -1.0, %v7408_v59  ;;  %4709 = vmatmul.mubr.f32.gmra.mrb[174].mxu1 %v3959_v41  ;;  %v3842_v57 = vld [vmem:[%s11911_s3 + $0x278] sm:$0xff]  ;;  %v3849_v61 = vld [vmem:[%s11911_s3 + $0x2b0] sm:$0xff] }
 0x310   :  { %7413 = vpow2.f32 %v3507_v14  ;;  %v3258_v43 = vmin.f32 %v3004_v21, 0.0  ;;  %4713 = vmatprep.mubr.f32.mxu1 %v3968_v12  ;;  %vm3132_vm14 = vcmp.gt.f32.partialorder %v3004_v21, 0.0  ;;  %v3858_v56 = vld [vmem:[%s11911_s3 + $0x2f8] sm:$0xff]  ;;  %v3857_v23 = vld [vmem:[%s11911_s3 + $0x2f0] sm:$0xff] }
 0x311   :  { %v3758_v54 = vsel %vm3128_vm10, %v11158_v32, %v6147_v0  ;;  %v3866_v5 = vld [vmem:[%s11911_s3 + $0x338] sm:$0xff]  ;;  %v3865_v55 = vld [vmem:[%s11911_s3 + $0x330] sm:$0xff] }
 0x312   :  { %v7410_v18 = vpop.eup %7409  ;;  %v3509_v7 = vmul.f32 1.442695, %v3258_v43  ;;  %v6884_v51 = vpack.c.bf16 %v3758_v54, %v3757_v28  ;;  %v3874_v33 = vld [vmem:[%s11911_s3 + $0x378] sm:$0xff]  ;;  %v3873_v41 = vld [vmem:[%s11911_s3 + $0x370] sm:$0xff] }
 0x313   :  { %4714 = vmatmul.mubr.f32.gmra.mrb[176].mxu1 %v3967_v52  ;;  %v6148_v2 = vadd.f32 -1.0, %v7410_v18  ;;  %v3882_v49 = vld [vmem:[%s11911_s3 + $0x3b8] sm:$0xff]  ;;  %v3881_v12 = vld [vmem:[%s11911_s3 + $0x3b0] sm:$0xff] }
 0x314   :  { %7415 = vpow2.f32 %v3509_v7  ;;  %6885 = vmatpush1.bf16.msra.mxu1 %v6884_v51  ;;  %4718 = vmatprep.mubr.f32.mxu1 %v3976_v19  ;;  %v3890_v59 = vld [vmem:[%s11911_s3 + $0x3f8] sm:$0xff]  ;;  %v3889_v14 = vld [vmem:[%s11911_s3 + $0x3f0] sm:$0xff] }
 0x315   :  { %6886 = vmatprep.subr.bf16.mxu1 %v11953_v63  ;;  %v3759_v36 = vsel %vm3129_vm11, %v11172_v31, %v6148_v2  ;;  %v3898_v40 = vld [vmem:[%s11911_s3 + $0x438] sm:$0xff]  ;;  %v3905_v43 = vld [vmem:[%s11911_s3 + $0x470] sm:$0xff] }
 0x316   :  { %v7412_v32 = vpop.eup %7411  ;;  %v3906_v0 = vld [vmem:[%s11911_s3 + $0x478] sm:$0xff]  ;;  %v3913_v28 = vld [vmem:[%s11911_s3 + $0x4b0] sm:$0xff] }
 0x317   :  { %v6149_v27 = vadd.f32 -1.0, %v7412_v32  ;;  %4719 = vmatmul.mubr.f32.gmra.mrb[178].mxu1 %v3975_v48  ;;  %v3914_v52 = vld [vmem:[%s11911_s3 + $0x4b8] sm:$0xff]  ;;  %v3921_v19 = vld [vmem:[%s11911_s3 + $0x4f0] sm:$0xff] }
 0x318   :  { %4723 = vmatprep.mubr.f32.mxu1 %v3984_v10  ;;  %v3922_v54 = vld [vmem:[%s11911_s3 + $0x4f8] sm:$0xff]  ;;  %v3929_v7 = vld [vmem:[%s11911_s3 + $0x530] sm:$0xff] }
 0x319   :  { %v3760_v24 = vsel %vm3130_vm12, %v11183_v58, %v6149_v27  ;;  %v3793_v58 = vld [vmem:[%s11911_s3 + $0xf0] sm:$0xff]  ;;  %v3930_v18 = vld [vmem:[%s11911_s3 + $0x538] sm:$0xff] }
 0x31a   :  { %v7414_v50 = vpop.eup %7413  ;;  %v6887_v20 = vpack.c.bf16 %v3760_v24, %v3759_v36  ;;  %v3938_v51 = vld [vmem:[%s11911_s3 + $0x578] sm:$0xff]  ;;  %v3937_v48 = vld [vmem:[%s11911_s3 + $0x570] sm:$0xff] }
 0x31b   :  { %4724 = vmatmul.mubr.f32.gmra.mrb[180].mxu1 %v3983_v42  ;;  %v6150_v1 = vadd.f32 -1.0, %v7414_v50  ;;  %v3946_v2 = vld [vmem:[%s11911_s3 + $0x5b8] sm:$0xff]  ;;  %v3945_v10 = vld [vmem:[%s11911_s3 + $0x5b0] sm:$0xff] }
 0x31c   :  { %6888 = vmatpush1.bf16.msra.mxu1 %v6887_v20  ;;  %4728 = vmatprep.mubr.f32.mxu1 %v3992_v9  ;;  %v3954_v32 = vld [vmem:[%s11911_s3 + $0x5f8] sm:$0xff]  ;;  %v3953_v27 = vld [vmem:[%s11911_s3 + $0x5f0] sm:$0xff] }
 0x31d   :  { %6889 = vmatprep.subr.bf16.mxu1 %v11953_v63  ;;  %v3761_v35 = vsel %vm3131_vm13, %v11197_v8, %v6150_v1  ;;  %v3850_v8 = vld [vmem:[%s11911_s3 + $0x2b8] sm:$0xff]  ;;  %v3961_v36 = vld [vmem:[%s11911_s3 + $0x630] sm:$0xff] }
 0x31e   :  { %v7416_v26 = vpop.eup %7415  ;;  %v3962_v42 = vld [vmem:[%s11911_s3 + $0x638] sm:$0xff]  ;;  %v3969_v9 = vld [vmem:[%s11911_s3 + $0x670] sm:$0xff] }
 0x31f   :  { %v6151_v31 = vadd.f32 -1.0, %v7416_v26  ;;  %4729 = vmatmul.mubr.f32.gmra.mrb[182].mxu1 %v3991_v46  ;;  %v3970_v24 = vld [vmem:[%s11911_s3 + $0x678] sm:$0xff]  ;;  %v3977_v20 = vld [vmem:[%s11911_s3 + $0x6b0] sm:$0xff] }
 0x320   :  { %4733 = vmatprep.mubr.f32.mxu1 %v4000_v45  ;;  %v3978_v50 = vld [vmem:[%s11911_s3 + $0x6b8] sm:$0xff]  ;;  %v3985_v1 = vld [vmem:[%s11911_s3 + $0x6f0] sm:$0xff] }
 0x321   :  { %v3762_v4 = vsel %vm3132_vm14, %v3004_v21, %v6151_v31  ;;  %v3897_v21 = vld [vmem:[%s11911_s3 + $0x430] sm:$0xff]  ;;  %v3986_v46 = vld [vmem:[%s11911_s3 + $0x6f8] sm:$0xff] }
 0x322   :  { %v6890_v44 = vpack.c.bf16 %v3762_v4, %v3761_v35  ;;  %v3994_v45 = vld [vmem:[%s11911_s3 + $0x738] sm:$0xff]  ;;  %v3993_v26 = vld [vmem:[%s11911_s3 + $0x730] sm:$0xff]  ;;  %v4955_v35 = vld [vmem:[%s11912_s4 + $0x8] sm:$0xff] }
 0x323   :  { %4734 = vmatmul.mubr.f32.gmra.mrb[184].mxu1 %v3999_v29  ;;  %v4002_v31 = vld [vmem:[%s11911_s3 + $0x778] sm:$0xff]  ;;  %v4001_v29 = vld [vmem:[%s11911_s3 + $0x770] sm:$0xff]  ;;  %6182 = vmatprep.mubr.msk.f32.mxu0 %vm4003_vm15, %v4955_v35 }
 0x324   :  { %6891 = vmatpush1.bf16.msra.mxu1 %v6890_v44  ;;  %6152 = vmatprep.mubr.msk.f32.mxu1 %vm4003_vm15, %v3770_v38 }
 0x327   :  { %4804 = vmatmul.mubr.f32.vlgmr.msra.gmra.mrb[126].mxu1 %v3769_v15 }
 0x328   :  { %6153 = vmatprep.mubr.msk.f32.mxu1 %vm4003_vm15, %v3778_v6 }
 0x32b   :  { %4809 = vmatmul.mubr.f32.gmra.mrb[128].mxu1 %v3777_v53 }
 0x32c   :  { %6154 = vmatprep.mubr.msk.f32.mxu1 %vm4003_vm15, %v3786_v47 }
 0x32f   :  { %4814 = vmatmul.mubr.f32.gmra.mrb[130].mxu1 %v3785_v30 }
 0x330   :  { %6155 = vmatprep.mubr.msk.f32.mxu1 %vm4003_vm15, %v3794_v39 }
 0x333   :  { %4819 = vmatmul.mubr.f32.gmra.mrb[132].mxu1 %v3793_v58 }
 0x334   :  { %6156 = vmatprep.mubr.msk.f32.mxu1 %vm4003_vm15, %v3802_v34 }
 0x337   :  { %4824 = vmatmul.mubr.f32.gmra.mrb[134].mxu1 %v3801_v16 }
 0x338   :  { %6157 = vmatprep.mubr.msk.f32.mxu1 %vm4003_vm15, %v3810_v37 }
 0x33b   :  { %4829 = vmatmul.mubr.f32.gmra.mrb[136].mxu1 %v3809_v17 }
 0x33c   :  { %6158 = vmatprep.mubr.msk.f32.mxu1 %vm4003_vm15, %v3818_v60 }
 0x33f   :  { %4834 = vmatmul.mubr.f32.gmra.mrb[138].mxu1 %v3817_v3 }
 0x340   :  { %6159 = vmatprep.mubr.msk.f32.mxu1 %vm4003_vm15, %v3826_v13 }
 0x343   :  { %4839 = vmatmul.mubr.f32.gmra.mrb[140].mxu1 %v3825_v11 }
 0x344   :  { %6160 = vmatprep.mubr.msk.f32.mxu1 %vm4003_vm15, %v3834_v25 }
 0x347   :  { %4844 = vmatmul.mubr.f32.gmra.mrb[142].mxu1 %v3833_v22 }
 0x348   :  { %6161 = vmatprep.mubr.msk.f32.mxu1 %vm4003_vm15, %v3842_v57 }
 0x34b   :  { %4849 = vmatmul.mubr.f32.gmra.mrb[144].mxu1 %v3841_v62 }
 0x34c   :  { %6162 = vmatprep.mubr.msk.f32.mxu1 %vm4003_vm15, %v3850_v8 }
 0x34f   :  { %4854 = vmatmul.mubr.f32.gmra.mrb[146].mxu1 %v3849_v61 }
 0x350   :  { %6163 = vmatprep.mubr.msk.f32.mxu1 %vm4003_vm15, %v3858_v56 }
 0x353   :  { %4859 = vmatmul.mubr.f32.gmra.mrb[148].mxu1 %v3857_v23 }
 0x354   :  { %6164 = vmatprep.mubr.msk.f32.mxu1 %vm4003_vm15, %v3866_v5 }
 0x357   :  { %4864 = vmatmul.mubr.f32.gmra.mrb[150].mxu1 %v3865_v55 }
 0x358   :  { %6165 = vmatprep.mubr.msk.f32.mxu1 %vm4003_vm15, %v3874_v33 }
 0x35b   :  { %4869 = vmatmul.mubr.f32.gmra.mrb[152].mxu1 %v3873_v41 }
 0x35c   :  { %6166 = vmatprep.mubr.msk.f32.mxu1 %vm4003_vm15, %v3882_v49 }
 0x35f   :  { %4874 = vmatmul.mubr.f32.gmra.mrb[154].mxu1 %v3881_v12 }
 0x360   :  { %6167 = vmatprep.mubr.msk.f32.mxu1 %vm4003_vm15, %v3890_v59 }
 0x363   :  { %4879 = vmatmul.mubr.f32.gmra.mrb[156].mxu1 %v3889_v14 }
 0x364   :  { %6168 = vmatprep.mubr.msk.f32.mxu1 %vm4003_vm15, %v3898_v40 }
 0x367   :  { %4884 = vmatmul.mubr.f32.gmra.mrb[158].mxu1 %v3897_v21 }
 0x368   :  { %6169 = vmatprep.mubr.msk.f32.mxu1 %vm4003_vm15, %v3906_v0 }
 0x36b   :  { %4889 = vmatmul.mubr.f32.gmra.mrb[160].mxu1 %v3905_v43 }
 0x36c   :  { %6170 = vmatprep.mubr.msk.f32.mxu1 %vm4003_vm15, %v3914_v52 }
 0x36f   :  { %4894 = vmatmul.mubr.f32.gmra.mrb[162].mxu1 %v3913_v28 }
 0x370   :  { %6171 = vmatprep.mubr.msk.f32.mxu1 %vm4003_vm15, %v3922_v54 }
 0x373   :  { %4899 = vmatmul.mubr.f32.gmra.mrb[164].mxu1 %v3921_v19 }
 0x374   :  { %6172 = vmatprep.mubr.msk.f32.mxu1 %vm4003_vm15, %v3930_v18 }
 0x377   :  { %4904 = vmatmul.mubr.f32.gmra.mrb[166].mxu1 %v3929_v7 }
 0x378   :  { %6173 = vmatprep.mubr.msk.f32.mxu1 %vm4003_vm15, %v3938_v51 }
 0x37b   :  { %4909 = vmatmul.mubr.f32.gmra.mrb[168].mxu1 %v3937_v48 }
 0x37c   :  { %6174 = vmatprep.mubr.msk.f32.mxu1 %vm4003_vm15, %v3946_v2 }
 0x37f   :  { %4914 = vmatmul.mubr.f32.gmra.mrb[170].mxu1 %v3945_v10 }
 0x380   :  { %6175 = vmatprep.mubr.msk.f32.mxu1 %vm4003_vm15, %v3954_v32 }
 0x383   :  { %4919 = vmatmul.mubr.f32.gmra.mrb[172].mxu1 %v3953_v27 }
 0x384   :  { %6176 = vmatprep.mubr.msk.f32.mxu1 %vm4003_vm15, %v3962_v42 }
 0x387   :  { %4924 = vmatmul.mubr.f32.gmra.mrb[174].mxu1 %v3961_v36 }
 0x388   :  { %6177 = vmatprep.mubr.msk.f32.mxu1 %vm4003_vm15, %v3970_v24 }
 0x38b   :  { %4929 = vmatmul.mubr.f32.gmra.mrb[176].mxu1 %v3969_v9 }
 0x38c   :  { %6178 = vmatprep.mubr.msk.f32.mxu1 %vm4003_vm15, %v3978_v50 }
 0x38f   :  { %4934 = vmatmul.mubr.f32.gmra.mrb[178].mxu1 %v3977_v20 }
 0x390   :  { %6179 = vmatprep.mubr.msk.f32.mxu1 %vm4003_vm15, %v3986_v46 }
 0x393   :  { %4939 = vmatmul.mubr.f32.gmra.mrb[180].mxu1 %v3985_v1 }
 0x394   :  { %6180 = vmatprep.mubr.msk.f32.mxu1 %vm4003_vm15, %v3994_v45 }
 0x397   :  { %4944 = vmatmul.mubr.f32.gmra.mrb[182].mxu1 %v3993_v26 }
 0x398   :  { %6181 = vmatprep.mubr.msk.f32.mxu1 %vm4003_vm15, %v4002_v31 }
 0x39b   :  { %4949 = vmatmul.mubr.f32.gmra.mrb[184].mxu1 %v4001_v29 }
 0x3fa   :  { %v4805_v4 = vpop.f32.mrb[126].mxu1 }
 0x3fb   :  { %v4807_v38 = vpop.f32.mrb[127].mxu1 }
 0x3fe   :  { %v4810_v44 = vpop.f32.mrb[128].mxu1 }
 0x3ff   :  { %v6893_v15 = vpack.c.bf16 %v4810_v44, %v4805_v4  ;;  %v4812_v6 = vpop.f32.mrb[129].mxu1 }
 0x401   :  { %6894 = vmatpush1.bf16.msra.mxu0 %v6893_v15 }
 0x402   :  { %v4815_v53 = vpop.f32.mrb[130].mxu1  ;;  %6895 = vmatprep.subr.bf16.mxu0 %v11953_v63 }
 0x403   :  { %v4817_v47 = vpop.f32.mrb[131].mxu1 }
 0x406   :  { %v4820_v30 = vpop.f32.mrb[132].mxu1 }
 0x407   :  { %v6896_v39 = vpack.c.bf16 %v4820_v30, %v4815_v53  ;;  %v4822_v58 = vpop.f32.mrb[133].mxu1 }
 0x409   :  { %6897 = vmatpush1.bf16.msra.mxu0 %v6896_v39 }
 0x40a   :  { %v4825_v34 = vpop.f32.mrb[134].mxu1  ;;  %6898 = vmatprep.subr.bf16.mxu0 %v11953_v63 }
 0x40b   :  { %v4827_v16 = vpop.f32.mrb[135].mxu1 }
 0x40e   :  { %v4830_v37 = vpop.f32.mrb[136].mxu1 }
 0x40f   :  { %v6899_v17 = vpack.c.bf16 %v4830_v37, %v4825_v34  ;;  %v4832_v60 = vpop.f32.mrb[137].mxu1  ;;  %v4954_v37 = vld [vmem:[%s11912_s4] sm:$0xff] }
 0x410   :  { %v4956_v60 = vld [vmem:[%s11912_s4 + $0x10] sm:$0xff] }
 0x411   :  { %6900 = vmatpush1.bf16.msra.mxu0 %v6899_v17  ;;  %v4957_v17 = vld [vmem:[%s11912_s4 + $0x18] sm:$0xff] }
 0x412   :  { %v4835_v3 = vpop.f32.mrb[138].mxu1  ;;  %6901 = vmatprep.subr.bf16.mxu0 %v11953_v63 }
 0x413   :  { %v4837_v13 = vpop.f32.mrb[139].mxu1 }
 0x414   :  { %v4958_v13 = vld [vmem:[%s11912_s4 + $0x20] sm:$0xff] }
 0x416   :  { %v4840_v11 = vpop.f32.mrb[140].mxu1 }
 0x417   :  { %v6902_v25 = vpack.c.bf16 %v4840_v11, %v4835_v3  ;;  %v4842_v22 = vpop.f32.mrb[141].mxu1  ;;  %v4959_v3 = vld [vmem:[%s11912_s4 + $0x28] sm:$0xff]  ;;  %v4961_v11 = vld [vmem:[%s11912_s4 + $0x38] sm:$0xff] }
 0x418   :  { %v4963_v22 = vld [vmem:[%s11912_s4 + $0x48] sm:$0xff] }
 0x419   :  { %6903 = vmatpush1.bf16.msra.mxu0 %v6902_v25  ;;  %v4960_v25 = vld [vmem:[%s11912_s4 + $0x30] sm:$0xff] }
 0x41a   :  { %v4845_v57 = vpop.f32.mrb[142].mxu1  ;;  %6904 = vmatprep.subr.bf16.mxu0 %v11953_v63 }
 0x41b   :  { %v4847_v62 = vpop.f32.mrb[143].mxu1 }
 0x41c   :  { %v4965_v62 = vld [vmem:[%s11912_s4 + $0x58] sm:$0xff] }
 0x41e   :  { %v4850_v8 = vpop.f32.mrb[144].mxu1 }
 0x41f   :  { %v6905_v61 = vpack.c.bf16 %v4850_v8, %v4845_v57  ;;  %v4852_v56 = vpop.f32.mrb[145].mxu1  ;;  %v4962_v57 = vld [vmem:[%s11912_s4 + $0x40] sm:$0xff]  ;;  %v4964_v8 = vld [vmem:[%s11912_s4 + $0x50] sm:$0xff] }
 0x420   :  { %v4966_v56 = vld [vmem:[%s11912_s4 + $0x60] sm:$0xff] }
 0x421   :  { %6906 = vmatpush1.bf16.msra.mxu0 %v6905_v61  ;;  %v4967_v61 = vld [vmem:[%s11912_s4 + $0x68] sm:$0xff] }
 0x422   :  { %v4855_v23 = vpop.f32.mrb[146].mxu1  ;;  %6907 = vmatprep.subr.bf16.mxu0 %v11953_v63 }
 0x423   :  { %v4857_v5 = vpop.f32.mrb[147].mxu1 }
 0x424   :  { %v4968_v5 = vld [vmem:[%s11912_s4 + $0x70] sm:$0xff] }
 0x426   :  { %v4860_v55 = vpop.f32.mrb[148].mxu1 }
 0x427   :  { %v6908_v33 = vpack.c.bf16 %v4860_v55, %v4855_v23  ;;  %v4862_v41 = vpop.f32.mrb[149].mxu1  ;;  %v4969_v23 = vld [vmem:[%s11912_s4 + $0x78] sm:$0xff]  ;;  %v4971_v55 = vld [vmem:[%s11912_s4 + $0x88] sm:$0xff] }
 0x428   :  { %v4973_v41 = vld [vmem:[%s11912_s4 + $0x98] sm:$0xff] }
 0x429   :  { %6909 = vmatpush1.bf16.msra.mxu0 %v6908_v33  ;;  %v4970_v33 = vld [vmem:[%s11912_s4 + $0x80] sm:$0xff] }
 0x42a   :  { %v4865_v49 = vpop.f32.mrb[150].mxu1  ;;  %6910 = vmatprep.subr.bf16.mxu0 %v11953_v63 }
 0x42b   :  { %v4867_v12 = vpop.f32.mrb[151].mxu1 }
 0x42c   :  { %v4975_v12 = vld [vmem:[%s11912_s4 + $0xa8] sm:$0xff] }
 0x42e   :  { %v4870_v59 = vpop.f32.mrb[152].mxu1 }
 0x42f   :  { %v6911_v14 = vpack.c.bf16 %v4870_v59, %v4865_v49  ;;  %v4872_v40 = vpop.f32.mrb[153].mxu1  ;;  %v4972_v49 = vld [vmem:[%s11912_s4 + $0x90] sm:$0xff]  ;;  %v4974_v59 = vld [vmem:[%s11912_s4 + $0xa0] sm:$0xff] }
 0x430   :  { %v4976_v40 = vld [vmem:[%s11912_s4 + $0xb0] sm:$0xff] }
 0x431   :  { %6912 = vmatpush1.bf16.msra.mxu0 %v6911_v14  ;;  %v4977_v14 = vld [vmem:[%s11912_s4 + $0xb8] sm:$0xff] }
 0x432   :  { %v4875_v21 = vpop.f32.mrb[154].mxu1  ;;  %6913 = vmatprep.subr.bf16.mxu0 %v11953_v63 }
 0x433   :  { %v4877_v0 = vpop.f32.mrb[155].mxu1 }
 0x434   :  { %v4978_v0 = vld [vmem:[%s11912_s4 + $0xc0] sm:$0xff] }
 0x436   :  { %v4880_v43 = vpop.f32.mrb[156].mxu1 }
 0x437   :  { %v6914_v52 = vpack.c.bf16 %v4880_v43, %v4875_v21  ;;  %v4882_v28 = vpop.f32.mrb[157].mxu1  ;;  %v4979_v21 = vld [vmem:[%s11912_s4 + $0xc8] sm:$0xff]  ;;  %v4981_v43 = vld [vmem:[%s11912_s4 + $0xd8] sm:$0xff] }
 0x438   :  { %v4983_v28 = vld [vmem:[%s11912_s4 + $0xe8] sm:$0xff] }
 0x439   :  { %6915 = vmatpush1.bf16.msra.mxu0 %v6914_v52  ;;  %v4980_v52 = vld [vmem:[%s11912_s4 + $0xd0] sm:$0xff] }
 0x43a   :  { %v4885_v54 = vpop.f32.mrb[158].mxu1  ;;  %6916 = vmatprep.subr.bf16.mxu0 %v11953_v63 }
 0x43b   :  { %v4887_v19 = vpop.f32.mrb[159].mxu1 }
 0x43c   :  { %v4985_v19 = vld [vmem:[%s11912_s4 + $0xf8] sm:$0xff] }
 0x43e   :  { %v4890_v18 = vpop.f32.mrb[160].mxu1 }
 0x43f   :  { %v6917_v7 = vpack.c.bf16 %v4890_v18, %v4885_v54  ;;  %v4892_v51 = vpop.f32.mrb[161].mxu1  ;;  %v4982_v54 = vld [vmem:[%s11912_s4 + $0xe0] sm:$0xff]  ;;  %v4984_v18 = vld [vmem:[%s11912_s4 + $0xf0] sm:$0xff] }
 0x440   :  { %v4986_v51 = vld [vmem:[%s11912_s4 + $0x100] sm:$0xff] }
 0x441   :  { %6918 = vmatpush1.bf16.msra.mxu0 %v6917_v7  ;;  %v4987_v7 = vld [vmem:[%s11912_s4 + $0x108] sm:$0xff] }
 0x442   :  { %v4895_v48 = vpop.f32.mrb[162].mxu1  ;;  %6919 = vmatprep.subr.bf16.mxu0 %v11953_v63 }
 0x443   :  { %v4897_v2 = vpop.f32.mrb[163].mxu1 }
 0x444   :  { %v4988_v2 = vld [vmem:[%s11912_s4 + $0x110] sm:$0xff] }
 0x446   :  { %v4900_v10 = vpop.f32.mrb[164].mxu1 }
 0x447   :  { %v6920_v32 = vpack.c.bf16 %v4900_v10, %v4895_v48  ;;  %v4902_v27 = vpop.f32.mrb[165].mxu1  ;;  %v4989_v48 = vld [vmem:[%s11912_s4 + $0x118] sm:$0xff]  ;;  %v4991_v10 = vld [vmem:[%s11912_s4 + $0x128] sm:$0xff] }
 0x448   :  { %v4993_v27 = vld [vmem:[%s11912_s4 + $0x138] sm:$0xff] }
 0x449   :  { %6921 = vmatpush1.bf16.msra.mxu0 %v6920_v32  ;;  %v4990_v32 = vld [vmem:[%s11912_s4 + $0x120] sm:$0xff] }
 0x44a   :  { %v4905_v42 = vpop.f32.mrb[166].mxu1  ;;  %6922 = vmatprep.subr.bf16.mxu0 %v11953_v63 }
 0x44b   :  { %v4907_v36 = vpop.f32.mrb[167].mxu1 }
 0x44c   :  { %v4995_v36 = vld [vmem:[%s11912_s4 + $0x148] sm:$0xff] }
 0x44e   :  { %v4910_v24 = vpop.f32.mrb[168].mxu1 }
 0x44f   :  { %v6923_v9 = vpack.c.bf16 %v4910_v24, %v4905_v42  ;;  %v4912_v50 = vpop.f32.mrb[169].mxu1  ;;  %v4992_v42 = vld [vmem:[%s11912_s4 + $0x130] sm:$0xff]  ;;  %v4994_v24 = vld [vmem:[%s11912_s4 + $0x140] sm:$0xff] }
 0x450   :  { %v4996_v50 = vld [vmem:[%s11912_s4 + $0x150] sm:$0xff] }
 0x451   :  { %6924 = vmatpush1.bf16.msra.mxu0 %v6923_v9  ;;  %v4997_v9 = vld [vmem:[%s11912_s4 + $0x158] sm:$0xff] }
 0x452   :  { %v4915_v20 = vpop.f32.mrb[170].mxu1  ;;  %6925 = vmatprep.subr.bf16.mxu0 %v11953_v63 }
 0x453   :  { %v4917_v46 = vpop.f32.mrb[171].mxu1 }
 0x454   :  { %v4998_v46 = vld [vmem:[%s11912_s4 + $0x160] sm:$0xff] }
 0x456   :  { %v4920_v1 = vpop.f32.mrb[172].mxu1 }
 0x457   :  { %v6926_v45 = vpack.c.bf16 %v4920_v1, %v4915_v20  ;;  %v4922_v26 = vpop.f32.mrb[173].mxu1  ;;  %v4999_v20 = vld [vmem:[%s11912_s4 + $0x168] sm:$0xff]  ;;  %v5001_v1 = vld [vmem:[%s11912_s4 + $0x178] sm:$0xff] }
 0x458   :  { %v5003_v26 = vld [vmem:[%s11912_s4 + $0x188] sm:$0xff] }
 0x459   :  { %6927 = vmatpush1.bf16.msra.mxu0 %v6926_v45  ;;  %v5000_v45 = vld [vmem:[%s11912_s4 + $0x170] sm:$0xff] }
 0x45a   :  { %v4925_v31 = vpop.f32.mrb[174].mxu1  ;;  %6928 = vmatprep.subr.bf16.mxu0 %v11953_v63 }
 0x45b   :  { %v4927_v29 = vpop.f32.mrb[175].mxu1 }
 0x45c   :  { %v5005_v29 = vld [vmem:[%s11912_s4 + $0x198] sm:$0xff] }
 0x45e   :  { %v4930_v35 = vpop.f32.mrb[176].mxu1 }
 0x45f   :  { %v6929_v4 = vpack.c.bf16 %v4930_v35, %v4925_v31  ;;  %v4932_v38 = vpop.f32.mrb[177].mxu1  ;;  %v5002_v31 = vld [vmem:[%s11912_s4 + $0x180] sm:$0xff]  ;;  %v5004_v35 = vld [vmem:[%s11912_s4 + $0x190] sm:$0xff] }
 0x460   :  { %v5006_v38 = vld [vmem:[%s11912_s4 + $0x1a0] sm:$0xff] }
 0x461   :  { %6930 = vmatpush1.bf16.msra.mxu0 %v6929_v4  ;;  %v5007_v4 = vld [vmem:[%s11912_s4 + $0x1a8] sm:$0xff] }
 0x462   :  { %v4935_v44 = vpop.f32.mrb[178].mxu1  ;;  %6931 = vmatprep.subr.bf16.mxu0 %v11953_v63 }
 0x463   :  { %v4937_v15 = vpop.f32.mrb[179].mxu1 }
 0x464   :  { %v5008_v15 = vld [vmem:[%s11912_s4 + $0x1b0] sm:$0xff] }
 0x466   :  { %v4940_v6 = vpop.f32.mrb[180].mxu1 }
 0x467   :  { %v6932_v53 = vpack.c.bf16 %v4940_v6, %v4935_v44  ;;  %v4942_v47 = vpop.f32.mrb[181].mxu1  ;;  %v5009_v44 = vld [vmem:[%s11912_s4 + $0x1b8] sm:$0xff]  ;;  %v5011_v6 = vld [vmem:[%s11912_s4 + $0x1c8] sm:$0xff] }
 0x468   :  { %v5013_v47 = vld [vmem:[%s11912_s4 + $0x1d8] sm:$0xff] }
 0x469   :  { %6933 = vmatpush1.bf16.msra.mxu0 %v6932_v53  ;;  %v5010_v53 = vld [vmem:[%s11912_s4 + $0x1c0] sm:$0xff] }
 0x46a   :  { %v4945_v30 = vpop.f32.mrb[182].mxu1  ;;  %6934 = vmatprep.subr.bf16.mxu0 %v11953_v63 }
 0x46b   :  { %v4947_v39 = vpop.f32.mrb[183].mxu1 }
 0x46c   :  { %v5015_v39 = vld [vmem:[%s11912_s4 + $0x1e8] sm:$0xff] }
 0x46e   :  { %v4950_v58 = vpop.f32.mrb[184].mxu1 }
 0x46f   :  { %v6935_v34 = vpack.c.bf16 %v4950_v58, %v4945_v30  ;;  %v4952_v16 = vpop.f32.mrb[185].mxu1  ;;  %v5012_v30 = vld [vmem:[%s11912_s4 + $0x1d0] sm:$0xff]  ;;  %v5014_v58 = vld [vmem:[%s11912_s4 + $0x1e0] sm:$0xff] }
 0x470   :  { %v5016_v16 = vld [vmem:[%s11912_s4 + $0x1f0] sm:$0xff] }
 0x471   :  { %6936 = vmatpush1.bf16.msra.mxu0 %v6935_v34  ;;  %v5017_v34 = vld [vmem:[%s11912_s4 + $0x1f8] sm:$0xff] }
 0x474   :  { %5339 = vmatmul.mubr.f32.vlgmr.msra.gmra.mrb[252].mxu0 %v4954_v37  ;;  %v11695_v37 = vpop.permute.xlu0 %5100 }
 0x475   :  { %6183 = vmatprep.mubr.msk.f32.mxu0 %vm4003_vm15, %v4957_v17  ;;  %v11697_v17 = vpop.permute.xlu1 %5105 }
 0x478   :  { %5344 = vmatmul.mubr.f32.gmra.mrb[254].mxu0 %v4956_v60  ;;  %v5021_v60 = vpop.permute.xlu0 %5020 }
 0x479   :  { %6184 = vmatprep.mubr.msk.f32.mxu0 %vm4003_vm15, %v4959_v3  ;;  %v5026_v3 = vpop.permute.xlu1 %5025 }
 0x47c   :  { %5349 = vmatmul.mubr.f32.gmra.mrb[0].mxu0 %v4958_v13  ;;  %v11699_v13 = vpop.permute.xlu0 %5110 }
 0x47d   :  { %6185 = vmatprep.mubr.msk.f32.mxu0 %vm4003_vm15, %v4961_v11  ;;  %v11701_v11 = vpop.permute.xlu1 %5115 }
 0x480   :  { %5354 = vmatmul.mubr.f32.gmra.mrb[2].mxu0 %v4960_v25  ;;  %v5031_v25 = vpop.permute.xlu0 %5030 }
 0x481   :  { %6186 = vmatprep.mubr.msk.f32.mxu0 %vm4003_vm15, %v4963_v22  ;;  %v5036_v22 = vpop.permute.xlu1 %5035 }
 0x484   :  { %5359 = vmatmul.mubr.f32.gmra.mrb[4].mxu0 %v4962_v57  ;;  %v11703_v57 = vpop.permute.xlu0 %5120 }
 0x485   :  { %6187 = vmatprep.mubr.msk.f32.mxu0 %vm4003_vm15, %v4965_v62  ;;  %v11705_v62 = vpop.permute.xlu1 %5125 }
 0x488   :  { %5364 = vmatmul.mubr.f32.gmra.mrb[6].mxu0 %v4964_v8  ;;  %v5041_v8 = vpop.permute.xlu0 %5040 }
 0x489   :  { %6188 = vmatprep.mubr.msk.f32.mxu0 %vm4003_vm15, %v4967_v61  ;;  %v5046_v61 = vpop.permute.xlu1 %5045 }
 0x48c   :  { %5369 = vmatmul.mubr.f32.gmra.mrb[8].mxu0 %v4966_v56 }
 0x48d   :  { %6189 = vmatprep.mubr.msk.f32.mxu0 %vm4003_vm15, %v4969_v23 }
 0x490   :  { %5374 = vmatmul.mubr.f32.gmra.mrb[10].mxu0 %v4968_v5 }
 0x491   :  { %6190 = vmatprep.mubr.msk.f32.mxu0 %vm4003_vm15, %v4971_v55  ;;  %v11707_v55 = vpop.permute.xlu0 %5130 }
 0x494   :  { %5379 = vmatmul.mubr.f32.gmra.mrb[12].mxu0 %v4970_v33 }
 0x495   :  { %6191 = vmatprep.mubr.msk.f32.mxu0 %vm4003_vm15, %v4973_v41 }
 0x498   :  { %5384 = vmatmul.mubr.f32.gmra.mrb[14].mxu0 %v4972_v49 }
 0x499   :  { %6192 = vmatprep.mubr.msk.f32.mxu0 %vm4003_vm15, %v4975_v12 }
 0x49c   :  { %5389 = vmatmul.mubr.f32.gmra.mrb[16].mxu0 %v4974_v59 }
 0x49d   :  { %6193 = vmatprep.mubr.msk.f32.mxu0 %vm4003_vm15, %v4977_v14  ;;  %v11709_v14 = vpop.permute.xlu1 %5135 }
 0x4a0   :  { %5394 = vmatmul.mubr.f32.gmra.mrb[18].mxu0 %v4976_v40 }
 0x4a1   :  { %6194 = vmatprep.mubr.msk.f32.mxu0 %vm4003_vm15, %v4979_v21  ;;  %v5051_v21 = vpop.permute.xlu0 %5050 }
 0x4a4   :  { %5399 = vmatmul.mubr.f32.gmra.mrb[20].mxu0 %v4978_v0 }
 0x4a5   :  { %6195 = vmatprep.mubr.msk.f32.mxu0 %vm4003_vm15, %v4981_v43 }
 0x4a8   :  { %5404 = vmatmul.mubr.f32.gmra.mrb[22].mxu0 %v4980_v52 }
 0x4a9   :  { %6196 = vmatprep.mubr.msk.f32.mxu0 %vm4003_vm15, %v4983_v28 }
 0x4ac   :  { %5409 = vmatmul.mubr.f32.gmra.mrb[24].mxu0 %v4982_v54 }
 0x4ad   :  { %6197 = vmatprep.mubr.msk.f32.mxu0 %vm4003_vm15, %v4985_v19  ;;  %v5056_v19 = vpop.permute.xlu1 %5055 }
 0x4b0   :  { %5414 = vmatmul.mubr.f32.gmra.mrb[26].mxu0 %v4984_v18 }
 0x4b1   :  { %6198 = vmatprep.mubr.msk.f32.mxu0 %vm4003_vm15, %v4987_v7 }
 0x4b4   :  { %5419 = vmatmul.mubr.f32.gmra.mrb[28].mxu0 %v4986_v51 }
 0x4b5   :  { %6199 = vmatprep.mubr.msk.f32.mxu0 %vm4003_vm15, %v4989_v48 }
 0x4b8   :  { %5424 = vmatmul.mubr.f32.gmra.mrb[30].mxu0 %v4988_v2  ;;  %v11711_v2 = vpop.permute.xlu0 %5140 }
 0x4b9   :  { %6200 = vmatprep.mubr.msk.f32.mxu0 %vm4003_vm15, %v4991_v10 }
 0x4bc   :  { %5429 = vmatmul.mubr.f32.gmra.mrb[32].mxu0 %v4990_v32 }
 0x4bd   :  { %6201 = vmatprep.mubr.msk.f32.mxu0 %vm4003_vm15, %v4993_v27 }
 0x4c0   :  { %5434 = vmatmul.mubr.f32.gmra.mrb[34].mxu0 %v4992_v42 }
 0x4c1   :  { %6202 = vmatprep.mubr.msk.f32.mxu0 %vm4003_vm15, %v4995_v36 }
 0x4c4   :  { %5439 = vmatmul.mubr.f32.gmra.mrb[36].mxu0 %v4994_v24 }
 0x4c5   :  { %6203 = vmatprep.mubr.msk.f32.mxu0 %vm4003_vm15, %v4997_v9  ;;  %v11715_v9 = vpop.permute.xlu1 %5145 }
 0x4c8   :  { %5444 = vmatmul.mubr.f32.gmra.mrb[38].mxu0 %v4996_v50 }
 0x4c9   :  { %6204 = vmatprep.mubr.msk.f32.mxu0 %vm4003_vm15, %v4999_v20  ;;  %v5061_v20 = vpop.permute.xlu0 %5060 }
 0x4cc   :  { %5449 = vmatmul.mubr.f32.gmra.mrb[40].mxu0 %v4998_v46 }
 0x4cd   :  { %6205 = vmatprep.mubr.msk.f32.mxu0 %vm4003_vm15, %v5001_v1 }
 0x4d0   :  { %5454 = vmatmul.mubr.f32.gmra.mrb[42].mxu0 %v5000_v45  ;;  %v5692_v45 = vld [vmem:[%s11913_s5 + $0x8] sm:$0xff] }
 0x4d1   :  { %6206 = vmatprep.mubr.msk.f32.mxu0 %vm4003_vm15, %v5003_v26 }
 0x4d4   :  { %5459 = vmatmul.mubr.f32.gmra.mrb[44].mxu0 %v5002_v31 }
 0x4d5   :  { %6207 = vmatprep.mubr.msk.f32.mxu0 %vm4003_vm15, %v5005_v29 }
 0x4d8   :  { %5464 = vmatmul.mubr.f32.gmra.mrb[46].mxu0 %v5004_v35 }
 0x4d9   :  { %6208 = vmatprep.mubr.msk.f32.mxu0 %vm4003_vm15, %v5007_v4 }
 0x4dc   :  { %5469 = vmatmul.mubr.f32.gmra.mrb[48].mxu0 %v5006_v38 }
 0x4dd   :  { %6209 = vmatprep.mubr.msk.f32.mxu0 %vm4003_vm15, %v5009_v44  ;;  %v5066_v44 = vpop.permute.xlu1 %5065 }
 0x4e0   :  { %5474 = vmatmul.mubr.f32.gmra.mrb[50].mxu0 %v5008_v15 }
 0x4e1   :  { %6210 = vmatprep.mubr.msk.f32.mxu0 %vm4003_vm15, %v5011_v6 }
 0x4e4   :  { %5479 = vmatmul.mubr.f32.gmra.mrb[52].mxu0 %v5010_v53 }
 0x4e5   :  { %6211 = vmatprep.mubr.msk.f32.mxu0 %vm4003_vm15, %v5013_v47 }
 0x4e8   :  { %5484 = vmatmul.mubr.f32.gmra.mrb[54].mxu0 %v5012_v30 }
 0x4e9   :  { %6212 = vmatprep.mubr.msk.f32.mxu0 %vm4003_vm15, %v5015_v39 }
 0x4ec   :  { %5489 = vmatmul.mubr.f32.gmra.mrb[56].mxu0 %v5014_v58 }
 0x4ed   :  { %6213 = vmatprep.mubr.msk.f32.mxu0 %vm4003_vm15, %v5017_v34 }
 0x4f0   :  { %5494 = vmatmul.mubr.f32.gmra.mrb[58].mxu0 %v5016_v16  ;;  %v11729_v16 = vpop.permute.xlu0 %5150 }
 0x4f1   :  { %5763 = vmatprep.mubr.f32.mxu0 %v5692_v45 }
 0x547   :  { %v5340_v56 = vpop.f32.mrb[252].mxu0 }
 0x548   :  { %v5341_v23 = vadd.f32 %v5340_v56, %v5021_v60  ;;  %v5342_v5 = vpop.f32.mrb[253].mxu0 }
 0x54a   :  { %v5531_v33 = vmin.f32 %v5341_v23, 0.0  ;;  %vm5499_vm0 = vcmp.gt.f32.partialorder %v5341_v23, 0.0 }
 0x54b   :  { %v5345_v41 = vpop.f32.mrb[254].mxu0 }
 0x54c   :  { %v5563_v49 = vmul.f32 1.442695, %v5531_v33  ;;  %v5346_v12 = vadd.f32 %v5345_v41, %v5026_v3  ;;  %v5347_v59 = vpop.f32.mrb[255].mxu0  ;;  %v5071_v41 = vpop.permute.xlu0 %5070 }
 0x54e   :  { %7417 = vpow2.f32 %v5563_v49  ;;  %v5532_v40 = vmin.f32 %v5346_v12, 0.0  ;;  %vm5500_vm1 = vcmp.gt.f32.partialorder %v5346_v12, 0.0 }
 0x54f   :  { %v5350_v0 = vpop.f32.mrb[0].mxu0 }
 0x550   :  { %v5565_v43 = vmul.f32 1.442695, %v5532_v40  ;;  %v5351_v52 = vadd.f32 %v5350_v0, %v5031_v25  ;;  %v5352_v28 = vpop.f32.mrb[1].mxu0 }
 0x552   :  { %7419 = vpow2.f32 %v5565_v43  ;;  %v5533_v54 = vmin.f32 %v5351_v52, 0.0  ;;  %vm5501_vm2 = vcmp.gt.f32.partialorder %v5351_v52, 0.0 }
 0x553   :  { %v5355_v18 = vpop.f32.mrb[2].mxu0 }
 0x554   :  { %v5567_v7 = vmul.f32 1.442695, %v5533_v54  ;;  %v5356_v51 = vadd.f32 %v5355_v18, %v5036_v22  ;;  %v5357_v48 = vpop.f32.mrb[3].mxu0 }
 0x556   :  { %7421 = vpow2.f32 %v5567_v7  ;;  %v5534_v10 = vmin.f32 %v5356_v51, 0.0  ;;  %vm5502_vm3 = vcmp.gt.f32.partialorder %v5356_v51, 0.0 }
 0x557   :  { %v5360_v32 = vpop.f32.mrb[4].mxu0 }
 0x558   :  { %v7418_v27 = vpop.eup %7417  ;;  %v5569_v42 = vmul.f32 1.442695, %v5534_v10  ;;  %v11713_v36 = vadd.f32 %v5360_v32, %v5041_v8  ;;  %v5362_v24 = vpop.f32.mrb[5].mxu0 }
 0x559   :  { %v6214_v46 = vadd.f32 -1.0, %v7418_v27  ;;  %v11743_v32 = vpop.permute.xlu0 %5160 }
 0x55a   :  { %7423 = vpow2.f32 %v5569_v42  ;;  %v5535_v50 = vmin.f32 %v11713_v36, 0.0  ;;  %vm5503_vm4 = vcmp.gt.f32.partialorder %v11713_v36, 0.0 }
 0x55b   :  { %v5365_v1 = vpop.f32.mrb[6].mxu0  ;;  %v11721_v15 = vsel %vm5499_vm0, %v5341_v23, %v6214_v46  ;;  %v11732_v23 = vpop.permute.xlu1 %5155 }
 0x55c   :  { %v7420_v26 = vpop.eup %7419  ;;  %v5571_v31 = vmul.f32 1.442695, %v5535_v50  ;;  %v5366_v29 = vadd.f32 %v5365_v1, %v5046_v61  ;;  %v5367_v35 = vpop.f32.mrb[7].mxu0 }
 0x55d   :  { %v6215_v4 = vadd.f32 -1.0, %v7420_v26 }
 0x55e   :  { %7425 = vpow2.f32 %v5571_v31  ;;  %v5536_v38 = vmin.f32 %v5366_v29, 0.0  ;;  %vm5504_vm5 = vcmp.gt.f32.partialorder %v5366_v29, 0.0 }
 0x55f   :  { %v11723_v6 = vsel %vm5500_vm1, %v5346_v12, %v6215_v4  ;;  %v5370_v53 = vpop.f32.mrb[8].mxu0 }
 0x560   :  { %v7422_v47 = vpop.eup %7421  ;;  %v6939_v30 = vpack.c.bf16 %v11723_v6, %v11721_v15  ;;  %v5573_v39 = vmul.f32 1.442695, %v5536_v38  ;;  %v11727_v58 = vadd.f32 %v5370_v53, %v5051_v21  ;;  %v5372_v34 = vpop.f32.mrb[9].mxu0 }
 0x561   :  { %v6216_v3 = vadd.f32 -1.0, %v7422_v47  ;;  %v5081_v38 = vpop.permute.xlu0 %5080 }
 0x562   :  { %7427 = vpow2.f32 %v5573_v39  ;;  %v5537_v60 = vmin.f32 %v11727_v58, 0.0  ;;  %vm5505_vm6 = vcmp.gt.f32.partialorder %v11727_v58, 0.0 }
 0x563   :  { %v5375_v25 = vpop.f32.mrb[10].mxu0  ;;  %v11734_v49 = vsel %vm5501_vm2, %v5351_v52, %v6216_v3 }
 0x564   :  { %v7424_v22 = vpop.eup %7423  ;;  %v5575_v8 = vmul.f32 1.442695, %v5537_v60  ;;  %v5376_v61 = vadd.f32 %v5375_v25, %v5056_v19  ;;  %v5377_v56 = vpop.f32.mrb[11].mxu0 }
 0x565   :  { %v6217_v5 = vadd.f32 -1.0, %v7424_v22  ;;  %v5076_v19 = vpop.permute.xlu1 %5075 }
 0x566   :  { %7429 = vpow2.f32 %v5575_v8  ;;  %v5538_v33 = vmin.f32 %v5376_v61, 0.0  ;;  %vm5506_vm7 = vcmp.gt.f32.partialorder %v5376_v61, 0.0 }
 0x567   :  { %v11736_v12 = vsel %vm5502_vm3, %v5356_v51, %v6217_v5  ;;  %v5380_v59 = vpop.f32.mrb[12].mxu0 }
 0x568   :  { %v7426_v40 = vpop.eup %7425  ;;  %v6943_v21 = vpack.c.bf16 %v11736_v12, %v11734_v49  ;;  %v5577_v0 = vmul.f32 1.442695, %v5538_v33  ;;  %v11740_v43 = vadd.f32 %v5380_v59, %v5061_v20  ;;  %v5382_v28 = vpop.f32.mrb[13].mxu0 }
 0x569   :  { %v6218_v18 = vadd.f32 -1.0, %v7426_v40  ;;  %v11755_v35 = vpop.permute.xlu1 %5165  ;;  %v11766_v40 = vpop.permute.xlu0 %5170 }
 0x56a   :  { %7431 = vpow2.f32 %v5577_v0  ;;  %v5539_v54 = vmin.f32 %v11740_v43, 0.0  ;;  %vm5507_vm8 = vcmp.gt.f32.partialorder %v11740_v43, 0.0 }
 0x56b   :  { %v5385_v7 = vpop.f32.mrb[14].mxu0  ;;  %v11747_v24 = vsel %vm5503_vm4, %v11713_v36, %v6218_v18 }
 0x56c   :  { %v7428_v48 = vpop.eup %7427  ;;  %v5579_v52 = vmul.f32 1.442695, %v5539_v54  ;;  %v5386_v10 = vadd.f32 %v5385_v7, %v5066_v44  ;;  %v5387_v51 = vpop.f32.mrb[15].mxu0 }
 0x56d   :  { %v6219_v27 = vadd.f32 -1.0, %v7428_v48  ;;  %v5086_v3 = vpop.permute.xlu1 %5085  ;;  %v5091_v51 = vpop.permute.xlu0 %5090 }
 0x56e   :  { %7433 = vpow2.f32 %v5579_v52  ;;  %v5540_v42 = vmin.f32 %v5386_v10, 0.0  ;;  %vm5508_vm9 = vcmp.gt.f32.partialorder %v5386_v10, 0.0 }
 0x56f   :  { %v11749_v50 = vsel %vm5504_vm5, %v5366_v29, %v6219_v27  ;;  %v5390_v20 = vpop.f32.mrb[16].mxu0 }
 0x570   :  { %v7430_v46 = vpop.eup %7429  ;;  %v6947_v1 = vpack.c.bf16 %v11749_v50, %v11747_v24  ;;  %v5581_v45 = vmul.f32 1.442695, %v5540_v42  ;;  %v11753_v26 = vadd.f32 %v5390_v20, %v5071_v41  ;;  %v5392_v31 = vpop.f32.mrb[17].mxu0 }
 0x571   :  { %v6220_v44 = vadd.f32 -1.0, %v7430_v46 }
 0x572   :  { %7435 = vpow2.f32 %v5581_v45  ;;  %v5541_v4 = vmin.f32 %v11753_v26, 0.0  ;;  %vm5509_vm10 = vcmp.gt.f32.partialorder %v11753_v26, 0.0 }
 0x573   :  { %v5395_v36 = vpop.f32.mrb[18].mxu0  ;;  %v11760_v25 = vsel %vm5505_vm6, %v11727_v58, %v6220_v44 }
 0x574   :  { %v7432_v53 = vpop.eup %7431  ;;  %v5583_v29 = vmul.f32 1.442695, %v5541_v4  ;;  %v5396_v47 = vadd.f32 %v5395_v36, %v5076_v19  ;;  %v5397_v39 = vpop.f32.mrb[19].mxu0 }
 0x575   :  { %v6221_v34 = vadd.f32 -1.0, %v7432_v53 }
 0x576   :  { %7437 = vpow2.f32 %v5583_v29  ;;  %v5542_v60 = vmin.f32 %v5396_v47, 0.0  ;;  %vm5510_vm11 = vcmp.gt.f32.partialorder %v5396_v47, 0.0 }
 0x577   :  { %v11762_v22 = vsel %vm5506_vm7, %v5376_v61, %v6221_v34  ;;  %v5400_v8 = vpop.f32.mrb[20].mxu0  ;;  %v11768_v61 = vpop.permute.xlu1 %5175 }
 0x578   :  { %v7434_v56 = vpop.eup %7433  ;;  %v6951_v5 = vpack.c.bf16 %v11762_v22, %v11760_v25  ;;  %v5585_v33 = vmul.f32 1.442695, %v5542_v60  ;;  %v5401_v41 = vadd.f32 %v5400_v8, %v5081_v38  ;;  %v5402_v59 = vpop.f32.mrb[21].mxu0 }
 0x579   :  { %v6222_v28 = vadd.f32 -1.0, %v7434_v56 }
 0x57a   :  { %7439 = vpow2.f32 %v5585_v33  ;;  %v5543_v0 = vmin.f32 %v5401_v41, 0.0  ;;  %vm5511_vm12 = vcmp.gt.f32.partialorder %v5401_v41, 0.0 }
 0x57b   :  { %v5405_v54 = vpop.f32.mrb[22].mxu0  ;;  %v11772_v27 = vsel %vm5507_vm8, %v11740_v43, %v6222_v28  ;;  %v5096_v36 = vpop.permute.xlu1 %5095 }
 0x57c   :  { %v7436_v19 = vpop.eup %7435  ;;  %v5587_v18 = vmul.f32 1.442695, %v5543_v0  ;;  %v5406_v58 = vadd.f32 %v5405_v54, %v5086_v3  ;;  %v5407_v7 = vpop.f32.mrb[23].mxu0 }
 0x57d   :  { %v6223_v48 = vadd.f32 -1.0, %v7436_v19 }
 0x57e   :  { %7441 = vpow2.f32 %v5587_v18  ;;  %v5544_v52 = vmin.f32 %v5406_v58, 0.0  ;;  %vm5512_vm13 = vcmp.gt.f32.partialorder %v5406_v58, 0.0 }
 0x57f   :  { %v11774_v42 = vsel %vm5508_vm9, %v5386_v10, %v6223_v48  ;;  %v5410_v20 = vpop.f32.mrb[24].mxu0 }
 0x580   :  { %v7438_v46 = vpop.eup %7437  ;;  %v6955_v45 = vpack.c.bf16 %v11774_v42, %v11772_v27  ;;  %v5589_v31 = vmul.f32 1.442695, %v5544_v52  ;;  %v5411_v4 = vadd.f32 %v5410_v20, %v5091_v51  ;;  %v5412_v38 = vpop.f32.mrb[25].mxu0 }
 0x581   :  { %v6224_v53 = vadd.f32 -1.0, %v7438_v46 }
 0x582   :  { %7443 = vpow2.f32 %v5589_v31  ;;  %v5545_v44 = vmin.f32 %v5411_v4, 0.0  ;;  %vm5513_vm14 = vcmp.gt.f32.partialorder %v5411_v4, 0.0 }
 0x583   :  { %v5415_v29 = vpop.f32.mrb[26].mxu0  ;;  %v11780_v8 = vsel %vm5509_vm10, %v11753_v26, %v6224_v53 }
 0x584   :  { %v7440_v39 = vpop.eup %7439  ;;  %v5591_v34 = vmul.f32 1.442695, %v5545_v44  ;;  %v5416_v60 = vadd.f32 %v5415_v29, %v5096_v36  ;;  %v5417_v43 = vpop.f32.mrb[27].mxu0 }
 0x585   :  { %v6225_v3 = vadd.f32 -1.0, %v7440_v39 }
 0x586   :  { %7445 = vpow2.f32 %v5591_v34  ;;  %v5546_v10 = vmin.f32 %v5416_v60, 0.0  ;;  %vm5514_vm15 = vcmp.gt.f32.partialorder %v5416_v60, 0.0 }
 0x587   :  { %v11782_v56 = vsel %vm5510_vm11, %v5396_v47, %v6225_v3  ;;  %v5420_v33 = vpop.f32.mrb[28].mxu0 }
 0x588   :  { %v7442_v59 = vpop.eup %7441  ;;  %v6959_v0 = vpack.c.bf16 %v11782_v56, %v11780_v8  ;;  %v5593_v28 = vmul.f32 1.442695, %v5546_v10  ;;  %v5421_v54 = vadd.f32 %v5420_v33, %v11695_v37  ;;  %v5422_v19 = vpop.f32.mrb[29].mxu0 }
 0x589   :  { %v6226_v7 = vadd.f32 -1.0, %v7442_v59 }
 0x58a   :  { %7447 = vpow2.f32 %v5593_v28  ;;  %v5547_v18 = vmin.f32 %v5421_v54, 0.0  ;;  %vm5515_vm0 = vcmp.gt.f32.partialorder %v5421_v54, 0.0 }
 0x58b   :  { %v5425_v48 = vpop.f32.mrb[30].mxu0  ;;  %v11788_v31 = vsel %vm5511_vm12, %v5401_v41, %v6226_v7 }
 0x58c   :  { %v7444_v52 = vpop.eup %7443  ;;  %v5595_v51 = vmul.f32 1.442695, %v5547_v18  ;;  %v5426_v26 = vadd.f32 %v5425_v48, %v11697_v17  ;;  %v5427_v20 = vpop.f32.mrb[31].mxu0 }
 0x58d   :  { %v6227_v47 = vadd.f32 -1.0, %v7444_v52 }
 0x58e   :  { %7449 = vpow2.f32 %v5595_v51  ;;  %v5548_v46 = vmin.f32 %v5426_v26, 0.0  ;;  %vm5516_vm1 = vcmp.gt.f32.partialorder %v5426_v26, 0.0 }
 0x58f   :  { %v11790_v38 = vsel %vm5512_vm13, %v5406_v58, %v6227_v47  ;;  %v5430_v37 = vpop.f32.mrb[32].mxu0 }
 0x590   :  { %v7446_v44 = vpop.eup %7445  ;;  %v6963_v36 = vpack.c.bf16 %v11790_v38, %v11788_v31  ;;  %v5597_v53 = vmul.f32 1.442695, %v5548_v46  ;;  %v5431_v29 = vadd.f32 %v5430_v37, %v11699_v13  ;;  %v5432_v39 = vpop.f32.mrb[33].mxu0  ;;  %v5694_v31 = vld [vmem:[%s11913_s5 + $0x18] sm:$0xff]  ;;  %v5693_v38 = vld [vmem:[%s11913_s5 + $0x10] sm:$0xff] }
 0x591   :  { %v6228_v34 = vadd.f32 -1.0, %v7446_v44 }
 0x592   :  { %7451 = vpow2.f32 %v5597_v53  ;;  %v5549_v17 = vmin.f32 %v5431_v29, 0.0  ;;  %vm5517_vm2 = vcmp.gt.f32.partialorder %v5431_v29, 0.0 }
 0x593   :  { %v5435_v43 = vpop.f32.mrb[34].mxu0  ;;  %v11796_v28 = vsel %vm5513_vm14, %v5411_v4, %v6228_v34 }
 0x594   :  { %v7448_v3 = vpop.eup %7447  ;;  %v5599_v10 = vmul.f32 1.442695, %v5549_v17  ;;  %v5436_v41 = vadd.f32 %v5435_v43, %v11701_v11  ;;  %v5437_v33 = vpop.f32.mrb[35].mxu0 }
 0x595   :  { %v6229_v58 = vadd.f32 -1.0, %v7448_v3 }
 0x596   :  { %7453 = vpow2.f32 %v5599_v10  ;;  %v5550_v59 = vmin.f32 %v5436_v41, 0.0  ;;  %vm5518_vm3 = vcmp.gt.f32.partialorder %v5436_v41, 0.0 }
 0x597   :  { %v11798_v19 = vsel %vm5514_vm15, %v5416_v60, %v6229_v58  ;;  %v5440_v13 = vpop.f32.mrb[36].mxu0 }
 0x598   :  { %v7450_v18 = vpop.eup %7449  ;;  %v6967_v7 = vpack.c.bf16 %v11798_v19, %v11796_v28  ;;  %v5601_v48 = vmul.f32 1.442695, %v5550_v59  ;;  %v11803_v52 = vadd.f32 %v5440_v13, %v11703_v57  ;;  %v5442_v11 = vpop.f32.mrb[37].mxu0  ;;  %v5695_v28 = vld [vmem:[%s11913_s5 + $0x20] sm:$0xff]  ;;  %v5698_v19 = vld [vmem:[%s11913_s5 + $0x38] sm:$0xff] }
 0x599   :  { %v6230_v20 = vadd.f32 -1.0, %v7450_v18 }
 0x59a   :  { %7455 = vpow2.f32 %v5601_v48  ;;  %v5551_v51 = vmin.f32 %v11803_v52, 0.0  ;;  %vm5519_vm4 = vcmp.gt.f32.partialorder %v11803_v52, 0.0 }
 0x59b   :  { %v5445_v47 = vpop.f32.mrb[38].mxu0  ;;  %v5675_v17 = vsel %vm5515_vm0, %v5421_v54, %v6230_v20  ;;  %vm7531_vm0 = vmmov 0  }
 0x59c   :  { %v7452_v46 = vpop.eup %7451  ;;  %v5603_v4 = vmul.f32 1.442695, %v5551_v51  ;;  %v5446_v60 = vadd.f32 %v5445_v47, %v11705_v62  ;;  %v5447_v37 = vpop.f32.mrb[39].mxu0 }
 0x59d   :  { %v6231_v44 = vadd.f32 -1.0, %v7452_v46 }
 0x59e   :  { %7457 = vpow2.f32 %v5603_v4  ;;  %v5552_v53 = vmin.f32 %v5446_v60, 0.0  ;;  %vm5520_vm5 = vcmp.gt.f32.partialorder %v5446_v60, 0.0 }
 0x59f   :  { %v5450_v39 = vpop.f32.mrb[40].mxu0  ;;  %v5676_v57 = vsel %vm5516_vm1, %v5426_v26, %v6231_v44  ;;  %vm5795_vm1 = vcmask 261120  }
 0x5a0   :  { %v7454_v34 = vpop.eup %7453  ;;  %v5605_v43 = vmul.f32 1.442695, %v5552_v53  ;;  %v11808_v3 = vadd.f32 %v5450_v39, %v11707_v55  ;;  %v5452_v10 = vpop.f32.mrb[41].mxu0  ;;  %v6937_v33 = vpack.c.bf16 %v5676_v57, %v5675_v17 }
 0x5a1   :  { %v6232_v62 = vadd.f32 -1.0, %v7454_v34 }
 0x5a2   :  { %7459 = vpow2.f32 %v5605_v43  ;;  %v5553_v58 = vmin.f32 %v11808_v3, 0.0  ;;  %6938 = vmatprep.subr.bf16.mxu0 %v6937_v33  ;;  %vm5521_vm6 = vcmp.gt.f32.partialorder %v11808_v3, 0.0 }
 0x5a3   :  { %v5455_v59 = vpop.f32.mrb[42].mxu0  ;;  %6940 = vmatpush3.bf16.msra.mxu0 %v6939_v30  ;;  %v5677_v51 = vsel %vm5517_vm2, %v5431_v29, %v6232_v62 }
 0x5a4   :  { %v7456_v13 = vpop.eup %7455  ;;  %v5607_v54 = vmul.f32 1.442695, %v5553_v58  ;;  %v5456_v26 = vadd.f32 %v5455_v59, %v11709_v14  ;;  %v5457_v18 = vpop.f32.mrb[43].mxu0 }
 0x5a5   :  { %v6233_v48 = vadd.f32 -1.0, %v7456_v13 }
 0x5a6   :  { %7461 = vpow2.f32 %v5607_v54  ;;  %v5554_v55 = vmin.f32 %v5456_v26, 0.0  ;;  %vm5522_vm7 = vcmp.gt.f32.partialorder %v5456_v26, 0.0 }
 0x5a7   :  { %v5460_v11 = vpop.f32.mrb[44].mxu0  ;;  %v5678_v20 = vsel %vm5518_vm3, %v5436_v41, %v6233_v48 }
 0x5a8   :  { %v7458_v47 = vpop.eup %7457  ;;  %v5609_v46 = vmul.f32 1.442695, %v5554_v55  ;;  %v11816_v4 = vadd.f32 %v5460_v11, %v11711_v2  ;;  %v5462_v15 = vpop.f32.mrb[45].mxu0  ;;  %v6941_v6 = vpack.c.bf16 %v5678_v20, %v5677_v51 }
 0x5a9   :  { %v6234_v14 = vadd.f32 -1.0, %v7458_v47 }
 0x5aa   :  { %7463 = vpow2.f32 %v5609_v46  ;;  %v5555_v30 = vmin.f32 %v11816_v4, 0.0  ;;  %6942 = vmatprep.subr.bf16.mxu0 %v6941_v6  ;;  %vm5523_vm8 = vcmp.gt.f32.partialorder %v11816_v4, 0.0 }
 0x5ab   :  { %v5465_v37 = vpop.f32.mrb[46].mxu0  ;;  %6944 = vmatpush3.bf16.msra.mxu0 %v6943_v21  ;;  %v5679_v57 = vsel %vm5519_vm4, %v11803_v52, %v6234_v14 }
 0x5ac   :  { %v7460_v44 = vpop.eup %7459  ;;  %v5611_v29 = vmul.f32 1.442695, %v5555_v30  ;;  %v5466_v41 = vadd.f32 %v5465_v37, %v11715_v9  ;;  %v5467_v53 = vpop.f32.mrb[47].mxu0 }
 0x5ad   :  { %v6235_v39 = vadd.f32 -1.0, %v7460_v44 }
 0x5ae   :  { %7465 = vpow2.f32 %v5611_v29  ;;  %v5556_v2 = vmin.f32 %v5466_v41, 0.0  ;;  %vm5524_vm9 = vcmp.gt.f32.partialorder %v5466_v41, 0.0 }
 0x5af   :  { %v5470_v17 = vpop.f32.mrb[48].mxu0  ;;  %v5680_v34 = vsel %vm5520_vm5, %v5446_v60, %v6235_v39 }
 0x5b0   :  { %v7462_v43 = vpop.eup %7461  ;;  %v5613_v10 = vmul.f32 1.442695, %v5556_v2  ;;  %v11826_v49 = vadd.f32 %v5470_v17, %v11729_v16  ;;  %v5472_v12 = vpop.f32.mrb[49].mxu0  ;;  %v6945_v21 = vpack.c.bf16 %v5680_v34, %v5679_v57 }
 0x5b1   :  { %v6236_v33 = vadd.f32 -1.0, %v7462_v43 }
 0x5b2   :  { %7467 = vpow2.f32 %v5613_v10  ;;  %v5557_v9 = vmin.f32 %v11826_v49, 0.0  ;;  %6946 = vmatprep.subr.bf16.mxu0 %v6945_v21  ;;  %vm5525_vm10 = vcmp.gt.f32.partialorder %v11826_v49, 0.0 }
 0x5b3   :  { %v5475_v58 = vpop.f32.mrb[50].mxu0  ;;  %6948 = vmatpush3.bf16.msra.mxu0 %v6947_v1  ;;  %v5681_v18 = vsel %vm5521_vm6, %v11808_v3, %v6236_v33 }
 0x5b4   :  { %v7464_v62 = vpop.eup %7463  ;;  %v5615_v52 = vmul.f32 1.442695, %v5557_v9  ;;  %v5476_v60 = vadd.f32 %v5475_v58, %v11732_v23  ;;  %v5477_v59 = vpop.f32.mrb[51].mxu0 }
 0x5b5   :  { %v6237_v13 = vadd.f32 -1.0, %v7464_v62 }
 0x5b6   :  { %7469 = vpow2.f32 %v5615_v52  ;;  %v5558_v16 = vmin.f32 %v5476_v60, 0.0  ;;  %vm5526_vm11 = vcmp.gt.f32.partialorder %v5476_v60, 0.0  ;;  %v5691_v52 = vld [vmem:[%s11913_s5] sm:$0xff] }
 0x5b7   :  { %v5480_v54 = vpop.f32.mrb[52].mxu0  ;;  %v5682_v48 = vsel %vm5522_vm7, %v5456_v26, %v6237_v13 }
 0x5b8   :  { %v7466_v55 = vpop.eup %7465  ;;  %v5617_v11 = vmul.f32 1.442695, %v5558_v16  ;;  %v5481_v24 = vadd.f32 %v5480_v54, %v11743_v32  ;;  %v5482_v50 = vpop.f32.mrb[53].mxu0  ;;  %v6949_v1 = vpack.c.bf16 %v5682_v48, %v5681_v18 }
 0x5b9   :  { %v6238_v23 = vadd.f32 -1.0, %v7466_v55 }
 0x5ba   :  { %7471 = vpow2.f32 %v5617_v11  ;;  %v5559_v51 = vmin.f32 %v5481_v24, 0.0  ;;  %6950 = vmatprep.subr.bf16.mxu0 %v6949_v1  ;;  %vm5527_vm12 = vcmp.gt.f32.partialorder %v5481_v24, 0.0 }
 0x5bb   :  { %v5485_v20 = vpop.f32.mrb[54].mxu0  ;;  %6952 = vmatpush3.bf16.msra.mxu0 %v6951_v5  ;;  %v5683_v30 = vsel %vm5523_vm8, %v11816_v4, %v6238_v23 }
 0x5bc   :  { %v7468_v47 = vpop.eup %7467  ;;  %v5619_v46 = vmul.f32 1.442695, %v5559_v51  ;;  %v5486_v3 = vadd.f32 %v5485_v20, %v11755_v35  ;;  %v5487_v26 = vpop.f32.mrb[55].mxu0 }
 0x5bd   :  { %v6239_v15 = vadd.f32 -1.0, %v7468_v47  ;;  %v5788_v47 = vld [vmem:[%s11914_s6] sm:$0xff] }
 0x5be   :  { %7473 = vpow2.f32 %v5619_v46  ;;  %v5560_v32 = vmin.f32 %v5486_v3, 0.0  ;;  %vm5528_vm13 = vcmp.gt.f32.partialorder %v5486_v3, 0.0 }
 0x5bf   :  { %v5490_v6 = vpop.f32.mrb[56].mxu0  ;;  %v5684_v14 = vsel %vm5524_vm9, %v5466_v41, %v6239_v15 }
 0x5c0   :  { %v7470_v37 = vpop.eup %7469  ;;  %v5621_v44 = vmul.f32 1.442695, %v5560_v32  ;;  %v5491_v25 = vadd.f32 %v5490_v6, %v11766_v40  ;;  %v5492_v22 = vpop.f32.mrb[57].mxu0  ;;  %v6953_v5 = vpack.c.bf16 %v5684_v14, %v5683_v30 }
 0x5c1   :  { %v6240_v35 = vadd.f32 -1.0, %v7470_v37 }
 0x5c2   :  { %7475 = vpow2.f32 %v5621_v44  ;;  %v5561_v29 = vmin.f32 %v5491_v25, 0.0  ;;  %6954 = vmatprep.subr.bf16.mxu0 %v6953_v5  ;;  %vm5529_vm14 = vcmp.gt.f32.partialorder %v5491_v25, 0.0 }
 0x5c3   :  { %v5495_v53 = vpop.f32.mrb[58].mxu0  ;;  %6956 = vmatpush3.bf16.msra.mxu0 %v6955_v45  ;;  %v5685_v57 = vsel %vm5525_vm10, %v11826_v49, %v6240_v35 }
 0x5c4   :  { %v7472_v39 = vpop.eup %7471  ;;  %v5623_v2 = vmul.f32 1.442695, %v5561_v29  ;;  %v5496_v4 = vadd.f32 %v5495_v53, %v11768_v61  ;;  %v5497_v41 = vpop.f32.mrb[59].mxu0 }
 0x5c5   :  { %v6241_v17 = vadd.f32 -1.0, %v7472_v39 }
 0x5c6   :  { %7477 = vpow2.f32 %v5623_v2  ;;  %v5562_v40 = vmin.f32 %v5496_v4, 0.0  ;;  %vm5530_vm15 = vcmp.gt.f32.partialorder %v5496_v4, 0.0 }
 0x5c7   :  { %v5686_v34 = vsel %vm5526_vm11, %v5476_v60, %v6241_v17  ;;  %v7532_v60 = vmov 0.0  }
 0x5c8   :  { %v7474_v43 = vpop.eup %7473  ;;  %v5625_v10 = vmul.f32 1.442695, %v5562_v40  ;;  %v6957_v12 = vpack.c.bf16 %v5686_v34, %v5685_v57 }
 0x5c9   :  { %v6242_v27 = vadd.f32 -1.0, %v7474_v43 }
 0x5ca   :  { %7479 = vpow2.f32 %v5625_v10  ;;  %6958 = vmatprep.subr.bf16.mxu0 %v6957_v12 }
 0x5cb   :  { %6960 = vmatpush3.bf16.msra.mxu0 %v6959_v0  ;;  %v5687_v45 = vsel %vm5527_vm12, %v5481_v24, %v6242_v27 }
 0x5cc   :  { %v7476_v61 = vpop.eup %7475 }
 0x5cd   :  { %v6243_v42 = vadd.f32 -1.0, %v7476_v61 }
 0x5cf   :  { %v5688_v21 = vsel %vm5528_vm13, %v5486_v3, %v6243_v42 }
 0x5d0   :  { %v7478_v9 = vpop.eup %7477  ;;  %v6961_v33 = vpack.c.bf16 %v5688_v21, %v5687_v45 }
 0x5d1   :  { %v6244_v49 = vadd.f32 -1.0, %v7478_v9 }
 0x5d2   :  { %6962 = vmatprep.subr.bf16.mxu0 %v6961_v33 }
 0x5d3   :  { %6964 = vmatpush3.bf16.msra.mxu0 %v6963_v36  ;;  %v5689_v8 = vsel %vm5529_vm14, %v5491_v25, %v6244_v49  ;;  %v5696_v36 = vld [vmem:[%s11913_s5 + $0x28] sm:$0xff] }
 0x5d4   :  { %v7480_v58 = vpop.eup %7479 }
 0x5d5   :  { %v6245_v62 = vadd.f32 -1.0, %v7480_v58 }
 0x5d7   :  { %v5690_v56 = vsel %vm5530_vm15, %v5496_v4, %v6245_v62 }
 0x5d8   :  { %v6965_v0 = vpack.c.bf16 %v5690_v56, %v5689_v8 }
 0x5da   :  { %6966 = vmatprep.subr.bf16.mxu0 %v6965_v0 }
 0x5db   :  { %6968 = vmatpush3.bf16.msra.mxu0 %v6967_v7  ;;  %v5697_v7 = vld [vmem:[%s11913_s5 + $0x30] sm:$0xff] }
 0x5dc   :  { %6969 = vmatprep.subr.bf16.mxu0 %v11953_v63 }
 0x5de   :  { %5764 = vmatmul.mubr.f32.vlgmr.msra.gmra.mrb[60].mxu0 %v5691_v52 }
 0x5df   :  { %5768 = vmatprep.mubr.f32.mxu0 %v5694_v31 }
 0x5e2   :  { %5769 = vmatmul.mubr.f32.gmra.mrb[62].mxu0 %v5693_v38 }
 0x5e3   :  { %5773 = vmatprep.mubr.f32.mxu0 %v5696_v36 }
 0x5e6   :  { %5774 = vmatmul.mubr.f32.gmra.mrb[64].mxu0 %v5695_v28 }
 0x5e7   :  { %5778 = vmatprep.mubr.f32.mxu0 %v5698_v19 }
 0x5ea   :  { %5779 = vmatmul.mubr.f32.gmra.mrb[66].mxu0 %v5697_v7 }
 0x5eb   :  { %6640 = vmatprep.mubr.msk.f32.mxu0 %vm7531_vm0, %v7532_v60 }
 0x6b1   :  { %v6412_v59 = vpop.f32.mrb[60].mxu0 }
 0x6b2   :  { %v6413_v13 = vpop.f32.mrb[61].mxu0 }
 0x6b3   :  { %v6414_v16 = vadd.f32 %v6413_v13, %v6412_v59 }
 0x6b5   :  { %5784 = vst [vmem:[#allocation2] sm:$0xff] %v6414_v16  ;;  %v6415_v54 = vpop.f32.mrb[62].mxu0 }
 0x6b6   :  { %v6416_v18 = vpop.f32.mrb[63].mxu0 }
 0x6b7   :  { %v6417_v48 = vadd.f32 %v6416_v18, %v6415_v54 }
 0x6b9   :  { %5785 = vst [vmem:[#allocation2 + $0x8] sm:$0xff] %v6417_v48  ;;  %v6970_v55 = vpack.c.bf16 %v6417_v48, %v6414_v16  ;;  %v6418_v11 = vpop.f32.mrb[64].mxu0 }
 0x6ba   :  { %v6419_v24 = vpop.f32.mrb[65].mxu0 }
 0x6bb   :  { %v6420_v50 = vadd.f32 %v6419_v24, %v6418_v11  ;;  %6971 = vmatpush3.bf16.msra.mxu0 %v6970_v55 }
 0x6bc   :  { %6972 = vmatprep.subr.bf16.mxu0 %v11953_v63 }
 0x6bd   :  { %5786 = vst [vmem:[#allocation2 + $0x10] sm:$0xff] %v6420_v50  ;;  %v6421_v1 = vpop.f32.mrb[66].mxu0 }
 0x6be   :  { %v6422_v51 = vpop.f32.mrb[67].mxu0 }
 0x6bf   :  { %v6423_v23 = vadd.f32 %v6422_v51, %v6421_v1 }
 0x6c1   :  { %5787 = vst [vmem:[#allocation2 + $0x18] sm:$0xff] %v6423_v23  ;;  %v6973_v20 = vpack.c.bf16 %v6423_v23, %v6420_v50 }
 0x6c3   :  { %6974 = vmatpush3.bf16.msra.mxu0 %v6973_v20 }
 0x6c6   :  { %6641 = vmatmul.mubr.msk.f32.vlgmr.msra.gmra.mrb[68].mxu0 %vm5795_vm1, %v5788_v47 }
 0x6c7   :  { %7492 = shalt.err (!%p7489_p4)
}
 0x6c8   :  { %s7493_s27 = scalar_lea.hbm %s11916_s8, 512 }
 0x6c9   :  { %p7494_p5 = scmp.ne.s32.totalorder %s11916_s8, %s7493_s27  ;;  %p7497_p6 = scmp.lt.u32.totalorder %s7493_s27, %s11916_s8 }
 0x6cb   :  { %p7499_p7 = pnand %p7497_p6, %p7494_p5 }
 0x6cd   :  { %7502 = shalt.err (!%p7499_p7)
}
 0x6ce   :  { %s7534_s10 = smov 128   ;;  %s7535_s4 = smov 8   ;;  %v5793_v63 = vpop.permute.xlu0 %5792 }
 0x6cf   :  { %5881 = dma.vmem_to_hbm [thread:$0]  %s5876_s23, 512, %s11916_s8, [#allocation3], %s7534_s10, %s7534_s10, %s7535_s4  }
 0x6d0   :  { %s7536_s13 = smov [#allocation4]  }
 0x6d1   :  { %s5888_s14 = sshll.u32 %s7536_s13, 4  ;;  %s5889_s14 = int_to_ptr.vmem [resolvable:$true] %s5888_s14 }
 0x6d2   :  { %s7503_s3 = scalar_lea.vmem %s5889_s14, 128  ;;  %p7508_p9 = scmp.lt.s32.totalorder %s5889_s14, %s5889_s14 }
 0x6d3   :  { %p7504_p8 = scmp.ne.s32.totalorder %s5889_s14, %s7503_s3  ;;  %p7509_p10 = scmp.lt.s32.totalorder %s7503_s3, %s7503_s3 }
 0x6d5   :  { %p7510_p11 = por %p7509_p10, %p7508_p9 }
 0x6d7   :  { %p7511_p12 = pnand %p7510_p11, %p7504_p8 }
 0x799   :  { %v5865_v46 = vpop.f32.mrb[68].mxu0 }
 0x79a   :  { %v5866_v3 = vadd.f32 %v5865_v46, %v5793_v63  ;;  %v6642_v26 = vpop.f32.mrb[69].mxu0 }
 0x79c   :  { %5869 = vst [vmem:[#allocation4] sm:$0xff] %v5866_v3 }
 0x79d   :  { %7514 = shalt.err (!%p7511_p12)
}
 0x79e   :  { %s7515_s1 = scalar_lea.hbm %s11917_s9, 128 }
 0x79f   :  { %p7516_p13 = scmp.ne.s32.totalorder %s11917_s9, %s7515_s1  ;;  %p7519_p0 = scmp.lt.u32.totalorder %s7515_s1, %s11917_s9 }
 0x7a1   :  { %p7521_p1 = pnand %p7519_p0, %p7516_p13 }
 0x7a3   :  { %7524 = shalt.err (!%p7521_p1)
}
 0x7a4   :  { %5891 = dma.vmem_to_hbm [thread:$0]  %s5889_s14, 128, %s11917_s9, [#allocation5]  }
 0x7a5   :  { %7525 = dma.done.wait [#allocation3], 512  }
 0x7a6   :  { %7526 = vsyncadd [#allocation3], 4294966784 }
 0x7a7   :  { %7527 = dma.done.wait [#allocation5], 128  }
 0x7a8   :  { %7528 = vsyncadd [#allocation5], 4294967168 }
 0x7a9   :  { %5898 = vsyncpa [#allocation3], 1 }
 0x7aa   :  { %5899 = vsyncpa [#allocation5], 1 }

</bundles_post_ra>
